<compile_context>
chip_gen: v7x
topology: tpu7x:2x2x1
jax: 0.10.0
libtpu: 0.0.40
codegen_flags: <defaults>
</compile_context>

<pallas_src>
import jax
import jax.numpy as jnp
from jax.experimental import pallas as pl
from jax.experimental.pallas import tpu as pltpu


LATENT_SIZE = 125            # latent_size + 3 == 128 (lane-aligned)
D_IN = LATENT_SIZE + 3       # 128
HIDDEN = 512
SKIP_OUT = HIDDEN - D_IN     # 384, output width of lin3 before the skip concat


def _deepsdf_kernel(x_ref,
                    w0, b0, w1, b1, w2, b2, w3, b3,
                    w4a, w4b, b4, w5, b5, w6, b6, w7, b7,
                    w8row, b8,
                    out_ref):
    """Full decoder MLP for one batch tile, entirely in VMEM.

    Weights are bf16; matmuls accumulate in f32 on the MXU; bias+ReLU run on
    the f32 accumulator (VPU), then cast back to bf16 for the next layer
    (except lin7, whose f32 output feeds the 512->1 head directly).
    """
    x_bf = x_ref[...]                                    # (TB, 128) bf16

    def lin_relu_bf16(h_bf, w_ref, b_ref):
        y = jnp.dot(h_bf, w_ref[...], preferred_element_type=jnp.float32)
        y = jnp.maximum(y + b_ref[...], 0.0)             # f32 epilogue
        return y.astype(jnp.bfloat16)                    # dropout = id (eval)

    h = lin_relu_bf16(x_bf, w0, b0)                      # (TB, 512)
    h = lin_relu_bf16(h, w1, b1)                         # (TB, 512)
    h = lin_relu_bf16(h, w2, b2)                         # (TB, 512)
    h = lin_relu_bf16(h, w3, b3)                         # (TB, 384)

    # Skip connection without materializing concat([h, x_in], 1):
    # concat([h, x_in]) @ w4  ==  h @ w4[:384] + x_in @ w4[384:]
    y4 = (jnp.dot(h, w4a[...], preferred_element_type=jnp.float32)
          + jnp.dot(x_bf, w4b[...], preferred_element_type=jnp.float32)
          + b4[...])
    h = jnp.maximum(y4, 0.0).astype(jnp.bfloat16)        # (TB, 512)

    h = lin_relu_bf16(h, w5, b5)                         # (TB, 512)
    h = lin_relu_bf16(h, w6, b6)                         # (TB, 512)

    # lin7: keep the ReLU output in f32 — no bf16 round-trip before the head.
    y7 = jnp.dot(h, w7[...], preferred_element_type=jnp.float32) + b7[...]
    h32 = jnp.maximum(y7, 0.0)                           # (TB, 512) f32

    # Final layer (512 -> 1): VPU multiply + cross-lane reduce (no N=1 MXU pass).
    y = jnp.sum(h32 * w8row[...], axis=-1, keepdims=True) + b8[...]
    out_ref[...] = y.astype(out_ref.dtype)               # (TB, 1)


def _pick_tile_b(batch, *, max_tile=1024, min_tile=256):
    """Largest 256-multiple batch tile that keeps the grid >= 2 steps
    (so both v7x TensorCores get work) whenever the batch allows it."""
    if batch <= min_tile:
        return min_tile                               # grid collapses to 1; unavoidable
    half = -(-batch // 2)                             # ceil(batch / 2)
    tile = -(-half // min_tile) * min_tile            # round up to a 256 multiple
    return min(max_tile, tile)


def deepsdf_forward(x_in, params, *, tile_b=None):
    """x_in: (B, D_IN) f32  ->  (B, 1) f32. Handles B not divisible by tile_b."""
    B_orig, d = x_in.shape
    assert d == D_IN

    if tile_b is None:
        tile_b = _pick_tile_b(B_orig)

    pad = (-B_orig) % tile_b
    if pad:
        x_in = jnp.pad(x_in, ((0, pad), (0, 0)))
    B = x_in.shape[0]

    x_bf = x_in.astype(jnp.bfloat16)

    # Flatten params in kernel-call order: bf16 weights, f32 biases,
    # w4 split for the concat-free skip, w8 passed as a (1, 512) f32 row.
    ws = [w for w, _ in params]
    bs = [b for _, b in params]
    w4a = ws[4][:SKIP_OUT, :]
    w4b = ws[4][SKIP_OUT:, :]

    flat = []
    for li in range(4):                                   # lin0..lin3
        flat += [ws[li].astype(jnp.bfloat16), bs[li]]
    flat += [w4a.astype(jnp.bfloat16),                    # lin4 (skip, split)
             w4b.astype(jnp.bfloat16), bs[4]]
    for li in range(5, 8):                                # lin5..lin7
        flat += [ws[li].astype(jnp.bfloat16), bs[li]]
    flat += [ws[8].T.astype(jnp.float32), bs[8]]          # lin8 as (1,512) row

    def resident_spec(a):
        # Same block every grid step -> single-buffer it (halves weight VMEM).
        return pl.BlockSpec(a.shape, lambda i: (0, 0),
                            pipeline_mode=pl.Buffered(1))

    in_specs = [pl.BlockSpec((tile_b, D_IN), lambda i: (i, 0))]
    in_specs += [resident_spec(a) for a in flat]

    out = pl.pallas_call(
        _deepsdf_kernel,
        out_shape=jax.ShapeDtypeStruct((B, 1), jnp.float32),
        grid_spec=pltpu.PrefetchScalarGridSpec(
            num_scalar_prefetch=0,
            grid=(B // tile_b,),
            in_specs=in_specs,
            out_specs=pl.BlockSpec((tile_b, 1), lambda i: (i, 0)),
        ),
        compiler_params=pltpu.CompilerParams(
            dimension_semantics=("parallel",),
            # ~3.5 MiB bf16 weights (single-buffered) + double-buffered input
            # tiles + f32 activations (~10 MiB total at tile_b=1024); 32 MiB
            # leaves comfortable headroom even inside v7x's 64 MiB per-TC VMEM.
            vmem_limit_bytes=32 * 1024 * 1024,
        ),
    )(x_bf, *flat)
    return out[:B_orig]


def init_params(key):
    """Deterministic parameter init. Weight-norm is folded into dense weights."""
    layer_dims = [
        (D_IN, HIDDEN),      # lin0
        (HIDDEN, HIDDEN),    # lin1
        (HIDDEN, HIDDEN),    # lin2
        (HIDDEN, SKIP_OUT),  # lin3  (output feeds the skip concat)
        (HIDDEN, HIDDEN),    # lin4
        (HIDDEN, HIDDEN),    # lin5
        (HIDDEN, HIDDEN),    # lin6
        (HIDDEN, HIDDEN),    # lin7
        (HIDDEN, 1),         # lin8  (plain Linear, no weight norm)
    ]
    params = []
    for li, (din, dout) in enumerate(layer_dims):
        key, kv, kg, kb = jax.random.split(key, 4)
        scale = 1.0 / jnp.sqrt(jnp.float32(din))
        v = jax.random.uniform(kv, (din, dout), jnp.float32, -scale, scale)
        b = jax.random.uniform(kb, (1, dout), jnp.float32, -scale, scale)
        if li < 8:
            # weight_norm (torch dim=0) normalizes per output unit:
            # w[:, j] = g[j] * v[:, j] / ||v[:, j]||
            g = jax.random.uniform(kg, (1, dout), jnp.float32, 0.5, 1.5)
            norm = jnp.sqrt(jnp.sum(v * v, axis=0, keepdims=True))
            w = g * v / norm
        else:
            w = v
        params.append((w, b))
    return params


def deepsdf_reference(x_in, params):
    """Pure-JAX reference with identical numerics (bf16 weights, f32 accum,
    f32 lin7 output feeding the final head)."""
    x_bf = x_in.astype(jnp.bfloat16)
    h = x_bf
    for li in range(8):
        w, b = params[li]
        y = jnp.dot(h, w.astype(jnp.bfloat16),
                    preferred_element_type=jnp.float32) + b
        y = jnp.maximum(y, 0.0)
        if li < 7:
            h = y.astype(jnp.bfloat16)
            if li == 3:
                h = jnp.concatenate([h, x_bf], axis=1)
        else:
            h = y                                        # keep f32 for the head
    w8, b8 = params[8]
    return jnp.dot(h, w8) + b8


if __name__ == "__main__":
    key = jax.random.PRNGKey(0)
    key, kx = jax.random.split(key)

    # Deliberately not a multiple of 256 to exercise padding; large enough that
    # the auto tile picker produces a >= 2-step grid (both v7x TCs busy).
    B = 300
    x_in = jax.random.normal(kx, (B, D_IN), jnp.float32)
    params = init_params(key)

    out = deepsdf_forward(x_in, params)
    out = jax.block_until_ready(out)

    ref = deepsdf_reference(x_in, params)
    assert out.shape == (B, 1)
    assert jnp.allclose(out, ref, atol=2e-3, rtol=2e-3), "mismatch vs reference"

    print("KERNEL_OK")
</pallas_src>

<mosaic_0001>
module attributes {stable_mosaic.version = 11 : i64} {
  func.func @_deepsdf_kernel(%arg0: i32, %arg1: memref<256x128xbf16, #tpu.memory_space<vmem>>, %arg2: memref<128x512xbf16, #tpu.memory_space<vmem>>, %arg3: memref<1x512xf32, #tpu.memory_space<vmem>>, %arg4: memref<512x512xbf16, #tpu.memory_space<vmem>>, %arg5: memref<1x512xf32, #tpu.memory_space<vmem>>, %arg6: memref<512x512xbf16, #tpu.memory_space<vmem>>, %arg7: memref<1x512xf32, #tpu.memory_space<vmem>>, %arg8: memref<512x384xbf16, #tpu.memory_space<vmem>>, %arg9: memref<1x384xf32, #tpu.memory_space<vmem>>, %arg10: memref<384x512xbf16, #tpu.memory_space<vmem>>, %arg11: memref<128x512xbf16, #tpu.memory_space<vmem>>, %arg12: memref<1x512xf32, #tpu.memory_space<vmem>>, %arg13: memref<512x512xbf16, #tpu.memory_space<vmem>>, %arg14: memref<1x512xf32, #tpu.memory_space<vmem>>, %arg15: memref<512x512xbf16, #tpu.memory_space<vmem>>, %arg16: memref<1x512xf32, #tpu.memory_space<vmem>>, %arg17: memref<512x512xbf16, #tpu.memory_space<vmem>>, %arg18: memref<1x512xf32, #tpu.memory_space<vmem>>, %arg19: memref<1x512xf32, #tpu.memory_space<vmem>>, %arg20: memref<1x1xf32, #tpu.memory_space<vmem>>, %arg21: memref<256x1xf32, #tpu.memory_space<vmem>>) attributes {dimension_semantics = [#tpu.dimension_semantics<parallel>], iteration_bounds = array<i64: 2>, scalar_prefetch = 0 : i64, scratch_operands = 0 : i64, tpu.core_type = #tpu.core_type<tc>, window_params = [{transform_indices = @transform_0, window_bounds = array<i64: 256, 128>}, {pipeline_mode = #tpu.pipeline_mode<synchronous>, transform_indices = @transform_1, window_bounds = array<i64: 128, 512>}, {pipeline_mode = #tpu.pipeline_mode<synchronous>, transform_indices = @transform_2, window_bounds = array<i64: 1, 512>}, {pipeline_mode = #tpu.pipeline_mode<synchronous>, transform_indices = @transform_3, window_bounds = array<i64: 512, 512>}, {pipeline_mode = #tpu.pipeline_mode<synchronous>, transform_indices = @transform_4, window_bounds = array<i64: 1, 512>}, {pipeline_mode = #tpu.pipeline_mode<synchronous>, transform_indices = @transform_5, window_bounds = array<i64: 512, 512>}, {pipeline_mode = #tpu.pipeline_mode<synchronous>, transform_indices = @transform_6, window_bounds = array<i64: 1, 512>}, {pipeline_mode = #tpu.pipeline_mode<synchronous>, transform_indices = @transform_7, window_bounds = array<i64: 512, 384>}, {pipeline_mode = #tpu.pipeline_mode<synchronous>, transform_indices = @transform_8, window_bounds = array<i64: 1, 384>}, {pipeline_mode = #tpu.pipeline_mode<synchronous>, transform_indices = @transform_9, window_bounds = array<i64: 384, 512>}, {pipeline_mode = #tpu.pipeline_mode<synchronous>, transform_indices = @transform_10, window_bounds = array<i64: 128, 512>}, {pipeline_mode = #tpu.pipeline_mode<synchronous>, transform_indices = @transform_11, window_bounds = array<i64: 1, 512>}, {pipeline_mode = #tpu.pipeline_mode<synchronous>, transform_indices = @transform_12, window_bounds = array<i64: 512, 512>}, {pipeline_mode = #tpu.pipeline_mode<synchronous>, transform_indices = @transform_13, window_bounds = array<i64: 1, 512>}, {pipeline_mode = #tpu.pipeline_mode<synchronous>, transform_indices = @transform_14, window_bounds = array<i64: 512, 512>}, {pipeline_mode = #tpu.pipeline_mode<synchronous>, transform_indices = @transform_15, window_bounds = array<i64: 1, 512>}, {pipeline_mode = #tpu.pipeline_mode<synchronous>, transform_indices = @transform_16, window_bounds = array<i64: 512, 512>}, {pipeline_mode = #tpu.pipeline_mode<synchronous>, transform_indices = @transform_17, window_bounds = array<i64: 1, 512>}, {pipeline_mode = #tpu.pipeline_mode<synchronous>, transform_indices = @transform_18, window_bounds = array<i64: 1, 512>}, {pipeline_mode = #tpu.pipeline_mode<synchronous>, transform_indices = @transform_19, window_bounds = array<i64: 1, 1>}, {transform_indices = @transform_20, window_bounds = array<i64: 256, 1>}]} {
    %c0 = arith.constant 0 : index
    %c0_0 = arith.constant 0 : index
    %0 = vector.load %arg1[%c0, %c0_0] : memref<256x128xbf16, #tpu.memory_space<vmem>>, vector<256x128xbf16>
    %c0_1 = arith.constant 0 : index
    %c0_2 = arith.constant 0 : index
    %1 = vector.load %arg2[%c0_1, %c0_2] : memref<128x512xbf16, #tpu.memory_space<vmem>>, vector<128x512xbf16>
    %cst = arith.constant dense<0.000000e+00> : vector<256x512xf32>
    %2 = tpu.matmul %0, %1, %cst {dimension_numbers = #tpu.dot_dimension_numbers<[1], [0], [0], [1], [0, 0, 1, 1], [], []>} : vector<256x128xbf16>, vector<128x512xbf16>, vector<256x512xf32> -> vector<256x512xf32>
    %c0_3 = arith.constant 0 : index
    %c0_4 = arith.constant 0 : index
    %3 = vector.load %arg3[%c0_3, %c0_4] : memref<1x512xf32, #tpu.memory_space<vmem>>, vector<1x512xf32>
    %4 = vector.broadcast %3 : vector<1x512xf32> to vector<256x512xf32>
    %5 = arith.addf %2, %4 : vector<256x512xf32>
    %cst_5 = arith.constant 0.000000e+00 : f32
    %6 = vector.broadcast %cst_5 : f32 to vector<256x512xf32>
    %7 = arith.maximumf %5, %6 : vector<256x512xf32>
    %8 = arith.truncf %7 : vector<256x512xf32> to vector<256x512xbf16>
    %c0_6 = arith.constant 0 : index
    %c0_7 = arith.constant 0 : index
    %9 = vector.load %arg4[%c0_6, %c0_7] : memref<512x512xbf16, #tpu.memory_space<vmem>>, vector<512x512xbf16>
    %cst_8 = arith.constant dense<0.000000e+00> : vector<256x512xf32>
    %10 = tpu.matmul %8, %9, %cst_8 {dimension_numbers = #tpu.dot_dimension_numbers<[1], [0], [0], [1], [0, 0, 1, 1], [], []>} : vector<256x512xbf16>, vector<512x512xbf16>, vector<256x512xf32> -> vector<256x512xf32>
    %c0_9 = arith.constant 0 : index
    %c0_10 = arith.constant 0 : index
    %11 = vector.load %arg5[%c0_9, %c0_10] : memref<1x512xf32, #tpu.memory_space<vmem>>, vector<1x512xf32>
    %12 = vector.broadcast %11 : vector<1x512xf32> to vector<256x512xf32>
    %13 = arith.addf %10, %12 : vector<256x512xf32>
    %cst_11 = arith.constant 0.000000e+00 : f32
    %14 = vector.broadcast %cst_11 : f32 to vector<256x512xf32>
    %15 = arith.maximumf %13, %14 : vector<256x512xf32>
    %16 = arith.truncf %15 : vector<256x512xf32> to vector<256x512xbf16>
    %c0_12 = arith.constant 0 : index
    %c0_13 = arith.constant 0 : index
    %17 = vector.load %arg6[%c0_12, %c0_13] : memref<512x512xbf16, #tpu.memory_space<vmem>>, vector<512x512xbf16>
    %cst_14 = arith.constant dense<0.000000e+00> : vector<256x512xf32>
    %18 = tpu.matmul %16, %17, %cst_14 {dimension_numbers = #tpu.dot_dimension_numbers<[1], [0], [0], [1], [0, 0, 1, 1], [], []>} : vector<256x512xbf16>, vector<512x512xbf16>, vector<256x512xf32> -> vector<256x512xf32>
    %c0_15 = arith.constant 0 : index
    %c0_16 = arith.constant 0 : index
    %19 = vector.load %arg7[%c0_15, %c0_16] : memref<1x512xf32, #tpu.memory_space<vmem>>, vector<1x512xf32>
    %20 = vector.broadcast %19 : vector<1x512xf32> to vector<256x512xf32>
    %21 = arith.addf %18, %20 : vector<256x512xf32>
    %cst_17 = arith.constant 0.000000e+00 : f32
    %22 = vector.broadcast %cst_17 : f32 to vector<256x512xf32>
    %23 = arith.maximumf %21, %22 : vector<256x512xf32>
    %24 = arith.truncf %23 : vector<256x512xf32> to vector<256x512xbf16>
    %c0_18 = arith.constant 0 : index
    %c0_19 = arith.constant 0 : index
    %25 = vector.load %arg8[%c0_18, %c0_19] : memref<512x384xbf16, #tpu.memory_space<vmem>>, vector<512x384xbf16>
    %cst_20 = arith.constant dense<0.000000e+00> : vector<256x384xf32>
    %26 = tpu.matmul %24, %25, %cst_20 {dimension_numbers = #tpu.dot_dimension_numbers<[1], [0], [0], [1], [0, 0, 1, 1], [], []>} : vector<256x512xbf16>, vector<512x384xbf16>, vector<256x384xf32> -> vector<256x384xf32>
    %c0_21 = arith.constant 0 : index
    %c0_22 = arith.constant 0 : index
    %27 = vector.load %arg9[%c0_21, %c0_22] : memref<1x384xf32, #tpu.memory_space<vmem>>, vector<1x384xf32>
    %28 = vector.broadcast %27 : vector<1x384xf32> to vector<256x384xf32>
    %29 = arith.addf %26, %28 : vector<256x384xf32>
    %cst_23 = arith.constant 0.000000e+00 : f32
    %30 = vector.broadcast %cst_23 : f32 to vector<256x384xf32>
    %31 = arith.maximumf %29, %30 : vector<256x384xf32>
    %32 = arith.truncf %31 : vector<256x384xf32> to vector<256x384xbf16>
    %c0_24 = arith.constant 0 : index
    %c0_25 = arith.constant 0 : index
    %33 = vector.load %arg10[%c0_24, %c0_25] : memref<384x512xbf16, #tpu.memory_space<vmem>>, vector<384x512xbf16>
    %cst_26 = arith.constant dense<0.000000e+00> : vector<256x512xf32>
    %34 = tpu.matmul %32, %33, %cst_26 {dimension_numbers = #tpu.dot_dimension_numbers<[1], [0], [0], [1], [0, 0, 1, 1], [], []>} : vector<256x384xbf16>, vector<384x512xbf16>, vector<256x512xf32> -> vector<256x512xf32>
    %c0_27 = arith.constant 0 : index
    %c0_28 = arith.constant 0 : index
    %35 = vector.load %arg11[%c0_27, %c0_28] : memref<128x512xbf16, #tpu.memory_space<vmem>>, vector<128x512xbf16>
    %cst_29 = arith.constant dense<0.000000e+00> : vector<256x512xf32>
    %36 = tpu.matmul %0, %35, %cst_29 {dimension_numbers = #tpu.dot_dimension_numbers<[1], [0], [0], [1], [0, 0, 1, 1], [], []>} : vector<256x128xbf16>, vector<128x512xbf16>, vector<256x512xf32> -> vector<256x512xf32>
    %37 = arith.addf %34, %36 : vector<256x512xf32>
    %c0_30 = arith.constant 0 : index
    %c0_31 = arith.constant 0 : index
    %38 = vector.load %arg12[%c0_30, %c0_31] : memref<1x512xf32, #tpu.memory_space<vmem>>, vector<1x512xf32>
    %39 = vector.broadcast %38 : vector<1x512xf32> to vector<256x512xf32>
    %40 = arith.addf %37, %39 : vector<256x512xf32>
    %cst_32 = arith.constant 0.000000e+00 : f32
    %41 = vector.broadcast %cst_32 : f32 to vector<256x512xf32>
    %42 = arith.maximumf %40, %41 : vector<256x512xf32>
    %43 = arith.truncf %42 : vector<256x512xf32> to vector<256x512xbf16>
    %c0_33 = arith.constant 0 : index
    %c0_34 = arith.constant 0 : index
    %44 = vector.load %arg13[%c0_33, %c0_34] : memref<512x512xbf16, #tpu.memory_space<vmem>>, vector<512x512xbf16>
    %cst_35 = arith.constant dense<0.000000e+00> : vector<256x512xf32>
    %45 = tpu.matmul %43, %44, %cst_35 {dimension_numbers = #tpu.dot_dimension_numbers<[1], [0], [0], [1], [0, 0, 1, 1], [], []>} : vector<256x512xbf16>, vector<512x512xbf16>, vector<256x512xf32> -> vector<256x512xf32>
    %c0_36 = arith.constant 0 : index
    %c0_37 = arith.constant 0 : index
    %46 = vector.load %arg14[%c0_36, %c0_37] : memref<1x512xf32, #tpu.memory_space<vmem>>, vector<1x512xf32>
    %47 = vector.broadcast %46 : vector<1x512xf32> to vector<256x512xf32>
    %48 = arith.addf %45, %47 : vector<256x512xf32>
    %cst_38 = arith.constant 0.000000e+00 : f32
    %49 = vector.broadcast %cst_38 : f32 to vector<256x512xf32>
    %50 = arith.maximumf %48, %49 : vector<256x512xf32>
    %51 = arith.truncf %50 : vector<256x512xf32> to vector<256x512xbf16>
    %c0_39 = arith.constant 0 : index
    %c0_40 = arith.constant 0 : index
    %52 = vector.load %arg15[%c0_39, %c0_40] : memref<512x512xbf16, #tpu.memory_space<vmem>>, vector<512x512xbf16>
    %cst_41 = arith.constant dense<0.000000e+00> : vector<256x512xf32>
    %53 = tpu.matmul %51, %52, %cst_41 {dimension_numbers = #tpu.dot_dimension_numbers<[1], [0], [0], [1], [0, 0, 1, 1], [], []>} : vector<256x512xbf16>, vector<512x512xbf16>, vector<256x512xf32> -> vector<256x512xf32>
    %c0_42 = arith.constant 0 : index
    %c0_43 = arith.constant 0 : index
    %54 = vector.load %arg16[%c0_42, %c0_43] : memref<1x512xf32, #tpu.memory_space<vmem>>, vector<1x512xf32>
    %55 = vector.broadcast %54 : vector<1x512xf32> to vector<256x512xf32>
    %56 = arith.addf %53, %55 : vector<256x512xf32>
    %cst_44 = arith.constant 0.000000e+00 : f32
    %57 = vector.broadcast %cst_44 : f32 to vector<256x512xf32>
    %58 = arith.maximumf %56, %57 : vector<256x512xf32>
    %59 = arith.truncf %58 : vector<256x512xf32> to vector<256x512xbf16>
    %c0_45 = arith.constant 0 : index
    %c0_46 = arith.constant 0 : index
    %60 = vector.load %arg17[%c0_45, %c0_46] : memref<512x512xbf16, #tpu.memory_space<vmem>>, vector<512x512xbf16>
    %cst_47 = arith.constant dense<0.000000e+00> : vector<256x512xf32>
    %61 = tpu.matmul %59, %60, %cst_47 {dimension_numbers = #tpu.dot_dimension_numbers<[1], [0], [0], [1], [0, 0, 1, 1], [], []>} : vector<256x512xbf16>, vector<512x512xbf16>, vector<256x512xf32> -> vector<256x512xf32>
    %c0_48 = arith.constant 0 : index
    %c0_49 = arith.constant 0 : index
    %62 = vector.load %arg18[%c0_48, %c0_49] : memref<1x512xf32, #tpu.memory_space<vmem>>, vector<1x512xf32>
    %63 = vector.broadcast %62 : vector<1x512xf32> to vector<256x512xf32>
    %64 = arith.addf %61, %63 : vector<256x512xf32>
    %cst_50 = arith.constant 0.000000e+00 : f32
    %65 = vector.broadcast %cst_50 : f32 to vector<256x512xf32>
    %66 = arith.maximumf %64, %65 : vector<256x512xf32>
    %c0_51 = arith.constant 0 : index
    %c0_52 = arith.constant 0 : index
    %67 = vector.load %arg19[%c0_51, %c0_52] : memref<1x512xf32, #tpu.memory_space<vmem>>, vector<1x512xf32>
    %68 = vector.broadcast %67 : vector<1x512xf32> to vector<256x512xf32>
    %69 = arith.mulf %66, %68 : vector<256x512xf32>
    %cst_53 = arith.constant dense<0.000000e+00> : vector<256xf32>
    %70 = vector.multi_reduction <add>, %69, %cst_53 [1] : vector<256x512xf32> to vector<256xf32>
    %71 = vector.shape_cast %70 : vector<256xf32> to vector<256x1xf32>
    %c0_54 = arith.constant 0 : index
    %c0_55 = arith.constant 0 : index
    %72 = vector.load %arg20[%c0_54, %c0_55] : memref<1x1xf32, #tpu.memory_space<vmem>>, vector<1x1xf32>
    %73 = vector.broadcast %72 : vector<1x1xf32> to vector<256x1xf32>
    %74 = arith.addf %71, %73 : vector<256x1xf32>
    %c0_56 = arith.constant 0 : index
    %c0_57 = arith.constant 0 : index
    %75 = vector.load %arg21[%c0_56, %c0_57] : memref<256x1xf32, #tpu.memory_space<vmem>>, vector<256x1xf32>
    tpu.vector_store %arg21[%c0_56, %c0_57], %74 {strides = array<i32>} : memref<256x1xf32, #tpu.memory_space<vmem>>, vector<256x1xf32>,
    return
  }
  func.func @transform_0(%arg0: i32) -> (i32, i32) {
    %c0_i32 = arith.constant 0 : i32
    %c0_i32_0 = arith.constant 0 : i32
    return %arg0, %c0_i32 : i32, i32
  }
  func.func @transform_1(%arg0: i32) -> (i32, i32) {
    %c0_i32 = arith.constant 0 : i32
    %c0_i32_0 = arith.constant 0 : i32
    %c0_i32_1 = arith.constant 0 : i32
    return %c0_i32, %c0_i32_0 : i32, i32
  }
  func.func @transform_2(%arg0: i32) -> (i32, i32) {
    %c0_i32 = arith.constant 0 : i32
    %c0_i32_0 = arith.constant 0 : i32
    %c0_i32_1 = arith.constant 0 : i32
    return %c0_i32, %c0_i32_0 : i32, i32
  }
  func.func @transform_3(%arg0: i32) -> (i32, i32) {
    %c0_i32 = arith.constant 0 : i32
    %c0_i32_0 = arith.constant 0 : i32
    %c0_i32_1 = arith.constant 0 : i32
    return %c0_i32, %c0_i32_0 : i32, i32
  }
  func.func @transform_4(%arg0: i32) -> (i32, i32) {
    %c0_i32 = arith.constant 0 : i32
    %c0_i32_0 = arith.constant 0 : i32
    %c0_i32_1 = arith.constant 0 : i32
    return %c0_i32, %c0_i32_0 : i32, i32
  }
  func.func @transform_5(%arg0: i32) -> (i32, i32) {
    %c0_i32 = arith.constant 0 : i32
    %c0_i32_0 = arith.constant 0 : i32
    %c0_i32_1 = arith.constant 0 : i32
    return %c0_i32, %c0_i32_0 : i32, i32
  }
  func.func @transform_6(%arg0: i32) -> (i32, i32) {
    %c0_i32 = arith.constant 0 : i32
    %c0_i32_0 = arith.constant 0 : i32
    %c0_i32_1 = arith.constant 0 : i32
    return %c0_i32, %c0_i32_0 : i32, i32
  }
  func.func @transform_7(%arg0: i32) -> (i32, i32) {
    %c0_i32 = arith.constant 0 : i32
    %c0_i32_0 = arith.constant 0 : i32
    %c0_i32_1 = arith.constant 0 : i32
    return %c0_i32, %c0_i32_0 : i32, i32
  }
  func.func @transform_8(%arg0: i32) -> (i32, i32) {
    %c0_i32 = arith.constant 0 : i32
    %c0_i32_0 = arith.constant 0 : i32
    %c0_i32_1 = arith.constant 0 : i32
    return %c0_i32, %c0_i32_0 : i32, i32
  }
  func.func @transform_9(%arg0: i32) -> (i32, i32) {
    %c0_i32 = arith.constant 0 : i32
    %c0_i32_0 = arith.constant 0 : i32
    %c0_i32_1 = arith.constant 0 : i32
    return %c0_i32, %c0_i32_0 : i32, i32
  }
  func.func @transform_10(%arg0: i32) -> (i32, i32) {
    %c0_i32 = arith.constant 0 : i32
    %c0_i32_0 = arith.constant 0 : i32
    %c0_i32_1 = arith.constant 0 : i32
    return %c0_i32, %c0_i32_0 : i32, i32
  }
  func.func @transform_11(%arg0: i32) -> (i32, i32) {
    %c0_i32 = arith.constant 0 : i32
    %c0_i32_0 = arith.constant 0 : i32
    %c0_i32_1 = arith.constant 0 : i32
    return %c0_i32, %c0_i32_0 : i32, i32
  }
  func.func @transform_12(%arg0: i32) -> (i32, i32) {
    %c0_i32 = arith.constant 0 : i32
    %c0_i32_0 = arith.constant 0 : i32
    %c0_i32_1 = arith.constant 0 : i32
    return %c0_i32, %c0_i32_0 : i32, i32
  }
  func.func @transform_13(%arg0: i32) -> (i32, i32) {
    %c0_i32 = arith.constant 0 : i32
    %c0_i32_0 = arith.constant 0 : i32
    %c0_i32_1 = arith.constant 0 : i32
    return %c0_i32, %c0_i32_0 : i32, i32
  }
  func.func @transform_14(%arg0: i32) -> (i32, i32) {
    %c0_i32 = arith.constant 0 : i32
    %c0_i32_0 = arith.constant 0 : i32
    %c0_i32_1 = arith.constant 0 : i32
    return %c0_i32, %c0_i32_0 : i32, i32
  }
  func.func @transform_15(%arg0: i32) -> (i32, i32) {
    %c0_i32 = arith.constant 0 : i32
    %c0_i32_0 = arith.constant 0 : i32
    %c0_i32_1 = arith.constant 0 : i32
    return %c0_i32, %c0_i32_0 : i32, i32
  }
  func.func @transform_16(%arg0: i32) -> (i32, i32) {
    %c0_i32 = arith.constant 0 : i32
    %c0_i32_0 = arith.constant 0 : i32
    %c0_i32_1 = arith.constant 0 : i32
    return %c0_i32, %c0_i32_0 : i32, i32
  }
  func.func @transform_17(%arg0: i32) -> (i32, i32) {
    %c0_i32 = arith.constant 0 : i32
    %c0_i32_0 = arith.constant 0 : i32
    %c0_i32_1 = arith.constant 0 : i32
    return %c0_i32, %c0_i32_0 : i32, i32
  }
  func.func @transform_18(%arg0: i32) -> (i32, i32) {
    %c0_i32 = arith.constant 0 : i32
    %c0_i32_0 = arith.constant 0 : i32
    %c0_i32_1 = arith.constant 0 : i32
    return %c0_i32, %c0_i32_0 : i32, i32
  }
  func.func @transform_19(%arg0: i32) -> (i32, i32) {
    %c0_i32 = arith.constant 0 : i32
    %c0_i32_0 = arith.constant 0 : i32
    %c0_i32_1 = arith.constant 0 : i32
    return %c0_i32, %c0_i32_0 : i32, i32
  }
  func.func @transform_20(%arg0: i32) -> (i32, i32) {
    %c0_i32 = arith.constant 0 : i32
    %c0_i32_0 = arith.constant 0 : i32
    return %arg0, %c0_i32 : i32, i32
  }
}

</mosaic_0001>

<bundles_post_ra>
// kernel: tpu_custom_call.1
= control target key start
LH: loop header
LB: loop body
LE: loop exit
PB: predicated region body
PF: predicated region fallthrough
CT: control target
= control target key end

     0   :  { %s22486_s0 = inlined_call_operand.hbm [shape: bf16[512,128], index: 0, kind: input, shape index: {}]   ;;  %s22487_s1 = inlined_call_operand.hbm [shape: bf16[128,512], index: 1, kind: input, shape index: {}]   ;;  %s22488_s2 = inlined_call_operand.vmem [shape: f32[1,512], index: 2, kind: input, shape index: {}]   ;;  %s22489_s3 = inlined_call_operand.hbm [shape: bf16[512,512], index: 3, kind: input, shape index: {}]   ;;  %s22490_s4 = inlined_call_operand.vmem [shape: f32[1,512], index: 4, kind: input, shape index: {}]   ;;  %s22491_s5 = inlined_call_operand.hbm [shape: bf16[512,512], index: 5, kind: input, shape index: {}]   ;;  %s22492_s6 = inlined_call_operand.vmem [shape: f32[1,512], index: 6, kind: input, shape index: {}]   ;;  %s22493_s7 = inlined_call_operand.hbm [shape: bf16[512,384], index: 7, kind: input, shape index: {}]   ;;  %s22494_s8 = inlined_call_operand.hbm [shape: f32[1,384], index: 8, kind: input, shape index: {}]   ;;  %s22495_s9 = inlined_call_operand.hbm [shape: bf16[384,512], index: 9, kind: input, shape index: {}]   ;;  %s22496_s10 = inlined_call_operand.hbm [shape: bf16[128,512], index: 10, kind: input, shape index: {}]   ;;  %s22497_s11 = inlined_call_operand.vmem [shape: f32[1,512], index: 11, kind: input, shape index: {}]   ;;  %s22498_s12 = inlined_call_operand.hbm [shape: bf16[512,512], index: 12, kind: input, shape index: {}]   ;;  %s22499_s13 = inlined_call_operand.vmem [shape: f32[1,512], index: 13, kind: input, shape index: {}]   ;;  %s22500_s14 = inlined_call_operand.hbm [shape: bf16[512,512], index: 14, kind: input, shape index: {}]   ;;  %s22501_s15 = inlined_call_operand.vmem [shape: f32[1,512], index: 15, kind: input, shape index: {}]   ;;  %s22502_s16 = inlined_call_operand.hbm [shape: bf16[512,512], index: 16, kind: input, shape index: {}]   ;;  %s22503_s17 = inlined_call_operand.vmem [shape: f32[1,512], index: 17, kind: input, shape index: {}]   ;;  %s22504_s18 = inlined_call_operand.vmem [shape: f32[1,512], index: 18, kind: input, shape index: {}]   ;;  %s22505_s19 = inlined_call_operand.<no memory space> [shape: f32[1,1], index: 19, kind: input, shape index: {}]   ;;  %s22506_s20 = inlined_call_operand.vmem [shape: f32[512,1], index: 20, kind: output, shape index: {}]  }
   0x1   :  { %22521 = sst [smem:[#allocation26_spill]] %s22486_s0  ;;  %v25_v0 = vstv %s22505_s19 }
   0x2   :  { %22522 = sst [smem:[#allocation27_spill]] %s22487_s1  ;;  %26 = vst [vmem:[#allocation2] sm:$0x1] %v25_v0 }
   0x3   :  { %22523 = sst [smem:[#allocation28_spill]] %s22488_s2 }
   0x4   :  { %22524 = sst [smem:[#allocation29_spill]] %s22489_s3 }
   0x5   :  { %22525 = sst [smem:[#allocation30_spill]] %s22490_s4 }
   0x6   :  { %22526 = sst [smem:[#allocation31_spill]] %s22491_s5 }
   0x7   :  { %22527 = sst [smem:[#allocation32_spill]] %s22492_s6 }
   0x8   :  { %22528 = sst [smem:[#allocation33_spill]] %s22494_s8 }
   0x9   :  { %22529 = sst [smem:[#allocation34_spill]] %s22496_s10 }
   0xa   :  { %22530 = sst [smem:[#allocation35_spill]] %s22497_s11 }
   0xb   :  { %22531 = sst [smem:[#allocation36_spill]] %s22499_s13 }
   0xc   :  { %22532 = sst [smem:[#allocation37_spill]] %s22501_s15 }
   0xd   :  { %22533 = sst [smem:[#allocation38_spill]] %s22503_s17 }
   0xe   :  { %22534 = sst [smem:[#allocation39_spill]] %s22504_s18 }
   0xf   :  { %22535 = sst [smem:[#allocation40_spill]] %s22506_s20 }
  0x10   :  { %27 = vsyncpa [#allocation4], 0 }
  0x11   :  { %29 = vsyncpa [#allocation4 + $0x1], 0 }
  0x12   :  { %30 = vsyncpa [#allocation6], 0 }
  0x13   :  { %31 = vsyncpa [#allocation9], 0 }
  0x14   :  { %32 = vsyncpa [#allocation12], 0 }
  0x15   :  { %33 = vsyncpa [#allocation15], 0 }
  0x16   :  { %34 = vsyncpa [#allocation18], 0  ;;  %s19579_s23 = smov 0   ;;  %s19581_s24 = smov 0  }
  0x17   :  { %s19583_s2 = smov 0   ;;  %s19585_s25 = smov 0  }
  0x18 LB: > { %s19453_s19 = smov [#allocation5]   ;;  %s22510_s26 = sadd.s32 4294967295, %s19451_s25   ;;  %s19451_s25 = sphi %s19585_s25, %s22567_s25   ;;  %s19447_s2 = sphi %s19583_s2, %s22566_s2   ;;  %s19443_s24 = sphi %s19581_s24, %s22565_s24   ;;  %s19439_s23 = sphi %s19579_s23, %s22564_s23  }
  0x19   : > { %s508_s3 = sshll.u32 %s19453_s19, 4  ;;  %p14747_p0 = scmp.ge.s32.totalorder %s19451_s25, 1  ;;  %s19608_s3 = int_to_ptr.vmem [resolvable:$true] %s508_s3 }
  0x1a   : > { %p19603_p1 = scmp.eq.s32.totalorder %s22510_s26, 0  ;;  %p496_p2 = scmp.lt.s32.totalorder %s19451_s25, 3 }
  0x1b   : > { %s19454_s4 = smov [#allocation8]   ;;  %s19455_s0 = smov [#allocation11]  }
  0x1c   : > { %s22536_s27 = scalar_select %p19603_p1, 1, 0 }
  0x1d   : > { %p19610_p3 = pnand %p14747_p0, %p496_p2  ;;  %s540_s29 = sshll.u32 %s19454_s4, 4  ;;  %s19622_s29 = int_to_ptr.vmem [resolvable:$true] %s540_s29 }
  0x1e   : > { %s570_s21 = sshll.u32 %s19455_s0, 4  ;;  %s22539_s19 = sld [smem:[#allocation27_spill]]  ;;  %s19624_s21 = int_to_ptr.vmem [resolvable:$true] %s570_s21 }
  0x1f   : > { %s22537_s28 = scalar_select %p19610_p3, 1, 0 }
  0x20   : > { %p17622_p4 = pneg %p19610_p3 }
  0x22   : > { %p19618_p5 = pnand %p17622_p4, %p19603_p1 }
  0x24   : > { %s19087_s26 = scalar_lea.hbm %s22539_s19, 4096  ;;  %p19634_p7 = pneg %p19618_p5 }
  0x25   : > { %p19088_p6 = scmp.ne.s32.totalorder %s22539_s19, %s19087_s26  ;;  %p19094_p10 = scmp.lt.u32.totalorder %s19087_s26, %s22539_s19 }
  0x27   : > { %p19090_p8 = pnand %p19634_p7, %p19088_p6 }
  0x29   : > { %p19091_p9 = pneg %p19090_p8 }
  0x2b   : > { %p19096_p11 = pnand %p19094_p10, %p19091_p9 }
  0x2d   : > { %19099 = shalt.err (!%p19096_p11)
}
  0x2e   : > { %s19100_s18 = scalar_lea.vmem %s19608_s3, 4096  ;;  %p19108_p2 = scmp.lt.s32.totalorder %s19608_s3, %s19608_s3 }
  0x2f   : > { %p19101_p12 = scmp.ne.s32.totalorder %s19608_s3, %s19100_s18  ;;  %p19109_p4 = scmp.lt.s32.totalorder %s19100_s18, %s19100_s18 }
  0x31   : > { %p19103_p13 = pnand %p19101_p12, %p19634_p7  ;;  %p19110_p6 = por %p19109_p4, %p19108_p2 }
  0x33   : > { %p19104_p0 = pneg %p19103_p13 }
  0x35   : > { %p19111_p8 = pnand %p19110_p6, %p19104_p0 }
  0x37   : > { %19114 = shalt.err (!%p19111_p8)
}
  0x38   : > { %s22511_s20 = smov 256   ;;  %s22516_s17 = smov 16  }
  0x39   : > { %17625 = dma.hbm_to_vmem [thread:$0]  (!%p19618_p5), %s22539_s19, 4096, %s19608_s3, [#allocation6], %s22511_s20, %s22511_s20, %s22516_s17  }
  0x3a   : > { %s22541_s5 = sld [smem:[#allocation31_spill]] }
  0x40   : > { %s19115_s18 = scalar_lea.hbm %s22541_s5, 16384 }
  0x41   : > { %p19116_p9 = scmp.ne.s32.totalorder %s22541_s5, %s19115_s18  ;;  %p19122_p12 = scmp.lt.u32.totalorder %s19115_s18, %s22541_s5 }
  0x43   : > { %p19118_p10 = pnand %p19116_p9, %p19634_p7 }
  0x45   : > { %p19119_p11 = pneg %p19118_p10 }
  0x47   : > { %p19124_p13 = pnand %p19122_p12, %p19119_p11 }
  0x49   : > { %19127 = shalt.err (!%p19124_p13)
}
  0x4a   : > { %s19128_s3 = scalar_lea.vmem %s19622_s29, 16384  ;;  %p19136_p6 = scmp.lt.s32.totalorder %s19622_s29, %s19622_s29 }
  0x4b   : > { %p19129_p0 = scmp.ne.s32.totalorder %s19622_s29, %s19128_s3  ;;  %p19137_p8 = scmp.lt.s32.totalorder %s19128_s3, %s19128_s3 }
  0x4d   : > { %p19131_p2 = pnand %p19129_p0, %p19634_p7  ;;  %p19138_p9 = por %p19137_p8, %p19136_p6 }
  0x4f   : > { %p19132_p4 = pneg %p19131_p2 }
  0x51   : > { %p19139_p10 = pnand %p19138_p9, %p19132_p4 }
  0x53   : > { %19142 = shalt.err (!%p19139_p10)
}
  0x54   : > { %17631 = dma.hbm_to_vmem [thread:$0]  (!%p19618_p5), %s22541_s5, 16384, %s19622_s29, [#allocation9], %s22511_s20, %s22511_s20, %s22516_s17  }
  0x55   : > { %s22542_s8 = sld [smem:[#allocation33_spill]] }
  0x5b   : > { %s19143_s26 = scalar_lea.hbm %s22542_s8, 48 }
  0x5c   : > { %p19144_p11 = scmp.ne.s32.totalorder %s22542_s8, %s19143_s26  ;;  %p19150_p0 = scmp.lt.u32.totalorder %s19143_s26, %s22542_s8 }
  0x5e   : > { %p19146_p12 = pnand %p19144_p11, %p19634_p7 }
  0x60   : > { %p19147_p13 = pneg %p19146_p12 }
  0x62   : > { %p19152_p2 = pnand %p19150_p0, %p19147_p13 }
  0x64   : > { %19155 = shalt.err (!%p19152_p2)
}
  0x65   : > { %s19156_s29 = scalar_lea.vmem %s19624_s21, 48  ;;  %s19163_s3 = scalar_lea.vmem %s19624_s21, 64 }
  0x66   : > { %p19157_p4 = scmp.ne.s32.totalorder %s19624_s21, %s19156_s29  ;;  %p19164_p9 = scmp.lt.s32.totalorder %s19624_s21, %s19624_s21 }
  0x67   : > { %p19165_p10 = scmp.lt.s32.totalorder %s19163_s3, %s19156_s29 }
  0x68   : > { %p19159_p6 = pnand %p19157_p4, %p19634_p7 }
  0x69   : > { %p19166_p11 = por %p19165_p10, %p19164_p9 }
  0x6a   : > { %p19160_p8 = pneg %p19159_p6 }
  0x6c   : > { %p19167_p12 = pnand %p19166_p11, %p19160_p8 }
  0x6e   : > { %19170 = shalt.err (!%p19167_p12)
}
  0x6f   : > { %17637 = dma.hbm_to_vmem [thread:$0]  (!%p19618_p5), %s22542_s8, 48, %s19624_s21, [#allocation12]  }
  0x70   : > { %s19458_s13 = smov [#allocation14]   ;;  %s19459_s26 = smov [#allocation17]  }
  0x71   : > { %s593_s15 = sshll.u32 %s19458_s13, 4  ;;  %s625_s1 = sshll.u32 %s19459_s26, 4  ;;  %s594_s15 = int_to_ptr.vmem [resolvable:$true] %s593_s15  ;;  %s626_s1 = int_to_ptr.vmem [resolvable:$true] %s625_s1 }
  0x72   : > { %s22543_s10 = sld [smem:[#allocation34_spill]] }
  0x78   : > { %s19171_s18 = scalar_lea.hbm %s22543_s10, 4096 }
  0x79   : > { %p19172_p13 = scmp.ne.s32.totalorder %s22543_s10, %s19171_s18  ;;  %p19178_p4 = scmp.lt.u32.totalorder %s19171_s18, %s22543_s10 }
  0x7b   : > { %p19174_p0 = pnand %p19172_p13, %p19634_p7 }
  0x7d   : > { %p19175_p2 = pneg %p19174_p0 }
  0x7f   : > { %p19180_p6 = pnand %p19178_p4, %p19175_p2 }
  0x81   : > { %19183 = shalt.err (!%p19180_p6)
}
  0x82   : > { %s19184_s21 = scalar_lea.vmem %s594_s15, 4096  ;;  %p19192_p11 = scmp.lt.s32.totalorder %s594_s15, %s594_s15 }
  0x83   : > { %p19185_p8 = scmp.ne.s32.totalorder %s594_s15, %s19184_s21  ;;  %p19193_p12 = scmp.lt.s32.totalorder %s19184_s21, %s19184_s21 }
  0x85   : > { %p19187_p9 = pnand %p19185_p8, %p19634_p7  ;;  %p19194_p3 = por %p19193_p12, %p19192_p11 }
  0x87   : > { %p19188_p10 = pneg %p19187_p9 }
  0x89   : > { %p19195_p1 = pnand %p19194_p3, %p19188_p10 }
  0x8b   : > { %19198 = shalt.err (!%p19195_p1)
}
  0x8c   : > { %s22544_s11 = smov 256   ;;  %s19199_s0 = scalar_lea.hbm %s22500_s14, 16384 }
  0x8d   : > { %17643 = dma.hbm_to_vmem [thread:$0]  (!%p19618_p5), %s22543_s10, 4096, %s594_s15, [#allocation15], %s22544_s11, %s22544_s11, %s22516_s17  }
  0x8e   : > { %p19200_p3 = scmp.ne.s32.totalorder %s22500_s14, %s19199_s0  ;;  %p19206_p0 = scmp.lt.u32.totalorder %s19199_s0, %s22500_s14 }
  0x90   : > { %p19202_p1 = pnand %p19200_p3, %p19634_p7 }
  0x92   : > { %p19203_p13 = pneg %p19202_p1 }
  0x94   : > { %p19208_p2 = pnand %p19206_p0, %p19203_p13 }
  0x96   : > { %19211 = shalt.err (!%p19208_p2)
}
  0x97   : > { %s19212_s21 = scalar_lea.vmem %s626_s1, 16384  ;;  %p19220_p9 = scmp.lt.s32.totalorder %s626_s1, %s626_s1 }
  0x98   : > { %p19213_p4 = scmp.ne.s32.totalorder %s626_s1, %s19212_s21  ;;  %p19221_p10 = scmp.lt.s32.totalorder %s19212_s21, %s19212_s21 }
  0x9a   : > { %p19215_p6 = pnand %p19213_p4, %p19634_p7  ;;  %p19222_p11 = por %p19221_p10, %p19220_p9 }
  0x9c   : > { %p19216_p8 = pneg %p19215_p6 }
  0x9e   : > { %p19223_p12 = pnand %p19222_p11, %p19216_p8 }
  0xa0   : > { %19226 = shalt.err (!%p19223_p12)
}
  0xa1   : > { %17649 = dma.hbm_to_vmem [thread:$0]  (!%p19618_p5), %s22500_s14, 16384, %s626_s1, [#allocation18], %s22544_s11, %s22544_s11, %s22516_s17  }
  0xa2   : > { %s19460_s13 = smov [#allocation7]   ;;  %s19461_s22 = smov [#allocation10]  }
  0xa3   : > { %s524_s26 = sshll.u32 %s19460_s13, 4  ;;  %s556_s0 = sshll.u32 %s19461_s22, 4  ;;  %s525_s26 = int_to_ptr.vmem [resolvable:$true] %s524_s26  ;;  %s557_s0 = int_to_ptr.vmem [resolvable:$true] %s556_s0 }
  0xa4   : > { %s22545_s3 = sld [smem:[#allocation29_spill]] }
  0xaa   : > { %s19227_s6 = scalar_lea.hbm %s22545_s3, 16384 }
  0xab   : > { %p19228_p3 = scmp.ne.s32.totalorder %s22545_s3, %s19227_s6  ;;  %p19234_p0 = scmp.lt.u32.totalorder %s19227_s6, %s22545_s3 }
  0xad   : > { %p19230_p1 = pnand %p19228_p3, %p19634_p7 }
  0xaf   : > { %p19231_p13 = pneg %p19230_p1 }
  0xb1   : > { %p19236_p2 = pnand %p19234_p0, %p19231_p13 }
  0xb3   : > { %19239 = shalt.err (!%p19236_p2)
}
  0xb4   : > { %s19240_s1 = scalar_lea.vmem %s525_s26, 16384  ;;  %p19248_p9 = scmp.lt.s32.totalorder %s525_s26, %s525_s26 }
  0xb5   : > { %p19241_p4 = scmp.ne.s32.totalorder %s525_s26, %s19240_s1  ;;  %p19249_p10 = scmp.lt.s32.totalorder %s19240_s1, %s19240_s1 }
  0xb7   : > { %p19243_p6 = pnand %p19241_p4, %p19634_p7  ;;  %p19250_p11 = por %p19249_p10, %p19248_p9 }
  0xb9   : > { %p19244_p8 = pneg %p19243_p6 }
  0xbb   : > { %p19251_p12 = pnand %p19250_p11, %p19244_p8 }
  0xbd   : > { %19254 = shalt.err (!%p19251_p12)
}
  0xbe   : > { %17628 = dma.hbm_to_vmem [thread:$0]  (!%p19618_p5), %s22545_s3, 16384, %s525_s26, [#allocation6], %s22544_s11, %s22544_s11, %s22516_s17  }
  0xbf   : > { %s19255_s22 = scalar_lea.hbm %s22493_s7, 12288 }
  0xc0   : > { %p19256_p3 = scmp.ne.s32.totalorder %s22493_s7, %s19255_s22  ;;  %p19262_p0 = scmp.lt.u32.totalorder %s19255_s22, %s22493_s7 }
  0xc2   : > { %p19258_p1 = pnand %p19256_p3, %p19634_p7 }
  0xc4   : > { %p19259_p13 = pneg %p19258_p1 }
  0xc6   : > { %p19264_p2 = pnand %p19262_p0, %p19259_p13 }
  0xc8   : > { %19267 = shalt.err (!%p19264_p2)
}
  0xc9   : > { %s19268_s15 = scalar_lea.vmem %s557_s0, 12288  ;;  %p19276_p9 = scmp.lt.s32.totalorder %s557_s0, %s557_s0 }
  0xca   : > { %p19269_p4 = scmp.ne.s32.totalorder %s557_s0, %s19268_s15  ;;  %p19277_p10 = scmp.lt.s32.totalorder %s19268_s15, %s19268_s15 }
  0xcc   : > { %p19271_p6 = pnand %p19269_p4, %p19634_p7  ;;  %p19278_p11 = por %p19277_p10, %p19276_p9 }
  0xce   : > { %p19272_p8 = pneg %p19271_p6 }
  0xd0   : > { %p19279_p12 = pnand %p19278_p11, %p19272_p8 }
  0xd2   : > { %19282 = shalt.err (!%p19279_p12)
}
  0xd3   : > { %s19462_s26 = smov 192   ;;  %s19463_s1 = smov 12  }
  0xd4   : > { %17634 = dma.hbm_to_vmem [thread:$0]  (!%p19618_p5), %s22493_s7, 12288, %s557_s0, [#allocation9], %s19462_s26, %s19462_s26, %s19463_s1  }
  0xd5   : > { %s19464_s20 = smov [#allocation13]   ;;  %s19465_s22 = smov [#allocation16]  }
  0xd6   : > { %s580_s13 = sshll.u32 %s19464_s20, 4  ;;  %s609_s18 = sshll.u32 %s19465_s22, 4  ;;  %s581_s13 = int_to_ptr.vmem [resolvable:$true] %s580_s13  ;;  %s610_s18 = int_to_ptr.vmem [resolvable:$true] %s609_s18 }
  0xd7   : > { %s19283_s21 = scalar_lea.hbm %s22495_s9, 12288 }
  0xd8   : > { %p19284_p3 = scmp.ne.s32.totalorder %s22495_s9, %s19283_s21  ;;  %p19290_p0 = scmp.lt.u32.totalorder %s19283_s21, %s22495_s9 }
  0xda   : > { %p19286_p1 = pnand %p19284_p3, %p19634_p7 }
  0xdc   : > { %p19287_p13 = pneg %p19286_p1 }
  0xde   : > { %p19292_p2 = pnand %p19290_p0, %p19287_p13 }
  0xe0   : > { %19295 = shalt.err (!%p19292_p2)
}
  0xe1   : > { %s19296_s0 = scalar_lea.vmem %s581_s13, 12288  ;;  %p19304_p9 = scmp.lt.s32.totalorder %s581_s13, %s581_s13 }
  0xe2   : > { %p19297_p4 = scmp.ne.s32.totalorder %s581_s13, %s19296_s0  ;;  %p19305_p10 = scmp.lt.s32.totalorder %s19296_s0, %s19296_s0 }
  0xe4   : > { %p19299_p6 = pnand %p19297_p4, %p19634_p7  ;;  %p19306_p11 = por %p19305_p10, %p19304_p9 }
  0xe6   : > { %p19300_p8 = pneg %p19299_p6 }
  0xe8   : > { %p19307_p12 = pnand %p19306_p11, %p19300_p8 }
  0xea   : > { %19310 = shalt.err (!%p19307_p12)
}
  0xeb   : > { %s22546_s17 = smov 16   ;;  %s19311_s5 = scalar_lea.hbm %s22498_s12, 16384 }
  0xec   : > { %17640 = dma.hbm_to_vmem [thread:$0]  (!%p19618_p5), %s22495_s9, 12288, %s581_s13, [#allocation12], %s22544_s11, %s22544_s11, %s22546_s17  }
  0xed   : > { %p19312_p3 = scmp.ne.s32.totalorder %s22498_s12, %s19311_s5  ;;  %p19318_p0 = scmp.lt.u32.totalorder %s19311_s5, %s22498_s12 }
  0xef   : > { %p19314_p1 = pnand %p19312_p3, %p19634_p7 }
  0xf1   : > { %p19315_p13 = pneg %p19314_p1 }
  0xf3   : > { %p19320_p2 = pnand %p19318_p0, %p19315_p13 }
  0xf5   : > { %19323 = shalt.err (!%p19320_p2)
}
  0xf6   : > { %s19324_s6 = scalar_lea.vmem %s610_s18, 16384  ;;  %p19332_p9 = scmp.lt.s32.totalorder %s610_s18, %s610_s18 }
  0xf7   : > { %p19325_p4 = scmp.ne.s32.totalorder %s610_s18, %s19324_s6  ;;  %p19333_p10 = scmp.lt.s32.totalorder %s19324_s6, %s19324_s6 }
  0xf9   : > { %p19327_p6 = pnand %p19325_p4, %p19634_p7  ;;  %p19334_p11 = por %p19333_p10, %p19332_p9 }
  0xfb   : > { %p19328_p8 = pneg %p19327_p6 }
  0xfd   : > { %p19335_p12 = pnand %p19334_p11, %p19328_p8 }
  0xff   : > { %19338 = shalt.err (!%p19335_p12)
}
 0x100   : > { %17646 = dma.hbm_to_vmem [thread:$0]  (!%p19618_p5), %s22498_s12, 16384, %s610_s18, [#allocation15], %s22544_s11, %s22544_s11, %s22546_s17  }
 0x101   : > { %s19466_s15 = smov [#allocation19]   ;;  %s19339_s26 = scalar_lea.hbm %s22502_s16, 16384 }
 0x102   : > { %s641_s0 = sshll.u32 %s19466_s15, 4  ;;  %p19340_p3 = scmp.ne.s32.totalorder %s22502_s16, %s19339_s26  ;;  %s642_s0 = int_to_ptr.vmem [resolvable:$true] %s641_s0 }
 0x103   : > { %p19346_p0 = scmp.lt.u32.totalorder %s19339_s26, %s22502_s16 }
 0x104   : > { %p19342_p1 = pnand %p19340_p3, %p19634_p7 }
 0x106   : > { %p19343_p13 = pneg %p19342_p1 }
 0x108   : > { %p19348_p2 = pnand %p19346_p0, %p19343_p13 }
 0x10a   : > { %19351 = shalt.err (!%p19348_p2)
}
 0x10b   : > { %s19352_s18 = scalar_lea.vmem %s642_s0, 16384  ;;  %p19360_p9 = scmp.lt.s32.totalorder %s642_s0, %s642_s0 }
 0x10c   : > { %p19353_p4 = scmp.ne.s32.totalorder %s642_s0, %s19352_s18  ;;  %p19361_p10 = scmp.lt.s32.totalorder %s19352_s18, %s19352_s18 }
 0x10e   : > { %p19355_p6 = pnand %p19353_p4, %p19634_p7  ;;  %p19362_p11 = por %p19361_p10, %p19360_p9 }
 0x110   : > { %p19356_p8 = pneg %p19355_p6 }
 0x112   : > { %p19363_p12 = pnand %p19362_p11, %p19356_p8 }
 0x114   : > { %19366 = shalt.err (!%p19363_p12)
}
 0x115   : > { %17652 = dma.hbm_to_vmem [thread:$0]  (!%p19618_p5), %s22502_s16, 16384, %s642_s0, [#allocation18], %s22544_s11, %s22544_s11, %s22546_s17  }
 0x116   : > { %s19853_s30 = sadd.s32 1, %s19451_s25   ;;  %s47_s4 = sadd.s32 1, %s19447_s2 }
 0x117   : > { %s44_s6 = ssub.s32 %s19451_s25, %s19853_s30  ;;  %p54_p7 = scmp.ne.s32.totalorder %s19447_s2, %s19443_s24 }
 0x118   : > { %p45_p3 = scmp.eq.s32.totalorder %s44_s6, 0  ;;  %p55_p1 = scmp.eq.s32.totalorder %s19451_s25, 0 }
 0x119   : > { %p60_p13 = scmp.ne.s32.totalorder %s19443_s24, %s19439_s23  ;;  %p17667_p0 = scmp.lt.s32.totalorder %s19451_s25, 2 }
 0x11a   : > { %s19865_s13 = scalar_select %p45_p3, %s19447_s2, %s47_s4  }
 0x11b   : > { %p56_p2 = por %p55_p1, %p54_p7  ;;  %p22547_p4 = scmp.ne.s32.totalorder %s22536_s27, 0 }
 0x11c   : > { %s664_s15 = sand.u32 1, %s19447_s2   ;;  %s15691_s11 = sshll.u32 %s19451_s25, 11 }
 0x11d   : > { %p19869_p6 = por %p22547_p4, %p60_p13  ;;  %s14759_s17 = sshll.u32 %s664_s15, 7 }
 0x11e   : > { %s22549_s3 = sld [smem:[#allocation26_spill]]  ;;  %s668_s23 = scalar_lea.vmem [#allocation3], %s14759_s17 }
 0x11f   : > { %s675_s1 = sshll.u32 %s668_s23, 4  ;;  %p19880_p5 = pnand %p17667_p0, %p56_p2  ;;  %s19884_s1 = int_to_ptr.vmem [resolvable:$true] %s675_s1 }
 0x120   : > { %s19886_s8 = scalar_lea.sflag [#allocation4], %s664_s15 }
 0x121   : > { %p19369_p9 = pneg %p19880_p5 }
 0x124   : > { %s19878_s26 = scalar_lea.hbm %s22549_s3, %s15691_s11  ;;  %s19372_s29 = scalar_lea.hbm %s22549_s3, 4096 }
 0x125   : > { %s19367_s20 = scalar_lea.hbm %s19878_s26, 2048  ;;  %p19373_p12 = scmp.lt.u32.totalorder %s19878_s26, %s22549_s3 }
 0x126   : > { %p19368_p8 = scmp.ne.s32.totalorder %s19878_s26, %s19367_s20  ;;  %p19374_p7 = scmp.lt.u32.totalorder %s19372_s29, %s19367_s20 }
 0x127   : > { %p19376_p1 = scmp.lt.u32.totalorder %s19367_s20, %s19878_s26 }
 0x128   : > { %p19370_p10 = pnand %p19369_p9, %p19368_p8  ;;  %p19375_p3 = por %p19374_p7, %p19373_p12 }
 0x12a   : > { %p19371_p11 = pneg %p19370_p10  ;;  %p19377_p13 = por %p19376_p1, %p19375_p3 }
 0x12c   : > { %p19378_p0 = pnand %p19377_p13, %p19371_p11 }
 0x12e   : > { %19381 = shalt.err (!%p19378_p0)
}
 0x12f   : > { %s19382_s15 = scalar_lea.vmem %s19884_s1, 2048  ;;  %s19467_s11 = smov [#allocation3]  }
 0x130   : > { %p19383_p2 = scmp.ne.s32.totalorder %s19884_s1, %s19382_s15  ;;  %s19387_s17 = sshll.u32 %s19467_s11, 4  ;;  %s19388_s17 = int_to_ptr.vmem [resolvable:$false] %s19387_s17 }
 0x131   : > { %s19389_s0 = scalar_lea.vmem %s19388_s17, 4096  ;;  %p19390_p10 = scmp.lt.s32.totalorder %s19884_s1, %s19388_s17 }
 0x132   : > { %p19385_p4 = pnand %p19383_p2, %p19369_p9  ;;  %p19391_p12 = scmp.lt.s32.totalorder %s19389_s0, %s19382_s15 }
 0x134   : > { %p19386_p8 = pneg %p19385_p4  ;;  %p19392_p7 = por %p19391_p12, %p19390_p10 }
 0x136   : > { %p19393_p3 = pnand %p19392_p7, %p19386_p8 }
 0x138   : > { %19396 = shalt.err (!%p19393_p3)
}
 0x139   : > { %s19468_s10 = smov 64   ;;  %s19469_s23 = smov 4  }
 0x13a   : > { %17656 = dma.hbm_to_vmem [thread:$0]  (!%p19880_p5), %s19878_s26, 2048, %s19884_s1, %s19886_s8, %s19468_s10, %s19468_s10, %s19469_s23  }
 0x13b   : > { %p22551_p9 = scmp.ne.s32.totalorder %s22537_s28, 0 }
 0x13c   : > { %s689_s20 = sand.u32 (!%p22551_p9), 1, %s19443_s24  }
 0x13d   : > { %687 = sbr.rel (%p22551_p9) target bundleno = 3346 (0xd12), region = 100  ;;  %s14763_s18 = sshll.u32 (!%p22551_p9), %s689_s20, 7 }
 0x13e   : > { %s690_s22 = scalar_lea.sflag (!%p22551_p9), [#allocation4], %s689_s20  ;;  %s19917_s29 = scalar_lea.vmem (!%p22551_p9), [#allocation3], %s14763_s18 }
 0x144   : > { %19414 = dma.done.wait (%p19869_p6), %s690_s22, 2048  }
 0x145   : > { %19416 = vsyncadd (%p19869_p6), %s690_s22, 4294965248  ;;  %p22552_p11 = scmp.ne.s32.totalorder %s22536_s27, 0 }
 0x147   : > { %19418 = dma.done.wait (%p22552_p11), [#allocation6], 20480  }
 0x148   : > { %19420 = vsyncadd (%p22552_p11), [#allocation6], 4294946816 }
 0x149   : > { %19422 = dma.done.wait (%p22552_p11), [#allocation9], 28672  }
 0x14a   : > { %19424 = vsyncadd (%p22552_p11), [#allocation9], 4294938624 }
 0x14b   : > { %19426 = dma.done.wait (%p22552_p11), [#allocation12], 12336  }
 0x14c   : > { %19428 = vsyncadd (%p22552_p11), [#allocation12], 4294954960 }
 0x14d   : > { %19430 = dma.done.wait (%p22552_p11), [#allocation15], 20480  }
 0x14e   : > { %19432 = vsyncadd (%p22552_p11), [#allocation15], 4294946816 }
 0x14f   : > { %19434 = dma.done.wait (%p22552_p11), [#allocation18], 32768  }
 0x150   : > { %19436 = vsyncadd (%p22552_p11), [#allocation18], 4294934528  ;;  %v22519_v1 = vmov 0   ;;  %v17727_v2 = vld [vmem:[#allocation5 + $0x4] ss:$16 sps:$4 sm:$0xff]   ;;  %v17752_v32 = vld [vmem:[%s19917_s29 + $0x8] sm:$0xff]  }
 0x151   : > { %1172 = vmatprep.mubr.bf16.mxu0 %v22519_v1  ;;  %1365 = vmatprep.mubr.bf16.mxu1 %v22519_v1  ;;  %v17729_v3 = vld [vmem:[#allocation5] ss:$16 sps:$4 sm:$0xff]   ;;  %v17730_v4 = vld [vmem:[#allocation5 + $0x24] ss:$16 sps:$4 sm:$0xff]   ;;  %v17759_v14 = vld [vmem:[#allocation5 + $0xc] ss:$16 sps:$4 sm:$0xff]  }
 0x152   : > { %1140 = vmatprep.subr.bf16.mxu0 %v17727_v2  ;;  %v17732_v5 = vld [vmem:[#allocation5 + $0x20] ss:$16 sps:$4 sm:$0xff]   ;;  %v17733_v6 = vld [vmem:[#allocation5 + $0x44] ss:$16 sps:$4 sm:$0xff]   ;;  %v17761_v15 = vld [vmem:[#allocation5 + $0x8] ss:$16 sps:$4 sm:$0xff]   ;;  %1333 = vmatprep.subr.bf16.mxu1 %v17759_v14 }
 0x153   : > { %1141 = vmatpush1.bf16.msra.mxu0 %v17729_v3  ;;  %v17735_v7 = vld [vmem:[#allocation5 + $0x40] ss:$16 sps:$4 sm:$0xff]   ;;  %v17736_v8 = vld [vmem:[#allocation5 + $0x64] ss:$16 sps:$4 sm:$0xff]   ;;  %v17763_v17 = vld [vmem:[#allocation5 + $0x2c] ss:$16 sps:$4 sm:$0xff]   ;;  %1334 = vmatpush1.bf16.msra.mxu1 %v17761_v15 }
 0x154   : > { %1142 = vmatprep.subr.bf16.mxu0 %v17730_v4  ;;  %v17738_v9 = vld [vmem:[#allocation5 + $0x60] ss:$16 sps:$4 sm:$0xff]   ;;  %v17739_v10 = vld [vmem:[#allocation5 + $0x84] ss:$16 sps:$4 sm:$0xff]   ;;  %v17765_v18 = vld [vmem:[#allocation5 + $0x28] ss:$16 sps:$4 sm:$0xff]   ;;  %1335 = vmatprep.subr.bf16.mxu1 %v17763_v17 }
 0x155   : > { %v17741_v11 = vld [vmem:[#allocation5 + $0x80] ss:$16 sps:$4 sm:$0xff]   ;;  %v17742_v12 = vld [vmem:[#allocation5 + $0xa4] ss:$16 sps:$4 sm:$0xff]   ;;  %v17766_v20 = vld [vmem:[#allocation5 + $0x4c] ss:$16 sps:$4 sm:$0xff]  }
 0x156   : > { %v17744_v13 = vld [vmem:[#allocation5 + $0xa0] ss:$16 sps:$4 sm:$0xff]   ;;  %v17745_v16 = vld [vmem:[#allocation5 + $0xc4] ss:$16 sps:$4 sm:$0xff]   ;;  %v17768_v23 = vld [vmem:[#allocation5 + $0x48] ss:$16 sps:$4 sm:$0xff]  }
 0x157   : > { %1143 = vmatpush1.bf16.msra.mxu0 %v17732_v5  ;;  %v17747_v19 = vld [vmem:[#allocation5 + $0xc0] ss:$16 sps:$4 sm:$0xff]   ;;  %v17748_v21 = vld [vmem:[#allocation5 + $0xe4] ss:$16 sps:$4 sm:$0xff]   ;;  %1336 = vmatpush1.bf16.msra.mxu1 %v17765_v18  ;;  %v17770_v24 = vld [vmem:[#allocation5 + $0x6c] ss:$16 sps:$4 sm:$0xff]  }
 0x158   : > { %1144 = vmatprep.subr.bf16.mxu0 %v17733_v6  ;;  %v17750_v22 = vld [vmem:[#allocation5 + $0xe0] ss:$16 sps:$4 sm:$0xff]   ;;  %1337 = vmatprep.subr.bf16.mxu1 %v17766_v20  ;;  %v17772_v26 = vld [vmem:[#allocation5 + $0x68] ss:$16 sps:$4 sm:$0xff]   ;;  %v17773_v27 = vld [vmem:[#allocation5 + $0x8c] ss:$16 sps:$4 sm:$0xff]  }
 0x159   : > { %v17751_v25 = vld [vmem:[%s19917_s29] sm:$0xff]   ;;  %v17775_v28 = vld [vmem:[#allocation5 + $0x88] ss:$16 sps:$4 sm:$0xff]   ;;  %v17777_v31 = vld [vmem:[#allocation5 + $0xac] ss:$16 sps:$4 sm:$0xff]   ;;  %s22553_s21 = sld [smem:[#allocation28_spill]] }
 0x15a   : > { %v17787_v29 = vld [vmem:[#allocation7] ss:$16 sps:$4 sm:$0xff]   ;;  %v17789_v30 = vld [vmem:[#allocation7 + $0x4] ss:$16 sps:$4 sm:$0xff]   ;;  %v17779_v35 = vld [vmem:[#allocation5 + $0xa8] ss:$16 sps:$4 sm:$0xff]  }
 0x15b   : > { %1145 = vmatpush1.bf16.msra.mxu0 %v17735_v7  ;;  %1338 = vmatpush1.bf16.msra.mxu1 %v17768_v23  ;;  %v17793_v33 = vld [vmem:[#allocation7 + $0x24] ss:$16 sps:$4 sm:$0xff]   ;;  %v17791_v34 = vld [vmem:[#allocation7 + $0x20] ss:$16 sps:$4 sm:$0xff]   ;;  %v17780_v36 = vld [vmem:[#allocation5 + $0xcc] ss:$16 sps:$4 sm:$0xff]  }
 0x15c   : > { %1146 = vmatprep.subr.bf16.mxu0 %v17736_v8  ;;  %1339 = vmatprep.subr.bf16.mxu1 %v17770_v24  ;;  %v17797_v37 = vld [vmem:[#allocation7 + $0x44] ss:$16 sps:$4 sm:$0xff]   ;;  %v17782_v38 = vld [vmem:[#allocation5 + $0xc8] ss:$16 sps:$4 sm:$0xff]   ;;  %v17795_v39 = vld [vmem:[#allocation7 + $0x40] ss:$16 sps:$4 sm:$0xff]  }
 0x15d   : > { %v17801_v40 = vld [vmem:[#allocation7 + $0x64] ss:$16 sps:$4 sm:$0xff]   ;;  %v17784_v41 = vld [vmem:[#allocation5 + $0xec] ss:$16 sps:$4 sm:$0xff]   ;;  %v17799_v42 = vld [vmem:[#allocation7 + $0x60] ss:$16 sps:$4 sm:$0xff]  }
 0x15e   : > { %v17753_v43 = vld [vmem:[%s19917_s29 + $0x10] sm:$0xff]   ;;  %v17786_v44 = vld [vmem:[#allocation5 + $0xe8] ss:$16 sps:$4 sm:$0xff]   ;;  %v17820_v48 = vld [vmem:[#allocation7 + $0xc] ss:$16 sps:$4 sm:$0xff]   ;;  %s22554_s5 = sld [smem:[#allocation30_spill]] }
 0x15f   : > { %1147 = vmatpush1.bf16.msra.mxu0 %v17738_v9  ;;  %1340 = vmatpush1.bf16.msra.mxu1 %v17772_v26  ;;  %v17805_v45 = vld [vmem:[#allocation7 + $0x84] ss:$16 sps:$4 sm:$0xff]   ;;  %v17803_v46 = vld [vmem:[#allocation7 + $0x80] ss:$16 sps:$4 sm:$0xff]   ;;  %v17818_v49 = vld [vmem:[#allocation7 + $0x8] ss:$16 sps:$4 sm:$0xff]  }
 0x160   : > { %1148 = vmatprep.subr.bf16.mxu0 %v17739_v10  ;;  %1341 = vmatprep.subr.bf16.mxu1 %v17773_v27  ;;  %v17808_v47 = vld [vmem:[#allocation7 + $0xa4] ss:$16 sps:$4 sm:$0xff]   ;;  %v17823_v50 = vld [vmem:[#allocation7 + $0x2c] ss:$16 sps:$4 sm:$0xff]   ;;  %v17806_v51 = vld [vmem:[#allocation7 + $0xa0] ss:$16 sps:$4 sm:$0xff]  }
 0x161   : > { %v17754_v52 = vld [vmem:[%s19917_s29 + $0x18] sm:$0xff]   ;;  %v17811_v53 = vld [vmem:[#allocation7 + $0xc4] ss:$16 sps:$4 sm:$0xff]   ;;  %v17809_v56 = vld [vmem:[#allocation7 + $0xc0] ss:$16 sps:$4 sm:$0xff]   ;;  %s22555_s6 = sld [smem:[#allocation32_spill]] }
 0x162   : > { %v17821_v54 = vld [vmem:[#allocation7 + $0x28] ss:$16 sps:$4 sm:$0xff]   ;;  %v17829_v55 = vld [vmem:[#allocation7 + $0x4c] ss:$16 sps:$4 sm:$0xff]   ;;  %v17814_v57 = vld [vmem:[#allocation7 + $0xe4] ss:$16 sps:$4 sm:$0xff]  }
 0x163   : > { %1149 = vmatpush1.bf16.msra.mxu0 %v17741_v11  ;;  %1342 = vmatpush1.bf16.msra.mxu1 %v17775_v28  ;;  %v17827_v58 = vld [vmem:[#allocation7 + $0x48] ss:$16 sps:$4 sm:$0xff]   ;;  %v17832_v59 = vld [vmem:[#allocation7 + $0x6c] ss:$16 sps:$4 sm:$0xff]   ;;  %v17812_v60 = vld [vmem:[#allocation7 + $0xe0] ss:$16 sps:$4 sm:$0xff]  }
 0x164   : > { %1150 = vmatprep.subr.bf16.mxu0 %v17742_v12  ;;  %1343 = vmatprep.subr.bf16.mxu1 %v17777_v31  ;;  %v17755_v61 = vld [vmem:[%s19917_s29 + $0x20] sm:$0xff]   ;;  %v17830_v63 = vld [vmem:[#allocation7 + $0x68] ss:$16 sps:$4 sm:$0xff]   ;;  %v17838_v0 = vld [vmem:[#allocation7 + $0x8c] ss:$16 sps:$4 sm:$0xff]   ;;  %s22557_s17 = sld [smem:[#allocation35_spill]] }
 0x165   : > { %v17817_v62 = vld [vmem:[#allocation7 + $0x104] ss:$16 sps:$4 sm:$0xff]   ;;  %v17815_v2 = vld [vmem:[#allocation7 + $0x100] ss:$16 sps:$4 sm:$0xff]   ;;  %v17836_v4 = vld [vmem:[#allocation7 + $0x88] ss:$16 sps:$4 sm:$0xff]  }
 0x166   : > { %v17826_v3 = vld [vmem:[#allocation7 + $0x124] ss:$16 sps:$4 sm:$0xff]   ;;  %v17841_v5 = vld [vmem:[#allocation7 + $0xac] ss:$16 sps:$4 sm:$0xff]   ;;  %v17824_v6 = vld [vmem:[#allocation7 + $0x120] ss:$16 sps:$4 sm:$0xff]  }
 0x167   : > { %1151 = vmatpush1.bf16.msra.mxu0 %v17744_v13  ;;  %1344 = vmatpush1.bf16.msra.mxu1 %v17779_v35  ;;  %v17756_v7 = vld [vmem:[%s19917_s29 + $0x28] sm:$0xff]   ;;  %v17835_v8 = vld [vmem:[#allocation7 + $0x144] ss:$16 sps:$4 sm:$0xff]   ;;  %v17833_v11 = vld [vmem:[#allocation7 + $0x140] ss:$16 sps:$4 sm:$0xff]   ;;  %s22558_s23 = sld [smem:[#allocation36_spill]] }
 0x168   : > { %1152 = vmatprep.subr.bf16.mxu0 %v17745_v16  ;;  %1345 = vmatprep.subr.bf16.mxu1 %v17780_v36  ;;  %v17839_v9 = vld [vmem:[#allocation7 + $0xa8] ss:$16 sps:$4 sm:$0xff]   ;;  %v17847_v10 = vld [vmem:[#allocation7 + $0xcc] ss:$16 sps:$4 sm:$0xff]   ;;  %v17844_v12 = vld [vmem:[#allocation7 + $0x164] ss:$16 sps:$4 sm:$0xff]  }
 0x169   : > { %v17842_v13 = vld [vmem:[#allocation7 + $0x160] ss:$16 sps:$4 sm:$0xff]   ;;  %v17845_v14 = vld [vmem:[#allocation7 + $0xc8] ss:$16 sps:$4 sm:$0xff]   ;;  %v17850_v15 = vld [vmem:[#allocation7 + $0xec] ss:$16 sps:$4 sm:$0xff]  }
 0x16a   : > { %v17757_v16 = vld [vmem:[%s19917_s29 + $0x30] sm:$0xff]   ;;  %v17848_v18 = vld [vmem:[#allocation7 + $0xe8] ss:$16 sps:$4 sm:$0xff]   ;;  %v17859_v23 = vld [vmem:[#allocation7 + $0x12c] ss:$16 sps:$4 sm:$0xff]   ;;  %s22559_s22 = sld [smem:[#allocation37_spill]] }
 0x16b   : > { %1153 = vmatpush1.bf16.msra.mxu0 %v17747_v19  ;;  %1346 = vmatpush1.bf16.msra.mxu1 %v17782_v38  ;;  %v17853_v17 = vld [vmem:[#allocation7 + $0x184] ss:$16 sps:$4 sm:$0xff]   ;;  %v17856_v19 = vld [vmem:[#allocation7 + $0x10c] ss:$16 sps:$4 sm:$0xff]   ;;  %v17851_v20 = vld [vmem:[#allocation7 + $0x180] ss:$16 sps:$4 sm:$0xff]  }
 0x16c   : > { %1154 = vmatprep.subr.bf16.mxu0 %v17748_v21  ;;  %1347 = vmatprep.subr.bf16.mxu1 %v17784_v41  ;;  %v17862_v21 = vld [vmem:[#allocation7 + $0x1a4] ss:$16 sps:$4 sm:$0xff]   ;;  %v17860_v24 = vld [vmem:[#allocation7 + $0x1a0] ss:$16 sps:$4 sm:$0xff]   ;;  %v17857_v27 = vld [vmem:[#allocation7 + $0x128] ss:$16 sps:$4 sm:$0xff]  }
 0x16d   : > { %v17871_v26 = vld [vmem:[#allocation7 + $0x1c4] ss:$16 sps:$4 sm:$0xff]   ;;  %v17865_v28 = vld [vmem:[#allocation7 + $0x14c] ss:$16 sps:$4 sm:$0xff]   ;;  %v17872_v35 = vld [vmem:[#allocation7 + $0x188] ss:$16 sps:$4 sm:$0xff]  }
 0x16e   : > { %v17868_v31 = vld [vmem:[#allocation7 + $0x16c] ss:$16 sps:$4 sm:$0xff]   ;;  %v17875_v38 = vld [vmem:[#allocation7 + $0x1a8] ss:$16 sps:$4 sm:$0xff]   ;;  %s22560_s28 = sld [smem:[#allocation38_spill]]  ;;  %s22561_s1 = sld [smem:[#allocation39_spill]] }
 0x16f   : > { %1155 = vmatpush1.bf16.msra.mxu0 %v17750_v22  ;;  %1348 = vmatpush1.bf16.msra.mxu1 %v17786_v44  ;;  %v17854_v22 = vld [vmem:[#allocation7 + $0x108] ss:$16 sps:$4 sm:$0xff]   ;;  %v17877_v36 = vld [vmem:[#allocation7 + $0x1ac] ss:$16 sps:$4 sm:$0xff]   ;;  %s22563_s11 = sld [smem:[#allocation40_spill]]  ;;  %vm14550_vm0 = vcmask 7168  }
 0x170   : > { %2508 = vmatprep.subr.bf16.mxu0 %v17789_v30  ;;  %2894 = vmatprep.subr.bf16.mxu1 %v17820_v48  ;;  %v17863_v30 = vld [vmem:[#allocation7 + $0x148] ss:$16 sps:$4 sm:$0xff]   ;;  %v17883_v41 = vld [vmem:[#allocation7 + $0x1cc] ss:$16 sps:$4 sm:$0xff]   ;;  %v17889_v48 = vld [vmem:[#allocation7 + $0x204] ss:$16 sps:$4 sm:$0xff]  }
 0x171   : > { %v17886_v44 = vld [vmem:[#allocation7 + $0x1ec] ss:$16 sps:$4 sm:$0xff]  }
 0x172   : > { %1173 = vmatmul.mubr.bf16.vlgmr.msra.gmra.mrb[0].mxu0 %v17751_v25  ;;  %1366 = vmatmul.mubr.bf16.vlgmr.msra.gmra.mrb[0].mxu1 %v17751_v25  ;;  %v17758_v25 = vld [vmem:[%s19917_s29 + $0x38] sm:$0xff]  }
 0x173   : > { %1182 = vmatprep.mubr.bf16.mxu0 %v22519_v1  ;;  %2509 = vmatpush1.bf16.msra.mxu0 %v17787_v29  ;;  %v17869_v29 = vld [vmem:[#allocation7 + $0x1c0] ss:$16 sps:$4 sm:$0xff]  }
 0x174   : > { %2510 = vmatprep.subr.bf16.mxu0 %v17793_v33  ;;  %1375 = vmatprep.mubr.bf16.mxu1 %v22519_v1  ;;  %v17866_v33 = vld [vmem:[#allocation7 + $0x168] ss:$16 sps:$4 sm:$0xff]  }
 0x175   : > { %2895 = vmatpush1.bf16.msra.mxu1 %v17818_v49  ;;  %v17794_v49 = vld [vmem:[%s19917_s29 + $0x68] sm:$0xff]  }
 0x176   : > { %2896 = vmatprep.subr.bf16.mxu1 %v17823_v50  ;;  %v17798_v50 = vld [vmem:[%s19917_s29 + $0x70] sm:$0xff]  }
 0x177   : > { %2511 = vmatpush1.bf16.msra.mxu0 %v17791_v34  ;;  %v17874_v34 = vld [vmem:[#allocation7 + $0x18c] ss:$16 sps:$4 sm:$0xff]  }
 0x178   : > { %2512 = vmatprep.subr.bf16.mxu0 %v17797_v37  ;;  %v17769_v37 = vld [vmem:[%s19917_s29 + $0x48] sm:$0xff]  }
 0x179   : > { %2897 = vmatpush1.bf16.msra.mxu1 %v17821_v54 }
 0x17a   : > { %1183 = vmatmul.mubr.bf16.gmra.mrb[4].mxu0 %v17752_v32  ;;  %2898 = vmatprep.subr.bf16.mxu1 %v17829_v55 }
 0x17b   : > { %1192 = vmatprep.mubr.bf16.mxu0 %v22519_v1  ;;  %2513 = vmatpush1.bf16.msra.mxu0 %v17795_v39  ;;  %v17776_v39 = vld [vmem:[%s19917_s29 + $0x50] sm:$0xff]  }
 0x17c   : > { %2514 = vmatprep.subr.bf16.mxu0 %v17801_v40  ;;  %1376 = vmatmul.mubr.bf16.gmra.mrb[4].mxu1 %v17752_v32  ;;  %v17762_v32 = vld [vmem:[%s19917_s29 + $0x40] sm:$0xff]   ;;  %v17783_v40 = vld [vmem:[%s19917_s29 + $0x58] sm:$0xff]  }
 0x17d   : > { %1385 = vmatprep.mubr.bf16.mxu1 %v22519_v1  ;;  %2899 = vmatpush1.bf16.msra.mxu1 %v17827_v58 }
 0x17e   : > { %2900 = vmatprep.subr.bf16.mxu1 %v17832_v59 }
 0x17f   : > { %2515 = vmatpush1.bf16.msra.mxu0 %v17799_v42  ;;  %v17881_v42 = vld [vmem:[#allocation7 + $0x1c8] ss:$16 sps:$4 sm:$0xff]  }
 0x180   : > { %2516 = vmatprep.subr.bf16.mxu0 %v17805_v45  ;;  %v17878_v45 = vld [vmem:[#allocation7 + $0x1e0] ss:$16 sps:$4 sm:$0xff]  }
 0x181   : > { %2901 = vmatpush1.bf16.msra.mxu1 %v17830_v63 }
 0x182   : > { %1193 = vmatmul.mubr.bf16.gmra.mrb[8].mxu0 %v17753_v43  ;;  %2902 = vmatprep.subr.bf16.mxu1 %v17838_v0 }
 0x183   : > { %1202 = vmatprep.mubr.bf16.mxu0 %v22519_v1  ;;  %2517 = vmatpush1.bf16.msra.mxu0 %v17803_v46  ;;  %v17884_v46 = vld [vmem:[#allocation7 + $0x1e8] ss:$16 sps:$4 sm:$0xff]  }
 0x184   : > { %2518 = vmatprep.subr.bf16.mxu0 %v17808_v47  ;;  %1386 = vmatmul.mubr.bf16.gmra.mrb[8].mxu1 %v17753_v43  ;;  %v17880_v43 = vld [vmem:[#allocation7 + $0x1e4] ss:$16 sps:$4 sm:$0xff]  }
 0x185   : > { %1395 = vmatprep.mubr.bf16.mxu1 %v22519_v1  ;;  %2903 = vmatpush1.bf16.msra.mxu1 %v17836_v4  ;;  %v17790_v47 = vld [vmem:[%s19917_s29 + $0x60] sm:$0xff]  }
 0x186   : > { %2904 = vmatprep.subr.bf16.mxu1 %v17841_v5 }
 0x187   : > { %2519 = vmatpush1.bf16.msra.mxu0 %v17806_v51  ;;  %v17802_v51 = vld [vmem:[%s19917_s29 + $0x78] sm:$0xff]  }
 0x188   : > { %2520 = vmatprep.subr.bf16.mxu0 %v17811_v53  ;;  %v864_v53 = vlaneseq }
 0x189   : > { %2905 = vmatpush1.bf16.msra.mxu1 %v17839_v9  ;;  %v17887_v9 = vld [vmem:[#allocation7 + $0x200] ss:$16 sps:$4 sm:$0xff]  }
 0x18a   : > { %1203 = vmatmul.mubr.bf16.gmra.mrb[12].mxu0 %v17754_v52  ;;  %2906 = vmatprep.subr.bf16.mxu1 %v17847_v10  ;;  %v865_v54 = vshrl.u32 %v864_v53, 7  ;;  %v17914_v10 = vld [vmem:[#allocation7 + $0x208] ss:$16 sps:$4 sm:$0xff]  }
 0x18b   : > { %1212 = vmatprep.mubr.bf16.mxu0 %v22519_v1  ;;  %2521 = vmatpush1.bf16.msra.mxu0 %v17809_v56  ;;  %v862_v56 = vld [vmem:[%s22553_s21] sm:$0xf] }
 0x18c   : > { %2522 = vmatprep.subr.bf16.mxu0 %v17814_v57  ;;  %1396 = vmatmul.mubr.bf16.gmra.mrb[12].mxu1 %v17754_v52  ;;  %v17916_v52 = vld [vmem:[#allocation7 + $0x20c] ss:$16 sps:$4 sm:$0xff]   ;;  %v19991_v55 = vsub.s32 0, %v865_v54  ;;  %v19996_v57 = vsub.s32 1, %v865_v54 }
 0x18d   : > { %1405 = vmatprep.mubr.bf16.mxu1 %v22519_v1  ;;  %2907 = vmatpush1.bf16.msra.mxu1 %v17845_v14 }
 0x18e   : > { %2908 = vmatprep.subr.bf16.mxu1 %v17850_v15  ;;  %v19999_v58 = vrot.slane %v862_v56, %v19991_v55  ;;  %v20002_v59 = vrot.slane %v862_v56, %v19996_v57 }
 0x18f   : > { %2523 = vmatpush1.bf16.msra.mxu0 %v17812_v60 }
 0x190   : > { %2524 = vmatprep.subr.bf16.mxu0 %v17817_v62 }
 0x191   : > { %2909 = vmatpush1.bf16.msra.mxu1 %v17848_v18 }
 0x192   : > { %1213 = vmatmul.mubr.bf16.gmra.mrb[16].mxu0 %v17755_v61  ;;  %2910 = vmatprep.subr.bf16.mxu1 %v17856_v19 }
 0x193   : > { %1222 = vmatprep.mubr.bf16.mxu0 %v22519_v1  ;;  %2525 = vmatpush1.bf16.msra.mxu0 %v17815_v2 }
 0x194   : > { %2526 = vmatprep.subr.bf16.mxu0 %v17826_v3  ;;  %1406 = vmatmul.mubr.bf16.gmra.mrb[16].mxu1 %v17755_v61 }
 0x195   : > { %1415 = vmatprep.mubr.bf16.mxu1 %v22519_v1  ;;  %2911 = vmatpush1.bf16.msra.mxu1 %v17854_v22 }
 0x196   : > { %2912 = vmatprep.subr.bf16.mxu1 %v17859_v23 }
 0x197   : > { %2527 = vmatpush1.bf16.msra.mxu0 %v17824_v6 }
 0x198   : > { %2528 = vmatprep.subr.bf16.mxu0 %v17835_v8 }
 0x199   : > { %2913 = vmatpush1.bf16.msra.mxu1 %v17857_v27  ;;  %v20012_v27 = vsub.s32 2, %v865_v54 }
 0x19a   : > { %1223 = vmatmul.mubr.bf16.gmra.mrb[20].mxu0 %v17756_v7  ;;  %2914 = vmatprep.subr.bf16.mxu1 %v17865_v28 }
 0x19b   : > { %1232 = vmatprep.mubr.bf16.mxu0 %v22519_v1  ;;  %2529 = vmatpush1.bf16.msra.mxu0 %v17833_v11 }
 0x19c   : > { %2530 = vmatprep.subr.bf16.mxu0 %v17844_v12  ;;  %1416 = vmatmul.mubr.bf16.gmra.mrb[20].mxu1 %v17756_v7  ;;  %v17892_v12 = vld [vmem:[#allocation7 + $0x224] ss:$16 sps:$4 sm:$0xff]  }
 0x19d   : > { %1425 = vmatprep.mubr.bf16.mxu1 %v22519_v1  ;;  %2915 = vmatpush1.bf16.msra.mxu1 %v17863_v30  ;;  %v20014_v30 = vsub.s32 3, %v865_v54 }
 0x19e   : > { %2916 = vmatprep.subr.bf16.mxu1 %v17868_v31 }
 0x19f   : > { %2531 = vmatpush1.bf16.msra.mxu0 %v17842_v13  ;;  %v17919_v13 = vld [vmem:[#allocation7 + $0x22c] ss:$16 sps:$4 sm:$0xff]  }
 0x1a0   : > { %2532 = vmatprep.subr.bf16.mxu0 %v17853_v17 }
 0x1a1   : > { %2917 = vmatpush1.bf16.msra.mxu1 %v17866_v33  ;;  %v17893_v33 = vld [vmem:[#allocation7 + $0x240] ss:$16 sps:$4 sm:$0xff]  }
 0x1a2   : > { %1233 = vmatmul.mubr.bf16.gmra.mrb[24].mxu0 %v17757_v16  ;;  %2918 = vmatprep.subr.bf16.mxu1 %v17874_v34  ;;  %v17923_v34 = vld [vmem:[#allocation7 + $0x248] ss:$16 sps:$4 sm:$0xff]  }
 0x1a3   : > { %1242 = vmatprep.mubr.bf16.mxu0 %v22519_v1  ;;  %2533 = vmatpush1.bf16.msra.mxu0 %v17851_v20  ;;  %v17890_v20 = vld [vmem:[#allocation7 + $0x220] ss:$16 sps:$4 sm:$0xff]  }
 0x1a4   : > { %2534 = vmatprep.subr.bf16.mxu0 %v17862_v21  ;;  %1426 = vmatmul.mubr.bf16.gmra.mrb[24].mxu1 %v17757_v16  ;;  %v17917_v21 = vld [vmem:[#allocation7 + $0x228] ss:$16 sps:$4 sm:$0xff]  }
 0x1a5   : > { %1435 = vmatprep.mubr.bf16.mxu1 %v22519_v1  ;;  %2919 = vmatpush1.bf16.msra.mxu1 %v17872_v35 }
 0x1a6   : > { %2920 = vmatprep.subr.bf16.mxu1 %v17877_v36  ;;  %v17898_v36 = vld [vmem:[#allocation7 + $0x264] ss:$16 sps:$4 sm:$0xff]  }
 0x1a7   : > { %2535 = vmatpush1.bf16.msra.mxu0 %v17860_v24  ;;  %v17895_v24 = vld [vmem:[#allocation7 + $0x244] ss:$16 sps:$4 sm:$0xff]  }
 0x1a8   : > { %2536 = vmatprep.subr.bf16.mxu0 %v17871_v26 }
 0x1a9   : > { %2921 = vmatpush1.bf16.msra.mxu1 %v17875_v38 }
 0x1aa   : > { %1243 = vmatmul.mubr.bf16.gmra.mrb[28].mxu0 %v17758_v25  ;;  %2922 = vmatprep.subr.bf16.mxu1 %v17883_v41 }
 0x1ab   : > { %1252 = vmatprep.mubr.bf16.mxu0 %v22519_v1  ;;  %2537 = vmatpush1.bf16.msra.mxu0 %v17869_v29 }
 0x1ac   : > { %1436 = vmatmul.mubr.bf16.gmra.mrb[28].mxu1 %v17758_v25  ;;  %2538 = vmatprep.subr.bf16.mxu0 %v17880_v43  ;;  %v17925_v25 = vld [vmem:[#allocation7 + $0x24c] ss:$16 sps:$4 sm:$0xff]   ;;  %v20021_v43 = vrot.slane %v862_v56, %v20014_v30 }
 0x1ad   : > { %1445 = vmatprep.mubr.bf16.mxu1 %v22519_v1  ;;  %2923 = vmatpush1.bf16.msra.mxu1 %v17881_v42 }
 0x1ae   : > { %2924 = vmatprep.subr.bf16.mxu1 %v17886_v44 }
 0x1af   : > { %2539 = vmatpush1.bf16.msra.mxu0 %v17878_v45 }
 0x1b0   : > { %2701 = vmatprep.subr.bf16.mxu0 %v17889_v48 }
 0x1b1   : > { %2925 = vmatpush1.bf16.msra.mxu1 %v17884_v46  ;;  %v17896_v46 = vld [vmem:[#allocation7 + $0x260] ss:$16 sps:$4 sm:$0xff]  }
 0x1b2   : > { %1253 = vmatmul.mubr.bf16.gmra.mrb[32].mxu0 %v17762_v32  ;;  %3087 = vmatprep.subr.bf16.mxu1 %v17916_v52 }
 0x1b3   : > { %1262 = vmatprep.mubr.bf16.mxu0 %v22519_v1 }
 0x1b4   : > { %1446 = vmatmul.mubr.bf16.gmra.mrb[32].mxu1 %v17762_v32 }
 0x1b5   : > { %1455 = vmatprep.mubr.bf16.mxu1 %v22519_v1 }
 0x1ba   : > { %1263 = vmatmul.mubr.bf16.gmra.mrb[36].mxu0 %v17769_v37 }
 0x1bb   : > { %1272 = vmatprep.mubr.bf16.mxu0 %v22519_v1 }
 0x1bc   : > { %1456 = vmatmul.mubr.bf16.gmra.mrb[36].mxu1 %v17769_v37  ;;  %v17928_v37 = vld [vmem:[#allocation7 + $0x26c] ss:$16 sps:$4 sm:$0xff]  }
 0x1bd   : > { %1465 = vmatprep.mubr.bf16.mxu1 %v22519_v1 }
 0x1c2   : > { %1273 = vmatmul.mubr.bf16.gmra.mrb[40].mxu0 %v17776_v39 }
 0x1c3   : > { %1282 = vmatprep.mubr.bf16.mxu0 %v22519_v1 }
 0x1c4   : > { %1466 = vmatmul.mubr.bf16.gmra.mrb[40].mxu1 %v17776_v39 }
 0x1c5   : > { %1475 = vmatprep.mubr.bf16.mxu1 %v22519_v1 }
 0x1ca   : > { %1283 = vmatmul.mubr.bf16.gmra.mrb[44].mxu0 %v17783_v40 }
 0x1cb   : > { %1292 = vmatprep.mubr.bf16.mxu0 %v22519_v1 }
 0x1cc   : > { %1476 = vmatmul.mubr.bf16.gmra.mrb[44].mxu1 %v17783_v40  ;;  %v20017_v40 = vrot.slane %v862_v56, %v20012_v27 }
 0x1cd   : > { %1485 = vmatprep.mubr.bf16.mxu1 %v22519_v1 }
 0x1d2   : > { %1293 = vmatmul.mubr.bf16.gmra.mrb[48].mxu0 %v17790_v47 }
 0x1d3   : > { %1302 = vmatprep.mubr.bf16.mxu0 %v22519_v1 }
 0x1d4   : > { %1486 = vmatmul.mubr.bf16.gmra.mrb[48].mxu1 %v17790_v47  ;;  %v17926_v47 = vld [vmem:[#allocation7 + $0x268] ss:$16 sps:$4 sm:$0xff]  }
 0x1d5   : > { %1495 = vmatprep.mubr.bf16.mxu1 %v22519_v1 }
 0x1da   : > { %1303 = vmatmul.mubr.bf16.gmra.mrb[52].mxu0 %v17794_v49 }
 0x1db   : > { %1312 = vmatprep.mubr.bf16.mxu0 %v22519_v1 }
 0x1dc   : > { %1496 = vmatmul.mubr.bf16.gmra.mrb[52].mxu1 %v17794_v49 }
 0x1dd   : > { %1505 = vmatprep.mubr.bf16.mxu1 %v22519_v1 }
 0x1e2   : > { %1313 = vmatmul.mubr.bf16.gmra.mrb[56].mxu0 %v17798_v50 }
 0x1e3   : > { %1322 = vmatprep.mubr.bf16.mxu0 %v22519_v1 }
 0x1e4   : > { %1506 = vmatmul.mubr.bf16.gmra.mrb[56].mxu1 %v17798_v50  ;;  %v17901_v50 = vld [vmem:[#allocation7 + $0x284] ss:$16 sps:$4 sm:$0xff]  }
 0x1e5   : > { %1515 = vmatprep.mubr.bf16.mxu1 %v22519_v1 }
 0x1ea   : > { %1323 = vmatmul.mubr.bf16.gmra.mrb[60].mxu0 %v17802_v51 }
 0x1ec   : > { %1516 = vmatmul.mubr.bf16.gmra.mrb[60].mxu1 %v17802_v51  ;;  %v17934_v51 = vld [vmem:[#allocation7 + $0x28c] ss:$16 sps:$4 sm:$0xff]  }
 0x245   : > { %v1174_v60 = vpop.f32.mrb[0].mxu0  ;;  %v1367_v52 = vpop.f32.mrb[0].mxu1 }
 0x246   : > { %v1175_v61 = vadd.f32 %v1174_v60, %v19999_v58  ;;  %v1176_v62 = vpop.f32.mrb[1].mxu0  ;;  %v1368_v56 = vadd.f32 %v1367_v52, %v20017_v40  ;;  %v1369_v60 = vpop.f32.mrb[1].mxu1 }
 0x247   : > { %v1178_v63 = vpop.f32.mrb[2].mxu0  ;;  %v1177_v0 = vadd.f32 %v1176_v62, %v20002_v59 }
 0x248   : > { %v1179_v2 = vadd.f32 %v1178_v63, %v19999_v58  ;;  %v1180_v3 = vpop.f32.mrb[3].mxu0  ;;  %v1526_v5 = vmax.f32 %v1175_v61, 0.0  ;;  %v1370_v63 = vadd.f32 %v1369_v60, %v20021_v43 }
 0x249   : > { %v1181_v4 = vadd.f32 %v1180_v3, %v20002_v59  ;;  %v1527_v7 = vmax.f32 %v1177_v0, 0.0  ;;  %v1371_v0 = vpop.f32.mrb[2].mxu1  ;;  %v17899_v3 = vld [vmem:[#allocation7 + $0x280] ss:$16 sps:$4 sm:$0xff]  }
 0x24a   : > { %v1530_v6 = vmax.f32 %v1179_v2, 0.0 }
 0x24b   : > { %v1531_v8 = vmax.f32 %v1181_v4, 0.0  ;;  %v17932_v4 = vld [vmem:[#allocation7 + $0x288] ss:$16 sps:$4 sm:$0xff]  }
 0x24c   : > { %v1654_v11 = vpack.c.bf16 %v1530_v6, %v1526_v5  ;;  %v1528_v5 = vmax.f32 %v1368_v56, 0.0  ;;  %v1372_v6 = vadd.f32 %v1371_v0, %v20017_v40 }
 0x24d   : > { %v1184_v14 = vpop.f32.mrb[4].mxu0  ;;  %v1655_v15 = vpack.c.bf16 %v1531_v8, %v1527_v7  ;;  %v1373_v7 = vpop.f32.mrb[3].mxu1 }
 0x24e   : > { %v1186_v16 = vpop.f32.mrb[5].mxu0  ;;  %v1185_v17 = vadd.f32 %v1184_v14, %v19999_v58 }
 0x24f   : > { %v1188_v18 = vpop.f32.mrb[6].mxu0  ;;  %2540 = vmatprep.mubr.bf16.mxu0 %v1655_v15  ;;  %2926 = vmatprep.mubr.bf16.mxu1 %v1655_v15  ;;  %v1187_v19 = vadd.f32 %v1186_v16, %v20002_v59  ;;  %v1532_v15 = vmax.f32 %v1372_v6, 0.0 }
 0x250   : > { %v1190_v22 = vpop.f32.mrb[7].mxu0  ;;  %2541 = vmatmul.mubr.bf16.vlgmr.msra.gmra.mrb[64].mxu0 %v1654_v11  ;;  %2927 = vmatmul.mubr.bf16.vlgmr.msra.gmra.mrb[64].mxu1 %v1654_v11  ;;  %v1189_v23 = vadd.f32 %v1188_v18, %v19999_v58  ;;  %v1534_v28 = vmax.f32 %v1185_v17, 0.0  ;;  %v1529_v11 = vmax.f32 %v1370_v63, 0.0 }
 0x251   : > { %2702 = vmatpush1.bf16.msra.mxu0 %v17887_v9  ;;  %v1191_v26 = vadd.f32 %v1190_v22, %v20002_v59  ;;  %3088 = vmatpush1.bf16.msra.mxu1 %v17914_v10  ;;  %v1535_v31 = vmax.f32 %v1187_v19, 0.0  ;;  %v17904_v9 = vld [vmem:[#allocation7 + $0x2a4] ss:$16 sps:$4 sm:$0xff]   ;;  %v17937_v10 = vld [vmem:[#allocation7 + $0x2ac] ss:$16 sps:$4 sm:$0xff]  }
 0x252   : > { %2703 = vmatprep.subr.bf16.mxu0 %v17892_v12  ;;  %v1538_v29 = vmax.f32 %v1189_v23, 0.0  ;;  %3089 = vmatprep.subr.bf16.mxu1 %v17919_v13  ;;  %v1374_v12 = vadd.f32 %v1373_v7, %v20021_v43  ;;  %v17935_v22 = vld [vmem:[#allocation7 + $0x2a8] ss:$16 sps:$4 sm:$0xff]   ;;  %v20032_v23 = vpack.c.bf16 %v1532_v15, %v1528_v5  ;;  %v17913_v7 = vld [vmem:[#allocation7 + $0x304] ss:$16 sps:$4 sm:$0xff]  }
 0x253   : > { %v1539_v32 = vmax.f32 %v1191_v26, 0.0  ;;  %v17907_v26 = vld [vmem:[#allocation7 + $0x2c4] ss:$16 sps:$4 sm:$0xff]  }
 0x254   : > { %v1658_v35 = vpack.c.bf16 %v1538_v29, %v1534_v28  ;;  %v1533_v18 = vmax.f32 %v1374_v12, 0.0  ;;  %v17943_v28 = vld [vmem:[#allocation7 + $0x2cc] ss:$16 sps:$4 sm:$0xff]   ;;  %v1377_v29 = vpop.f32.mrb[4].mxu1 }
 0x255   : > { %v1194_v38 = vpop.f32.mrb[8].mxu0  ;;  %v1659_v39 = vpack.c.bf16 %v1539_v32, %v1535_v31  ;;  %2704 = vmatpush1.bf16.msra.mxu0 %v17890_v20  ;;  %3090 = vmatpush1.bf16.msra.mxu1 %v17917_v21  ;;  %v17902_v21 = vld [vmem:[#allocation7 + $0x2a0] ss:$16 sps:$4 sm:$0xff]  }
 0x256   : > { %v1196_v41 = vpop.f32.mrb[9].mxu0  ;;  %2705 = vmatprep.subr.bf16.mxu0 %v17895_v24  ;;  %v1195_v42 = vadd.f32 %v1194_v38, %v19999_v58  ;;  %3091 = vmatprep.subr.bf16.mxu1 %v17925_v25  ;;  %v20035_v31 = vpack.c.bf16 %v1533_v18, %v1529_v11 }
 0x257   : > { %v1198_v44 = vpop.f32.mrb[10].mxu0  ;;  %2550 = vmatprep.mubr.bf16.mxu0 %v1659_v39  ;;  %2936 = vmatprep.mubr.bf16.mxu1 %v1659_v39  ;;  %v1197_v45 = vadd.f32 %v1196_v41, %v20002_v59 }
 0x258   : > { %v1200_v48 = vpop.f32.mrb[11].mxu0  ;;  %2551 = vmatmul.mubr.bf16.gmra.mrb[68].mxu0 %v1658_v35  ;;  %2937 = vmatmul.mubr.bf16.gmra.mrb[68].mxu1 %v1658_v35  ;;  %v1199_v49 = vadd.f32 %v1198_v44, %v19999_v58  ;;  %v1542_v54 = vmax.f32 %v1195_v42, 0.0  ;;  %v1379_v35 = vpop.f32.mrb[5].mxu1  ;;  %v17905_v42 = vld [vmem:[#allocation7 + $0x2c0] ss:$16 sps:$4 sm:$0xff]  }
 0x259   : > { %v1201_v53 = vadd.f32 %v1200_v48, %v20002_v59  ;;  %2706 = vmatpush1.bf16.msra.mxu0 %v17893_v33  ;;  %3092 = vmatpush1.bf16.msra.mxu1 %v17923_v34  ;;  %v1543_v61 = vmax.f32 %v1197_v45, 0.0  ;;  %v1378_v34 = vadd.f32 %v1377_v29, %v20017_v40  ;;  %v1380_v38 = vadd.f32 %v1379_v35, %v20021_v43  ;;  %v1381_v39 = vpop.f32.mrb[6].mxu1  ;;  %v17941_v44 = vld [vmem:[#allocation7 + $0x2c8] ss:$16 sps:$4 sm:$0xff]   ;;  %v17955_v29 = vld [vmem:[#allocation7 + $0x32c] ss:$16 sps:$4 sm:$0xff]  }
 0x25a   : > { %v1546_v62 = vmax.f32 %v1199_v49, 0.0  ;;  %2707 = vmatprep.subr.bf16.mxu0 %v17898_v36  ;;  %3093 = vmatprep.subr.bf16.mxu1 %v17928_v37  ;;  %v17910_v49 = vld [vmem:[#allocation7 + $0x2e4] ss:$16 sps:$4 sm:$0xff]  }
 0x25b   : > { %v1547_v2 = vmax.f32 %v1201_v53, 0.0  ;;  %v1536_v45 = vmax.f32 %v1378_v34, 0.0 }
 0x25c   : > { %v1662_v8 = vpack.c.bf16 %v1546_v62, %v1542_v54 }
 0x25d   : > { %v1204_v13 = vpop.f32.mrb[12].mxu0  ;;  %v1663_v14 = vpack.c.bf16 %v1547_v2, %v1543_v61  ;;  %2708 = vmatpush1.bf16.msra.mxu0 %v17896_v46  ;;  %3094 = vmatpush1.bf16.msra.mxu1 %v17926_v47  ;;  %v1382_v46 = vadd.f32 %v1381_v39, %v20017_v40  ;;  %v1383_v47 = vpop.f32.mrb[7].mxu1  ;;  %v17908_v2 = vld [vmem:[#allocation7 + $0x2e0] ss:$16 sps:$4 sm:$0xff]  }
 0x25e   : > { %v1206_v16 = vpop.f32.mrb[13].mxu0  ;;  %v1205_v17 = vadd.f32 %v1204_v13, %v19999_v58  ;;  %2709 = vmatprep.subr.bf16.mxu0 %v17901_v50  ;;  %3095 = vmatprep.subr.bf16.mxu1 %v17934_v51  ;;  %v17946_v50 = vld [vmem:[#allocation7 + $0x2ec] ss:$16 sps:$4 sm:$0xff]   ;;  %v1537_v51 = vmax.f32 %v1380_v38, 0.0  ;;  %v1384_v52 = vadd.f32 %v1383_v47, %v20021_v43 }
 0x25f   : > { %v1208_v19 = vpop.f32.mrb[14].mxu0  ;;  %2560 = vmatprep.mubr.bf16.mxu0 %v1663_v14  ;;  %2946 = vmatprep.mubr.bf16.mxu1 %v1663_v14  ;;  %v1207_v20 = vadd.f32 %v1206_v16, %v20002_v59  ;;  %v1540_v56 = vmax.f32 %v1382_v46, 0.0 }
 0x260   : > { %v1210_v24 = vpop.f32.mrb[15].mxu0  ;;  %2561 = vmatmul.mubr.bf16.gmra.mrb[72].mxu0 %v1662_v8  ;;  %2947 = vmatmul.mubr.bf16.gmra.mrb[72].mxu1 %v1662_v8  ;;  %v1209_v25 = vadd.f32 %v1208_v19, %v19999_v58  ;;  %v1550_v33 = vmax.f32 %v1205_v17, 0.0  ;;  %v1541_v62 = vmax.f32 %v1384_v52, 0.0  ;;  %v17952_v8 = vld [vmem:[#allocation7 + $0x30c] ss:$16 sps:$4 sm:$0xff]  }
 0x261   : > { %v1211_v32 = vadd.f32 %v1210_v24, %v20002_v59  ;;  %2710 = vmatpush1.bf16.msra.mxu0 %v17899_v3  ;;  %3096 = vmatpush1.bf16.msra.mxu1 %v17932_v4  ;;  %v1551_v36 = vmax.f32 %v1207_v20, 0.0  ;;  %v17944_v3 = vld [vmem:[#allocation7 + $0x2e8] ss:$16 sps:$4 sm:$0xff]   ;;  %v20044_v4 = vpack.c.bf16 %v1540_v56, %v1536_v45  ;;  %v17911_v20 = vld [vmem:[#allocation7 + $0x300] ss:$16 sps:$4 sm:$0xff]  }
 0x262   : > { %v1554_v37 = vmax.f32 %v1209_v25, 0.0  ;;  %2711 = vmatprep.subr.bf16.mxu0 %v17904_v9  ;;  %3097 = vmatprep.subr.bf16.mxu1 %v17937_v10  ;;  %v1387_v9 = vpop.f32.mrb[8].mxu1  ;;  %v20047_v10 = vpack.c.bf16 %v1541_v62, %v1537_v51  ;;  %v17953_v45 = vld [vmem:[#allocation7 + $0x328] ss:$16 sps:$4 sm:$0xff]  }
 0x263   : > { %v1555_v41 = vmax.f32 %v1211_v32, 0.0  ;;  %v1388_v13 = vadd.f32 %v1387_v9, %v20017_v40  ;;  %v1389_v14 = vpop.f32.mrb[9].mxu1 }
 0x264   : > { %v1666_v48 = vpack.c.bf16 %v1554_v37, %v1550_v33  ;;  %v1390_v17 = vadd.f32 %v1389_v14, %v20021_v43  ;;  %v1391_v18 = vpop.f32.mrb[10].mxu1 }
 0x265   : > { %v1214_v53 = vpop.f32.mrb[16].mxu0  ;;  %v1667_v54 = vpack.c.bf16 %v1555_v41, %v1551_v36  ;;  %2712 = vmatpush1.bf16.msra.mxu0 %v17902_v21  ;;  %3098 = vmatpush1.bf16.msra.mxu1 %v17935_v22  ;;  %v17950_v21 = vld [vmem:[#allocation7 + $0x308] ss:$16 sps:$4 sm:$0xff]   ;;  %v1544_v22 = vmax.f32 %v1388_v13, 0.0  ;;  %v1392_v24 = vadd.f32 %v1391_v18, %v20017_v40  ;;  %v1393_v25 = vpop.f32.mrb[11].mxu1 }
 0x266   : > { %v1216_v60 = vpop.f32.mrb[17].mxu0  ;;  %v1215_v61 = vadd.f32 %v1214_v53, %v19999_v58  ;;  %2713 = vmatprep.subr.bf16.mxu0 %v17907_v26  ;;  %3099 = vmatprep.subr.bf16.mxu1 %v17943_v28  ;;  %v17922_v28 = vld [vmem:[#allocation7 + $0x324] ss:$16 sps:$4 sm:$0xff]   ;;  %v1545_v32 = vmax.f32 %v1390_v17, 0.0  ;;  %v1394_v33 = vadd.f32 %v1393_v25, %v20021_v43  ;;  %v1397_v51 = vpop.f32.mrb[12].mxu1 }
 0x267   : > { %v1218_v63 = vpop.f32.mrb[18].mxu0  ;;  %2570 = vmatprep.mubr.bf16.mxu0 %v1667_v54  ;;  %2956 = vmatprep.mubr.bf16.mxu1 %v1667_v54  ;;  %v1217_v0 = vadd.f32 %v1216_v60, %v20002_v59  ;;  %v1548_v36 = vmax.f32 %v1392_v24, 0.0  ;;  %v1398_v56 = vadd.f32 %v1397_v51, %v20017_v40  ;;  %v1399_v60 = vpop.f32.mrb[13].mxu1  ;;  %v17938_v24 = vld [vmem:[#allocation7 + $0x360] ss:$16 sps:$4 sm:$0xff]  }
 0x268   : > { %v1220_v5 = vpop.f32.mrb[19].mxu0  ;;  %2571 = vmatmul.mubr.bf16.gmra.mrb[76].mxu0 %v1666_v48  ;;  %2957 = vmatmul.mubr.bf16.gmra.mrb[76].mxu1 %v1666_v48  ;;  %v1219_v6 = vadd.f32 %v1218_v63, %v19999_v58  ;;  %v1558_v12 = vmax.f32 %v1215_v61, 0.0  ;;  %v1549_v39 = vmax.f32 %v1394_v33, 0.0  ;;  %v1400_v63 = vadd.f32 %v1399_v60, %v20021_v43  ;;  %v17962_v25 = vld [vmem:[#allocation7 + $0x368] ss:$16 sps:$4 sm:$0xff]  }
 0x269   : > { %v1221_v11 = vadd.f32 %v1220_v5, %v20002_v59  ;;  %2714 = vmatpush1.bf16.msra.mxu0 %v17905_v42  ;;  %3100 = vmatpush1.bf16.msra.mxu1 %v17941_v44  ;;  %v1559_v15 = vmax.f32 %v1217_v0, 0.0  ;;  %v17920_v44 = vld [vmem:[#allocation7 + $0x320] ss:$16 sps:$4 sm:$0xff]   ;;  %v20056_v46 = vpack.c.bf16 %v1548_v36, %v1544_v22  ;;  %v1401_v0 = vpop.f32.mrb[14].mxu1  ;;  %v17959_v5 = vld [vmem:[#allocation7 + $0x348] ss:$16 sps:$4 sm:$0xff]  }
 0x26a   : > { %v1562_v16 = vmax.f32 %v1219_v6, 0.0  ;;  %2715 = vmatprep.subr.bf16.mxu0 %v17910_v49  ;;  %3101 = vmatprep.subr.bf16.mxu1 %v17946_v50  ;;  %v17931_v49 = vld [vmem:[#allocation7 + $0x344] ss:$16 sps:$4 sm:$0xff]   ;;  %v17961_v50 = vld [vmem:[#allocation7 + $0x34c] ss:$16 sps:$4 sm:$0xff]   ;;  %v20059_v52 = vpack.c.bf16 %v1549_v39, %v1545_v32  ;;  %v1552_v6 = vmax.f32 %v1398_v56, 0.0 }
 0x26b   : > { %v1563_v19 = vmax.f32 %v1221_v11, 0.0  ;;  %v17940_v11 = vld [vmem:[#allocation7 + $0x364] ss:$16 sps:$4 sm:$0xff]   ;;  %v1553_v13 = vmax.f32 %v1400_v63, 0.0  ;;  %v17970_v33 = vld [vmem:[#allocation7 + $0x38c] ss:$16 sps:$4 sm:$0xff]  }
 0x26c   : > { %v1670_v26 = vpack.c.bf16 %v1562_v16, %v1558_v12  ;;  %v17964_v12 = vld [vmem:[#allocation7 + $0x36c] ss:$16 sps:$4 sm:$0xff]   ;;  %v17949_v32 = vld [vmem:[#allocation7 + $0x384] ss:$16 sps:$4 sm:$0xff]  }
 0x26d   : > { %v1224_v34 = vpop.f32.mrb[20].mxu0  ;;  %v1671_v35 = vpack.c.bf16 %v1563_v19, %v1559_v15  ;;  %2716 = vmatpush1.bf16.msra.mxu0 %v17908_v2  ;;  %3102 = vmatpush1.bf16.msra.mxu1 %v17944_v3  ;;  %v17929_v3 = vld [vmem:[#allocation7 + $0x340] ss:$16 sps:$4 sm:$0xff]   ;;  %v17958_v56 = vld [vmem:[#allocation7 + $0x3a4] ss:$16 sps:$4 sm:$0xff]  }
 0x26e   : > { %v1226_v37 = vpop.f32.mrb[21].mxu0  ;;  %v1225_v38 = vadd.f32 %v1224_v34, %v19999_v58  ;;  %2717 = vmatprep.subr.bf16.mxu0 %v17913_v7  ;;  %3103 = vmatprep.subr.bf16.mxu1 %v17952_v8  ;;  %v1402_v7 = vadd.f32 %v1401_v0, %v20017_v40  ;;  %v1403_v8 = vpop.f32.mrb[15].mxu1  ;;  %v17973_v60 = vld [vmem:[#allocation7 + $0x3ac] ss:$16 sps:$4 sm:$0xff]  }
 0x26f   : > { %v1228_v41 = vpop.f32.mrb[22].mxu0  ;;  %2580 = vmatprep.mubr.bf16.mxu0 %v1671_v35  ;;  %2966 = vmatprep.mubr.bf16.mxu1 %v1671_v35  ;;  %v1227_v42 = vadd.f32 %v1226_v37, %v20002_v59  ;;  %v1404_v14 = vadd.f32 %v1403_v8, %v20021_v43  ;;  %v1407_v34 = vpop.f32.mrb[16].mxu1 }
 0x270   : > { %v1230_v47 = vpop.f32.mrb[23].mxu0  ;;  %2581 = vmatmul.mubr.bf16.gmra.mrb[80].mxu0 %v1670_v26  ;;  %2967 = vmatmul.mubr.bf16.gmra.mrb[80].mxu1 %v1670_v26  ;;  %v1229_v48 = vadd.f32 %v1228_v41, %v19999_v58  ;;  %v1566_v54 = vmax.f32 %v1225_v38, 0.0  ;;  %v1556_v17 = vmax.f32 %v1402_v7, 0.0  ;;  %v1408_v38 = vadd.f32 %v1407_v34, %v20017_v40  ;;  %v1409_v39 = vpop.f32.mrb[17].mxu1  ;;  %v17977_v34 = vld [vmem:[#allocation7 + $0x3c8] ss:$16 sps:$4 sm:$0xff]  }
 0x271   : > { %v1231_v53 = vadd.f32 %v1230_v47, %v20002_v59  ;;  %2718 = vmatpush1.bf16.msra.mxu0 %v17911_v20  ;;  %3104 = vmatpush1.bf16.msra.mxu1 %v17950_v21  ;;  %v1567_v61 = vmax.f32 %v1227_v42, 0.0  ;;  %v1557_v20 = vmax.f32 %v1404_v14, 0.0 }
 0x272   : > { %v1570_v62 = vmax.f32 %v1229_v48, 0.0  ;;  %2719 = vmatprep.subr.bf16.mxu0 %v17922_v28  ;;  %3105 = vmatprep.subr.bf16.mxu1 %v17955_v29  ;;  %v20068_v26 = vpack.c.bf16 %v1556_v17, %v1552_v6  ;;  %v17947_v48 = vld [vmem:[#allocation7 + $0x380] ss:$16 sps:$4 sm:$0xff]  }
 0x273   : > { %v1571_v2 = vmax.f32 %v1231_v53, 0.0  ;;  %v20071_v35 = vpack.c.bf16 %v1557_v20, %v1553_v13 }
 0x274   : > { %v1674_v9 = vpack.c.bf16 %v1570_v62, %v1566_v54 }
 0x275   : > { %v1234_v15 = vpop.f32.mrb[24].mxu0  ;;  %v1675_v16 = vpack.c.bf16 %v1571_v2, %v1567_v61  ;;  %2720 = vmatpush1.bf16.msra.mxu0 %v17920_v44  ;;  %3106 = vmatpush1.bf16.msra.mxu1 %v17953_v45  ;;  %v1410_v44 = vadd.f32 %v1409_v39, %v20021_v43  ;;  %v1411_v45 = vpop.f32.mrb[18].mxu1 }
 0x276   : > { %v1236_v18 = vpop.f32.mrb[25].mxu0  ;;  %v1235_v19 = vadd.f32 %v1234_v15, %v19999_v58  ;;  %2721 = vmatprep.subr.bf16.mxu0 %v17931_v49  ;;  %3107 = vmatprep.subr.bf16.mxu1 %v17961_v50  ;;  %v17968_v49 = vld [vmem:[#allocation7 + $0x388] ss:$16 sps:$4 sm:$0xff]   ;;  %v1560_v50 = vmax.f32 %v1408_v38, 0.0  ;;  %v1412_v51 = vadd.f32 %v1411_v45, %v20017_v40  ;;  %v1413_v53 = vpop.f32.mrb[19].mxu1 }
 0x277   : > { %v1238_v21 = vpop.f32.mrb[26].mxu0  ;;  %2590 = vmatprep.mubr.bf16.mxu0 %v1675_v16  ;;  %2976 = vmatprep.mubr.bf16.mxu1 %v1675_v16  ;;  %v1237_v22 = vadd.f32 %v1236_v18, %v20002_v59  ;;  %v1561_v61 = vmax.f32 %v1410_v44, 0.0  ;;  %v1414_v62 = vadd.f32 %v1413_v53, %v20021_v43  ;;  %v17967_v15 = vld [vmem:[#allocation7 + $0x3c4] ss:$16 sps:$4 sm:$0xff]   ;;  %v17979_v16 = vld [vmem:[#allocation7 + $0x3cc] ss:$16 sps:$4 sm:$0xff]  }
 0x278   : > { %v1240_v28 = vpop.f32.mrb[27].mxu0  ;;  %2591 = vmatmul.mubr.bf16.gmra.mrb[84].mxu0 %v1674_v9  ;;  %2977 = vmatmul.mubr.bf16.gmra.mrb[84].mxu1 %v1674_v9  ;;  %v1239_v29 = vadd.f32 %v1238_v21, %v19999_v58  ;;  %v1574_v37 = vmax.f32 %v1235_v19, 0.0  ;;  %v1564_v2 = vmax.f32 %v1412_v51, 0.0  ;;  %v17956_v9 = vld [vmem:[#allocation7 + $0x3a0] ss:$16 sps:$4 sm:$0xff]   ;;  %v1417_v17 = vpop.f32.mrb[20].mxu1 }
 0x279   : > { %v1241_v36 = vadd.f32 %v1240_v28, %v20002_v59  ;;  %2722 = vmatpush1.bf16.msra.mxu0 %v17929_v3  ;;  %3108 = vmatpush1.bf16.msra.mxu1 %v17959_v5  ;;  %v1575_v41 = vmax.f32 %v1237_v22, 0.0  ;;  %v1565_v6 = vmax.f32 %v1414_v62, 0.0  ;;  %v1418_v21 = vadd.f32 %v1417_v17, %v20017_v40  ;;  %v1419_v22 = vpop.f32.mrb[21].mxu1 }
 0x27a   : > { %v1578_v42 = vmax.f32 %v1239_v29, 0.0  ;;  %2723 = vmatprep.subr.bf16.mxu0 %v17940_v11  ;;  %3109 = vmatprep.subr.bf16.mxu1 %v17964_v12  ;;  %v17971_v11 = vld [vmem:[#allocation7 + $0x3a8] ss:$16 sps:$4 sm:$0xff]   ;;  %v20080_v12 = vpack.c.bf16 %v1564_v2, %v1560_v50  ;;  %v1420_v28 = vadd.f32 %v1419_v22, %v20021_v43  ;;  %v1421_v29 = vpop.f32.mrb[22].mxu1 }
 0x27b   : > { %v1579_v47 = vmax.f32 %v1241_v36, 0.0  ;;  %v20083_v18 = vpack.c.bf16 %v1565_v6, %v1561_v61  ;;  %v1568_v36 = vmax.f32 %v1418_v21, 0.0  ;;  %v1423_v38 = vpop.f32.mrb[23].mxu1  ;;  %v17980_v61 = vld [vmem:[#allocation7 + $0x3e8] ss:$16 sps:$4 sm:$0xff]  }
 0x27c   : > { %v1678_v54 = vpack.c.bf16 %v1578_v42, %v1574_v37  ;;  %v1422_v37 = vadd.f32 %v1421_v29, %v20017_v40  ;;  %v17982_v42 = vld [vmem:[#allocation7 + $0x3ec] ss:$16 sps:$4 sm:$0xff]   ;;  %v1569_v44 = vmax.f32 %v1420_v28, 0.0  ;;  %v1424_v45 = vadd.f32 %v1423_v38, %v20021_v43  ;;  %v1427_v2 = vpop.f32.mrb[24].mxu1 }
 0x27d   : > { %v1244_v63 = vpop.f32.mrb[28].mxu0  ;;  %v1679_v0 = vpack.c.bf16 %v1579_v47, %v1575_v41  ;;  %2724 = vmatpush1.bf16.msra.mxu0 %v17938_v24  ;;  %3110 = vmatpush1.bf16.msra.mxu1 %v17962_v25  ;;  %v17976_v41 = vld [vmem:[#allocation7 + $0x3e4] ss:$16 sps:$4 sm:$0xff]  }
 0x27e   : > { %v1246_v3 = vpop.f32.mrb[29].mxu0  ;;  %v1245_v5 = vadd.f32 %v1244_v63, %v19999_v58  ;;  %2725 = vmatprep.subr.bf16.mxu0 %v17949_v32  ;;  %3111 = vmatprep.subr.bf16.mxu1 %v17970_v33  ;;  %v17965_v33 = vld [vmem:[#allocation7 + $0x3c0] ss:$16 sps:$4 sm:$0xff]   ;;  %v1573_v53 = vmax.f32 %v1424_v45, 0.0 }
 0x27f   : > { %v1248_v7 = vpop.f32.mrb[30].mxu0  ;;  %2600 = vmatprep.mubr.bf16.mxu0 %v1679_v0  ;;  %2986 = vmatprep.mubr.bf16.mxu1 %v1679_v0  ;;  %v1247_v8 = vadd.f32 %v1246_v3, %v20002_v59 }
 0x280   : > { %v1250_v13 = vpop.f32.mrb[31].mxu0  ;;  %2601 = vmatmul.mubr.bf16.gmra.mrb[88].mxu0 %v1678_v54  ;;  %2987 = vmatmul.mubr.bf16.gmra.mrb[88].mxu1 %v1678_v54  ;;  %v1249_v14 = vadd.f32 %v1248_v7, %v19999_v58  ;;  %v1582_v20 = vmax.f32 %v1245_v5, 0.0  ;;  %v20095_v3 = vpack.c.bf16 %v1573_v53, %v1569_v44  ;;  %v1428_v7 = vadd.f32 %v1427_v2, %v20017_v40 }
 0x281   : > { %v1251_v19 = vadd.f32 %v1250_v13, %v20002_v59  ;;  %2726 = vmatpush1.bf16.msra.mxu0 %v17947_v48  ;;  %3112 = vmatpush1.bf16.msra.mxu1 %v17968_v49  ;;  %v1583_v24 = vmax.f32 %v1247_v8, 0.0  ;;  %v1572_v49 = vmax.f32 %v1422_v37, 0.0  ;;  %v1429_v8 = vpop.f32.mrb[25].mxu1 }
 0x282   : > { %v1586_v25 = vmax.f32 %v1249_v14, 0.0  ;;  %2727 = vmatprep.subr.bf16.mxu0 %v17958_v56  ;;  %3113 = vmatprep.subr.bf16.mxu1 %v17973_v60  ;;  %v17974_v60 = vld [vmem:[#allocation7 + $0x3e0] ss:$16 sps:$4 sm:$0xff]   ;;  %v1430_v13 = vadd.f32 %v1429_v8, %v20021_v43  ;;  %v1431_v14 = vpop.f32.mrb[26].mxu1 }
 0x283   : > { %v1587_v32 = vmax.f32 %v1251_v19, 0.0  ;;  %v20092_v62 = vpack.c.bf16 %v1572_v49, %v1568_v36  ;;  %v1432_v17 = vadd.f32 %v1431_v14, %v20017_v40  ;;  %v1433_v19 = vpop.f32.mrb[27].mxu1 }
 0x284   : > { %v1682_v39 = vpack.c.bf16 %v1586_v25, %v1582_v20  ;;  %v1577_v21 = vmax.f32 %v1430_v13, 0.0  ;;  %v1434_v22 = vadd.f32 %v1433_v19, %v20021_v43 }
 0x285   : > { %v1254_v47 = vpop.f32.mrb[32].mxu0  ;;  %v1683_v48 = vpack.c.bf16 %v1587_v32, %v1583_v24  ;;  %2728 = vmatpush1.bf16.msra.mxu0 %v17956_v9  ;;  %3114 = vmatpush1.bf16.msra.mxu1 %v17971_v11  ;;  %v1580_v28 = vmax.f32 %v1432_v17, 0.0 }
 0x286   : > { %v1256_v50 = vpop.f32.mrb[33].mxu0  ;;  %v1255_v51 = vadd.f32 %v1254_v47, %v19999_v58  ;;  %2729 = vmatprep.subr.bf16.mxu0 %v17967_v15  ;;  %3115 = vmatprep.subr.bf16.mxu1 %v17979_v16  ;;  %v1576_v16 = vmax.f32 %v1428_v7, 0.0 }
 0x287   : > { %v1258_v54 = vpop.f32.mrb[34].mxu0  ;;  %2610 = vmatprep.mubr.bf16.mxu0 %v1683_v48  ;;  %2996 = vmatprep.mubr.bf16.mxu1 %v1683_v48  ;;  %v1257_v56 = vadd.f32 %v1256_v50, %v20002_v59 }
 0x288   : > { %v1260_v63 = vpop.f32.mrb[35].mxu0  ;;  %2611 = vmatmul.mubr.bf16.gmra.mrb[92].mxu0 %v1682_v39  ;;  %2997 = vmatmul.mubr.bf16.gmra.mrb[92].mxu1 %v1682_v39  ;;  %v1259_v0 = vadd.f32 %v1258_v54, %v19999_v58  ;;  %v1590_v6 = vmax.f32 %v1255_v51, 0.0  ;;  %v20104_v37 = vpack.c.bf16 %v1580_v28, %v1576_v16 }
 0x289   : > { %v1261_v5 = vadd.f32 %v1260_v63, %v20002_v59  ;;  %2730 = vmatpush1.bf16.msra.mxu0 %v17965_v33  ;;  %3116 = vmatpush1.bf16.msra.mxu1 %v17977_v34  ;;  %v1591_v9 = vmax.f32 %v1257_v56, 0.0  ;;  %v1581_v33 = vmax.f32 %v1434_v22, 0.0 }
 0x28a   : > { %v1594_v11 = vmax.f32 %v1259_v0, 0.0  ;;  %2731 = vmatprep.subr.bf16.mxu0 %v17976_v41  ;;  %3117 = vmatprep.subr.bf16.mxu1 %v17982_v42  ;;  %v1437_v41 = vpop.f32.mrb[28].mxu1 }
 0x28b   : > { %v1595_v15 = vmax.f32 %v1261_v5, 0.0  ;;  %v20107_v42 = vpack.c.bf16 %v1581_v33, %v1577_v21  ;;  %v1438_v47 = vadd.f32 %v1437_v41, %v20017_v40  ;;  %v1439_v48 = vpop.f32.mrb[29].mxu1 }
 0x28c   : > { %v1686_v20 = vpack.c.bf16 %v1594_v11, %v1590_v6  ;;  %v1440_v51 = vadd.f32 %v1439_v48, %v20021_v43  ;;  %v1441_v53 = vpop.f32.mrb[30].mxu1 }
 0x28d   : > { %v1264_v24 = vpop.f32.mrb[36].mxu0  ;;  %v1687_v25 = vpack.c.bf16 %v1595_v15, %v1591_v9  ;;  %2732 = vmatpush1.bf16.msra.mxu0 %v17974_v60  ;;  %3118 = vmatpush1.bf16.msra.mxu1 %v17980_v61  ;;  %v1584_v56 = vmax.f32 %v1438_v47, 0.0  ;;  %v1442_v60 = vadd.f32 %v1441_v53, %v20017_v40  ;;  %v1443_v61 = vpop.f32.mrb[31].mxu1 }
 0x28e   : > { %v1266_v29 = vpop.f32.mrb[37].mxu0  ;;  %v1265_v32 = vadd.f32 %v1264_v24, %v19999_v58  ;;  %v1585_v0 = vmax.f32 %v1440_v51, 0.0  ;;  %v1444_v2 = vadd.f32 %v1443_v61, %v20021_v43  ;;  %v1447_v19 = vpop.f32.mrb[32].mxu1 }
 0x28f   : > { %v1268_v34 = vpop.f32.mrb[38].mxu0  ;;  %2620 = vmatprep.mubr.bf16.mxu0 %v1687_v25  ;;  %3006 = vmatprep.mubr.bf16.mxu1 %v1687_v25  ;;  %v1267_v36 = vadd.f32 %v1266_v29, %v20002_v59  ;;  %v1588_v7 = vmax.f32 %v1442_v60, 0.0  ;;  %v1448_v24 = vadd.f32 %v1447_v19, %v20017_v40  ;;  %v1449_v25 = vpop.f32.mrb[33].mxu1 }
 0x290   : > { %v1270_v38 = vpop.f32.mrb[39].mxu0  ;;  %2621 = vmatmul.mubr.bf16.gmra.mrb[96].mxu0 %v1686_v20  ;;  %3007 = vmatmul.mubr.bf16.gmra.mrb[96].mxu1 %v1686_v20  ;;  %v1269_v39 = vadd.f32 %v1268_v34, %v19999_v58  ;;  %v1598_v45 = vmax.f32 %v1265_v32, 0.0  ;;  %v1589_v11 = vmax.f32 %v1444_v2, 0.0  ;;  %v1450_v32 = vadd.f32 %v1449_v25, %v20021_v43  ;;  %v1451_v33 = vpop.f32.mrb[34].mxu1 }
 0x291   : > { %v1271_v44 = vadd.f32 %v1270_v38, %v20002_v59  ;;  %v1599_v49 = vmax.f32 %v1267_v36, 0.0  ;;  %v20116_v15 = vpack.c.bf16 %v1588_v7, %v1584_v56  ;;  %v1592_v36 = vmax.f32 %v1448_v24, 0.0 }
 0x292   : > { %v1602_v50 = vmax.f32 %v1269_v39, 0.0  ;;  %v20119_v20 = vpack.c.bf16 %v1589_v11, %v1585_v0  ;;  %v1452_v38 = vadd.f32 %v1451_v33, %v20017_v40  ;;  %v1453_v39 = vpop.f32.mrb[35].mxu1 }
 0x293   : > { %v1603_v54 = vmax.f32 %v1271_v44, 0.0  ;;  %v1593_v44 = vmax.f32 %v1450_v32, 0.0  ;;  %v1457_v0 = vpop.f32.mrb[36].mxu1 }
 0x294   : > { %v1690_v63 = vpack.c.bf16 %v1602_v50, %v1598_v45  ;;  %v1454_v45 = vadd.f32 %v1453_v39, %v20021_v43  ;;  %v1458_v7 = vadd.f32 %v1457_v0, %v20017_v40 }
 0x295   : > { %v1274_v5 = vpop.f32.mrb[40].mxu0  ;;  %v1691_v6 = vpack.c.bf16 %v1603_v54, %v1599_v49  ;;  %v1596_v49 = vmax.f32 %v1452_v38, 0.0 }
 0x296   : > { %v1276_v8 = vpop.f32.mrb[41].mxu0  ;;  %v1275_v9 = vadd.f32 %v1274_v5, %v19999_v58  ;;  %v1597_v53 = vmax.f32 %v1454_v45, 0.0 }
 0x297   : > { %v1278_v13 = vpop.f32.mrb[42].mxu0  ;;  %2630 = vmatprep.mubr.bf16.mxu0 %v1691_v6  ;;  %3016 = vmatprep.mubr.bf16.mxu1 %v1691_v6  ;;  %v1277_v14 = vadd.f32 %v1276_v8, %v20002_v59  ;;  %v20128_v60 = vpack.c.bf16 %v1596_v49, %v1592_v36  ;;  %v1459_v8 = vpop.f32.mrb[37].mxu1 }
 0x298   : > { %v1280_v16 = vpop.f32.mrb[43].mxu0  ;;  %2631 = vmatmul.mubr.bf16.gmra.mrb[100].mxu0 %v1690_v63  ;;  %3017 = vmatmul.mubr.bf16.gmra.mrb[100].mxu1 %v1690_v63  ;;  %v1279_v17 = vadd.f32 %v1278_v13, %v19999_v58  ;;  %v1606_v22 = vmax.f32 %v1275_v9, 0.0  ;;  %v20131_v2 = vpack.c.bf16 %v1597_v53, %v1593_v44  ;;  %v1460_v13 = vadd.f32 %v1459_v8, %v20021_v43 }
 0x299   : > { %v1281_v21 = vadd.f32 %v1280_v16, %v20002_v59  ;;  %v1607_v28 = vmax.f32 %v1277_v14, 0.0  ;;  %v1461_v14 = vpop.f32.mrb[38].mxu1 }
 0x29a   : > { %v1610_v29 = vmax.f32 %v1279_v17, 0.0  ;;  %v1600_v17 = vmax.f32 %v1458_v7, 0.0  ;;  %v1462_v19 = vadd.f32 %v1461_v14, %v20017_v40  ;;  %v1601_v24 = vmax.f32 %v1460_v13, 0.0 }
 0x29b   : > { %v1611_v34 = vmax.f32 %v1281_v21, 0.0  ;;  %v1463_v21 = vpop.f32.mrb[39].mxu1 }
 0x29c   : > { %v1694_v41 = vpack.c.bf16 %v1610_v29, %v1606_v22  ;;  %v1464_v25 = vadd.f32 %v1463_v21, %v20021_v43  ;;  %v1604_v32 = vmax.f32 %v1462_v19, 0.0 }
 0x29d   : > { %v1284_v47 = vpop.f32.mrb[44].mxu0  ;;  %v1695_v48 = vpack.c.bf16 %v1611_v34, %v1607_v28 }
 0x29e   : > { %v1286_v50 = vpop.f32.mrb[45].mxu0  ;;  %v1285_v51 = vadd.f32 %v1284_v47, %v19999_v58  ;;  %v1605_v36 = vmax.f32 %v1464_v25, 0.0  ;;  %v1467_v47 = vpop.f32.mrb[40].mxu1 }
 0x29f   : > { %v1288_v54 = vpop.f32.mrb[46].mxu0  ;;  %2640 = vmatprep.mubr.bf16.mxu0 %v1695_v48  ;;  %3026 = vmatprep.mubr.bf16.mxu1 %v1695_v48  ;;  %v1287_v56 = vadd.f32 %v1286_v50, %v20002_v59  ;;  %v1469_v53 = vpop.f32.mrb[41].mxu1 }
 0x2a0   : > { %v1290_v61 = vpop.f32.mrb[47].mxu0  ;;  %2641 = vmatmul.mubr.bf16.gmra.mrb[104].mxu0 %v1694_v41  ;;  %3027 = vmatmul.mubr.bf16.gmra.mrb[104].mxu1 %v1694_v41  ;;  %v1289_v63 = vadd.f32 %v1288_v54, %v19999_v58  ;;  %v1614_v6 = vmax.f32 %v1285_v51, 0.0  ;;  %v20140_v41 = vpack.c.bf16 %v1604_v32, %v1600_v17  ;;  %v20143_v48 = vpack.c.bf16 %v1605_v36, %v1601_v24  ;;  %v17985_v54 = vld [vmem:[#allocation8 + $0x4] ss:$16 sps:$4 sm:$0xff]   ;;  %v1471_v0 = vpop.f32.mrb[42].mxu1 }
 0x2a1   : > { %v1291_v5 = vadd.f32 %v1290_v61, %v20002_v59  ;;  %v1615_v9 = vmax.f32 %v1287_v56, 0.0  ;;  %v1468_v51 = vadd.f32 %v1467_v47, %v20017_v40  ;;  %v1472_v7 = vadd.f32 %v1471_v0, %v20017_v40  ;;  %v1473_v8 = vpop.f32.mrb[43].mxu1  ;;  %4262 = vmatprep.subr.bf16.mxu0 %v17985_v54 }
 0x2a2   : > { %v1618_v11 = vmax.f32 %v1289_v63, 0.0  ;;  %v1470_v63 = vadd.f32 %v1469_v53, %v20021_v43  ;;  %v1474_v13 = vadd.f32 %v1473_v8, %v20021_v43 }
 0x2a3   : > { %v1619_v16 = vmax.f32 %v1291_v5, 0.0  ;;  %v1612_v17 = vmax.f32 %v1472_v7, 0.0 }
 0x2a4   : > { %v1698_v22 = vpack.c.bf16 %v1618_v11, %v1614_v6  ;;  %v1608_v6 = vmax.f32 %v1468_v51, 0.0  ;;  %v1609_v11 = vmax.f32 %v1470_v63, 0.0 }
 0x2a5   : > { %v1294_v28 = vpop.f32.mrb[48].mxu0  ;;  %v1699_v29 = vpack.c.bf16 %v1619_v16, %v1615_v9 }
 0x2a6   : > { %v1296_v33 = vpop.f32.mrb[49].mxu0  ;;  %v1295_v34 = vadd.f32 %v1294_v28, %v19999_v58  ;;  %v20152_v28 = vpack.c.bf16 %v1612_v17, %v1608_v6 }
 0x2a7   : > { %v1298_v38 = vpop.f32.mrb[50].mxu0  ;;  %2650 = vmatprep.mubr.bf16.mxu0 %v1699_v29  ;;  %3036 = vmatprep.mubr.bf16.mxu1 %v1699_v29  ;;  %v1297_v39 = vadd.f32 %v1296_v33, %v20002_v59  ;;  %v1477_v33 = vpop.f32.mrb[44].mxu1 }
 0x2a8   : > { %v1300_v44 = vpop.f32.mrb[51].mxu0  ;;  %2651 = vmatmul.mubr.bf16.gmra.mrb[108].mxu0 %v1698_v22  ;;  %3037 = vmatmul.mubr.bf16.gmra.mrb[108].mxu1 %v1698_v22  ;;  %v1299_v45 = vadd.f32 %v1298_v38, %v19999_v58  ;;  %v1622_v50 = vmax.f32 %v1295_v34, 0.0  ;;  %v1613_v22 = vmax.f32 %v1474_v13, 0.0 }
 0x2a9   : > { %v1301_v49 = vadd.f32 %v1300_v44, %v20002_v59  ;;  %v1623_v56 = vmax.f32 %v1297_v39, 0.0  ;;  %v1478_v39 = vadd.f32 %v1477_v33, %v20017_v40  ;;  %v1479_v44 = vpop.f32.mrb[45].mxu1 }
 0x2aa   : > { %v1626_v61 = vmax.f32 %v1299_v45, 0.0  ;;  %v20155_v34 = vpack.c.bf16 %v1613_v22, %v1609_v11 }
 0x2ab   : > { %v1627_v5 = vmax.f32 %v1301_v49, 0.0  ;;  %v1480_v49 = vadd.f32 %v1479_v44, %v20021_v43  ;;  %v1616_v53 = vmax.f32 %v1478_v39, 0.0 }
 0x2ac   : > { %v1702_v9 = vpack.c.bf16 %v1626_v61, %v1622_v50  ;;  %v1481_v50 = vpop.f32.mrb[46].mxu1 }
 0x2ad   : > { %v1304_v14 = vpop.f32.mrb[52].mxu0  ;;  %v1703_v16 = vpack.c.bf16 %v1627_v5, %v1623_v56  ;;  %v1482_v54 = vadd.f32 %v1481_v50, %v20017_v40  ;;  %v1483_v56 = vpop.f32.mrb[47].mxu1  ;;  %v1617_v63 = vmax.f32 %v1480_v49, 0.0 }
 0x2ae   : > { %v1306_v19 = vpop.f32.mrb[53].mxu0  ;;  %v1305_v21 = vadd.f32 %v1304_v14, %v19999_v58  ;;  %v1484_v0 = vadd.f32 %v1483_v56, %v20021_v43 }
 0x2af   : > { %v1308_v24 = vpop.f32.mrb[54].mxu0  ;;  %2660 = vmatprep.mubr.bf16.mxu0 %v1703_v16  ;;  %3046 = vmatprep.mubr.bf16.mxu1 %v1703_v16  ;;  %v1307_v25 = vadd.f32 %v1306_v19, %v20002_v59  ;;  %v1620_v7 = vmax.f32 %v1482_v54, 0.0 }
 0x2b0   : > { %v1310_v29 = vpop.f32.mrb[55].mxu0  ;;  %2661 = vmatmul.mubr.bf16.gmra.mrb[112].mxu0 %v1702_v9  ;;  %3047 = vmatmul.mubr.bf16.gmra.mrb[112].mxu1 %v1702_v9  ;;  %v1309_v32 = vadd.f32 %v1308_v24, %v19999_v58  ;;  %v1630_v38 = vmax.f32 %v1305_v21, 0.0  ;;  %v1621_v11 = vmax.f32 %v1484_v0, 0.0  ;;  %v1487_v21 = vpop.f32.mrb[48].mxu1 }
 0x2b1   : > { %v1311_v36 = vadd.f32 %v1310_v29, %v20002_v59  ;;  %v1631_v45 = vmax.f32 %v1307_v25, 0.0  ;;  %v20164_v16 = vpack.c.bf16 %v1620_v7, %v1616_v53  ;;  %v1488_v29 = vadd.f32 %v1487_v21, %v20017_v40 }
 0x2b2   : > { %v1634_v47 = vmax.f32 %v1309_v32, 0.0  ;;  %v20167_v22 = vpack.c.bf16 %v1621_v11, %v1617_v63  ;;  %v1489_v32 = vpop.f32.mrb[49].mxu1 }
 0x2b3   : > { %v1635_v51 = vmax.f32 %v1311_v36, 0.0  ;;  %v1491_v39 = vpop.f32.mrb[50].mxu1 }
 0x2b4   : > { %v1706_v61 = vpack.c.bf16 %v1634_v47, %v1630_v38  ;;  %v1490_v38 = vadd.f32 %v1489_v32, %v20021_v43  ;;  %v1492_v47 = vadd.f32 %v1491_v39, %v20017_v40  ;;  %v1493_v49 = vpop.f32.mrb[51].mxu1 }
 0x2b5   : > { %v1314_v5 = vpop.f32.mrb[56].mxu0  ;;  %v1707_v6 = vpack.c.bf16 %v1635_v51, %v1631_v45  ;;  %v1624_v45 = vmax.f32 %v1488_v29, 0.0  ;;  %v1494_v53 = vadd.f32 %v1493_v49, %v20021_v43 }
 0x2b6   : > { %v1316_v8 = vpop.f32.mrb[57].mxu0  ;;  %v1315_v9 = vadd.f32 %v1314_v5, %v19999_v58  ;;  %v1625_v51 = vmax.f32 %v1490_v38, 0.0 }
 0x2b7   : > { %v1318_v13 = vpop.f32.mrb[58].mxu0  ;;  %2670 = vmatprep.mubr.bf16.mxu0 %v1707_v6  ;;  %3056 = vmatprep.mubr.bf16.mxu1 %v1707_v6  ;;  %v1317_v14 = vadd.f32 %v1316_v8, %v20002_v59  ;;  %v1629_v5 = vmax.f32 %v1494_v53, 0.0 }
 0x2b8   : > { %v1320_v17 = vpop.f32.mrb[59].mxu0  ;;  %2671 = vmatmul.mubr.bf16.gmra.mrb[116].mxu0 %v1706_v61  ;;  %3057 = vmatmul.mubr.bf16.gmra.mrb[116].mxu1 %v1706_v61  ;;  %v1319_v19 = vadd.f32 %v1318_v13, %v19999_v58  ;;  %v1638_v25 = vmax.f32 %v1315_v9, 0.0  ;;  %v1628_v61 = vmax.f32 %v1492_v47, 0.0  ;;  %v1497_v13 = vpop.f32.mrb[52].mxu1 }
 0x2b9   : > { %v1321_v24 = vadd.f32 %v1320_v17, %v20002_v59  ;;  %v1639_v33 = vmax.f32 %v1317_v14, 0.0  ;;  %v20179_v14 = vpack.c.bf16 %v1629_v5, %v1625_v51  ;;  %v1498_v21 = vadd.f32 %v1497_v13, %v20017_v40 }
 0x2ba   : > { %v1642_v36 = vmax.f32 %v1319_v19, 0.0  ;;  %v20176_v8 = vpack.c.bf16 %v1628_v61, %v1624_v45 }
 0x2bb   : > { %v1643_v44 = vmax.f32 %v1321_v24, 0.0  ;;  %v1499_v24 = vpop.f32.mrb[53].mxu1  ;;  %v1632_v38 = vmax.f32 %v1498_v21, 0.0 }
 0x2bc   : > { %v1710_v50 = vpack.c.bf16 %v1642_v36, %v1638_v25  ;;  %v1500_v32 = vadd.f32 %v1499_v24, %v20021_v43  ;;  %v18010_v24 = vld [vmem:[#allocation8 + $0x8] ss:$16 sps:$4 sm:$0xff]  }
 0x2bd   : > { %v1324_v54 = vpop.f32.mrb[60].mxu0  ;;  %v1711_v56 = vpack.c.bf16 %v1643_v44, %v1639_v33  ;;  %v1501_v33 = vpop.f32.mrb[54].mxu1 }
 0x2be   : > { %v1326_v63 = vpop.f32.mrb[61].mxu0  ;;  %v1325_v0 = vadd.f32 %v1324_v54, %v19999_v58  ;;  %v1502_v39 = vadd.f32 %v1501_v33, %v20017_v40  ;;  %v1503_v44 = vpop.f32.mrb[55].mxu1  ;;  %v1633_v45 = vmax.f32 %v1500_v32, 0.0 }
 0x2bf   : > { %v1328_v6 = vpop.f32.mrb[62].mxu0  ;;  %2680 = vmatprep.mubr.bf16.mxu0 %v1711_v56  ;;  %3066 = vmatprep.mubr.bf16.mxu1 %v1711_v56  ;;  %v1327_v7 = vadd.f32 %v1326_v63, %v20002_v59  ;;  %v1504_v47 = vadd.f32 %v1503_v44, %v20021_v43  ;;  %v1507_v53 = vpop.f32.mrb[56].mxu1 }
 0x2c0   : > { %v1330_v9 = vpop.f32.mrb[63].mxu0  ;;  %2681 = vmatmul.mubr.bf16.gmra.mrb[120].mxu0 %v1710_v50  ;;  %3067 = vmatmul.mubr.bf16.gmra.mrb[120].mxu1 %v1710_v50  ;;  %v1329_v11 = vadd.f32 %v1328_v6, %v19999_v58  ;;  %v1646_v19 = vmax.f32 %v1325_v0, 0.0  ;;  %v1508_v56 = vadd.f32 %v1507_v53, %v20017_v40  ;;  %v1509_v61 = vpop.f32.mrb[57].mxu1 }
 0x2c1   : > { %v1331_v17 = vadd.f32 %v1330_v9, %v20002_v59  ;;  %v1647_v25 = vmax.f32 %v1327_v7, 0.0  ;;  %v1636_v59 = vmax.f32 %v1502_v39, 0.0  ;;  %v1637_v50 = vmax.f32 %v1504_v47, 0.0  ;;  %v1511_v0 = vpop.f32.mrb[58].mxu1  ;;  %v17986_v39 = vld [vmem:[#allocation8 + $0x20] ss:$16 sps:$4 sm:$0xff]  }
 0x2c2   : > { %v1650_v29 = vmax.f32 %v1329_v11, 0.0  ;;  %v1510_v63 = vadd.f32 %v1509_v61, %v20021_v43  ;;  %v1640_v5 = vmax.f32 %v1508_v56, 0.0  ;;  %v1512_v6 = vadd.f32 %v1511_v0, %v20017_v40  ;;  %v1513_v7 = vpop.f32.mrb[59].mxu1  ;;  %v18019_v0 = vld [vmem:[#allocation8 + $0x48] ss:$16 sps:$4 sm:$0xff]  }
 0x2c3   : > { %v1651_v36 = vmax.f32 %v1331_v17, 0.0  ;;  %v20186_v51 = vpack.c.bf16 %v1636_v59, %v1632_v38  ;;  %v20188_v54 = vpack.c.bf16 %v1637_v50, %v1633_v45  ;;  %v1514_v11 = vadd.f32 %v1513_v7, %v20021_v43  ;;  %v18012_v17 = vld [vmem:[#allocation8 + $0xc] ss:$16 sps:$4 sm:$0xff]   ;;  %v1517_v32 = vpop.f32.mrb[60].mxu1  ;;  %v18013_v45 = vld [vmem:[#allocation8 + $0x28] ss:$16 sps:$4 sm:$0xff]  }
 0x2c4   : > { %v1714_v58 = vpack.c.bf16 %v1650_v29, %v1646_v19  ;;  %v1641_v9 = vmax.f32 %v1510_v63, 0.0  ;;  %v1644_v13 = vmax.f32 %v1512_v6, 0.0  ;;  %v17983_v19 = vld [vmem:[#allocation8] ss:$16 sps:$4 sm:$0xff]   ;;  %4648 = vmatprep.subr.bf16.mxu1 %v18012_v17  ;;  %v18015_v29 = vld [vmem:[#allocation8 + $0x2c] ss:$16 sps:$4 sm:$0xff]  }
 0x2c5   : > { %v1715_v49 = vpack.c.bf16 %v1651_v36, %v1647_v25  ;;  %v1645_v21 = vmax.f32 %v1514_v11, 0.0  ;;  %v17988_v25 = vld [vmem:[#allocation8 + $0x24] ss:$16 sps:$4 sm:$0xff]   ;;  %v1518_v36 = vadd.f32 %v1517_v32, %v20017_v40  ;;  %v1519_v38 = vpop.f32.mrb[61].mxu1  ;;  %v18021_v50 = vld [vmem:[#allocation8 + $0x4c] ss:$16 sps:$4 sm:$0xff]  }
 0x2c6   : > { %v1520_v44 = vadd.f32 %v1519_v38, %v20021_v43  ;;  %v17991_v59 = vld [vmem:[#allocation8 + $0x44] ss:$16 sps:$4 sm:$0xff]   ;;  %v17989_v63 = vld [vmem:[#allocation8 + $0x40] ss:$16 sps:$4 sm:$0xff]   ;;  %v18024_v7 = vld [vmem:[#allocation8 + $0x6c] ss:$16 sps:$4 sm:$0xff]  }
 0x2c7   : > { %2690 = vmatprep.mubr.bf16.mxu0 %v1715_v49  ;;  %3076 = vmatprep.mubr.bf16.mxu1 %v1715_v49  ;;  %v20200_v33 = vpack.c.bf16 %v1645_v21, %v1641_v9  ;;  %v1648_v47 = vmax.f32 %v1518_v36, 0.0  ;;  %v18022_v9 = vld [vmem:[#allocation8 + $0x68] ss:$16 sps:$4 sm:$0xff]   ;;  %v17997_v11 = vld [vmem:[#allocation8 + $0x84] ss:$16 sps:$4 sm:$0xff]  }
 0x2c8   : > { %2691 = vmatmul.mubr.bf16.gmra.mrb[124].mxu0 %v1714_v58  ;;  %3077 = vmatmul.mubr.bf16.gmra.mrb[124].mxu1 %v1714_v58  ;;  %v1521_v58 = vpop.f32.mrb[62].mxu1  ;;  %v1649_v53 = vmax.f32 %v1520_v44, 0.0  ;;  %v17995_v17 = vld [vmem:[#allocation8 + $0x80] ss:$16 sps:$4 sm:$0xff]   ;;  %v18028_v21 = vld [vmem:[#allocation8 + $0x88] ss:$16 sps:$4 sm:$0xff]  }
 0x2c9   : > { %2733 = vmatprep.mubr.bf16.mxu0 %v20035_v31  ;;  %3119 = vmatprep.mubr.bf16.mxu1 %v20035_v31  ;;  %v20196_v31 = vpack.c.bf16 %v1644_v13, %v1640_v5  ;;  %v1523_v49 = vpop.f32.mrb[63].mxu1  ;;  %v17994_v5 = vld [vmem:[#allocation8 + $0x64] ss:$16 sps:$4 sm:$0xff]   ;;  %v18030_v13 = vld [vmem:[#allocation8 + $0x8c] ss:$16 sps:$4 sm:$0xff]  }
 0x2ca   : > { %v18001_v32 = vld [vmem:[#allocation8 + $0xc0] ss:$16 sps:$4 sm:$0xff]   ;;  %v18037_v36 = vld [vmem:[#allocation8 + $0xc8] ss:$16 sps:$4 sm:$0xff]   ;;  %v18006_v38 = vld [vmem:[#allocation8 + $0xe4] ss:$16 sps:$4 sm:$0xff]  }
 0x2cb   : > { %v18009_v44 = vld [vmem:[#allocation8 + $0x104] ss:$16 sps:$4 sm:$0xff]  }
 0x2d0   : > { %2734 = vmatmul.mubr.bf16.vlgmr.msra.gmra.mrb[64].mxu0 %v20032_v23  ;;  %3120 = vmatmul.mubr.bf16.vlgmr.msra.gmra.mrb[64].mxu1 %v20032_v23  ;;  %v1522_v23 = vadd.f32 %v1521_v58, %v20017_v40  ;;  %v18048_v58 = vld [vmem:[#allocation8 + $0x10c] ss:$16 sps:$4 sm:$0xff]  }
 0x2d1   : > { %2743 = vmatprep.mubr.bf16.mxu0 %v20047_v10  ;;  %3129 = vmatprep.mubr.bf16.mxu1 %v20047_v10  ;;  %v1524_v10 = vadd.f32 %v1523_v49, %v20021_v43  ;;  %v17992_v43 = vld [vmem:[#allocation8 + $0x60] ss:$16 sps:$4 sm:$0xff]   ;;  %v18049_v49 = vld [vmem:[#allocation8 + $0x128] ss:$16 sps:$4 sm:$0xff]  }
 0x2d2   : > { %4263 = vmatpush1.bf16.msra.mxu0 %v17983_v19  ;;  %4649 = vmatpush1.bf16.msra.mxu1 %v18010_v24  ;;  %v1652_v56 = vmax.f32 %v1522_v23, 0.0  ;;  %v18000_v19 = vld [vmem:[#allocation8 + $0xa4] ss:$16 sps:$4 sm:$0xff]   ;;  %v18033_v24 = vld [vmem:[#allocation8 + $0xac] ss:$16 sps:$4 sm:$0xff]  }
 0x2d3   : > { %4264 = vmatprep.subr.bf16.mxu0 %v17988_v25  ;;  %4650 = vmatprep.subr.bf16.mxu1 %v18015_v29  ;;  %v1653_v61 = vmax.f32 %v1524_v10, 0.0  ;;  %v18003_v25 = vld [vmem:[#allocation8 + $0xc4] ss:$16 sps:$4 sm:$0xff]   ;;  %v18039_v29 = vld [vmem:[#allocation8 + $0xcc] ss:$16 sps:$4 sm:$0xff]  }
 0x2d4   : > { %v20208_v6 = vpack.c.bf16 %v1652_v56, %v1648_v47  ;;  %v18046_v47 = vld [vmem:[#allocation8 + $0x108] ss:$16 sps:$4 sm:$0xff]   ;;  %v18018_v23 = vld [vmem:[#allocation8 + $0x124] ss:$16 sps:$4 sm:$0xff]  }
 0x2d5   : > { %v20212_v40 = vpack.c.bf16 %v1653_v61, %v1649_v53  ;;  %v18025_v53 = vld [vmem:[#allocation8 + $0x140] ss:$16 sps:$4 sm:$0xff]   ;;  %v18055_v10 = vld [vmem:[#allocation8 + $0x148] ss:$16 sps:$4 sm:$0xff]   ;;  %v18036_v56 = vld [vmem:[#allocation8 + $0x164] ss:$16 sps:$4 sm:$0xff]  }
 0x2d6   : > { %4265 = vmatpush1.bf16.msra.mxu0 %v17986_v39  ;;  %4651 = vmatpush1.bf16.msra.mxu1 %v18013_v45  ;;  %v18040_v39 = vld [vmem:[#allocation8 + $0xe8] ss:$16 sps:$4 sm:$0xff]   ;;  %v18007_v45 = vld [vmem:[#allocation8 + $0x100] ss:$16 sps:$4 sm:$0xff]  }
 0x2d7   : > { %4266 = vmatprep.subr.bf16.mxu0 %v17991_v59  ;;  %4652 = vmatprep.subr.bf16.mxu1 %v18021_v50  ;;  %v18027_v59 = vld [vmem:[#allocation8 + $0x144] ss:$16 sps:$4 sm:$0xff]   ;;  %v18057_v50 = vld [vmem:[#allocation8 + $0x14c] ss:$16 sps:$4 sm:$0xff]   ;;  %v18058_v61 = vld [vmem:[#allocation8 + $0x168] ss:$16 sps:$4 sm:$0xff]  }
 0x2d8   : > { %2744 = vmatmul.mubr.bf16.gmra.mrb[68].mxu0 %v20044_v4  ;;  %3130 = vmatmul.mubr.bf16.gmra.mrb[68].mxu1 %v20044_v4  ;;  %v17998_v4 = vld [vmem:[#allocation8 + $0xa0] ss:$16 sps:$4 sm:$0xff]  }
 0x2d9   : > { %2753 = vmatprep.mubr.bf16.mxu0 %v20059_v52  ;;  %3139 = vmatprep.mubr.bf16.mxu1 %v20059_v52  ;;  %v18031_v52 = vld [vmem:[#allocation8 + $0xa8] ss:$16 sps:$4 sm:$0xff]  }
 0x2da   : > { %4267 = vmatpush1.bf16.msra.mxu0 %v17989_v63  ;;  %4653 = vmatpush1.bf16.msra.mxu1 %v18019_v0  ;;  %v18045_v63 = vld [vmem:[#allocation8 + $0x184] ss:$16 sps:$4 sm:$0xff]   ;;  %v18066_v0 = vld [vmem:[#allocation8 + $0x18c] ss:$16 sps:$4 sm:$0xff]  }
 0x2db   : > { %4268 = vmatprep.subr.bf16.mxu0 %v17994_v5  ;;  %4654 = vmatprep.subr.bf16.mxu1 %v18024_v7  ;;  %v18043_v5 = vld [vmem:[#allocation8 + $0x180] ss:$16 sps:$4 sm:$0xff]   ;;  %v18064_v7 = vld [vmem:[#allocation8 + $0x188] ss:$16 sps:$4 sm:$0xff]  }
 0x2de   : > { %4269 = vmatpush1.bf16.msra.mxu0 %v17992_v43  ;;  %4655 = vmatpush1.bf16.msra.mxu1 %v18022_v9  ;;  %v18054_v43 = vld [vmem:[#allocation8 + $0x1a4] ss:$16 sps:$4 sm:$0xff]   ;;  %v18067_v9 = vld [vmem:[#allocation8 + $0x1a8] ss:$16 sps:$4 sm:$0xff]  }
 0x2df   : > { %4270 = vmatprep.subr.bf16.mxu0 %v17997_v11  ;;  %4656 = vmatprep.subr.bf16.mxu1 %v18030_v13  ;;  %v18063_v11 = vld [vmem:[#allocation8 + $0x1c4] ss:$16 sps:$4 sm:$0xff]   ;;  %v18061_v13 = vld [vmem:[#allocation8 + $0x1c0] ss:$16 sps:$4 sm:$0xff]  }
 0x2e0   : > { %2754 = vmatmul.mubr.bf16.gmra.mrb[72].mxu0 %v20056_v46  ;;  %3140 = vmatmul.mubr.bf16.gmra.mrb[72].mxu1 %v20056_v46  ;;  %v18042_v46 = vld [vmem:[#allocation8 + $0xec] ss:$16 sps:$4 sm:$0xff]  }
 0x2e1   : > { %2763 = vmatprep.mubr.bf16.mxu0 %v20071_v35  ;;  %3149 = vmatprep.mubr.bf16.mxu1 %v20071_v35  ;;  %v18004_v35 = vld [vmem:[#allocation8 + $0xe0] ss:$16 sps:$4 sm:$0xff]  }
 0x2e2   : > { %4271 = vmatpush1.bf16.msra.mxu0 %v17995_v17  ;;  %4657 = vmatpush1.bf16.msra.mxu1 %v18028_v21 }
 0x2e3   : > { %4272 = vmatprep.subr.bf16.mxu0 %v18000_v19  ;;  %4658 = vmatprep.subr.bf16.mxu1 %v18033_v24 }
 0x2e6   : > { %4273 = vmatpush1.bf16.msra.mxu0 %v17998_v4  ;;  %4659 = vmatpush1.bf16.msra.mxu1 %v18031_v52 }
 0x2e7   : > { %4274 = vmatprep.subr.bf16.mxu0 %v18003_v25  ;;  %4660 = vmatprep.subr.bf16.mxu1 %v18039_v29 }
 0x2e8   : > { %2764 = vmatmul.mubr.bf16.gmra.mrb[76].mxu0 %v20068_v26  ;;  %3150 = vmatmul.mubr.bf16.gmra.mrb[76].mxu1 %v20068_v26  ;;  %v18051_v26 = vld [vmem:[#allocation8 + $0x12c] ss:$16 sps:$4 sm:$0xff]  }
 0x2e9   : > { %2773 = vmatprep.mubr.bf16.mxu0 %v20083_v18  ;;  %3159 = vmatprep.mubr.bf16.mxu1 %v20083_v18  ;;  %v18016_v18 = vld [vmem:[#allocation8 + $0x120] ss:$16 sps:$4 sm:$0xff]  }
 0x2ea   : > { %4275 = vmatpush1.bf16.msra.mxu0 %v18001_v32  ;;  %4661 = vmatpush1.bf16.msra.mxu1 %v18037_v36 }
 0x2eb   : > { %4276 = vmatprep.subr.bf16.mxu0 %v18006_v38  ;;  %4662 = vmatprep.subr.bf16.mxu1 %v18042_v46 }
 0x2ee   : > { %4277 = vmatpush1.bf16.msra.mxu0 %v18004_v35  ;;  %4663 = vmatpush1.bf16.msra.mxu1 %v18040_v39 }
 0x2ef   : > { %4278 = vmatprep.subr.bf16.mxu0 %v18009_v44  ;;  %4664 = vmatprep.subr.bf16.mxu1 %v18048_v58 }
 0x2f0   : > { %2774 = vmatmul.mubr.bf16.gmra.mrb[80].mxu0 %v20080_v12  ;;  %3160 = vmatmul.mubr.bf16.gmra.mrb[80].mxu1 %v20080_v12  ;;  %v18060_v12 = vld [vmem:[#allocation8 + $0x16c] ss:$16 sps:$4 sm:$0xff]  }
 0x2f1   : > { %2783 = vmatprep.mubr.bf16.mxu0 %v20095_v3  ;;  %3169 = vmatprep.mubr.bf16.mxu1 %v20095_v3  ;;  %v18034_v3 = vld [vmem:[#allocation8 + $0x160] ss:$16 sps:$4 sm:$0xff]  }
 0x2f2   : > { %4279 = vmatpush1.bf16.msra.mxu0 %v18007_v45  ;;  %4665 = vmatpush1.bf16.msra.mxu1 %v18046_v47 }
 0x2f3   : > { %4280 = vmatprep.subr.bf16.mxu0 %v18018_v23  ;;  %4666 = vmatprep.subr.bf16.mxu1 %v18051_v26 }
 0x2f6   : > { %4281 = vmatpush1.bf16.msra.mxu0 %v18016_v18  ;;  %4667 = vmatpush1.bf16.msra.mxu1 %v18049_v49 }
 0x2f7   : > { %4282 = vmatprep.subr.bf16.mxu0 %v18027_v59  ;;  %4668 = vmatprep.subr.bf16.mxu1 %v18057_v50  ;;  %v18079_v50 = vld [vmem:[#allocation8 + $0x200] ss:$16 sps:$4 sm:$0xff]  }
 0x2f8   : > { %2784 = vmatmul.mubr.bf16.gmra.mrb[84].mxu0 %v20092_v62  ;;  %3170 = vmatmul.mubr.bf16.gmra.mrb[84].mxu1 %v20092_v62  ;;  %v18069_v62 = vld [vmem:[#allocation8 + $0x1ac] ss:$16 sps:$4 sm:$0xff]  }
 0x2f9   : > { %2793 = vmatprep.mubr.bf16.mxu0 %v20107_v42  ;;  %3179 = vmatprep.mubr.bf16.mxu1 %v20107_v42  ;;  %v18052_v42 = vld [vmem:[#allocation8 + $0x1a0] ss:$16 sps:$4 sm:$0xff]  }
 0x2fa   : > { %4283 = vmatpush1.bf16.msra.mxu0 %v18025_v53  ;;  %4669 = vmatpush1.bf16.msra.mxu1 %v18055_v10  ;;  %v18106_v53 = vld [vmem:[#allocation8 + $0x208] ss:$16 sps:$4 sm:$0xff]  }
 0x2fb   : > { %4284 = vmatprep.subr.bf16.mxu0 %v18036_v56  ;;  %4670 = vmatprep.subr.bf16.mxu1 %v18060_v12 }
 0x2fe   : > { %4285 = vmatpush1.bf16.msra.mxu0 %v18034_v3  ;;  %4671 = vmatpush1.bf16.msra.mxu1 %v18058_v61  ;;  %v18084_v61 = vld [vmem:[#allocation8 + $0x224] ss:$16 sps:$4 sm:$0xff]  }
 0x2ff   : > { %4286 = vmatprep.subr.bf16.mxu0 %v18045_v63  ;;  %4672 = vmatprep.subr.bf16.mxu1 %v18066_v0  ;;  %v18111_v63 = vld [vmem:[#allocation8 + $0x22c] ss:$16 sps:$4 sm:$0xff]  }
 0x300   : > { %2794 = vmatmul.mubr.bf16.gmra.mrb[88].mxu0 %v20104_v37  ;;  %3180 = vmatmul.mubr.bf16.gmra.mrb[88].mxu1 %v20104_v37  ;;  %v18075_v37 = vld [vmem:[#allocation8 + $0x1cc] ss:$16 sps:$4 sm:$0xff]  }
 0x301   : > { %2803 = vmatprep.mubr.bf16.mxu0 %v20119_v20  ;;  %3189 = vmatprep.mubr.bf16.mxu1 %v20119_v20  ;;  %v18072_v20 = vld [vmem:[#allocation8 + $0x1e4] ss:$16 sps:$4 sm:$0xff]  }
 0x302   : > { %4287 = vmatpush1.bf16.msra.mxu0 %v18043_v5  ;;  %4673 = vmatpush1.bf16.msra.mxu1 %v18064_v7 }
 0x303   : > { %4288 = vmatprep.subr.bf16.mxu0 %v18054_v43  ;;  %4674 = vmatprep.subr.bf16.mxu1 %v18069_v62 }
 0x306   : > { %4289 = vmatpush1.bf16.msra.mxu0 %v18052_v42  ;;  %4675 = vmatpush1.bf16.msra.mxu1 %v18067_v9 }
 0x307   : > { %4290 = vmatprep.subr.bf16.mxu0 %v18063_v11  ;;  %4676 = vmatprep.subr.bf16.mxu1 %v18075_v37 }
 0x308   : > { %2804 = vmatmul.mubr.bf16.gmra.mrb[92].mxu0 %v20116_v15  ;;  %3190 = vmatmul.mubr.bf16.gmra.mrb[92].mxu1 %v20116_v15  ;;  %v18073_v15 = vld [vmem:[#allocation8 + $0x1c8] ss:$16 sps:$4 sm:$0xff]  }
 0x309   : > { %2813 = vmatprep.mubr.bf16.mxu0 %v20131_v2  ;;  %3199 = vmatprep.mubr.bf16.mxu1 %v20131_v2  ;;  %v18070_v2 = vld [vmem:[#allocation8 + $0x1e0] ss:$16 sps:$4 sm:$0xff]  }
 0x30a   : > { %4291 = vmatpush1.bf16.msra.mxu0 %v18061_v13  ;;  %4677 = vmatpush1.bf16.msra.mxu1 %v18073_v15  ;;  %v18082_v15 = vld [vmem:[#allocation8 + $0x220] ss:$16 sps:$4 sm:$0xff]  }
 0x30b   : > { %4292 = vmatprep.subr.bf16.mxu0 %v18072_v20  ;;  %v18087_v20 = vld [vmem:[#allocation8 + $0x244] ss:$16 sps:$4 sm:$0xff]  }
 0x30e   : > { %4293 = vmatpush1.bf16.msra.mxu0 %v18070_v2 }
 0x310   : > { %2814 = vmatmul.mubr.bf16.gmra.mrb[96].mxu0 %v20128_v60  ;;  %3200 = vmatmul.mubr.bf16.gmra.mrb[96].mxu1 %v20128_v60  ;;  %v18078_v60 = vld [vmem:[#allocation8 + $0x1ec] ss:$16 sps:$4 sm:$0xff]  }
 0x311   : > { %2823 = vmatprep.mubr.bf16.mxu0 %v20143_v48  ;;  %3209 = vmatprep.mubr.bf16.mxu1 %v20143_v48  ;;  %v18081_v48 = vld [vmem:[#allocation8 + $0x204] ss:$16 sps:$4 sm:$0xff]  }
 0x312   : > { %4678 = vmatprep.subr.bf16.mxu1 %v18078_v60  ;;  %4455 = vmatprep.subr.bf16.mxu0 %v18081_v48  ;;  %v18109_v60 = vld [vmem:[#allocation8 + $0x228] ss:$16 sps:$4 sm:$0xff]  }
 0x318   : > { %2824 = vmatmul.mubr.bf16.gmra.mrb[100].mxu0 %v20140_v41  ;;  %3210 = vmatmul.mubr.bf16.gmra.mrb[100].mxu1 %v20140_v41  ;;  %v18076_v41 = vld [vmem:[#allocation8 + $0x1e8] ss:$16 sps:$4 sm:$0xff]  }
 0x319   : > { %2833 = vmatprep.mubr.bf16.mxu0 %v20155_v34  ;;  %3219 = vmatprep.mubr.bf16.mxu1 %v20155_v34  ;;  %v1846_v34 = vld [vmem:[%s22554_s5] sm:$0xf]  ;;  %s22562_s5 = sadd.s32 4294967295, %s19451_s25  }
 0x31a   : > { %4679 = vmatpush1.bf16.msra.mxu1 %v18076_v41  ;;  %s14774_s8 = sshll.u32 %s22562_s5, 5 }
 0x31b   : > { %p792_p6 = scmp.lt.s32.totalorder %s14774_s8, 63 }
 0x31d   : > { %s22569_s8 = smov (!%p792_p6, %s14774_s8), 63 }
 0x31e   : > { %s14775_s4 = sshll.u32 %s22569_s8, 3 }
 0x320   : > { %2834 = vmatmul.mubr.bf16.gmra.mrb[104].mxu0 %v20152_v28  ;;  %3220 = vmatmul.mubr.bf16.gmra.mrb[104].mxu1 %v20152_v28  ;;  %v18108_v28 = vld [vmem:[#allocation8 + $0x20c] ss:$16 sps:$4 sm:$0xff]  }
 0x321   : > { %2843 = vmatprep.mubr.bf16.mxu0 %v20167_v22  ;;  %3229 = vmatprep.mubr.bf16.mxu1 %v20167_v22  ;;  %v20277_v22 = vrot.slane %v1846_v34, %v20012_v27 }
 0x322   : > { %4841 = vmatprep.subr.bf16.mxu1 %v18108_v28  ;;  %v18117_v28 = vld [vmem:[#allocation8 + $0x24c] ss:$16 sps:$4 sm:$0xff]  }
 0x328   : > { %2844 = vmatmul.mubr.bf16.gmra.mrb[108].mxu0 %v20164_v16  ;;  %3230 = vmatmul.mubr.bf16.gmra.mrb[108].mxu1 %v20164_v16  ;;  %v20274_v16 = vrot.slane %v1846_v34, %v19991_v55 }
 0x329   : > { %2853 = vmatprep.mubr.bf16.mxu0 %v20179_v14  ;;  %3239 = vmatprep.mubr.bf16.mxu1 %v20179_v14  ;;  %v20283_v14 = vrot.slane %v1846_v34, %v20014_v30 }
 0x330   : > { %2854 = vmatmul.mubr.bf16.gmra.mrb[112].mxu0 %v20176_v8  ;;  %3240 = vmatmul.mubr.bf16.gmra.mrb[112].mxu1 %v20176_v8  ;;  %v20280_v8 = vrot.slane %v1846_v34, %v19996_v57 }
 0x331   : > { %2863 = vmatprep.mubr.bf16.mxu0 %v20188_v54  ;;  %3249 = vmatprep.mubr.bf16.mxu1 %v20188_v54 }
 0x338   : > { %2864 = vmatmul.mubr.bf16.gmra.mrb[116].mxu0 %v20186_v51  ;;  %3250 = vmatmul.mubr.bf16.gmra.mrb[116].mxu1 %v20186_v51 }
 0x339   : > { %2873 = vmatprep.mubr.bf16.mxu0 %v20200_v33  ;;  %3259 = vmatprep.mubr.bf16.mxu1 %v20200_v33 }
 0x340   : > { %2874 = vmatmul.mubr.bf16.gmra.mrb[120].mxu0 %v20196_v31  ;;  %3260 = vmatmul.mubr.bf16.gmra.mrb[120].mxu1 %v20196_v31 }
 0x341   : > { %2883 = vmatprep.mubr.bf16.mxu0 %v20212_v40  ;;  %3269 = vmatprep.mubr.bf16.mxu1 %v20212_v40 }
 0x348   : > { %2884 = vmatmul.mubr.bf16.gmra.mrb[124].mxu0 %v20208_v6  ;;  %3270 = vmatmul.mubr.bf16.gmra.mrb[124].mxu1 %v20208_v6 }
 0x3a3   : > { %v2735_v51 = vpop.f32.mrb[64].mxu0  ;;  %v3121_v54 = vpop.f32.mrb[64].mxu1 }
 0x3a4   : > { %v15916_v31 = vadd.f32 %v2735_v51, %v20274_v16  ;;  %v15980_v33 = vadd.f32 %v3121_v54, %v20277_v22  ;;  %v2737_v6 = vpop.f32.mrb[65].mxu0  ;;  %v3123_v40 = vpop.f32.mrb[65].mxu1 }
 0x3a5   : > { %v15917_v17 = vadd.f32 %v2737_v6, %v20280_v8  ;;  %v2739_v19 = vpop.f32.mrb[66].mxu0  ;;  %v3125_v21 = vpop.f32.mrb[66].mxu1  ;;  %v15981_v24 = vadd.f32 %v3123_v40, %v20283_v14 }
 0x3a6   : > { %v15918_v4 = vadd.f32 %v2739_v19, %v20274_v16  ;;  %v15982_v52 = vadd.f32 %v3125_v21, %v20277_v22  ;;  %v2741_v25 = vpop.f32.mrb[67].mxu0  ;;  %v3127_v29 = vpop.f32.mrb[67].mxu1  ;;  %v3280_v38 = vmax.f32 %v15916_v31, 0.0  ;;  %v3282_v46 = vmax.f32 %v15980_v33, 0.0 }
 0x3a7   : > { %v15919_v32 = vadd.f32 %v2741_v25, %v20280_v8  ;;  %v15983_v36 = vadd.f32 %v3127_v29, %v20283_v14  ;;  %v3281_v44 = vmax.f32 %v15917_v17, 0.0  ;;  %v3283_v45 = vmax.f32 %v15981_v24, 0.0 }
 0x3a8   : > { %v3284_v35 = vmax.f32 %v15918_v4, 0.0  ;;  %v3286_v39 = vmax.f32 %v15982_v52, 0.0  ;;  %v18085_v4 = vld [vmem:[#allocation8 + $0x240] ss:$16 sps:$4 sm:$0xff]   ;;  %v18115_v52 = vld [vmem:[#allocation8 + $0x248] ss:$16 sps:$4 sm:$0xff]  }
 0x3a9   : > { %v3285_v58 = vmax.f32 %v15919_v32, 0.0  ;;  %v3287_v47 = vmax.f32 %v15983_v36, 0.0 }
 0x3aa   : > { %v3408_v23 = vpack.c.bf16 %v3284_v35, %v3280_v38  ;;  %v20293_v26 = vpack.c.bf16 %v3286_v39, %v3282_v46  ;;  %v18090_v38 = vld [vmem:[#allocation8 + $0x264] ss:$16 sps:$4 sm:$0xff]   ;;  %v18120_v46 = vld [vmem:[#allocation8 + $0x26c] ss:$16 sps:$4 sm:$0xff]  }
 0x3ab   : > { %v2745_v18 = vpop.f32.mrb[68].mxu0  ;;  %v3131_v49 = vpop.f32.mrb[68].mxu1  ;;  %v3409_v59 = vpack.c.bf16 %v3285_v58, %v3281_v44  ;;  %v20295_v10 = vpack.c.bf16 %v3287_v47, %v3283_v45 }
 0x3ac   : > { %v15920_v56 = vadd.f32 %v2745_v18, %v20274_v16  ;;  %v2747_v12 = vpop.f32.mrb[69].mxu0  ;;  %v3133_v3 = vpop.f32.mrb[69].mxu1  ;;  %v15984_v0 = vadd.f32 %v3131_v49, %v20277_v22 }
 0x3ad   : > { %v15921_v5 = vadd.f32 %v2747_v12, %v20280_v8  ;;  %v2749_v7 = vpop.f32.mrb[70].mxu0  ;;  %v3135_v43 = vpop.f32.mrb[70].mxu1  ;;  %4294 = vmatprep.mubr.bf16.mxu0 %v3409_v59  ;;  %4680 = vmatprep.mubr.bf16.mxu1 %v3409_v59  ;;  %v15985_v62 = vadd.f32 %v3133_v3, %v20283_v14 }
 0x3ae   : > { %v15922_v42 = vadd.f32 %v2749_v7, %v20274_v16  ;;  %v2751_v9 = vpop.f32.mrb[71].mxu0  ;;  %v3137_v11 = vpop.f32.mrb[71].mxu1  ;;  %4295 = vmatmul.mubr.bf16.vlgmr.msra.gmra.mrb[128].mxu0 %v3408_v23  ;;  %4681 = vmatmul.mubr.bf16.vlgmr.msra.gmra.mrb[128].mxu1 %v3408_v23  ;;  %v15986_v13 = vadd.f32 %v3135_v43, %v20277_v22  ;;  %v3288_v41 = vmax.f32 %v15920_v56, 0.0  ;;  %v3290_v34 = vmax.f32 %v15984_v0, 0.0  ;;  %v18118_v56 = vld [vmem:[#allocation8 + $0x268] ss:$16 sps:$4 sm:$0xff]  }
 0x3af   : > { %v15923_v37 = vadd.f32 %v2751_v9, %v20280_v8  ;;  %4456 = vmatpush1.bf16.msra.mxu0 %v18079_v50  ;;  %4842 = vmatpush1.bf16.msra.mxu1 %v18106_v53  ;;  %v15987_v2 = vadd.f32 %v3137_v11, %v20283_v14  ;;  %v3289_v54 = vmax.f32 %v15921_v5, 0.0  ;;  %v3291_v33 = vmax.f32 %v15985_v62, 0.0  ;;  %v18088_v50 = vld [vmem:[#allocation8 + $0x260] ss:$16 sps:$4 sm:$0xff]   ;;  %v18093_v53 = vld [vmem:[#allocation8 + $0x284] ss:$16 sps:$4 sm:$0xff]  }
 0x3b0   : > { %4457 = vmatprep.subr.bf16.mxu0 %v18084_v61  ;;  %v3292_v48 = vmax.f32 %v15922_v42, 0.0  ;;  %4843 = vmatprep.subr.bf16.mxu1 %v18111_v63  ;;  %v3294_v51 = vmax.f32 %v15986_v13, 0.0  ;;  %v18126_v63 = vld [vmem:[#allocation8 + $0x28c] ss:$16 sps:$4 sm:$0xff]  }
 0x3b1   : > { %v3293_v31 = vmax.f32 %v15923_v37, 0.0  ;;  %v3295_v6 = vmax.f32 %v15987_v2, 0.0 }
 0x3b2   : > { %v3412_v40 = vpack.c.bf16 %v3292_v48, %v3288_v41  ;;  %v20305_v17 = vpack.c.bf16 %v3294_v51, %v3290_v34  ;;  %v18096_v34 = vld [vmem:[#allocation8 + $0x2a4] ss:$16 sps:$4 sm:$0xff]   ;;  %v18129_v51 = vld [vmem:[#allocation8 + $0x2ac] ss:$16 sps:$4 sm:$0xff]  }
 0x3b3   : > { %v2755_v19 = vpop.f32.mrb[72].mxu0  ;;  %v3141_v21 = vpop.f32.mrb[72].mxu1  ;;  %v3413_v24 = vpack.c.bf16 %v3293_v31, %v3289_v54  ;;  %4458 = vmatpush1.bf16.msra.mxu0 %v18082_v15  ;;  %4844 = vmatpush1.bf16.msra.mxu1 %v18109_v60  ;;  %v20307_v25 = vpack.c.bf16 %v3295_v6, %v3291_v33  ;;  %v18124_v60 = vld [vmem:[#allocation8 + $0x288] ss:$16 sps:$4 sm:$0xff]  }
 0x3b4   : > { %v15924_v29 = vadd.f32 %v2755_v19, %v20274_v16  ;;  %v2757_v32 = vpop.f32.mrb[73].mxu0  ;;  %v3143_v36 = vpop.f32.mrb[73].mxu1  ;;  %4459 = vmatprep.subr.bf16.mxu0 %v18087_v20  ;;  %4845 = vmatprep.subr.bf16.mxu1 %v18117_v28  ;;  %v15988_v35 = vadd.f32 %v3141_v21, %v20277_v22  ;;  %v18091_v20 = vld [vmem:[#allocation8 + $0x280] ss:$16 sps:$4 sm:$0xff]  }
 0x3b5   : > { %v15925_v39 = vadd.f32 %v2757_v32, %v20280_v8  ;;  %v2759_v44 = vpop.f32.mrb[74].mxu0  ;;  %v3145_v58 = vpop.f32.mrb[74].mxu1  ;;  %4304 = vmatprep.mubr.bf16.mxu0 %v3413_v24  ;;  %4690 = vmatprep.mubr.bf16.mxu1 %v3413_v24  ;;  %v15989_v45 = vadd.f32 %v3143_v36, %v20283_v14  ;;  %v18099_v32 = vld [vmem:[#allocation8 + $0x2c4] ss:$16 sps:$4 sm:$0xff]   ;;  %v18127_v36 = vld [vmem:[#allocation8 + $0x2a8] ss:$16 sps:$4 sm:$0xff]  }
 0x3b6   : > { %v15926_v47 = vadd.f32 %v2759_v44, %v20274_v16  ;;  %v2761_v23 = vpop.f32.mrb[75].mxu0  ;;  %v3147_v18 = vpop.f32.mrb[75].mxu1  ;;  %4305 = vmatmul.mubr.bf16.gmra.mrb[132].mxu0 %v3412_v40  ;;  %4691 = vmatmul.mubr.bf16.gmra.mrb[132].mxu1 %v3412_v40  ;;  %v15990_v49 = vadd.f32 %v3145_v58, %v20277_v22  ;;  %v3296_v3 = vmax.f32 %v15924_v29, 0.0  ;;  %v3298_v0 = vmax.f32 %v15988_v35, 0.0  ;;  %v18094_v29 = vld [vmem:[#allocation8 + $0x2a0] ss:$16 sps:$4 sm:$0xff]  }
 0x3b7   : > { %v15927_v59 = vadd.f32 %v2761_v23, %v20280_v8  ;;  %4460 = vmatpush1.bf16.msra.mxu0 %v18085_v4  ;;  %4846 = vmatpush1.bf16.msra.mxu1 %v18115_v52  ;;  %v15991_v12 = vadd.f32 %v3147_v18, %v20283_v14  ;;  %v3297_v7 = vmax.f32 %v15925_v39, 0.0  ;;  %v3299_v62 = vmax.f32 %v15989_v45, 0.0  ;;  %v18135_v39 = vld [vmem:[#allocation8 + $0x2cc] ss:$16 sps:$4 sm:$0xff]  }
 0x3b8   : > { %v3300_v61 = vmax.f32 %v15926_v47, 0.0  ;;  %4461 = vmatprep.subr.bf16.mxu0 %v18090_v38  ;;  %4847 = vmatprep.subr.bf16.mxu1 %v18120_v46  ;;  %v3302_v5 = vmax.f32 %v15990_v49, 0.0 }
 0x3b9   : > { %v3301_v43 = vmax.f32 %v15927_v59, 0.0  ;;  %v3303_v42 = vmax.f32 %v15991_v12, 0.0  ;;  %v18097_v12 = vld [vmem:[#allocation8 + $0x2c0] ss:$16 sps:$4 sm:$0xff]  }
 0x3ba   : > { %v3416_v9 = vpack.c.bf16 %v3300_v61, %v3296_v3  ;;  %v20317_v11 = vpack.c.bf16 %v3302_v5, %v3298_v0  ;;  %v18133_v3 = vld [vmem:[#allocation8 + $0x2c8] ss:$16 sps:$4 sm:$0xff]  }
 0x3bb   : > { %v2765_v13 = vpop.f32.mrb[76].mxu0  ;;  %v3151_v37 = vpop.f32.mrb[76].mxu1  ;;  %v3417_v15 = vpack.c.bf16 %v3301_v43, %v3297_v7  ;;  %4462 = vmatpush1.bf16.msra.mxu0 %v18088_v50  ;;  %4848 = vmatpush1.bf16.msra.mxu1 %v18118_v56  ;;  %v20319_v2 = vpack.c.bf16 %v3303_v42, %v3299_v62  ;;  %v18102_v7 = vld [vmem:[#allocation8 + $0x2e4] ss:$16 sps:$4 sm:$0xff]   ;;  %v18138_v43 = vld [vmem:[#allocation8 + $0x2ec] ss:$16 sps:$4 sm:$0xff]  }
 0x3bc   : > { %v15928_v41 = vadd.f32 %v2765_v13, %v20274_v16  ;;  %v2767_v48 = vpop.f32.mrb[77].mxu0  ;;  %v3153_v28 = vpop.f32.mrb[77].mxu1  ;;  %4463 = vmatprep.subr.bf16.mxu0 %v18093_v53  ;;  %4849 = vmatprep.subr.bf16.mxu1 %v18126_v63  ;;  %v15992_v54 = vadd.f32 %v3151_v37, %v20277_v22 }
 0x3bd   : > { %v15929_v31 = vadd.f32 %v2767_v48, %v20280_v8  ;;  %v2769_v33 = vpop.f32.mrb[78].mxu0  ;;  %v3155_v6 = vpop.f32.mrb[78].mxu1  ;;  %4314 = vmatprep.mubr.bf16.mxu0 %v3417_v15  ;;  %4700 = vmatprep.mubr.bf16.mxu1 %v3417_v15  ;;  %v15993_v40 = vadd.f32 %v3153_v28, %v20283_v14  ;;  %v18100_v28 = vld [vmem:[#allocation8 + $0x2e0] ss:$16 sps:$4 sm:$0xff]  }
 0x3be   : > { %v15930_v19 = vadd.f32 %v2769_v33, %v20274_v16  ;;  %v2771_v21 = vpop.f32.mrb[79].mxu0  ;;  %v3157_v24 = vpop.f32.mrb[79].mxu1  ;;  %4315 = vmatmul.mubr.bf16.gmra.mrb[136].mxu0 %v3416_v9  ;;  %4701 = vmatmul.mubr.bf16.gmra.mrb[136].mxu1 %v3416_v9  ;;  %v15994_v4 = vadd.f32 %v3155_v6, %v20277_v22  ;;  %v3304_v46 = vmax.f32 %v15928_v41, 0.0  ;;  %v3306_v44 = vmax.f32 %v15992_v54, 0.0  ;;  %v18144_v6 = vld [vmem:[#allocation8 + $0x30c] ss:$16 sps:$4 sm:$0xff]  }
 0x3bf   : > { %v15931_v52 = vadd.f32 %v2771_v21, %v20280_v8  ;;  %4464 = vmatpush1.bf16.msra.mxu0 %v18091_v20  ;;  %4850 = vmatpush1.bf16.msra.mxu1 %v18124_v60  ;;  %v15995_v38 = vadd.f32 %v3157_v24, %v20283_v14  ;;  %v3305_v45 = vmax.f32 %v15929_v31, 0.0  ;;  %v3307_v23 = vmax.f32 %v15993_v40, 0.0 }
 0x3c0   : > { %v3308_v35 = vmax.f32 %v15930_v19, 0.0  ;;  %4465 = vmatprep.subr.bf16.mxu0 %v18096_v34  ;;  %4851 = vmatprep.subr.bf16.mxu1 %v18129_v51  ;;  %v3310_v58 = vmax.f32 %v15994_v4, 0.0  ;;  %v18105_v34 = vld [vmem:[#allocation8 + $0x304] ss:$16 sps:$4 sm:$0xff]   ;;  %v18136_v51 = vld [vmem:[#allocation8 + $0x2e8] ss:$16 sps:$4 sm:$0xff]  }
 0x3c1   : > { %v3309_v47 = vmax.f32 %v15931_v52, 0.0  ;;  %v3311_v18 = vmax.f32 %v15995_v38, 0.0 }
 0x3c2   : > { %v3420_v49 = vpack.c.bf16 %v3308_v35, %v3304_v46  ;;  %v20329_v59 = vpack.c.bf16 %v3310_v58, %v3306_v44  ;;  %v18103_v35 = vld [vmem:[#allocation8 + $0x300] ss:$16 sps:$4 sm:$0xff]  }
 0x3c3   : > { %v2775_v50 = vpop.f32.mrb[80].mxu0  ;;  %v3161_v53 = vpop.f32.mrb[80].mxu1  ;;  %v3421_v56 = vpack.c.bf16 %v3309_v47, %v3305_v45  ;;  %4466 = vmatpush1.bf16.msra.mxu0 %v18094_v29  ;;  %4852 = vmatpush1.bf16.msra.mxu1 %v18127_v36  ;;  %v20331_v61 = vpack.c.bf16 %v3311_v18, %v3307_v23  ;;  %v18114_v23 = vld [vmem:[#allocation8 + $0x324] ss:$16 sps:$4 sm:$0xff]   ;;  %v18147_v18 = vld [vmem:[#allocation8 + $0x32c] ss:$16 sps:$4 sm:$0xff]  }
 0x3c4   : > { %v15932_v63 = vadd.f32 %v2775_v50, %v20274_v16  ;;  %v2777_v0 = vpop.f32.mrb[81].mxu0  ;;  %v3163_v5 = vpop.f32.mrb[81].mxu1  ;;  %4467 = vmatprep.subr.bf16.mxu0 %v18099_v32  ;;  %4853 = vmatprep.subr.bf16.mxu1 %v18135_v39  ;;  %v15996_v62 = vadd.f32 %v3161_v53, %v20277_v22  ;;  %v18142_v39 = vld [vmem:[#allocation8 + $0x308] ss:$16 sps:$4 sm:$0xff]  }
 0x3c5   : > { %v15933_v42 = vadd.f32 %v2777_v0, %v20280_v8  ;;  %v2779_v9 = vpop.f32.mrb[82].mxu0  ;;  %v3165_v13 = vpop.f32.mrb[82].mxu1  ;;  %4324 = vmatprep.mubr.bf16.mxu0 %v3421_v56  ;;  %4710 = vmatprep.mubr.bf16.mxu1 %v3421_v56  ;;  %v15997_v37 = vadd.f32 %v3163_v5, %v20283_v14 }
 0x3c6   : > { %v15934_v15 = vadd.f32 %v2779_v9, %v20274_v16  ;;  %v2781_v20 = vpop.f32.mrb[83].mxu0  ;;  %v3167_v60 = vpop.f32.mrb[83].mxu1  ;;  %4325 = vmatmul.mubr.bf16.gmra.mrb[140].mxu0 %v3420_v49  ;;  %4711 = vmatmul.mubr.bf16.gmra.mrb[140].mxu1 %v3420_v49  ;;  %v15998_v41 = vadd.f32 %v3165_v13, %v20277_v22  ;;  %v3312_v31 = vmax.f32 %v15932_v63, 0.0  ;;  %v3314_v40 = vmax.f32 %v15996_v62, 0.0  ;;  %v18123_v62 = vld [vmem:[#allocation8 + $0x344] ss:$16 sps:$4 sm:$0xff]  }
 0x3c7   : > { %v15935_v48 = vadd.f32 %v2781_v20, %v20280_v8  ;;  %4468 = vmatpush1.bf16.msra.mxu0 %v18097_v12  ;;  %4854 = vmatpush1.bf16.msra.mxu1 %v18133_v3  ;;  %v15999_v54 = vadd.f32 %v3167_v60, %v20283_v14  ;;  %v3313_v21 = vmax.f32 %v15933_v42, 0.0  ;;  %v3315_v4 = vmax.f32 %v15997_v37, 0.0  ;;  %v18145_v42 = vld [vmem:[#allocation8 + $0x328] ss:$16 sps:$4 sm:$0xff]  }
 0x3c8   : > { %v3316_v33 = vmax.f32 %v15934_v15, 0.0  ;;  %4469 = vmatprep.subr.bf16.mxu0 %v18102_v7  ;;  %4855 = vmatprep.subr.bf16.mxu1 %v18138_v43  ;;  %v3318_v19 = vmax.f32 %v15998_v41, 0.0  ;;  %v18112_v43 = vld [vmem:[#allocation8 + $0x320] ss:$16 sps:$4 sm:$0xff]   ;;  %v18153_v15 = vld [vmem:[#allocation8 + $0x34c] ss:$16 sps:$4 sm:$0xff]  }
 0x3c9   : > { %v3317_v24 = vmax.f32 %v15935_v48, 0.0  ;;  %v3319_v52 = vmax.f32 %v15999_v54, 0.0 }
 0x3ca   : > { %v3424_v29 = vpack.c.bf16 %v3316_v33, %v3312_v31  ;;  %v20341_v32 = vpack.c.bf16 %v3318_v19, %v3314_v40  ;;  %v18121_v40 = vld [vmem:[#allocation8 + $0x340] ss:$16 sps:$4 sm:$0xff]   ;;  %v18151_v19 = vld [vmem:[#allocation8 + $0x348] ss:$16 sps:$4 sm:$0xff]  }
 0x3cb   : > { %v2785_v36 = vpop.f32.mrb[84].mxu0  ;;  %v3171_v38 = vpop.f32.mrb[84].mxu1  ;;  %v3425_v46 = vpack.c.bf16 %v3317_v24, %v3313_v21  ;;  %4470 = vmatpush1.bf16.msra.mxu0 %v18100_v28  ;;  %4856 = vmatpush1.bf16.msra.mxu1 %v18136_v51  ;;  %v20343_v44 = vpack.c.bf16 %v3319_v52, %v3315_v4 }
 0x3cc   : > { %v15936_v58 = vadd.f32 %v2785_v36, %v20274_v16  ;;  %v2787_v45 = vpop.f32.mrb[85].mxu0  ;;  %v3173_v47 = vpop.f32.mrb[85].mxu1  ;;  %4471 = vmatprep.subr.bf16.mxu0 %v18105_v34  ;;  %4857 = vmatprep.subr.bf16.mxu1 %v18144_v6  ;;  %v16000_v49 = vadd.f32 %v3171_v38, %v20277_v22  ;;  %v18156_v36 = vld [vmem:[#allocation8 + $0x36c] ss:$16 sps:$4 sm:$0xff]  }
 0x3cd   : > { %v15937_v50 = vadd.f32 %v2787_v45, %v20280_v8  ;;  %v2789_v53 = vpop.f32.mrb[86].mxu0  ;;  %v3175_v56 = vpop.f32.mrb[86].mxu1  ;;  %4334 = vmatprep.mubr.bf16.mxu0 %v3425_v46  ;;  %4720 = vmatprep.mubr.bf16.mxu1 %v3425_v46  ;;  %v16001_v12 = vadd.f32 %v3173_v47, %v20283_v14 }
 0x3ce   : > { %v15938_v3 = vadd.f32 %v2789_v53, %v20274_v16  ;;  %v2791_v63 = vpop.f32.mrb[87].mxu0  ;;  %v3177_v0 = vpop.f32.mrb[87].mxu1  ;;  %4335 = vmatmul.mubr.bf16.gmra.mrb[144].mxu0 %v3424_v29  ;;  %4721 = vmatmul.mubr.bf16.gmra.mrb[144].mxu1 %v3424_v29  ;;  %v16002_v5 = vadd.f32 %v3175_v56, %v20277_v22  ;;  %v3320_v13 = vmax.f32 %v15936_v58, 0.0  ;;  %v3322_v20 = vmax.f32 %v16000_v49, 0.0  ;;  %v18132_v29 = vld [vmem:[#allocation8 + $0x364] ss:$16 sps:$4 sm:$0xff]  }
 0x3cf   : > { %v15939_v7 = vadd.f32 %v2791_v63, %v20280_v8  ;;  %4472 = vmatpush1.bf16.msra.mxu0 %v18103_v35  ;;  %4858 = vmatpush1.bf16.msra.mxu1 %v18142_v39  ;;  %v16003_v9 = vadd.f32 %v3177_v0, %v20283_v14  ;;  %v3321_v41 = vmax.f32 %v15937_v50, 0.0  ;;  %v3323_v28 = vmax.f32 %v16001_v12, 0.0  ;;  %v18130_v50 = vld [vmem:[#allocation8 + $0x360] ss:$16 sps:$4 sm:$0xff]   ;;  %v18141_v53 = vld [vmem:[#allocation8 + $0x384] ss:$16 sps:$4 sm:$0xff]  }
 0x3d0   : > { %v3324_v37 = vmax.f32 %v15938_v3, 0.0  ;;  %4473 = vmatprep.subr.bf16.mxu0 %v18114_v23  ;;  %4859 = vmatprep.subr.bf16.mxu1 %v18147_v18  ;;  %v3326_v60 = vmax.f32 %v16002_v5, 0.0  ;;  %v18154_v56 = vld [vmem:[#allocation8 + $0x368] ss:$16 sps:$4 sm:$0xff]   ;;  %v18162_v0 = vld [vmem:[#allocation8 + $0x38c] ss:$16 sps:$4 sm:$0xff]  }
 0x3d1   : > { %v3325_v48 = vmax.f32 %v15939_v7, 0.0  ;;  %v3327_v34 = vmax.f32 %v16003_v9, 0.0 }
 0x3d2   : > { %v3428_v51 = vpack.c.bf16 %v3324_v37, %v3320_v13  ;;  %v20353_v54 = vpack.c.bf16 %v3326_v60, %v3322_v20 }
 0x3d3   : > { %v2795_v31 = vpop.f32.mrb[88].mxu0  ;;  %v3181_v33 = vpop.f32.mrb[88].mxu1  ;;  %v3429_v6 = vpack.c.bf16 %v3325_v48, %v3321_v41  ;;  %4474 = vmatpush1.bf16.msra.mxu0 %v18112_v43  ;;  %4860 = vmatpush1.bf16.msra.mxu1 %v18145_v42  ;;  %v20355_v21 = vpack.c.bf16 %v3327_v34, %v3323_v28  ;;  %v18139_v41 = vld [vmem:[#allocation8 + $0x380] ss:$16 sps:$4 sm:$0xff]   ;;  %v18160_v48 = vld [vmem:[#allocation8 + $0x388] ss:$16 sps:$4 sm:$0xff]  }
 0x3d4   : > { %v15940_v24 = vadd.f32 %v2795_v31, %v20274_v16  ;;  %v2797_v4 = vpop.f32.mrb[89].mxu0  ;;  %v3183_v52 = vpop.f32.mrb[89].mxu1  ;;  %4475 = vmatprep.subr.bf16.mxu0 %v18123_v62  ;;  %4861 = vmatprep.subr.bf16.mxu1 %v18153_v15  ;;  %v16004_v38 = vadd.f32 %v3181_v33, %v20277_v22  ;;  %v18150_v33 = vld [vmem:[#allocation8 + $0x3a4] ss:$16 sps:$4 sm:$0xff]  }
 0x3d5   : > { %v15941_v46 = vadd.f32 %v2797_v4, %v20280_v8  ;;  %v2799_v35 = vpop.f32.mrb[90].mxu0  ;;  %v3185_v39 = vpop.f32.mrb[90].mxu1  ;;  %4344 = vmatprep.mubr.bf16.mxu0 %v3429_v6  ;;  %4730 = vmatprep.mubr.bf16.mxu1 %v3429_v6  ;;  %v16005_v58 = vadd.f32 %v3183_v52, %v20283_v14  ;;  %v18165_v6 = vld [vmem:[#allocation8 + $0x3ac] ss:$16 sps:$4 sm:$0xff]  }
 0x3d6   : > { %v15942_v45 = vadd.f32 %v2799_v35, %v20274_v16  ;;  %v2801_v47 = vpop.f32.mrb[91].mxu0  ;;  %v3187_v23 = vpop.f32.mrb[91].mxu1  ;;  %4345 = vmatmul.mubr.bf16.gmra.mrb[148].mxu0 %v3428_v51  ;;  %4731 = vmatmul.mubr.bf16.gmra.mrb[148].mxu1 %v3428_v51  ;;  %v16006_v18 = vadd.f32 %v3185_v39, %v20277_v22  ;;  %v3328_v3 = vmax.f32 %v15940_v24, 0.0  ;;  %v3330_v5 = vmax.f32 %v16004_v38, 0.0  ;;  %v18148_v39 = vld [vmem:[#allocation8 + $0x3a0] ss:$16 sps:$4 sm:$0xff]  }
 0x3d7   : > { %v15943_v49 = vadd.f32 %v2801_v47, %v20280_v8  ;;  %4476 = vmatpush1.bf16.msra.mxu0 %v18121_v40  ;;  %4862 = vmatpush1.bf16.msra.mxu1 %v18151_v19  ;;  %v16007_v12 = vadd.f32 %v3187_v23, %v20283_v14  ;;  %v3329_v43 = vmax.f32 %v15941_v46, 0.0  ;;  %v3331_v42 = vmax.f32 %v16005_v58, 0.0  ;;  %v18159_v58 = vld [vmem:[#allocation8 + $0x3c4] ss:$16 sps:$4 sm:$0xff]  }
 0x3d8   : > { %v3332_v63 = vmax.f32 %v15942_v45, 0.0  ;;  %4477 = vmatprep.subr.bf16.mxu0 %v18132_v29  ;;  %4863 = vmatprep.subr.bf16.mxu1 %v18156_v36  ;;  %v3334_v7 = vmax.f32 %v16006_v18, 0.0  ;;  %v18163_v45 = vld [vmem:[#allocation8 + $0x3a8] ss:$16 sps:$4 sm:$0xff]  }
 0x3d9   : > { %v3333_v62 = vmax.f32 %v15943_v49, 0.0  ;;  %v3335_v9 = vmax.f32 %v16007_v12, 0.0  ;;  %v18171_v49 = vld [vmem:[#allocation8 + $0x3cc] ss:$16 sps:$4 sm:$0xff]  }
 0x3da   : > { %v3432_v13 = vpack.c.bf16 %v3332_v63, %v3328_v3  ;;  %v20365_v37 = vpack.c.bf16 %v3334_v7, %v3330_v5 }
 0x3db   : > { %v2805_v15 = vpop.f32.mrb[92].mxu0  ;;  %v3191_v20 = vpop.f32.mrb[92].mxu1  ;;  %v3433_v60 = vpack.c.bf16 %v3333_v62, %v3329_v43  ;;  %4478 = vmatpush1.bf16.msra.mxu0 %v18130_v50  ;;  %4864 = vmatpush1.bf16.msra.mxu1 %v18154_v56  ;;  %v20367_v28 = vpack.c.bf16 %v3335_v9, %v3331_v42  ;;  %v18157_v42 = vld [vmem:[#allocation8 + $0x3c0] ss:$16 sps:$4 sm:$0xff]   ;;  %v18169_v9 = vld [vmem:[#allocation8 + $0x3c8] ss:$16 sps:$4 sm:$0xff]  }
 0x3dc   : > { %v15944_v34 = vadd.f32 %v2805_v15, %v20274_v16  ;;  %v2807_v51 = vpop.f32.mrb[93].mxu0  ;;  %v3193_v31 = vpop.f32.mrb[93].mxu1  ;;  %4479 = vmatprep.subr.bf16.mxu0 %v18141_v53  ;;  %4865 = vmatprep.subr.bf16.mxu1 %v18162_v0  ;;  %v16008_v40 = vadd.f32 %v3191_v20, %v20277_v22 }
 0x3dd   : > { %v15945_v19 = vadd.f32 %v2807_v51, %v20280_v8  ;;  %v2809_v24 = vpop.f32.mrb[94].mxu0  ;;  %v3195_v4 = vpop.f32.mrb[94].mxu1  ;;  %4354 = vmatprep.mubr.bf16.mxu0 %v3433_v60  ;;  %4740 = vmatprep.mubr.bf16.mxu1 %v3433_v60  ;;  %v16009_v52 = vadd.f32 %v3193_v31, %v20283_v14 }
 0x3de   : > { %v15946_v29 = vadd.f32 %v2809_v24, %v20274_v16  ;;  %v2811_v36 = vpop.f32.mrb[95].mxu0  ;;  %v3197_v38 = vpop.f32.mrb[95].mxu1  ;;  %4355 = vmatmul.mubr.bf16.gmra.mrb[152].mxu0 %v3432_v13  ;;  %4741 = vmatmul.mubr.bf16.gmra.mrb[152].mxu1 %v3432_v13  ;;  %v16010_v46 = vadd.f32 %v3195_v4, %v20277_v22  ;;  %v3336_v23 = vmax.f32 %v15944_v34, 0.0  ;;  %v3338_v50 = vmax.f32 %v16008_v40, 0.0 }
 0x3df   : > { %v15947_v35 = vadd.f32 %v2811_v36, %v20280_v8  ;;  %4480 = vmatpush1.bf16.msra.mxu0 %v18139_v41  ;;  %4866 = vmatpush1.bf16.msra.mxu1 %v18160_v48  ;;  %v16011_v47 = vadd.f32 %v3197_v38, %v20283_v14  ;;  %v3337_v56 = vmax.f32 %v15945_v19, 0.0  ;;  %v3339_v3 = vmax.f32 %v16009_v52, 0.0  ;;  %v18168_v41 = vld [vmem:[#allocation8 + $0x3e4] ss:$16 sps:$4 sm:$0xff]   ;;  %v18174_v48 = vld [vmem:[#allocation8 + $0x3ec] ss:$16 sps:$4 sm:$0xff]  }
 0x3e0   : > { %v3340_v18 = vmax.f32 %v15946_v29, 0.0  ;;  %4481 = vmatprep.subr.bf16.mxu0 %v18150_v33  ;;  %4867 = vmatprep.subr.bf16.mxu1 %v18165_v6  ;;  %v3342_v53 = vmax.f32 %v16010_v46, 0.0  ;;  %v18166_v29 = vld [vmem:[#allocation8 + $0x3e0] ss:$16 sps:$4 sm:$0xff]   ;;  %v18172_v36 = vld [vmem:[#allocation8 + $0x3e8] ss:$16 sps:$4 sm:$0xff]  }
 0x3e1   : > { %v3341_v12 = vmax.f32 %v15947_v35, 0.0  ;;  %v3343_v63 = vmax.f32 %v16011_v47, 0.0 }
 0x3e2   : > { %v3436_v0 = vpack.c.bf16 %v3340_v18, %v3336_v23  ;;  %v20377_v5 = vpack.c.bf16 %v3342_v53, %v3338_v50 }
 0x3e3   : > { %v2815_v7 = vpop.f32.mrb[96].mxu0  ;;  %v3201_v43 = vpop.f32.mrb[96].mxu1  ;;  %v3437_v62 = vpack.c.bf16 %v3341_v12, %v3337_v56  ;;  %4482 = vmatpush1.bf16.msra.mxu0 %v18148_v39  ;;  %4868 = vmatpush1.bf16.msra.mxu1 %v18163_v45  ;;  %v20379_v13 = vpack.c.bf16 %v3343_v63, %v3339_v3 }
 0x3e4   : > { %v15948_v15 = vadd.f32 %v2815_v7, %v20274_v16  ;;  %v2817_v20 = vpop.f32.mrb[97].mxu0  ;;  %v3203_v60 = vpop.f32.mrb[97].mxu1  ;;  %4483 = vmatprep.subr.bf16.mxu0 %v18159_v58  ;;  %4869 = vmatprep.subr.bf16.mxu1 %v18171_v49  ;;  %v16012_v34 = vadd.f32 %v3201_v43, %v20277_v22 }
 0x3e5   : > { %v15949_v51 = vadd.f32 %v2817_v20, %v20280_v8  ;;  %v2819_v31 = vpop.f32.mrb[98].mxu0  ;;  %v3205_v33 = vpop.f32.mrb[98].mxu1  ;;  %4364 = vmatprep.mubr.bf16.mxu0 %v3437_v62  ;;  %4750 = vmatprep.mubr.bf16.mxu1 %v3437_v62  ;;  %v16013_v6 = vadd.f32 %v3203_v60, %v20283_v14 }
 0x3e6   : > { %v15950_v40 = vadd.f32 %v2819_v31, %v20274_v16  ;;  %v2821_v19 = vpop.f32.mrb[99].mxu0  ;;  %v3207_v24 = vpop.f32.mrb[99].mxu1  ;;  %4365 = vmatmul.mubr.bf16.gmra.mrb[156].mxu0 %v3436_v0  ;;  %4751 = vmatmul.mubr.bf16.gmra.mrb[156].mxu1 %v3436_v0  ;;  %v16014_v4 = vadd.f32 %v3205_v33, %v20277_v22  ;;  %v3344_v46 = vmax.f32 %v15948_v15, 0.0  ;;  %v3346_v39 = vmax.f32 %v16012_v34, 0.0 }
 0x3e7   : > { %v15951_v52 = vadd.f32 %v2821_v19, %v20280_v8  ;;  %4484 = vmatpush1.bf16.msra.mxu0 %v18157_v42  ;;  %4870 = vmatpush1.bf16.msra.mxu1 %v18169_v9  ;;  %v16015_v38 = vadd.f32 %v3207_v24, %v20283_v14  ;;  %v3345_v45 = vmax.f32 %v15949_v51, 0.0  ;;  %v3347_v23 = vmax.f32 %v16013_v6, 0.0 }
 0x3e8   : > { %v3348_v35 = vmax.f32 %v15950_v40, 0.0  ;;  %4485 = vmatprep.subr.bf16.mxu0 %v18168_v41  ;;  %4871 = vmatprep.subr.bf16.mxu1 %v18174_v48  ;;  %v3350_v58 = vmax.f32 %v16014_v4, 0.0 }
 0x3e9   : > { %v3349_v47 = vmax.f32 %v15951_v52, 0.0  ;;  %v3351_v18 = vmax.f32 %v16015_v38, 0.0 }
 0x3ea   : > { %v3440_v49 = vpack.c.bf16 %v3348_v35, %v3344_v46  ;;  %v20389_v50 = vpack.c.bf16 %v3350_v58, %v3346_v39 }
 0x3eb   : > { %v2825_v53 = vpop.f32.mrb[100].mxu0  ;;  %v3211_v56 = vpop.f32.mrb[100].mxu1  ;;  %v3441_v12 = vpack.c.bf16 %v3349_v47, %v3345_v45  ;;  %4486 = vmatpush1.bf16.msra.mxu0 %v18166_v29  ;;  %4872 = vmatpush1.bf16.msra.mxu1 %v18172_v36  ;;  %v20391_v3 = vpack.c.bf16 %v3351_v18, %v3347_v23 }
 0x3ec   : > { %v15952_v63 = vadd.f32 %v2825_v53, %v20274_v16  ;;  %v2827_v0 = vpop.f32.mrb[101].mxu0  ;;  %v3213_v7 = vpop.f32.mrb[101].mxu1  ;;  %v16016_v43 = vadd.f32 %v3211_v56, %v20277_v22 }
 0x3ed   : > { %v15953_v62 = vadd.f32 %v2827_v0, %v20280_v8  ;;  %v2829_v42 = vpop.f32.mrb[102].mxu0  ;;  %v3215_v9 = vpop.f32.mrb[102].mxu1  ;;  %4374 = vmatprep.mubr.bf16.mxu0 %v3441_v12  ;;  %4760 = vmatprep.mubr.bf16.mxu1 %v3441_v12  ;;  %v16017_v15 = vadd.f32 %v3213_v7, %v20283_v14 }
 0x3ee   : > { %v15954_v20 = vadd.f32 %v2829_v42, %v20274_v16  ;;  %v2831_v60 = vpop.f32.mrb[103].mxu0  ;;  %v3217_v41 = vpop.f32.mrb[103].mxu1  ;;  %4375 = vmatmul.mubr.bf16.gmra.mrb[160].mxu0 %v3440_v49  ;;  %4761 = vmatmul.mubr.bf16.gmra.mrb[160].mxu1 %v3440_v49  ;;  %v16018_v48 = vadd.f32 %v3215_v9, %v20277_v22  ;;  %v3352_v31 = vmax.f32 %v15952_v63, 0.0  ;;  %v3354_v6 = vmax.f32 %v16016_v43, 0.0 }
 0x3ef   : > { %v15955_v34 = vadd.f32 %v2831_v60, %v20280_v8  ;;  %v16019_v51 = vadd.f32 %v3217_v41, %v20283_v14  ;;  %v3353_v19 = vmax.f32 %v15953_v62, 0.0  ;;  %v3355_v4 = vmax.f32 %v16017_v15, 0.0 }
 0x3f0   : > { %v3356_v33 = vmax.f32 %v15954_v20, 0.0  ;;  %v3358_v40 = vmax.f32 %v16018_v48, 0.0 }
 0x3f1   : > { %v3357_v24 = vmax.f32 %v15955_v34, 0.0  ;;  %v3359_v52 = vmax.f32 %v16019_v51, 0.0 }
 0x3f2   : > { %v3444_v29 = vpack.c.bf16 %v3356_v33, %v3352_v31  ;;  %v20401_v36 = vpack.c.bf16 %v3358_v40, %v3354_v6 }
 0x3f3   : > { %v2835_v38 = vpop.f32.mrb[104].mxu0  ;;  %v3221_v46 = vpop.f32.mrb[104].mxu1  ;;  %v3445_v35 = vpack.c.bf16 %v3357_v24, %v3353_v19  ;;  %v20403_v39 = vpack.c.bf16 %v3359_v52, %v3355_v4 }
 0x3f4   : > { %v15956_v58 = vadd.f32 %v2835_v38, %v20274_v16  ;;  %v2837_v45 = vpop.f32.mrb[105].mxu0  ;;  %v3223_v47 = vpop.f32.mrb[105].mxu1  ;;  %v16020_v23 = vadd.f32 %v3221_v46, %v20277_v22 }
 0x3f5   : > { %v15957_v18 = vadd.f32 %v2837_v45, %v20280_v8  ;;  %v2839_v49 = vpop.f32.mrb[106].mxu0  ;;  %v3225_v53 = vpop.f32.mrb[106].mxu1  ;;  %4384 = vmatprep.mubr.bf16.mxu0 %v3445_v35  ;;  %4770 = vmatprep.mubr.bf16.mxu1 %v3445_v35  ;;  %v16021_v56 = vadd.f32 %v3223_v47, %v20283_v14 }
 0x3f6   : > { %v15958_v12 = vadd.f32 %v2839_v49, %v20274_v16  ;;  %v2841_v63 = vpop.f32.mrb[107].mxu0  ;;  %v3227_v0 = vpop.f32.mrb[107].mxu1  ;;  %4385 = vmatmul.mubr.bf16.gmra.mrb[164].mxu0 %v3444_v29  ;;  %4771 = vmatmul.mubr.bf16.gmra.mrb[164].mxu1 %v3444_v29  ;;  %v16022_v7 = vadd.f32 %v3225_v53, %v20277_v22  ;;  %v3360_v42 = vmax.f32 %v15956_v58, 0.0  ;;  %v3362_v15 = vmax.f32 %v16020_v23, 0.0 }
 0x3f7   : > { %v15959_v43 = vadd.f32 %v2841_v63, %v20280_v8  ;;  %v16023_v62 = vadd.f32 %v3227_v0, %v20283_v14  ;;  %v3361_v60 = vmax.f32 %v15957_v18, 0.0  ;;  %v3363_v48 = vmax.f32 %v16021_v56, 0.0 }
 0x3f8   : > { %v3364_v9 = vmax.f32 %v15958_v12, 0.0  ;;  %v3366_v20 = vmax.f32 %v16022_v7, 0.0 }
 0x3f9   : > { %v3365_v41 = vmax.f32 %v15959_v43, 0.0  ;;  %v3367_v34 = vmax.f32 %v16023_v62, 0.0 }
 0x3fa   : > { %v3448_v51 = vpack.c.bf16 %v3364_v9, %v3360_v42  ;;  %v20413_v31 = vpack.c.bf16 %v3366_v20, %v3362_v15 }
 0x3fb   : > { %v2845_v33 = vpop.f32.mrb[108].mxu0  ;;  %v3231_v6 = vpop.f32.mrb[108].mxu1  ;;  %v3449_v40 = vpack.c.bf16 %v3365_v41, %v3361_v60  ;;  %v20415_v19 = vpack.c.bf16 %v3367_v34, %v3363_v48 }
 0x3fc   : > { %v15960_v24 = vadd.f32 %v2845_v33, %v20274_v16  ;;  %v2847_v4 = vpop.f32.mrb[109].mxu0  ;;  %v3233_v52 = vpop.f32.mrb[109].mxu1  ;;  %v16024_v29 = vadd.f32 %v3231_v6, %v20277_v22 }
 0x3fd   : > { %v15961_v38 = vadd.f32 %v2847_v4, %v20280_v8  ;;  %v2849_v46 = vpop.f32.mrb[110].mxu0  ;;  %v3235_v35 = vpop.f32.mrb[110].mxu1  ;;  %4394 = vmatprep.mubr.bf16.mxu0 %v3449_v40  ;;  %4780 = vmatprep.mubr.bf16.mxu1 %v3449_v40  ;;  %v16025_v58 = vadd.f32 %v3233_v52, %v20283_v14 }
 0x3fe   : > { %v15962_v45 = vadd.f32 %v2849_v46, %v20274_v16  ;;  %v2851_v47 = vpop.f32.mrb[111].mxu0  ;;  %v3237_v23 = vpop.f32.mrb[111].mxu1  ;;  %4395 = vmatmul.mubr.bf16.gmra.mrb[168].mxu0 %v3448_v51  ;;  %4781 = vmatmul.mubr.bf16.gmra.mrb[168].mxu1 %v3448_v51  ;;  %v16026_v18 = vadd.f32 %v3235_v35, %v20277_v22  ;;  %v3368_v56 = vmax.f32 %v15960_v24, 0.0  ;;  %v3370_v63 = vmax.f32 %v16024_v29, 0.0 }
 0x3ff   : > { %v15963_v49 = vadd.f32 %v2851_v47, %v20280_v8  ;;  %v16027_v53 = vadd.f32 %v3237_v23, %v20283_v14  ;;  %v3369_v7 = vmax.f32 %v15961_v38, 0.0  ;;  %v3371_v62 = vmax.f32 %v16025_v58, 0.0  ;;  %v18177_v47 = vld [vmem:[#allocation10 + $0x4] ss:$12 sps:$4 sm:$0xff]  }
 0x400   : > { %v3372_v12 = vmax.f32 %v15962_v45, 0.0  ;;  %v3374_v0 = vmax.f32 %v16026_v18, 0.0  ;;  %5883 = vmatprep.subr.bf16.mxu0 %v18177_v47 }
 0x401   : > { %v3373_v43 = vmax.f32 %v15963_v49, 0.0  ;;  %v3375_v42 = vmax.f32 %v16027_v53, 0.0 }
 0x402   : > { %v3452_v9 = vpack.c.bf16 %v3372_v12, %v3368_v56  ;;  %v20425_v15 = vpack.c.bf16 %v3374_v0, %v3370_v63 }
 0x403   : > { %v2855_v20 = vpop.f32.mrb[112].mxu0  ;;  %v3241_v60 = vpop.f32.mrb[112].mxu1  ;;  %v3453_v41 = vpack.c.bf16 %v3373_v43, %v3369_v7  ;;  %v20427_v48 = vpack.c.bf16 %v3375_v42, %v3371_v62 }
 0x404   : > { %v15964_v34 = vadd.f32 %v2855_v20, %v20274_v16  ;;  %v2857_v51 = vpop.f32.mrb[113].mxu0  ;;  %v3243_v33 = vpop.f32.mrb[113].mxu1  ;;  %v16028_v6 = vadd.f32 %v3241_v60, %v20277_v22 }
 0x405   : > { %v15965_v40 = vadd.f32 %v2857_v51, %v20280_v8  ;;  %v2859_v24 = vpop.f32.mrb[114].mxu0  ;;  %v3245_v4 = vpop.f32.mrb[114].mxu1  ;;  %4404 = vmatprep.mubr.bf16.mxu0 %v3453_v41  ;;  %4790 = vmatprep.mubr.bf16.mxu1 %v3453_v41  ;;  %v16029_v52 = vadd.f32 %v3243_v33, %v20283_v14 }
 0x406   : > { %v15966_v29 = vadd.f32 %v2859_v24, %v20274_v16  ;;  %v2861_v38 = vpop.f32.mrb[115].mxu0  ;;  %v3247_v46 = vpop.f32.mrb[115].mxu1  ;;  %4405 = vmatmul.mubr.bf16.gmra.mrb[172].mxu0 %v3452_v9  ;;  %4791 = vmatmul.mubr.bf16.gmra.mrb[172].mxu1 %v3452_v9  ;;  %v16030_v35 = vadd.f32 %v3245_v4, %v20277_v22  ;;  %v3376_v23 = vmax.f32 %v15964_v34, 0.0  ;;  %v3378_v49 = vmax.f32 %v16028_v6, 0.0 }
 0x407   : > { %v15967_v58 = vadd.f32 %v2861_v38, %v20280_v8  ;;  %v16031_v45 = vadd.f32 %v3247_v46, %v20283_v14  ;;  %v3377_v56 = vmax.f32 %v15965_v40, 0.0  ;;  %v3379_v63 = vmax.f32 %v16029_v52, 0.0 }
 0x408   : > { %v3380_v18 = vmax.f32 %v15966_v29, 0.0  ;;  %v3382_v53 = vmax.f32 %v16030_v35, 0.0 }
 0x409   : > { %v3381_v12 = vmax.f32 %v15967_v58, 0.0  ;;  %v3383_v0 = vmax.f32 %v16031_v45, 0.0 }
 0x40a   : > { %v3456_v7 = vpack.c.bf16 %v3380_v18, %v3376_v23  ;;  %v20437_v43 = vpack.c.bf16 %v3382_v53, %v3378_v49 }
 0x40b   : > { %v2865_v62 = vpop.f32.mrb[116].mxu0  ;;  %v3251_v42 = vpop.f32.mrb[116].mxu1  ;;  %v3457_v9 = vpack.c.bf16 %v3381_v12, %v3377_v56  ;;  %v20439_v20 = vpack.c.bf16 %v3383_v0, %v3379_v63 }
 0x40c   : > { %v15968_v60 = vadd.f32 %v2865_v62, %v20274_v16  ;;  %v2867_v41 = vpop.f32.mrb[117].mxu0  ;;  %v3253_v34 = vpop.f32.mrb[117].mxu1  ;;  %v16032_v51 = vadd.f32 %v3251_v42, %v20277_v22 }
 0x40d   : > { %v15969_v33 = vadd.f32 %v2867_v41, %v20280_v8  ;;  %v2869_v6 = vpop.f32.mrb[118].mxu0  ;;  %v3255_v40 = vpop.f32.mrb[118].mxu1  ;;  %4414 = vmatprep.mubr.bf16.mxu0 %v3457_v9  ;;  %4800 = vmatprep.mubr.bf16.mxu1 %v3457_v9  ;;  %v16033_v24 = vadd.f32 %v3253_v34, %v20283_v14 }
 0x40e   : > { %v15970_v4 = vadd.f32 %v2869_v6, %v20274_v16  ;;  %v2871_v52 = vpop.f32.mrb[119].mxu0  ;;  %v3257_v29 = vpop.f32.mrb[119].mxu1  ;;  %4415 = vmatmul.mubr.bf16.gmra.mrb[176].mxu0 %v3456_v7  ;;  %4801 = vmatmul.mubr.bf16.gmra.mrb[176].mxu1 %v3456_v7  ;;  %v16034_v38 = vadd.f32 %v3255_v40, %v20277_v22  ;;  %v3384_v58 = vmax.f32 %v15968_v60, 0.0  ;;  %v3386_v47 = vmax.f32 %v16032_v51, 0.0 }
 0x40f   : > { %v15971_v46 = vadd.f32 %v2871_v52, %v20280_v8  ;;  %v16035_v35 = vadd.f32 %v3257_v29, %v20283_v14  ;;  %v3385_v18 = vmax.f32 %v15969_v33, 0.0  ;;  %v3387_v53 = vmax.f32 %v16033_v24, 0.0 }
 0x410   : > { %v3388_v45 = vmax.f32 %v15970_v4, 0.0  ;;  %v3390_v23 = vmax.f32 %v16034_v38, 0.0 }
 0x411   : > { %v3389_v49 = vmax.f32 %v15971_v46, 0.0  ;;  %v3391_v56 = vmax.f32 %v16035_v35, 0.0 }
 0x412   : > { %v3460_v12 = vpack.c.bf16 %v3388_v45, %v3384_v58  ;;  %v20449_v63 = vpack.c.bf16 %v3390_v23, %v3386_v47 }
 0x413   : > { %v2875_v0 = vpop.f32.mrb[120].mxu0  ;;  %v3261_v62 = vpop.f32.mrb[120].mxu1  ;;  %v3461_v7 = vpack.c.bf16 %v3389_v49, %v3385_v18  ;;  %v20451_v42 = vpack.c.bf16 %v3391_v56, %v3387_v53 }
 0x414   : > { %v15972_v9 = vadd.f32 %v2875_v0, %v20274_v16  ;;  %v2877_v41 = vpop.f32.mrb[121].mxu0  ;;  %v3263_v34 = vpop.f32.mrb[121].mxu1  ;;  %v16036_v60 = vadd.f32 %v3261_v62, %v20277_v22 }
 0x415   : > { %v15973_v51 = vadd.f32 %v2877_v41, %v20280_v8  ;;  %v2879_v33 = vpop.f32.mrb[122].mxu0  ;;  %v3265_v6 = vpop.f32.mrb[122].mxu1  ;;  %4424 = vmatprep.mubr.bf16.mxu0 %v3461_v7  ;;  %4810 = vmatprep.mubr.bf16.mxu1 %v3461_v7  ;;  %v16037_v40 = vadd.f32 %v3263_v34, %v20283_v14 }
 0x416   : > { %v15974_v24 = vadd.f32 %v2879_v33, %v20274_v16  ;;  %v2881_v4 = vpop.f32.mrb[123].mxu0  ;;  %v3267_v52 = vpop.f32.mrb[123].mxu1  ;;  %4425 = vmatmul.mubr.bf16.gmra.mrb[180].mxu0 %v3460_v12  ;;  %4811 = vmatmul.mubr.bf16.gmra.mrb[180].mxu1 %v3460_v12  ;;  %v16038_v29 = vadd.f32 %v3265_v6, %v20277_v22  ;;  %v3392_v35 = vmax.f32 %v15972_v9, 0.0  ;;  %v3394_v45 = vmax.f32 %v16036_v60, 0.0 }
 0x417   : > { %v15975_v38 = vadd.f32 %v2881_v4, %v20280_v8  ;;  %v16039_v46 = vadd.f32 %v3267_v52, %v20283_v14  ;;  %v3393_v23 = vmax.f32 %v15973_v51, 0.0  ;;  %v3395_v49 = vmax.f32 %v16037_v40, 0.0 }
 0x418   : > { %v3396_v58 = vmax.f32 %v15974_v24, 0.0  ;;  %v3398_v47 = vmax.f32 %v16038_v29, 0.0 }
 0x419   : > { %v3397_v18 = vmax.f32 %v15975_v38, 0.0  ;;  %v3399_v53 = vmax.f32 %v16039_v46, 0.0 }
 0x41a   : > { %v3464_v56 = vpack.c.bf16 %v3396_v58, %v3392_v35  ;;  %v20461_v0 = vpack.c.bf16 %v3398_v47, %v3394_v45 }
 0x41b   : > { %v2885_v62 = vpop.f32.mrb[124].mxu0  ;;  %v3271_v7 = vpop.f32.mrb[124].mxu1  ;;  %v3465_v12 = vpack.c.bf16 %v3397_v18, %v3393_v23  ;;  %v20463_v41 = vpack.c.bf16 %v3399_v53, %v3395_v49 }
 0x41c   : > { %v15976_v34 = vadd.f32 %v2885_v62, %v20274_v16  ;;  %v2887_v33 = vpop.f32.mrb[125].mxu0  ;;  %v3273_v6 = vpop.f32.mrb[125].mxu1  ;;  %v16040_v9 = vadd.f32 %v3271_v7, %v20277_v22 }
 0x41d   : > { %v15977_v60 = vadd.f32 %v2887_v33, %v20280_v8  ;;  %v2889_v51 = vpop.f32.mrb[126].mxu0  ;;  %v3275_v24 = vpop.f32.mrb[126].mxu1  ;;  %4434 = vmatprep.mubr.bf16.mxu0 %v3465_v12  ;;  %4820 = vmatprep.mubr.bf16.mxu1 %v3465_v12  ;;  %v16041_v40 = vadd.f32 %v3273_v6, %v20283_v14  ;;  %v18178_v6 = vld [vmem:[#allocation10 + $0x18] ss:$12 sps:$4 sm:$0xff]  }
 0x41e   : > { %v15978_v4 = vadd.f32 %v2889_v51, %v20274_v16  ;;  %v2891_v52 = vpop.f32.mrb[127].mxu0  ;;  %v3277_v29 = vpop.f32.mrb[127].mxu1  ;;  %4435 = vmatmul.mubr.bf16.gmra.mrb[184].mxu0 %v3464_v56  ;;  %4821 = vmatmul.mubr.bf16.gmra.mrb[184].mxu1 %v3464_v56  ;;  %v16042_v38 = vadd.f32 %v3275_v24, %v20277_v22  ;;  %v3400_v58 = vmax.f32 %v15976_v34, 0.0  ;;  %v3402_v47 = vmax.f32 %v16040_v9, 0.0  ;;  %v18175_v22 = vld [vmem:[#allocation10] ss:$12 sps:$4 sm:$0xff]  }
 0x41f   : > { %v15979_v46 = vadd.f32 %v2891_v52, %v20280_v8  ;;  %v16043_v35 = vadd.f32 %v3277_v29, %v20283_v14  ;;  %v3401_v18 = vmax.f32 %v15977_v60, 0.0  ;;  %v3403_v53 = vmax.f32 %v16041_v40, 0.0  ;;  %v18214_v8 = vld [vmem:[#allocation10 + $0xc8] ss:$12 sps:$4 sm:$0xff]   ;;  %v18216_v34 = vld [vmem:[#allocation10 + $0xe0] ss:$12 sps:$4 sm:$0xff]  }
 0x420   : > { %v3404_v45 = vmax.f32 %v15978_v4, 0.0  ;;  %v3406_v23 = vmax.f32 %v16042_v38, 0.0  ;;  %v18180_v14 = vld [vmem:[#allocation10 + $0x1c] ss:$12 sps:$4 sm:$0xff]   ;;  %15692 = vmatprep.subr.bf16.mxu1 %v18214_v8  ;;  %v18183_v9 = vld [vmem:[#allocation10 + $0x34] ss:$12 sps:$4 sm:$0xff]  }
 0x421   : > { %v3405_v49 = vmax.f32 %v15979_v46, 0.0  ;;  %v3407_v62 = vmax.f32 %v16043_v35, 0.0  ;;  %v18215_v56 = vld [vmem:[#allocation10 + $0x8] ss:$12 sps:$4 sm:$0xff]   ;;  %v18181_v60 = vld [vmem:[#allocation10 + $0x30] ss:$12 sps:$4 sm:$0xff]  }
 0x422   : > { %v3468_v7 = vpack.c.bf16 %v3404_v45, %v3400_v58  ;;  %v20473_v16 = vpack.c.bf16 %v3406_v23, %v3402_v47  ;;  %v18221_v51 = vld [vmem:[#allocation10 + $0xf8] ss:$12 sps:$4 sm:$0xff]   ;;  %v18184_v40 = vld [vmem:[#allocation10 + $0x48] ss:$12 sps:$4 sm:$0xff]   ;;  %v18224_v52 = vld [vmem:[#allocation10 + $0x50] ss:$12 sps:$4 sm:$0xff]  }
 0x423   : > { %v3469_v12 = vpack.c.bf16 %v3405_v49, %v3401_v18  ;;  %v20475_v33 = vpack.c.bf16 %v3407_v62, %v3403_v53  ;;  %v18186_v24 = vld [vmem:[#allocation10 + $0x4c] ss:$12 sps:$4 sm:$0xff]   ;;  %v18189_v4 = vld [vmem:[#allocation10 + $0x64] ss:$12 sps:$4 sm:$0xff]   ;;  %v18228_v38 = vld [vmem:[#allocation10 + $0x128] ss:$12 sps:$4 sm:$0xff]  }
 0x424   : > { %v18187_v29 = vld [vmem:[#allocation10 + $0x60] ss:$12 sps:$4 sm:$0xff]   ;;  %v18192_v46 = vld [vmem:[#allocation10 + $0x7c] ss:$12 sps:$4 sm:$0xff]   ;;  %v18190_v35 = vld [vmem:[#allocation10 + $0x78] ss:$12 sps:$4 sm:$0xff]  }
 0x425   : > { %4444 = vmatprep.mubr.bf16.mxu0 %v3469_v12  ;;  %4830 = vmatprep.mubr.bf16.mxu1 %v3469_v12  ;;  %v18195_v58 = vld [vmem:[#allocation10 + $0x94] ss:$12 sps:$4 sm:$0xff]   ;;  %v18193_v45 = vld [vmem:[#allocation10 + $0x90] ss:$12 sps:$4 sm:$0xff]   ;;  %v18198_v47 = vld [vmem:[#allocation10 + $0xac] ss:$12 sps:$4 sm:$0xff]  }
 0x426   : > { %4445 = vmatmul.mubr.bf16.gmra.mrb[188].mxu0 %v3468_v7  ;;  %4831 = vmatmul.mubr.bf16.gmra.mrb[188].mxu1 %v3468_v7  ;;  %v18199_v23 = vld [vmem:[#allocation10 + $0xc0] ss:$12 sps:$4 sm:$0xff]   ;;  %v18204_v18 = vld [vmem:[#allocation10 + $0xdc] ss:$12 sps:$4 sm:$0xff]  }
 0x427   : > { %4487 = vmatprep.mubr.bf16.mxu0 %v20295_v10  ;;  %4873 = vmatprep.mubr.bf16.mxu1 %v20295_v10  ;;  %v18217_v10 = vld [vmem:[#allocation10 + $0x20] ss:$12 sps:$4 sm:$0xff]   ;;  %v18205_v49 = vld [vmem:[#allocation10 + $0xf0] ss:$12 sps:$4 sm:$0xff]  }
 0x428   : > { %v18210_v53 = vld [vmem:[#allocation10 + $0x10c] ss:$12 sps:$4 sm:$0xff]   ;;  %v18220_v7 = vld [vmem:[#allocation10 + $0x13c] ss:$12 sps:$4 sm:$0xff]  }
 0x429   : > { %v18211_v62 = vld [vmem:[#allocation10 + $0x120] ss:$12 sps:$4 sm:$0xff]   ;;  %v18225_v12 = vld [vmem:[#allocation10 + $0x150] ss:$12 sps:$4 sm:$0xff]  }
 0x42e   : > { %4488 = vmatmul.mubr.bf16.vlgmr.msra.gmra.mrb[128].mxu0 %v20293_v26  ;;  %4874 = vmatmul.mubr.bf16.vlgmr.msra.gmra.mrb[128].mxu1 %v20293_v26  ;;  %v18222_v26 = vld [vmem:[#allocation10 + $0x38] ss:$12 sps:$4 sm:$0xff]  }
 0x42f   : > { %4497 = vmatprep.mubr.bf16.mxu0 %v20307_v25  ;;  %4883 = vmatprep.mubr.bf16.mxu1 %v20307_v25  ;;  %v18223_v25 = vld [vmem:[#allocation10 + $0x110] ss:$12 sps:$4 sm:$0xff]  }
 0x430   : > { %5884 = vmatpush1.bf16.msra.mxu0 %v18175_v22  ;;  %15693 = vmatpush3.bf16.msra.mxu1 %v18215_v56 }
 0x431   : > { %5885 = vmatprep.subr.bf16.mxu0 %v18180_v14  ;;  %15694 = vmatprep.subr.bf16.mxu1 %v18216_v34 }
 0x434   : > { %5886 = vmatpush1.bf16.msra.mxu0 %v18178_v6  ;;  %15695 = vmatpush3.bf16.msra.mxu1 %v18217_v10 }
 0x435   : > { %5887 = vmatprep.subr.bf16.mxu0 %v18183_v9  ;;  %15696 = vmatprep.subr.bf16.mxu1 %v18221_v51 }
 0x436   : > { %4498 = vmatmul.mubr.bf16.gmra.mrb[132].mxu0 %v20305_v17  ;;  %4884 = vmatmul.mubr.bf16.gmra.mrb[132].mxu1 %v20305_v17  ;;  %v18229_v17 = vld [vmem:[#allocation10 + $0x68] ss:$12 sps:$4 sm:$0xff]  }
 0x437   : > { %4507 = vmatprep.mubr.bf16.mxu0 %v20319_v2  ;;  %4893 = vmatprep.mubr.bf16.mxu1 %v20319_v2  ;;  %v18230_v2 = vld [vmem:[#allocation10 + $0x140] ss:$12 sps:$4 sm:$0xff]  }
 0x438   : > { %5888 = vmatpush1.bf16.msra.mxu0 %v18181_v60  ;;  %15697 = vmatpush3.bf16.msra.mxu1 %v18222_v26 }
 0x439   : > { %5889 = vmatprep.subr.bf16.mxu0 %v18186_v24  ;;  %15698 = vmatprep.subr.bf16.mxu1 %v18223_v25 }
 0x43c   : > { %5890 = vmatpush1.bf16.msra.mxu0 %v18184_v40  ;;  %15699 = vmatpush3.bf16.msra.mxu1 %v18224_v52 }
 0x43d   : > { %5891 = vmatprep.subr.bf16.mxu0 %v18189_v4  ;;  %15700 = vmatprep.subr.bf16.mxu1 %v18228_v38 }
 0x43e   : > { %4508 = vmatmul.mubr.bf16.gmra.mrb[136].mxu0 %v20317_v11  ;;  %4894 = vmatmul.mubr.bf16.gmra.mrb[136].mxu1 %v20317_v11  ;;  %v18196_v11 = vld [vmem:[#allocation10 + $0xa8] ss:$12 sps:$4 sm:$0xff]  }
 0x43f   : > { %4517 = vmatprep.mubr.bf16.mxu0 %v20331_v61  ;;  %4903 = vmatprep.mubr.bf16.mxu1 %v20331_v61  ;;  %v18201_v61 = vld [vmem:[#allocation10 + $0xc4] ss:$12 sps:$4 sm:$0xff]  }
 0x440   : > { %5892 = vmatpush1.bf16.msra.mxu0 %v18187_v29  ;;  %15701 = vmatpush3.bf16.msra.mxu1 %v18229_v17 }
 0x441   : > { %5893 = vmatprep.subr.bf16.mxu0 %v18192_v46  ;;  %15702 = vmatprep.subr.bf16.mxu1 %v18230_v2 }
 0x444   : > { %5894 = vmatpush1.bf16.msra.mxu0 %v18190_v35 }
 0x445   : > { %5895 = vmatprep.subr.bf16.mxu0 %v18195_v58 }
 0x446   : > { %4518 = vmatmul.mubr.bf16.gmra.mrb[140].mxu0 %v20329_v59  ;;  %4904 = vmatmul.mubr.bf16.gmra.mrb[140].mxu1 %v20329_v59  ;;  %v18202_v59 = vld [vmem:[#allocation10 + $0xd8] ss:$12 sps:$4 sm:$0xff]  }
 0x447   : > { %4527 = vmatprep.mubr.bf16.mxu0 %v20343_v44  ;;  %4913 = vmatprep.mubr.bf16.mxu1 %v20343_v44  ;;  %v18207_v44 = vld [vmem:[#allocation10 + $0xf4] ss:$12 sps:$4 sm:$0xff]  }
 0x448   : > { %5896 = vmatpush1.bf16.msra.mxu0 %v18193_v45 }
 0x449   : > { %5897 = vmatprep.subr.bf16.mxu0 %v18198_v47  ;;  %v18239_v47 = vld [vmem:[#allocation10 + $0x180] ss:$12 sps:$4 sm:$0xff]  }
 0x44c   : > { %5898 = vmatpush1.bf16.msra.mxu0 %v18196_v11  ;;  %v18279_v11 = vld [vmem:[#allocation10 + $0x188] ss:$12 sps:$4 sm:$0xff]  }
 0x44d   : > { %5899 = vmatprep.subr.bf16.mxu0 %v18201_v61 }
 0x44e   : > { %4528 = vmatmul.mubr.bf16.gmra.mrb[144].mxu0 %v20341_v32  ;;  %4914 = vmatmul.mubr.bf16.gmra.mrb[144].mxu1 %v20341_v32  ;;  %v18208_v32 = vld [vmem:[#allocation10 + $0x108] ss:$12 sps:$4 sm:$0xff]  }
 0x44f   : > { %4537 = vmatprep.mubr.bf16.mxu0 %v20355_v21  ;;  %4923 = vmatprep.mubr.bf16.mxu1 %v20355_v21  ;;  %v18213_v21 = vld [vmem:[#allocation10 + $0x124] ss:$12 sps:$4 sm:$0xff]  }
 0x450   : > { %5900 = vmatpush1.bf16.msra.mxu0 %v18199_v23 }
 0x451   : > { %5901 = vmatprep.subr.bf16.mxu0 %v18204_v18 }
 0x454   : > { %5902 = vmatpush1.bf16.msra.mxu0 %v18202_v59 }
 0x455   : > { %5903 = vmatprep.subr.bf16.mxu0 %v18207_v44 }
 0x456   : > { %4538 = vmatmul.mubr.bf16.gmra.mrb[148].mxu0 %v20353_v54  ;;  %4924 = vmatmul.mubr.bf16.gmra.mrb[148].mxu1 %v20353_v54  ;;  %v18218_v54 = vld [vmem:[#allocation10 + $0x138] ss:$12 sps:$4 sm:$0xff]  }
 0x457   : > { %4547 = vmatprep.mubr.bf16.mxu0 %v20367_v28  ;;  %4933 = vmatprep.mubr.bf16.mxu1 %v20367_v28  ;;  %v18227_v28 = vld [vmem:[#allocation10 + $0x154] ss:$12 sps:$4 sm:$0xff]  }
 0x458   : > { %5904 = vmatpush1.bf16.msra.mxu0 %v18205_v49  ;;  %v18244_v49 = vld [vmem:[#allocation10 + $0x19c] ss:$12 sps:$4 sm:$0xff]  }
 0x459   : > { %5905 = vmatprep.subr.bf16.mxu0 %v18210_v53  ;;  %v18280_v53 = vld [vmem:[#allocation10 + $0x260] ss:$12 sps:$4 sm:$0xff]  }
 0x45c   : > { %5906 = vmatpush1.bf16.msra.mxu0 %v18208_v32 }
 0x45d   : > { %5907 = vmatprep.subr.bf16.mxu0 %v18213_v21 }
 0x45e   : > { %4548 = vmatmul.mubr.bf16.gmra.mrb[152].mxu0 %v20365_v37  ;;  %4934 = vmatmul.mubr.bf16.gmra.mrb[152].mxu1 %v20365_v37  ;;  %v18231_v37 = vld [vmem:[#allocation10 + $0x80] ss:$12 sps:$4 sm:$0xff]  }
 0x45f   : > { %4557 = vmatprep.mubr.bf16.mxu0 %v20379_v13  ;;  %4943 = vmatprep.mubr.bf16.mxu1 %v20379_v13  ;;  %v18236_v13 = vld [vmem:[#allocation10 + $0x98] ss:$12 sps:$4 sm:$0xff]  }
 0x460   : > { %5908 = vmatpush1.bf16.msra.mxu0 %v18211_v62  ;;  %15703 = vmatpush3.bf16.msra.mxu1 %v18231_v37 }
 0x461   : > { %5909 = vmatprep.subr.bf16.mxu0 %v18220_v7 }
 0x464   : > { %5910 = vmatpush1.bf16.msra.mxu0 %v18218_v54 }
 0x465   : > { %5911 = vmatprep.subr.bf16.mxu0 %v18227_v28 }
 0x466   : > { %4558 = vmatmul.mubr.bf16.gmra.mrb[156].mxu0 %v20377_v5  ;;  %4944 = vmatmul.mubr.bf16.gmra.mrb[156].mxu1 %v20377_v5  ;;  %v18235_v5 = vld [vmem:[#allocation10 + $0x158] ss:$12 sps:$4 sm:$0xff]  }
 0x467   : > { %4567 = vmatprep.mubr.bf16.mxu0 %v20391_v3  ;;  %4953 = vmatprep.mubr.bf16.mxu1 %v20391_v3  ;;  %v18237_v3 = vld [vmem:[#allocation10 + $0x170] ss:$12 sps:$4 sm:$0xff]  }
 0x468   : > { %5912 = vmatpush1.bf16.msra.mxu0 %v18225_v12  ;;  %15704 = vmatprep.subr.bf16.mxu1 %v18235_v5 }
 0x469   : > { %15705 = vmatpush3.bf16.msra.mxu1 %v18236_v13 }
 0x46a   : > { %15706 = vmatprep.subr.bf16.mxu1 %v18237_v3  ;;  %v18247_v3 = vld [vmem:[#allocation10 + $0x1b4] ss:$12 sps:$4 sm:$0xff]  }
 0x46e   : > { %4568 = vmatmul.mubr.bf16.gmra.mrb[160].mxu0 %v20389_v50  ;;  %4954 = vmatmul.mubr.bf16.gmra.mrb[160].mxu1 %v20389_v50  ;;  %v18234_v50 = vld [vmem:[#allocation10 + $0x16c] ss:$12 sps:$4 sm:$0xff]  }
 0x46f   : > { %4577 = vmatprep.mubr.bf16.mxu0 %v20403_v39  ;;  %4963 = vmatprep.mubr.bf16.mxu1 %v20403_v39  ;;  %v18238_v39 = vld [vmem:[#allocation10 + $0xb0] ss:$12 sps:$4 sm:$0xff]  }
 0x470   : > { %5913 = vmatprep.subr.bf16.mxu0 %v18234_v50  ;;  %15707 = vmatpush3.bf16.msra.mxu1 %v18238_v39  ;;  %v18242_v50 = vld [vmem:[#allocation10 + $0x198] ss:$12 sps:$4 sm:$0xff]  }
 0x476   : > { %4578 = vmatmul.mubr.bf16.gmra.mrb[164].mxu0 %v20401_v36  ;;  %4964 = vmatmul.mubr.bf16.gmra.mrb[164].mxu1 %v20401_v36  ;;  %v18232_v36 = vld [vmem:[#allocation10 + $0x168] ss:$12 sps:$4 sm:$0xff]  }
 0x477   : > { %4587 = vmatprep.mubr.bf16.mxu0 %v20415_v19  ;;  %4973 = vmatprep.mubr.bf16.mxu1 %v20415_v19  ;;  %v18278_v19 = vld [vmem:[#allocation10 + $0x248] ss:$12 sps:$4 sm:$0xff]  }
 0x478   : > { %5914 = vmatpush1.bf16.msra.mxu0 %v18232_v36  ;;  %15804 = vmatprep.subr.bf16.mxu1 %v18278_v19  ;;  %v18281_v36 = vld [vmem:[#allocation10 + $0x1a0] ss:$12 sps:$4 sm:$0xff]   ;;  %v18285_v19 = vld [vmem:[#allocation10 + $0x278] ss:$12 sps:$4 sm:$0xff]  }
 0x47e   : > { %4588 = vmatmul.mubr.bf16.gmra.mrb[168].mxu0 %v20413_v31  ;;  %4974 = vmatmul.mubr.bf16.gmra.mrb[168].mxu1 %v20413_v31  ;;  %v18241_v31 = vld [vmem:[#allocation10 + $0x184] ss:$12 sps:$4 sm:$0xff]  }
 0x47f   : > { %4597 = vmatprep.mubr.bf16.mxu0 %v20427_v48  ;;  %4983 = vmatprep.mubr.bf16.mxu1 %v20427_v48 }
 0x480   : > { %6076 = vmatprep.subr.bf16.mxu0 %v18241_v31 }
 0x486   : > { %4598 = vmatmul.mubr.bf16.gmra.mrb[172].mxu0 %v20425_v15  ;;  %4984 = vmatmul.mubr.bf16.gmra.mrb[172].mxu1 %v20425_v15  ;;  %v3600_v15 = vld [vmem:[%s22555_s6] sm:$0xf] }
 0x487   : > { %4607 = vmatprep.mubr.bf16.mxu0 %v20439_v20  ;;  %4993 = vmatprep.mubr.bf16.mxu1 %v20439_v20  ;;  %v20545_v48 = vrot.slane %v3600_v15, %v19991_v55  ;;  %v20551_v20 = vrot.slane %v3600_v15, %v19996_v57 }
 0x48e   : > { %4608 = vmatmul.mubr.bf16.gmra.mrb[176].mxu0 %v20437_v43  ;;  %4994 = vmatmul.mubr.bf16.gmra.mrb[176].mxu1 %v20437_v43  ;;  %v20548_v43 = vrot.slane %v3600_v15, %v20012_v27 }
 0x48f   : > { %4617 = vmatprep.mubr.bf16.mxu0 %v20451_v42  ;;  %5003 = vmatprep.mubr.bf16.mxu1 %v20451_v42 }
 0x496   : > { %4618 = vmatmul.mubr.bf16.gmra.mrb[180].mxu0 %v20449_v63  ;;  %5004 = vmatmul.mubr.bf16.gmra.mrb[180].mxu1 %v20449_v63  ;;  %v20554_v63 = vrot.slane %v3600_v15, %v20014_v30 }
 0x497   : > { %4627 = vmatprep.mubr.bf16.mxu0 %v20463_v41  ;;  %5013 = vmatprep.mubr.bf16.mxu1 %v20463_v41 }
 0x49e   : > { %4628 = vmatmul.mubr.bf16.gmra.mrb[184].mxu0 %v20461_v0  ;;  %5014 = vmatmul.mubr.bf16.gmra.mrb[184].mxu1 %v20461_v0 }
 0x49f   : > { %4637 = vmatprep.mubr.bf16.mxu0 %v20475_v33  ;;  %5023 = vmatprep.mubr.bf16.mxu1 %v20475_v33 }
 0x4a6   : > { %4638 = vmatmul.mubr.bf16.gmra.mrb[188].mxu0 %v20473_v16  ;;  %5024 = vmatmul.mubr.bf16.gmra.mrb[188].mxu1 %v20473_v16 }
 0x501   : > { %v4489_v42 = vpop.f32.mrb[128].mxu0  ;;  %v4875_v0 = vpop.f32.mrb[128].mxu1 }
 0x502   : > { %v16044_v41 = vadd.f32 %v4489_v42, %v20545_v48  ;;  %v16108_v16 = vadd.f32 %v4875_v0, %v20548_v43  ;;  %v4491_v33 = vpop.f32.mrb[129].mxu0  ;;  %v4877_v22 = vpop.f32.mrb[129].mxu1 }
 0x503   : > { %v16045_v8 = vadd.f32 %v4491_v33, %v20551_v20  ;;  %v16109_v14 = vadd.f32 %v4877_v22, %v20554_v63  ;;  %v4493_v56 = vpop.f32.mrb[130].mxu0  ;;  %v4879_v34 = vpop.f32.mrb[130].mxu1 }
 0x504   : > { %v16046_v6 = vadd.f32 %v4493_v56, %v20545_v48  ;;  %v16110_v9 = vadd.f32 %v4879_v34, %v20548_v43  ;;  %v4495_v10 = vpop.f32.mrb[131].mxu0  ;;  %v4881_v60 = vpop.f32.mrb[131].mxu1  ;;  %v5034_v26 = vmax.f32 %v16044_v41, 0.0  ;;  %v5036_v25 = vmax.f32 %v16108_v16, 0.0 }
 0x505   : > { %v16047_v51 = vadd.f32 %v4495_v10, %v20551_v20  ;;  %v16111_v24 = vadd.f32 %v4881_v60, %v20554_v63  ;;  %v5035_v52 = vmax.f32 %v16045_v8, 0.0  ;;  %v5037_v38 = vmax.f32 %v16109_v14, 0.0 }
 0x506   : > { %v5038_v40 = vmax.f32 %v16046_v6, 0.0  ;;  %v5040_v4 = vmax.f32 %v16110_v9, 0.0  ;;  %v18245_v6 = vld [vmem:[#allocation10 + $0x1b0] ss:$12 sps:$4 sm:$0xff]   ;;  %v18286_v9 = vld [vmem:[#allocation10 + $0x1b8] ss:$12 sps:$4 sm:$0xff]  }
 0x507   : > { %v5039_v29 = vmax.f32 %v16047_v51, 0.0  ;;  %v5041_v46 = vmax.f32 %v16111_v24, 0.0 }
 0x508   : > { %v5162_v17 = vpack.c.bf16 %v5038_v40, %v5034_v26  ;;  %v20564_v2 = vpack.c.bf16 %v5040_v4, %v5036_v25  ;;  %v18250_v25 = vld [vmem:[#allocation10 + $0x1cc] ss:$12 sps:$4 sm:$0xff]   ;;  %v18287_v40 = vld [vmem:[#allocation10 + $0x290] ss:$12 sps:$4 sm:$0xff]  }
 0x509   : > { %v4499_v35 = vpop.f32.mrb[132].mxu0  ;;  %v4885_v58 = vpop.f32.mrb[132].mxu1  ;;  %v5163_v45 = vpack.c.bf16 %v5039_v29, %v5035_v52  ;;  %v20566_v61 = vpack.c.bf16 %v5041_v46, %v5037_v38 }
 0x50a   : > { %v16048_v23 = vadd.f32 %v4499_v35, %v20545_v48  ;;  %v16112_v18 = vadd.f32 %v4885_v58, %v20548_v43  ;;  %v4501_v59 = vpop.f32.mrb[133].mxu0  ;;  %v4887_v44 = vpop.f32.mrb[133].mxu1 }
 0x50b   : > { %v16049_v32 = vadd.f32 %v4501_v59, %v20551_v20  ;;  %v16113_v21 = vadd.f32 %v4887_v44, %v20554_v63  ;;  %v4503_v62 = vpop.f32.mrb[134].mxu0  ;;  %v4889_v7 = vpop.f32.mrb[134].mxu1  ;;  %5915 = vmatprep.mubr.bf16.mxu0 %v5163_v45  ;;  %6301 = vmatprep.mubr.bf16.mxu1 %v5163_v45 }
 0x50c   : > { %v16050_v54 = vadd.f32 %v4503_v62, %v20545_v48  ;;  %v16114_v28 = vadd.f32 %v4889_v7, %v20548_v43  ;;  %v4505_v12 = vpop.f32.mrb[135].mxu0  ;;  %v4891_v37 = vpop.f32.mrb[135].mxu1  ;;  %5916 = vmatmul.mubr.bf16.vlgmr.msra.gmra.mrb[192].mxu0 %v5162_v17  ;;  %6302 = vmatmul.mubr.bf16.vlgmr.msra.gmra.mrb[192].mxu1 %v5162_v17  ;;  %v5042_v39 = vmax.f32 %v16048_v23, 0.0  ;;  %v5044_v15 = vmax.f32 %v16112_v18, 0.0  ;;  %v18253_v23 = vld [vmem:[#allocation10 + $0x1e4] ss:$12 sps:$4 sm:$0xff]  }
 0x50d   : > { %v16051_v5 = vadd.f32 %v4505_v12, %v20551_v20  ;;  %v16115_v13 = vadd.f32 %v4891_v37, %v20554_v63  ;;  %6077 = vmatpush1.bf16.msra.mxu0 %v18239_v47  ;;  %15805 = vmatpush3.bf16.msra.mxu1 %v18279_v11  ;;  %v5043_v0 = vmax.f32 %v16049_v32, 0.0  ;;  %v5045_v16 = vmax.f32 %v16113_v21, 0.0  ;;  %v18248_v11 = vld [vmem:[#allocation10 + $0x1c8] ss:$12 sps:$4 sm:$0xff]   ;;  %v18288_v18 = vld [vmem:[#allocation10 + $0x1d0] ss:$12 sps:$4 sm:$0xff]  }
 0x50e   : > { %6078 = vmatprep.subr.bf16.mxu0 %v18244_v49  ;;  %v5046_v31 = vmax.f32 %v16050_v54, 0.0  ;;  %15806 = vmatprep.subr.bf16.mxu1 %v18280_v53  ;;  %v5048_v42 = vmax.f32 %v16114_v28, 0.0  ;;  %v18292_v49 = vld [vmem:[#allocation10 + $0x2a8] ss:$12 sps:$4 sm:$0xff]  }
 0x50f   : > { %v5047_v41 = vmax.f32 %v16051_v5, 0.0  ;;  %v5049_v33 = vmax.f32 %v16115_v13, 0.0 }
 0x510   : > { %v5166_v22 = vpack.c.bf16 %v5046_v31, %v5042_v39  ;;  %v20576_v8 = vpack.c.bf16 %v5048_v42, %v5044_v15  ;;  %v18256_v42 = vld [vmem:[#allocation10 + $0x1fc] ss:$12 sps:$4 sm:$0xff]  }
 0x511   : > { %v4509_v14 = vpop.f32.mrb[136].mxu0  ;;  %v4895_v56 = vpop.f32.mrb[136].mxu1  ;;  %v5167_v34 = vpack.c.bf16 %v5047_v41, %v5043_v0  ;;  %6079 = vmatpush1.bf16.msra.mxu0 %v18242_v50  ;;  %15807 = vmatpush3.bf16.msra.mxu1 %v18281_v36  ;;  %v20578_v10 = vpack.c.bf16 %v5049_v33, %v5045_v16  ;;  %v18251_v50 = vld [vmem:[#allocation10 + $0x1e0] ss:$12 sps:$4 sm:$0xff]  }
 0x512   : > { %v16052_v60 = vadd.f32 %v4509_v14, %v20545_v48  ;;  %v16116_v51 = vadd.f32 %v4895_v56, %v20548_v43  ;;  %v4511_v24 = vpop.f32.mrb[137].mxu0  ;;  %v4897_v26 = vpop.f32.mrb[137].mxu1  ;;  %6080 = vmatprep.subr.bf16.mxu0 %v18247_v3  ;;  %15808 = vmatprep.subr.bf16.mxu1 %v18285_v19  ;;  %v18293_v3 = vld [vmem:[#allocation10 + $0x1e8] ss:$12 sps:$4 sm:$0xff]   ;;  %v18294_v0 = vld [vmem:[#allocation10 + $0x2c0] ss:$12 sps:$4 sm:$0xff]  }
 0x513   : > { %v16053_v4 = vadd.f32 %v4511_v24, %v20551_v20  ;;  %v16117_v52 = vadd.f32 %v4897_v26, %v20554_v63  ;;  %v4513_v29 = vpop.f32.mrb[138].mxu0  ;;  %v4899_v38 = vpop.f32.mrb[138].mxu1  ;;  %5925 = vmatprep.mubr.bf16.mxu0 %v5167_v34  ;;  %6309 = vmatprep.mubr.bf16.mxu1 %v5167_v34  ;;  %v18259_v24 = vld [vmem:[#allocation10 + $0x214] ss:$12 sps:$4 sm:$0xff]  }
 0x514   : > { %v16054_v46 = vadd.f32 %v4513_v29, %v20545_v48  ;;  %v16118_v17 = vadd.f32 %v4899_v38, %v20548_v43  ;;  %v4515_v35 = vpop.f32.mrb[139].mxu0  ;;  %v4901_v58 = vpop.f32.mrb[139].mxu1  ;;  %5926 = vmatmul.mubr.bf16.gmra.mrb[196].mxu0 %v5166_v22  ;;  %6310 = vmatmul.mubr.bf16.gmra.mrb[196].mxu1 %v5166_v22  ;;  %v5050_v59 = vmax.f32 %v16052_v60, 0.0  ;;  %v5052_v53 = vmax.f32 %v16116_v51, 0.0  ;;  %v18254_v51 = vld [vmem:[#allocation10 + $0x1f8] ss:$12 sps:$4 sm:$0xff]  }
 0x515   : > { %v16055_v45 = vadd.f32 %v4515_v35, %v20551_v20  ;;  %v16119_v47 = vadd.f32 %v4901_v58, %v20554_v63  ;;  %6081 = vmatpush1.bf16.msra.mxu0 %v18245_v6  ;;  %15809 = vmatpush3.bf16.msra.mxu1 %v18286_v9  ;;  %v5051_v21 = vmax.f32 %v16053_v4, 0.0  ;;  %v5053_v7 = vmax.f32 %v16117_v52, 0.0  ;;  %v18295_v26 = vld [vmem:[#allocation10 + $0x200] ss:$12 sps:$4 sm:$0xff]   ;;  %v18299_v4 = vld [vmem:[#allocation10 + $0x2d8] ss:$12 sps:$4 sm:$0xff]  }
 0x516   : > { %v5054_v44 = vmax.f32 %v16054_v46, 0.0  ;;  %6082 = vmatprep.subr.bf16.mxu0 %v18250_v25  ;;  %15810 = vmatprep.subr.bf16.mxu1 %v18287_v40  ;;  %v5056_v32 = vmax.f32 %v16118_v17, 0.0 }
 0x517   : > { %v5055_v62 = vmax.f32 %v16055_v45, 0.0  ;;  %v5057_v54 = vmax.f32 %v16119_v47, 0.0 }
 0x518   : > { %v5170_v28 = vpack.c.bf16 %v5054_v44, %v5050_v59  ;;  %v20588_v12 = vpack.c.bf16 %v5056_v32, %v5052_v53  ;;  %v18300_v59 = vld [vmem:[#allocation10 + $0x218] ss:$12 sps:$4 sm:$0xff]  }
 0x519   : > { %v4519_v37 = vpop.f32.mrb[140].mxu0  ;;  %v4905_v5 = vpop.f32.mrb[140].mxu1  ;;  %v5171_v13 = vpack.c.bf16 %v5055_v62, %v5051_v21  ;;  %6083 = vmatpush1.bf16.msra.mxu0 %v18248_v11  ;;  %15811 = vmatpush3.bf16.msra.mxu1 %v18288_v18  ;;  %v20590_v36 = vpack.c.bf16 %v5057_v54, %v5053_v7  ;;  %v18257_v18 = vld [vmem:[#allocation10 + $0x210] ss:$12 sps:$4 sm:$0xff]   ;;  %v18262_v62 = vld [vmem:[#allocation10 + $0x22c] ss:$12 sps:$4 sm:$0xff]  }
 0x51a   : > { %v16056_v39 = vadd.f32 %v4519_v37, %v20545_v48  ;;  %v16120_v31 = vadd.f32 %v4905_v5, %v20548_v43  ;;  %v4521_v19 = vpop.f32.mrb[141].mxu0  ;;  %v4907_v15 = vpop.f32.mrb[141].mxu1  ;;  %6084 = vmatprep.subr.bf16.mxu0 %v18253_v23  ;;  %15812 = vmatprep.subr.bf16.mxu1 %v18292_v49  ;;  %v18301_v7 = vld [vmem:[#allocation10 + $0x2f0] ss:$12 sps:$4 sm:$0xff]  }
 0x51b   : > { %v16057_v41 = vadd.f32 %v4521_v19, %v20551_v20  ;;  %v16121_v16 = vadd.f32 %v4907_v15, %v20554_v63  ;;  %v4523_v33 = vpop.f32.mrb[142].mxu0  ;;  %v4909_v22 = vpop.f32.mrb[142].mxu1  ;;  %5935 = vmatprep.mubr.bf16.mxu0 %v5171_v13  ;;  %6317 = vmatprep.mubr.bf16.mxu1 %v5171_v13  ;;  %v18260_v15 = vld [vmem:[#allocation10 + $0x228] ss:$12 sps:$4 sm:$0xff]  }
 0x51c   : > { %v16058_v14 = vadd.f32 %v4523_v33, %v20545_v48  ;;  %v16122_v56 = vadd.f32 %v4909_v22, %v20548_v43  ;;  %v4525_v34 = vpop.f32.mrb[143].mxu0  ;;  %v4911_v6 = vpop.f32.mrb[143].mxu1  ;;  %5936 = vmatmul.mubr.bf16.gmra.mrb[200].mxu0 %v5170_v28  ;;  %6318 = vmatmul.mubr.bf16.gmra.mrb[200].mxu1 %v5170_v28  ;;  %v5058_v25 = vmax.f32 %v16056_v39, 0.0  ;;  %v5060_v52 = vmax.f32 %v16120_v31, 0.0 }
 0x51d   : > { %v16059_v9 = vadd.f32 %v4525_v34, %v20551_v20  ;;  %v16123_v60 = vadd.f32 %v4911_v6, %v20554_v63  ;;  %6085 = vmatpush1.bf16.msra.mxu0 %v18251_v50  ;;  %15813 = vmatpush3.bf16.msra.mxu1 %v18293_v3  ;;  %v5059_v38 = vmax.f32 %v16057_v41, 0.0  ;;  %v5061_v17 = vmax.f32 %v16121_v16, 0.0  ;;  %v18265_v16 = vld [vmem:[#allocation10 + $0x244] ss:$12 sps:$4 sm:$0xff]  }
 0x51e   : > { %v5062_v40 = vmax.f32 %v16058_v14, 0.0  ;;  %6086 = vmatprep.subr.bf16.mxu0 %v18256_v42  ;;  %15814 = vmatprep.subr.bf16.mxu1 %v18294_v0  ;;  %v5064_v29 = vmax.f32 %v16122_v56, 0.0  ;;  %v18302_v42 = vld [vmem:[#allocation10 + $0x230] ss:$12 sps:$4 sm:$0xff]  }
 0x51f   : > { %v5063_v46 = vmax.f32 %v16059_v9, 0.0  ;;  %v5065_v35 = vmax.f32 %v16123_v60, 0.0 }
 0x520   : > { %v5174_v58 = vpack.c.bf16 %v5062_v40, %v5058_v25  ;;  %v20600_v45 = vpack.c.bf16 %v5064_v29, %v5060_v52  ;;  %v18263_v25 = vld [vmem:[#allocation10 + $0x240] ss:$12 sps:$4 sm:$0xff]  }
 0x521   : > { %v4529_v47 = vpop.f32.mrb[144].mxu0  ;;  %v4915_v11 = vpop.f32.mrb[144].mxu1  ;;  %v5175_v23 = vpack.c.bf16 %v5063_v46, %v5059_v38  ;;  %6087 = vmatpush1.bf16.msra.mxu0 %v18254_v51  ;;  %15815 = vmatpush3.bf16.msra.mxu1 %v18295_v26  ;;  %v20602_v44 = vpack.c.bf16 %v5065_v35, %v5061_v17  ;;  %v18268_v46 = vld [vmem:[#allocation10 + $0x25c] ss:$12 sps:$4 sm:$0xff]  }
 0x522   : > { %v16060_v49 = vadd.f32 %v4529_v47, %v20545_v48  ;;  %v16124_v53 = vadd.f32 %v4915_v11, %v20548_v43  ;;  %v4531_v32 = vpop.f32.mrb[145].mxu0  ;;  %v4917_v21 = vpop.f32.mrb[145].mxu1  ;;  %6088 = vmatprep.subr.bf16.mxu0 %v18259_v24  ;;  %15816 = vmatprep.subr.bf16.mxu1 %v18299_v4 }
 0x523   : > { %v16061_v54 = vadd.f32 %v4531_v32, %v20551_v20  ;;  %v16125_v28 = vadd.f32 %v4917_v21, %v20554_v63  ;;  %v4533_v37 = vpop.f32.mrb[146].mxu0  ;;  %v4919_v5 = vpop.f32.mrb[146].mxu1  ;;  %5945 = vmatprep.mubr.bf16.mxu0 %v5175_v23  ;;  %6325 = vmatprep.mubr.bf16.mxu1 %v5175_v23  ;;  %v18266_v32 = vld [vmem:[#allocation10 + $0x258] ss:$12 sps:$4 sm:$0xff]  }
 0x524   : > { %v16062_v13 = vadd.f32 %v4533_v37, %v20545_v48  ;;  %v16126_v50 = vadd.f32 %v4919_v5, %v20548_v43  ;;  %v4535_v3 = vpop.f32.mrb[147].mxu0  ;;  %v4921_v39 = vpop.f32.mrb[147].mxu1  ;;  %5946 = vmatmul.mubr.bf16.gmra.mrb[204].mxu0 %v5174_v58  ;;  %6326 = vmatmul.mubr.bf16.gmra.mrb[204].mxu1 %v5174_v58  ;;  %v5066_v0 = vmax.f32 %v16060_v49, 0.0  ;;  %v5068_v33 = vmax.f32 %v16124_v53, 0.0 }
 0x525   : > { %v16063_v31 = vadd.f32 %v4535_v3, %v20551_v20  ;;  %v16127_v19 = vadd.f32 %v4921_v39, %v20554_v63  ;;  %6089 = vmatpush1.bf16.msra.mxu0 %v18257_v18  ;;  %15817 = vmatpush3.bf16.msra.mxu1 %v18300_v59  ;;  %v5067_v14 = vmax.f32 %v16061_v54, 0.0  ;;  %v5069_v34 = vmax.f32 %v16125_v28, 0.0 }
 0x526   : > { %v5070_v41 = vmax.f32 %v16062_v13, 0.0  ;;  %6090 = vmatprep.subr.bf16.mxu0 %v18262_v62  ;;  %15818 = vmatprep.subr.bf16.mxu1 %v18301_v7  ;;  %v5072_v22 = vmax.f32 %v16126_v50, 0.0  ;;  %v18271_v7 = vld [vmem:[#allocation10 + $0x274] ss:$12 sps:$4 sm:$0xff]  }
 0x527   : > { %v5071_v56 = vmax.f32 %v16063_v31, 0.0  ;;  %v5073_v6 = vmax.f32 %v16127_v19, 0.0 }
 0x528   : > { %v5178_v9 = vpack.c.bf16 %v5070_v41, %v5066_v0  ;;  %v20612_v60 = vpack.c.bf16 %v5072_v22, %v5068_v33 }
 0x529   : > { %v4539_v51 = vpop.f32.mrb[148].mxu0  ;;  %v4925_v24 = vpop.f32.mrb[148].mxu1  ;;  %v5179_v26 = vpack.c.bf16 %v5071_v56, %v5067_v14  ;;  %6091 = vmatpush1.bf16.msra.mxu0 %v18260_v15  ;;  %15819 = vmatpush3.bf16.msra.mxu1 %v18302_v42  ;;  %v20614_v40 = vpack.c.bf16 %v5073_v6, %v5069_v34  ;;  %v18269_v42 = vld [vmem:[#allocation10 + $0x270] ss:$12 sps:$4 sm:$0xff]   ;;  %v18274_v14 = vld [vmem:[#allocation10 + $0x28c] ss:$12 sps:$4 sm:$0xff]  }
 0x52a   : > { %v16064_v4 = vadd.f32 %v4539_v51, %v20545_v48  ;;  %v16128_v52 = vadd.f32 %v4925_v24, %v20548_v43  ;;  %v4541_v29 = vpop.f32.mrb[149].mxu0  ;;  %v4927_v38 = vpop.f32.mrb[149].mxu1  ;;  %6092 = vmatprep.subr.bf16.mxu0 %v18265_v16 }
 0x52b   : > { %v16065_v17 = vadd.f32 %v4541_v29, %v20551_v20  ;;  %v16129_v35 = vadd.f32 %v4927_v38, %v20554_v63  ;;  %v4543_v58 = vpop.f32.mrb[150].mxu0  ;;  %v4929_v47 = vpop.f32.mrb[150].mxu1  ;;  %5955 = vmatprep.mubr.bf16.mxu0 %v5179_v26  ;;  %6333 = vmatprep.mubr.bf16.mxu1 %v5179_v26  ;;  %v18272_v29 = vld [vmem:[#allocation10 + $0x288] ss:$12 sps:$4 sm:$0xff]  }
 0x52c   : > { %v16066_v11 = vadd.f32 %v4543_v58, %v20545_v48  ;;  %v16130_v23 = vadd.f32 %v4929_v47, %v20548_v43  ;;  %v4545_v18 = vpop.f32.mrb[151].mxu0  ;;  %v4931_v59 = vpop.f32.mrb[151].mxu1  ;;  %5956 = vmatmul.mubr.bf16.gmra.mrb[208].mxu0 %v5178_v9  ;;  %6334 = vmatmul.mubr.bf16.gmra.mrb[208].mxu1 %v5178_v9  ;;  %v5074_v21 = vmax.f32 %v16064_v4, 0.0  ;;  %v5076_v54 = vmax.f32 %v16128_v52, 0.0 }
 0x52d   : > { %v16067_v49 = vadd.f32 %v4545_v18, %v20551_v20  ;;  %v16131_v53 = vadd.f32 %v4931_v59, %v20554_v63  ;;  %6093 = vmatpush1.bf16.msra.mxu0 %v18263_v25  ;;  %v5075_v37 = vmax.f32 %v16065_v17, 0.0  ;;  %v5077_v13 = vmax.f32 %v16129_v35, 0.0  ;;  %v18277_v17 = vld [vmem:[#allocation10 + $0x2a4] ss:$12 sps:$4 sm:$0xff]  }
 0x52e   : > { %v5078_v62 = vmax.f32 %v16066_v11, 0.0  ;;  %6094 = vmatprep.subr.bf16.mxu0 %v18268_v46  ;;  %v5080_v28 = vmax.f32 %v16130_v23, 0.0 }
 0x52f   : > { %v5079_v5 = vmax.f32 %v16067_v49, 0.0  ;;  %v5081_v50 = vmax.f32 %v16131_v53, 0.0 }
 0x530   : > { %v5182_v3 = vpack.c.bf16 %v5078_v62, %v5074_v21  ;;  %v20624_v39 = vpack.c.bf16 %v5080_v28, %v5076_v54  ;;  %v18275_v62 = vld [vmem:[#allocation10 + $0x2a0] ss:$12 sps:$4 sm:$0xff]  }
 0x531   : > { %v4549_v31 = vpop.f32.mrb[152].mxu0  ;;  %v4935_v19 = vpop.f32.mrb[152].mxu1  ;;  %v5183_v15 = vpack.c.bf16 %v5079_v5, %v5075_v37  ;;  %6095 = vmatpush1.bf16.msra.mxu0 %v18266_v32  ;;  %v20626_v0 = vpack.c.bf16 %v5081_v50, %v5077_v13  ;;  %v18284_v13 = vld [vmem:[#allocation10 + $0x2bc] ss:$12 sps:$4 sm:$0xff]  }
 0x532   : > { %v16068_v41 = vadd.f32 %v4549_v31, %v20545_v48  ;;  %v16132_v16 = vadd.f32 %v4935_v19, %v20548_v43  ;;  %v4551_v33 = vpop.f32.mrb[153].mxu0  ;;  %v4937_v22 = vpop.f32.mrb[153].mxu1  ;;  %6096 = vmatprep.subr.bf16.mxu0 %v18271_v7 }
 0x533   : > { %v16069_v56 = vadd.f32 %v4551_v33, %v20551_v20  ;;  %v16133_v34 = vadd.f32 %v4937_v22, %v20554_v63  ;;  %v4553_v6 = vpop.f32.mrb[154].mxu0  ;;  %v4939_v9 = vpop.f32.mrb[154].mxu1  ;;  %5965 = vmatprep.mubr.bf16.mxu0 %v5183_v15  ;;  %6341 = vmatprep.mubr.bf16.mxu1 %v5183_v15 }
 0x534   : > { %v16070_v51 = vadd.f32 %v4553_v6, %v20545_v48  ;;  %v16134_v24 = vadd.f32 %v4939_v9, %v20548_v43  ;;  %v4555_v26 = vpop.f32.mrb[155].mxu0  ;;  %v4941_v25 = vpop.f32.mrb[155].mxu1  ;;  %5966 = vmatmul.mubr.bf16.gmra.mrb[212].mxu0 %v5182_v3  ;;  %6342 = vmatmul.mubr.bf16.gmra.mrb[212].mxu1 %v5182_v3  ;;  %v5082_v38 = vmax.f32 %v16068_v41, 0.0  ;;  %v5084_v35 = vmax.f32 %v16132_v16, 0.0  ;;  %v18291_v6 = vld [vmem:[#allocation10 + $0x2d4] ss:$12 sps:$4 sm:$0xff]  }
 0x535   : > { %v16071_v4 = vadd.f32 %v4555_v26, %v20551_v20  ;;  %v16135_v52 = vadd.f32 %v4941_v25, %v20554_v63  ;;  %6097 = vmatpush1.bf16.msra.mxu0 %v18269_v42  ;;  %v5083_v47 = vmax.f32 %v16069_v56, 0.0  ;;  %v5085_v23 = vmax.f32 %v16133_v34, 0.0 }
 0x536   : > { %v5086_v46 = vmax.f32 %v16070_v51, 0.0  ;;  %6098 = vmatprep.subr.bf16.mxu0 %v18274_v14  ;;  %v5088_v58 = vmax.f32 %v16134_v24, 0.0  ;;  %v18282_v14 = vld [vmem:[#allocation10 + $0x2b8] ss:$12 sps:$4 sm:$0xff]  }
 0x537   : > { %v5087_v11 = vmax.f32 %v16071_v4, 0.0  ;;  %v5089_v18 = vmax.f32 %v16135_v52, 0.0 }
 0x538   : > { %v5186_v59 = vpack.c.bf16 %v5086_v46, %v5082_v38  ;;  %v20636_v49 = vpack.c.bf16 %v5088_v58, %v5084_v35  ;;  %v18289_v35 = vld [vmem:[#allocation10 + $0x2d0] ss:$12 sps:$4 sm:$0xff]  }
 0x539   : > { %v4559_v53 = vpop.f32.mrb[156].mxu0  ;;  %v4945_v32 = vpop.f32.mrb[156].mxu1  ;;  %v5187_v21 = vpack.c.bf16 %v5087_v11, %v5083_v47  ;;  %6099 = vmatpush1.bf16.msra.mxu0 %v18272_v29  ;;  %v20638_v7 = vpack.c.bf16 %v5089_v18, %v5085_v23 }
 0x53a   : > { %v16072_v54 = vadd.f32 %v4559_v53, %v20545_v48  ;;  %v16136_v28 = vadd.f32 %v4945_v32, %v20548_v43  ;;  %v4561_v37 = vpop.f32.mrb[157].mxu0  ;;  %v4947_v5 = vpop.f32.mrb[157].mxu1  ;;  %6100 = vmatprep.subr.bf16.mxu0 %v18277_v17 }
 0x53b   : > { %v16073_v50 = vadd.f32 %v4561_v37, %v20551_v20  ;;  %v16137_v3 = vadd.f32 %v4947_v5, %v20554_v63  ;;  %v4563_v31 = vpop.f32.mrb[158].mxu0  ;;  %v4949_v19 = vpop.f32.mrb[158].mxu1  ;;  %5975 = vmatprep.mubr.bf16.mxu0 %v5187_v21  ;;  %6349 = vmatprep.mubr.bf16.mxu1 %v5187_v21 }
 0x53c   : > { %v16074_v15 = vadd.f32 %v4563_v31, %v20545_v48  ;;  %v16138_v42 = vadd.f32 %v4949_v19, %v20548_v43  ;;  %v4565_v41 = vpop.f32.mrb[159].mxu0  ;;  %v4951_v16 = vpop.f32.mrb[159].mxu1  ;;  %5976 = vmatmul.mubr.bf16.gmra.mrb[216].mxu0 %v5186_v59  ;;  %6350 = vmatmul.mubr.bf16.gmra.mrb[216].mxu1 %v5186_v59  ;;  %v5090_v56 = vmax.f32 %v16072_v54, 0.0  ;;  %v5092_v9 = vmax.f32 %v16136_v28, 0.0  ;;  %v18298_v59 = vld [vmem:[#allocation10 + $0x2ec] ss:$12 sps:$4 sm:$0xff]  }
 0x53d   : > { %v16075_v33 = vadd.f32 %v4565_v41, %v20551_v20  ;;  %v16139_v22 = vadd.f32 %v4951_v16, %v20554_v63  ;;  %6101 = vmatpush1.bf16.msra.mxu0 %v18275_v62  ;;  %v5091_v24 = vmax.f32 %v16073_v50, 0.0  ;;  %v5093_v25 = vmax.f32 %v16137_v3, 0.0  ;;  %v18296_v3 = vld [vmem:[#allocation10 + $0x2e8] ss:$12 sps:$4 sm:$0xff]  }
 0x53e   : > { %v5094_v34 = vmax.f32 %v16074_v15, 0.0  ;;  %6102 = vmatprep.subr.bf16.mxu0 %v18284_v13  ;;  %v5096_v51 = vmax.f32 %v16138_v42, 0.0  ;;  %v18305_v15 = vld [vmem:[#allocation14 + $0x4] ss:$16 sps:$4 sm:$0xff]  }
 0x53f   : > { %v5095_v26 = vmax.f32 %v16075_v33, 0.0  ;;  %v5097_v4 = vmax.f32 %v16139_v22, 0.0 }
 0x540   : > { %v5190_v52 = vpack.c.bf16 %v5094_v34, %v5090_v56  ;;  %v20648_v29 = vpack.c.bf16 %v5096_v51, %v5092_v9 }
 0x541   : > { %v4569_v38 = vpop.f32.mrb[160].mxu0  ;;  %v4955_v46 = vpop.f32.mrb[160].mxu1  ;;  %v5191_v17 = vpack.c.bf16 %v5095_v26, %v5091_v24  ;;  %6103 = vmatpush1.bf16.msra.mxu0 %v18282_v14  ;;  %v20650_v58 = vpack.c.bf16 %v5097_v4, %v5093_v25 }
 0x542   : > { %v16076_v47 = vadd.f32 %v4569_v38, %v20545_v48  ;;  %v16140_v11 = vadd.f32 %v4955_v46, %v20548_v43  ;;  %v4571_v23 = vpop.f32.mrb[161].mxu0  ;;  %v4957_v18 = vpop.f32.mrb[161].mxu1  ;;  %6104 = vmatprep.subr.bf16.mxu0 %v18291_v6 }
 0x543   : > { %v16077_v53 = vadd.f32 %v4571_v23, %v20551_v20  ;;  %v16141_v32 = vadd.f32 %v4957_v18, %v20554_v63  ;;  %v4573_v21 = vpop.f32.mrb[162].mxu0  ;;  %v4959_v62 = vpop.f32.mrb[162].mxu1  ;;  %5985 = vmatprep.mubr.bf16.mxu0 %v5191_v17  ;;  %6357 = vmatprep.mubr.bf16.mxu1 %v5191_v17 }
 0x544   : > { %v16078_v54 = vadd.f32 %v4573_v21, %v20545_v48  ;;  %v16142_v28 = vadd.f32 %v4959_v62, %v20548_v43  ;;  %v4575_v37 = vpop.f32.mrb[163].mxu0  ;;  %v4961_v5 = vpop.f32.mrb[163].mxu1  ;;  %5986 = vmatmul.mubr.bf16.gmra.mrb[220].mxu0 %v5190_v52  ;;  %6358 = vmatmul.mubr.bf16.gmra.mrb[220].mxu1 %v5190_v52  ;;  %v5098_v31 = vmax.f32 %v16076_v47, 0.0  ;;  %v5100_v42 = vmax.f32 %v16140_v11, 0.0 }
 0x545   : > { %v16079_v13 = vadd.f32 %v4575_v37, %v20551_v20  ;;  %v16143_v50 = vadd.f32 %v4961_v5, %v20554_v63  ;;  %6105 = vmatpush1.bf16.msra.mxu0 %v18289_v35  ;;  %v5099_v16 = vmax.f32 %v16077_v53, 0.0  ;;  %v5101_v22 = vmax.f32 %v16141_v32, 0.0 }
 0x546   : > { %v5102_v19 = vmax.f32 %v16078_v54, 0.0  ;;  %6106 = vmatprep.subr.bf16.mxu0 %v18298_v59  ;;  %v5104_v41 = vmax.f32 %v16142_v28, 0.0 }
 0x547   : > { %v5103_v33 = vmax.f32 %v16079_v13, 0.0  ;;  %v5105_v14 = vmax.f32 %v16143_v50, 0.0 }
 0x548   : > { %v5194_v56 = vpack.c.bf16 %v5102_v19, %v5098_v31  ;;  %v20660_v34 = vpack.c.bf16 %v5104_v41, %v5100_v42 }
 0x549   : > { %v4579_v6 = vpop.f32.mrb[164].mxu0  ;;  %v4965_v9 = vpop.f32.mrb[164].mxu1  ;;  %v5195_v51 = vpack.c.bf16 %v5103_v33, %v5099_v16  ;;  %6107 = vmatpush1.bf16.msra.mxu0 %v18296_v3  ;;  %v20662_v24 = vpack.c.bf16 %v5105_v14, %v5101_v22 }
 0x54a   : > { %v16080_v26 = vadd.f32 %v4579_v6, %v20545_v48  ;;  %v16144_v25 = vadd.f32 %v4965_v9, %v20548_v43  ;;  %v4581_v4 = vpop.f32.mrb[165].mxu0  ;;  %v4967_v52 = vpop.f32.mrb[165].mxu1  ;;  %7023 = vmatprep.subr.bf16.mxu0 %v18305_v15 }
 0x54b   : > { %v16081_v38 = vadd.f32 %v4581_v4, %v20551_v20  ;;  %v16145_v46 = vadd.f32 %v4967_v52, %v20554_v63  ;;  %v4583_v17 = vpop.f32.mrb[166].mxu0  ;;  %v4969_v35 = vpop.f32.mrb[166].mxu1  ;;  %5995 = vmatprep.mubr.bf16.mxu0 %v5195_v51  ;;  %6365 = vmatprep.mubr.bf16.mxu1 %v5195_v51 }
 0x54c   : > { %v16082_v47 = vadd.f32 %v4583_v17, %v20545_v48  ;;  %v16146_v11 = vadd.f32 %v4969_v35, %v20548_v43  ;;  %v4585_v23 = vpop.f32.mrb[167].mxu0  ;;  %v4971_v18 = vpop.f32.mrb[167].mxu1  ;;  %5996 = vmatmul.mubr.bf16.gmra.mrb[224].mxu0 %v5194_v56  ;;  %6366 = vmatmul.mubr.bf16.gmra.mrb[224].mxu1 %v5194_v56  ;;  %v5106_v32 = vmax.f32 %v16080_v26, 0.0  ;;  %v5108_v62 = vmax.f32 %v16144_v25, 0.0 }
 0x54d   : > { %v16083_v59 = vadd.f32 %v4585_v23, %v20551_v20  ;;  %v16147_v53 = vadd.f32 %v4971_v18, %v20554_v63  ;;  %v5107_v28 = vmax.f32 %v16081_v38, 0.0  ;;  %v5109_v5 = vmax.f32 %v16145_v46, 0.0 }
 0x54e   : > { %v5110_v21 = vmax.f32 %v16082_v47, 0.0  ;;  %v5112_v54 = vmax.f32 %v16146_v11, 0.0 }
 0x54f   : > { %v5111_v37 = vmax.f32 %v16083_v59, 0.0  ;;  %v5113_v13 = vmax.f32 %v16147_v53, 0.0 }
 0x550   : > { %v5198_v50 = vpack.c.bf16 %v5110_v21, %v5106_v32  ;;  %v20672_v3 = vpack.c.bf16 %v5112_v54, %v5108_v62 }
 0x551   : > { %v4589_v31 = vpop.f32.mrb[168].mxu0  ;;  %v4975_v19 = vpop.f32.mrb[168].mxu1  ;;  %v5199_v15 = vpack.c.bf16 %v5111_v37, %v5107_v28  ;;  %v20674_v42 = vpack.c.bf16 %v5113_v13, %v5109_v5 }
 0x552   : > { %v16084_v41 = vadd.f32 %v4589_v31, %v20545_v48  ;;  %v16148_v16 = vadd.f32 %v4975_v19, %v20548_v43  ;;  %v4591_v33 = vpop.f32.mrb[169].mxu0  ;;  %v4977_v22 = vpop.f32.mrb[169].mxu1 }
 0x553   : > { %v16085_v14 = vadd.f32 %v4591_v33, %v20551_v20  ;;  %v16149_v56 = vadd.f32 %v4977_v22, %v20554_v63  ;;  %v4593_v6 = vpop.f32.mrb[170].mxu0  ;;  %v4979_v9 = vpop.f32.mrb[170].mxu1  ;;  %6005 = vmatprep.mubr.bf16.mxu0 %v5199_v15  ;;  %6373 = vmatprep.mubr.bf16.mxu1 %v5199_v15 }
 0x554   : > { %v16086_v51 = vadd.f32 %v4593_v6, %v20545_v48  ;;  %v16150_v26 = vadd.f32 %v4979_v9, %v20548_v43  ;;  %v4595_v25 = vpop.f32.mrb[171].mxu0  ;;  %v4981_v4 = vpop.f32.mrb[171].mxu1  ;;  %6006 = vmatmul.mubr.bf16.gmra.mrb[228].mxu0 %v5198_v50  ;;  %6374 = vmatmul.mubr.bf16.gmra.mrb[228].mxu1 %v5198_v50  ;;  %v5114_v46 = vmax.f32 %v16084_v41, 0.0  ;;  %v5116_v35 = vmax.f32 %v16148_v16, 0.0 }
 0x555   : > { %v16087_v52 = vadd.f32 %v4595_v25, %v20551_v20  ;;  %v16151_v38 = vadd.f32 %v4981_v4, %v20554_v63  ;;  %v5115_v11 = vmax.f32 %v16085_v14, 0.0  ;;  %v5117_v18 = vmax.f32 %v16149_v56, 0.0 }
 0x556   : > { %v5118_v17 = vmax.f32 %v16086_v51, 0.0  ;;  %v5120_v47 = vmax.f32 %v16150_v26, 0.0 }
 0x557   : > { %v5119_v23 = vmax.f32 %v16087_v52, 0.0  ;;  %v5121_v59 = vmax.f32 %v16151_v38, 0.0 }
 0x558   : > { %v5202_v53 = vpack.c.bf16 %v5118_v17, %v5114_v46  ;;  %v20684_v32 = vpack.c.bf16 %v5120_v47, %v5116_v35 }
 0x559   : > { %v4599_v21 = vpop.f32.mrb[172].mxu0  ;;  %v4985_v62 = vpop.f32.mrb[172].mxu1  ;;  %v5203_v54 = vpack.c.bf16 %v5119_v23, %v5115_v11  ;;  %v20686_v28 = vpack.c.bf16 %v5121_v59, %v5117_v18 }
 0x55a   : > { %v16088_v37 = vadd.f32 %v4599_v21, %v20545_v48  ;;  %v16152_v5 = vadd.f32 %v4985_v62, %v20548_v43  ;;  %v4601_v13 = vpop.f32.mrb[173].mxu0  ;;  %v4987_v50 = vpop.f32.mrb[173].mxu1 }
 0x55b   : > { %v16089_v31 = vadd.f32 %v4601_v13, %v20551_v20  ;;  %v16153_v19 = vadd.f32 %v4987_v50, %v20554_v63  ;;  %v4603_v15 = vpop.f32.mrb[174].mxu0  ;;  %v4989_v41 = vpop.f32.mrb[174].mxu1  ;;  %6015 = vmatprep.mubr.bf16.mxu0 %v5203_v54  ;;  %6381 = vmatprep.mubr.bf16.mxu1 %v5203_v54 }
 0x55c   : > { %v16090_v16 = vadd.f32 %v4603_v15, %v20545_v48  ;;  %v16154_v33 = vadd.f32 %v4989_v41, %v20548_v43  ;;  %v4605_v22 = vpop.f32.mrb[175].mxu0  ;;  %v4991_v14 = vpop.f32.mrb[175].mxu1  ;;  %6016 = vmatmul.mubr.bf16.gmra.mrb[232].mxu0 %v5202_v53  ;;  %6382 = vmatmul.mubr.bf16.gmra.mrb[232].mxu1 %v5202_v53  ;;  %v5122_v9 = vmax.f32 %v16088_v37, 0.0  ;;  %v5124_v26 = vmax.f32 %v16152_v5, 0.0 }
 0x55d   : > { %v16091_v56 = vadd.f32 %v4605_v22, %v20551_v20  ;;  %v16155_v6 = vadd.f32 %v4991_v14, %v20554_v63  ;;  %v5123_v4 = vmax.f32 %v16089_v31, 0.0  ;;  %v5125_v38 = vmax.f32 %v16153_v19, 0.0 }
 0x55e   : > { %v5126_v51 = vmax.f32 %v16090_v16, 0.0  ;;  %v5128_v25 = vmax.f32 %v16154_v33, 0.0 }
 0x55f   : > { %v5127_v52 = vmax.f32 %v16091_v56, 0.0  ;;  %v5129_v46 = vmax.f32 %v16155_v6, 0.0 }
 0x560   : > { %v5206_v17 = vpack.c.bf16 %v5126_v51, %v5122_v9  ;;  %v20696_v35 = vpack.c.bf16 %v5128_v25, %v5124_v26 }
 0x561   : > { %v4609_v47 = vpop.f32.mrb[176].mxu0  ;;  %v4995_v11 = vpop.f32.mrb[176].mxu1  ;;  %v5207_v23 = vpack.c.bf16 %v5127_v52, %v5123_v4  ;;  %v20698_v18 = vpack.c.bf16 %v5129_v46, %v5125_v38 }
 0x562   : > { %v16092_v59 = vadd.f32 %v4609_v47, %v20545_v48  ;;  %v16156_v53 = vadd.f32 %v4995_v11, %v20548_v43  ;;  %v4611_v21 = vpop.f32.mrb[177].mxu0  ;;  %v4997_v62 = vpop.f32.mrb[177].mxu1 }
 0x563   : > { %v16093_v54 = vadd.f32 %v4611_v21, %v20551_v20  ;;  %v16157_v37 = vadd.f32 %v4997_v62, %v20554_v63  ;;  %v4613_v5 = vpop.f32.mrb[178].mxu0  ;;  %v4999_v13 = vpop.f32.mrb[178].mxu1  ;;  %6025 = vmatprep.mubr.bf16.mxu0 %v5207_v23  ;;  %6389 = vmatprep.mubr.bf16.mxu1 %v5207_v23 }
 0x564   : > { %v16094_v50 = vadd.f32 %v4613_v5, %v20545_v48  ;;  %v16158_v31 = vadd.f32 %v4999_v13, %v20548_v43  ;;  %v4615_v19 = vpop.f32.mrb[179].mxu0  ;;  %v5001_v15 = vpop.f32.mrb[179].mxu1  ;;  %6026 = vmatmul.mubr.bf16.gmra.mrb[236].mxu0 %v5206_v17  ;;  %6390 = vmatmul.mubr.bf16.gmra.mrb[236].mxu1 %v5206_v17  ;;  %v5130_v33 = vmax.f32 %v16092_v59, 0.0  ;;  %v5132_v14 = vmax.f32 %v16156_v53, 0.0 }
 0x565   : > { %v16095_v41 = vadd.f32 %v4615_v19, %v20551_v20  ;;  %v16159_v16 = vadd.f32 %v5001_v15, %v20554_v63  ;;  %v5131_v6 = vmax.f32 %v16093_v54, 0.0  ;;  %v5133_v51 = vmax.f32 %v16157_v37, 0.0  ;;  %v18326_v37 = vld [vmem:[#allocation14 + $0xc] ss:$16 sps:$4 sm:$0xff]  }
 0x566   : > { %v5134_v22 = vmax.f32 %v16094_v50, 0.0  ;;  %v5136_v56 = vmax.f32 %v16158_v31, 0.0  ;;  %7216 = vmatprep.subr.bf16.mxu1 %v18326_v37 }
 0x567   : > { %v5135_v9 = vmax.f32 %v16095_v41, 0.0  ;;  %v5137_v26 = vmax.f32 %v16159_v16, 0.0 }
 0x568   : > { %v5210_v25 = vpack.c.bf16 %v5134_v22, %v5130_v33  ;;  %v20708_v4 = vpack.c.bf16 %v5136_v56, %v5132_v14 }
 0x569   : > { %v4619_v52 = vpop.f32.mrb[180].mxu0  ;;  %v5005_v38 = vpop.f32.mrb[180].mxu1  ;;  %v5211_v46 = vpack.c.bf16 %v5135_v9, %v5131_v6  ;;  %v20710_v47 = vpack.c.bf16 %v5137_v26, %v5133_v51 }
 0x56a   : > { %v16096_v17 = vadd.f32 %v4619_v52, %v20545_v48  ;;  %v16160_v11 = vadd.f32 %v5005_v38, %v20548_v43  ;;  %v4621_v23 = vpop.f32.mrb[181].mxu0  ;;  %v5007_v59 = vpop.f32.mrb[181].mxu1 }
 0x56b   : > { %v16097_v53 = vadd.f32 %v4621_v23, %v20551_v20  ;;  %v16161_v21 = vadd.f32 %v5007_v59, %v20554_v63  ;;  %v4623_v62 = vpop.f32.mrb[182].mxu0  ;;  %v5009_v54 = vpop.f32.mrb[182].mxu1  ;;  %6035 = vmatprep.mubr.bf16.mxu0 %v5211_v46  ;;  %6397 = vmatprep.mubr.bf16.mxu1 %v5211_v46 }
 0x56c   : > { %v16098_v5 = vadd.f32 %v4623_v62, %v20545_v48  ;;  %v16162_v13 = vadd.f32 %v5009_v54, %v20548_v43  ;;  %v4625_v50 = vpop.f32.mrb[183].mxu0  ;;  %v5011_v31 = vpop.f32.mrb[183].mxu1  ;;  %6036 = vmatmul.mubr.bf16.gmra.mrb[240].mxu0 %v5210_v25  ;;  %6398 = vmatmul.mubr.bf16.gmra.mrb[240].mxu1 %v5210_v25  ;;  %v5138_v41 = vmax.f32 %v16096_v17, 0.0  ;;  %v5140_v33 = vmax.f32 %v16160_v11, 0.0 }
 0x56d   : > { %v16099_v19 = vadd.f32 %v4625_v50, %v20551_v20  ;;  %v16163_v15 = vadd.f32 %v5011_v31, %v20554_v63  ;;  %v5139_v14 = vmax.f32 %v16097_v53, 0.0  ;;  %v5141_v6 = vmax.f32 %v16161_v21, 0.0 }
 0x56e   : > { %v5142_v16 = vmax.f32 %v16098_v5, 0.0  ;;  %v5144_v22 = vmax.f32 %v16162_v13, 0.0 }
 0x56f   : > { %v5143_v56 = vmax.f32 %v16099_v19, 0.0  ;;  %v5145_v9 = vmax.f32 %v16163_v15, 0.0 }
 0x570   : > { %v5214_v51 = vpack.c.bf16 %v5142_v16, %v5138_v41  ;;  %v20720_v26 = vpack.c.bf16 %v5144_v22, %v5140_v33 }
 0x571   : > { %v4629_v52 = vpop.f32.mrb[184].mxu0  ;;  %v5015_v38 = vpop.f32.mrb[184].mxu1  ;;  %v5215_v46 = vpack.c.bf16 %v5143_v56, %v5139_v14  ;;  %v20722_v25 = vpack.c.bf16 %v5145_v9, %v5141_v6 }
 0x572   : > { %v16100_v23 = vadd.f32 %v4629_v52, %v20545_v48  ;;  %v16164_v59 = vadd.f32 %v5015_v38, %v20548_v43  ;;  %v4631_v17 = vpop.f32.mrb[185].mxu0  ;;  %v5017_v62 = vpop.f32.mrb[185].mxu1 }
 0x573   : > { %v16101_v11 = vadd.f32 %v4631_v17, %v20551_v20  ;;  %v16165_v53 = vadd.f32 %v5017_v62, %v20554_v63  ;;  %v4633_v21 = vpop.f32.mrb[186].mxu0  ;;  %v5019_v54 = vpop.f32.mrb[186].mxu1  ;;  %6045 = vmatprep.mubr.bf16.mxu0 %v5215_v46  ;;  %6405 = vmatprep.mubr.bf16.mxu1 %v5215_v46 }
 0x574   : > { %v16102_v37 = vadd.f32 %v4633_v21, %v20545_v48  ;;  %v16166_v5 = vadd.f32 %v5019_v54, %v20548_v43  ;;  %v4635_v13 = vpop.f32.mrb[187].mxu0  ;;  %v5021_v50 = vpop.f32.mrb[187].mxu1  ;;  %6046 = vmatmul.mubr.bf16.gmra.mrb[244].mxu0 %v5214_v51  ;;  %6406 = vmatmul.mubr.bf16.gmra.mrb[244].mxu1 %v5214_v51  ;;  %v5146_v15 = vmax.f32 %v16100_v23, 0.0  ;;  %v5148_v16 = vmax.f32 %v16164_v59, 0.0 }
 0x575   : > { %v16103_v31 = vadd.f32 %v4635_v13, %v20551_v20  ;;  %v16167_v19 = vadd.f32 %v5021_v50, %v20554_v63  ;;  %v5147_v22 = vmax.f32 %v16101_v11, 0.0  ;;  %v5149_v56 = vmax.f32 %v16165_v53, 0.0 }
 0x576   : > { %v5150_v41 = vmax.f32 %v16102_v37, 0.0  ;;  %v5152_v33 = vmax.f32 %v16166_v5, 0.0 }
 0x577   : > { %v5151_v14 = vmax.f32 %v16103_v31, 0.0  ;;  %v5153_v6 = vmax.f32 %v16167_v19, 0.0 }
 0x578   : > { %v5218_v9 = vpack.c.bf16 %v5150_v41, %v5146_v15  ;;  %v20732_v52 = vpack.c.bf16 %v5152_v33, %v5148_v16 }
 0x579   : > { %v4639_v38 = vpop.f32.mrb[188].mxu0  ;;  %v5025_v46 = vpop.f32.mrb[188].mxu1  ;;  %v5219_v17 = vpack.c.bf16 %v5151_v14, %v5147_v22  ;;  %v20734_v62 = vpack.c.bf16 %v5153_v6, %v5149_v56 }
 0x57a   : > { %v16104_v51 = vadd.f32 %v4639_v38, %v20545_v48  ;;  %v16168_v21 = vadd.f32 %v5025_v46, %v20548_v43  ;;  %v4641_v23 = vpop.f32.mrb[189].mxu0  ;;  %v5027_v54 = vpop.f32.mrb[189].mxu1 }
 0x57b   : > { %v16105_v59 = vadd.f32 %v4641_v23, %v20551_v20  ;;  %v16169_v11 = vadd.f32 %v5027_v54, %v20554_v63  ;;  %v4643_v53 = vpop.f32.mrb[190].mxu0  ;;  %v5029_v37 = vpop.f32.mrb[190].mxu1  ;;  %6055 = vmatprep.mubr.bf16.mxu0 %v5219_v17  ;;  %6413 = vmatprep.mubr.bf16.mxu1 %v5219_v17  ;;  %v18311_v23 = vld [vmem:[#allocation14 + $0x44] ss:$16 sps:$4 sm:$0xff]   ;;  %v18327_v54 = vld [vmem:[#allocation14 + $0x28] ss:$16 sps:$4 sm:$0xff]  }
 0x57c   : > { %v16106_v5 = vadd.f32 %v4643_v53, %v20545_v48  ;;  %v16170_v13 = vadd.f32 %v5029_v37, %v20548_v43  ;;  %v4645_v50 = vpop.f32.mrb[191].mxu0  ;;  %v5031_v31 = vpop.f32.mrb[191].mxu1  ;;  %6056 = vmatmul.mubr.bf16.gmra.mrb[248].mxu0 %v5218_v9  ;;  %6414 = vmatmul.mubr.bf16.gmra.mrb[248].mxu1 %v5218_v9  ;;  %v5154_v41 = vmax.f32 %v16104_v51, 0.0  ;;  %v5156_v33 = vmax.f32 %v16168_v21, 0.0  ;;  %v18324_v9 = vld [vmem:[#allocation14 + $0x8] ss:$16 sps:$4 sm:$0xff]  }
 0x57d   : > { %v16107_v19 = vadd.f32 %v4645_v50, %v20551_v20  ;;  %v16171_v15 = vadd.f32 %v5031_v31, %v20554_v63  ;;  %v5155_v14 = vmax.f32 %v16105_v59, 0.0  ;;  %v5157_v6 = vmax.f32 %v16169_v11, 0.0  ;;  %v18303_v20 = vld [vmem:[#allocation14] ss:$16 sps:$4 sm:$0xff]   ;;  %v18308_v63 = vld [vmem:[#allocation14 + $0x24] ss:$16 sps:$4 sm:$0xff]  }
 0x57e   : > { %v5158_v16 = vmax.f32 %v16106_v5, 0.0  ;;  %v5160_v22 = vmax.f32 %v16170_v13, 0.0  ;;  %v18329_v51 = vld [vmem:[#allocation14 + $0x2c] ss:$16 sps:$4 sm:$0xff]   ;;  %v18306_v21 = vld [vmem:[#allocation14 + $0x20] ss:$16 sps:$4 sm:$0xff]  }
 0x57f   : > { %v5159_v56 = vmax.f32 %v16107_v19, 0.0  ;;  %v5161_v38 = vmax.f32 %v16171_v15, 0.0  ;;  %v18332_v59 = vld [vmem:[#allocation14 + $0x4c] ss:$16 sps:$4 sm:$0xff]   ;;  %v18314_v11 = vld [vmem:[#allocation14 + $0x64] ss:$16 sps:$4 sm:$0xff]  }
 0x580   : > { %v5222_v46 = vpack.c.bf16 %v5158_v16, %v5154_v41  ;;  %v20744_v48 = vpack.c.bf16 %v5160_v22, %v5156_v33  ;;  %v18330_v53 = vld [vmem:[#allocation14 + $0x48] ss:$16 sps:$4 sm:$0xff]   ;;  %v18317_v37 = vld [vmem:[#allocation14 + $0x84] ss:$16 sps:$4 sm:$0xff]   ;;  %v18315_v13 = vld [vmem:[#allocation14 + $0x80] ss:$16 sps:$4 sm:$0xff]  }
 0x581   : > { %v5223_v43 = vpack.c.bf16 %v5159_v56, %v5155_v14  ;;  %v20746_v17 = vpack.c.bf16 %v5161_v38, %v5157_v6  ;;  %v18333_v5 = vld [vmem:[#allocation14 + $0x68] ss:$16 sps:$4 sm:$0xff]   ;;  %v18341_v50 = vld [vmem:[#allocation14 + $0x8c] ss:$16 sps:$4 sm:$0xff]   ;;  %v18320_v31 = vld [vmem:[#allocation14 + $0xa4] ss:$16 sps:$4 sm:$0xff]  }
 0x582   : > { %v18318_v19 = vld [vmem:[#allocation14 + $0xa0] ss:$16 sps:$4 sm:$0xff]   ;;  %v18323_v15 = vld [vmem:[#allocation14 + $0xc4] ss:$16 sps:$4 sm:$0xff]   ;;  %v18342_v41 = vld [vmem:[#allocation14 + $0xa8] ss:$16 sps:$4 sm:$0xff]  }
 0x583   : > { %6065 = vmatprep.mubr.bf16.mxu0 %v5223_v43  ;;  %6421 = vmatprep.mubr.bf16.mxu1 %v5223_v43  ;;  %v18321_v16 = vld [vmem:[#allocation14 + $0xc0] ss:$16 sps:$4 sm:$0xff]   ;;  %v18347_v33 = vld [vmem:[#allocation14 + $0xcc] ss:$16 sps:$4 sm:$0xff]   ;;  %v18338_v22 = vld [vmem:[#allocation14 + $0xe4] ss:$16 sps:$4 sm:$0xff]  }
 0x584   : > { %6066 = vmatmul.mubr.bf16.gmra.mrb[252].mxu0 %v5222_v46  ;;  %6422 = vmatmul.mubr.bf16.gmra.mrb[252].mxu1 %v5222_v46  ;;  %v18336_v14 = vld [vmem:[#allocation14 + $0xe0] ss:$16 sps:$4 sm:$0xff]   ;;  %v18348_v56 = vld [vmem:[#allocation14 + $0xe8] ss:$16 sps:$4 sm:$0xff]   ;;  %v18353_v6 = vld [vmem:[#allocation13 + $0x4] ss:$16 sps:$4 sm:$0xff]  }
 0x585   : > { %6108 = vmatprep.mubr.bf16.mxu0 %v20566_v61  ;;  %6462 = vmatprep.mubr.bf16.mxu1 %v20566_v61  ;;  %v18309_v61 = vld [vmem:[#allocation14 + $0x40] ss:$16 sps:$4 sm:$0xff]  }
 0x58c   : > { %6109 = vmatmul.mubr.bf16.vlgmr.msra.gmra.mrb[192].mxu0 %v20564_v2  ;;  %6463 = vmatmul.mubr.bf16.vlgmr.msra.gmra.mrb[0].mxu1 %v20564_v2  ;;  %v18335_v2 = vld [vmem:[#allocation14 + $0x6c] ss:$16 sps:$4 sm:$0xff]  }
 0x58d   : > { %7024 = vmatpush1.bf16.msra.mxu0 %v18303_v20  ;;  %6118 = vmatprep.mubr.bf16.mxu0 %v20578_v10 }
 0x58e   : > { %6470 = vmatprep.mubr.bf16.mxu1 %v20578_v10  ;;  %7025 = vmatprep.subr.bf16.mxu0 %v18308_v63  ;;  %v18312_v10 = vld [vmem:[#allocation14 + $0x60] ss:$16 sps:$4 sm:$0xff]  }
 0x58f   : > { %7217 = vmatpush1.bf16.msra.mxu1 %v18324_v9 }
 0x590   : > { %7218 = vmatprep.subr.bf16.mxu1 %v18329_v51 }
 0x591   : > { %7026 = vmatpush1.bf16.msra.mxu0 %v18306_v21 }
 0x592   : > { %7027 = vmatprep.subr.bf16.mxu0 %v18311_v23 }
 0x593   : > { %7219 = vmatpush1.bf16.msra.mxu1 %v18327_v54 }
 0x594   : > { %6119 = vmatmul.mubr.bf16.gmra.mrb[196].mxu0 %v20576_v8  ;;  %6471 = vmatmul.mubr.bf16.gmra.mrb[4].mxu1 %v20576_v8  ;;  %v18339_v8 = vld [vmem:[#allocation14 + $0x88] ss:$16 sps:$4 sm:$0xff]  }
 0x595   : > { %6128 = vmatprep.mubr.bf16.mxu0 %v20590_v36  ;;  %6478 = vmatprep.mubr.bf16.mxu1 %v20590_v36  ;;  %v18344_v36 = vld [vmem:[#allocation14 + $0xac] ss:$16 sps:$4 sm:$0xff]  }
 0x596   : > { %7028 = vmatpush1.bf16.msra.mxu0 %v18309_v61  ;;  %7220 = vmatprep.subr.bf16.mxu1 %v18332_v59  ;;  %v18351_v59 = vld [vmem:[#allocation13] ss:$16 sps:$4 sm:$0xff]  }
 0x597   : > { %7029 = vmatprep.subr.bf16.mxu0 %v18314_v11  ;;  %7221 = vmatpush1.bf16.msra.mxu1 %v18330_v53  ;;  %v18356_v53 = vld [vmem:[#allocation13 + $0x24] ss:$16 sps:$4 sm:$0xff]  }
 0x598   : > { %7222 = vmatprep.subr.bf16.mxu1 %v18335_v2 }
 0x59a   : > { %7030 = vmatpush1.bf16.msra.mxu0 %v18312_v10  ;;  %v18378_v10 = vld [vmem:[#allocation13 + $0x8] ss:$16 sps:$4 sm:$0xff]  }
 0x59b   : > { %7031 = vmatprep.subr.bf16.mxu0 %v18317_v37  ;;  %7223 = vmatpush1.bf16.msra.mxu1 %v18333_v5  ;;  %v19071_v37 = vld [vmem:[%s19917_s29] sm:$0xff]  }
 0x59c   : > { %6129 = vmatmul.mubr.bf16.gmra.mrb[200].mxu0 %v20588_v12  ;;  %6479 = vmatmul.mubr.bf16.gmra.mrb[8].mxu1 %v20588_v12  ;;  %v18345_v12 = vld [vmem:[#allocation14 + $0xc8] ss:$16 sps:$4 sm:$0xff]   ;;  %v18383_v5 = vld [vmem:[#allocation13 + $0x2c] ss:$16 sps:$4 sm:$0xff]  }
 0x59d   : > { %6138 = vmatprep.mubr.bf16.mxu0 %v20602_v44  ;;  %6486 = vmatprep.mubr.bf16.mxu1 %v20602_v44  ;;  %v18350_v44 = vld [vmem:[#allocation14 + $0xec] ss:$16 sps:$4 sm:$0xff]  }
 0x59e   : > { %7032 = vmatpush1.bf16.msra.mxu0 %v18315_v13  ;;  %7224 = vmatprep.subr.bf16.mxu1 %v18341_v50  ;;  %v18359_v13 = vld [vmem:[#allocation13 + $0x44] ss:$16 sps:$4 sm:$0xff]  }
 0x59f   : > { %7033 = vmatprep.subr.bf16.mxu0 %v18320_v31  ;;  %7225 = vmatpush1.bf16.msra.mxu1 %v18339_v8  ;;  %v18381_v31 = vld [vmem:[#allocation13 + $0x28] ss:$16 sps:$4 sm:$0xff]  }
 0x5a0   : > { %7226 = vmatprep.subr.bf16.mxu1 %v18344_v36 }
 0x5a2   : > { %7034 = vmatpush1.bf16.msra.mxu0 %v18318_v19 }
 0x5a3   : > { %7035 = vmatprep.subr.bf16.mxu0 %v18323_v15  ;;  %7227 = vmatpush1.bf16.msra.mxu1 %v18342_v41  ;;  %v18357_v41 = vld [vmem:[#allocation13 + $0x40] ss:$16 sps:$4 sm:$0xff]  }
 0x5a4   : > { %6139 = vmatmul.mubr.bf16.gmra.mrb[204].mxu0 %v20600_v45  ;;  %6487 = vmatmul.mubr.bf16.gmra.mrb[12].mxu1 %v20600_v45  ;;  %v18380_v45 = vld [vmem:[#allocation13 + $0xc] ss:$16 sps:$4 sm:$0xff]  }
 0x5a5   : > { %6148 = vmatprep.mubr.bf16.mxu0 %v20614_v40  ;;  %6494 = vmatprep.mubr.bf16.mxu1 %v20614_v40 }
 0x5a6   : > { %7036 = vmatpush1.bf16.msra.mxu0 %v18321_v16  ;;  %7228 = vmatprep.subr.bf16.mxu1 %v18347_v33  ;;  %v18389_v16 = vld [vmem:[#allocation13 + $0x4c] ss:$16 sps:$4 sm:$0xff]  }
 0x5a7   : > { %7037 = vmatprep.subr.bf16.mxu0 %v18338_v22  ;;  %7229 = vmatpush1.bf16.msra.mxu1 %v18345_v12  ;;  %v18362_v22 = vld [vmem:[#allocation13 + $0x64] ss:$16 sps:$4 sm:$0xff]   ;;  %v18387_v12 = vld [vmem:[#allocation13 + $0x48] ss:$16 sps:$4 sm:$0xff]  }
 0x5a8   : > { %7230 = vmatprep.subr.bf16.mxu1 %v18350_v44  ;;  %v19072_v44 = vld [vmem:[%s19917_s29 + $0x8] sm:$0xff]  }
 0x5aa   : > { %7038 = vmatpush1.bf16.msra.mxu0 %v18336_v14  ;;  %v18392_v14 = vld [vmem:[#allocation13 + $0x6c] ss:$16 sps:$4 sm:$0xff]  }
 0x5ab   : > { %7231 = vmatpush1.bf16.msra.mxu1 %v18348_v56  ;;  %7889 = vmatprep.subr.bf16.mxu0 %v18353_v6  ;;  %v18360_v56 = vld [vmem:[#allocation13 + $0x60] ss:$16 sps:$4 sm:$0xff]  }
 0x5ac   : > { %6149 = vmatmul.mubr.bf16.gmra.mrb[208].mxu0 %v20612_v60  ;;  %6495 = vmatmul.mubr.bf16.gmra.mrb[16].mxu1 %v20612_v60 }
 0x5ad   : > { %6158 = vmatprep.mubr.bf16.mxu0 %v20626_v0  ;;  %6502 = vmatprep.mubr.bf16.mxu1 %v20626_v0 }
 0x5ae   : > { %8275 = vmatprep.subr.bf16.mxu1 %v18380_v45  ;;  %v18365_v45 = vld [vmem:[#allocation13 + $0x84] ss:$16 sps:$4 sm:$0xff]  }
 0x5b4   : > { %6159 = vmatmul.mubr.bf16.gmra.mrb[212].mxu0 %v20624_v39  ;;  %6503 = vmatmul.mubr.bf16.gmra.mrb[20].mxu1 %v20624_v39 }
 0x5b5   : > { %6168 = vmatprep.mubr.bf16.mxu0 %v20638_v7  ;;  %6510 = vmatprep.mubr.bf16.mxu1 %v20638_v7 }
 0x5bc   : > { %6169 = vmatmul.mubr.bf16.gmra.mrb[216].mxu0 %v20636_v49  ;;  %6511 = vmatmul.mubr.bf16.gmra.mrb[24].mxu1 %v20636_v49 }
 0x5bd   : > { %6178 = vmatprep.mubr.bf16.mxu0 %v20650_v58  ;;  %6518 = vmatprep.mubr.bf16.mxu1 %v20650_v58 }
 0x5c4   : > { %6179 = vmatmul.mubr.bf16.gmra.mrb[220].mxu0 %v20648_v29  ;;  %6519 = vmatmul.mubr.bf16.gmra.mrb[28].mxu1 %v20648_v29 }
 0x5c5   : > { %6188 = vmatprep.mubr.bf16.mxu0 %v20662_v24  ;;  %6526 = vmatprep.mubr.bf16.mxu1 %v20662_v24 }
 0x5cc   : > { %6189 = vmatmul.mubr.bf16.gmra.mrb[224].mxu0 %v20660_v34  ;;  %6527 = vmatmul.mubr.bf16.gmra.mrb[32].mxu1 %v20660_v34 }
 0x5cd   : > { %6198 = vmatprep.mubr.bf16.mxu0 %v20674_v42  ;;  %6534 = vmatprep.mubr.bf16.mxu1 %v20674_v42 }
 0x5d4   : > { %6199 = vmatmul.mubr.bf16.gmra.mrb[228].mxu0 %v20672_v3  ;;  %6535 = vmatmul.mubr.bf16.gmra.mrb[36].mxu1 %v20672_v3 }
 0x5d5   : > { %6208 = vmatprep.mubr.bf16.mxu0 %v20686_v28  ;;  %6542 = vmatprep.mubr.bf16.mxu1 %v20686_v28 }
 0x5dc   : > { %6209 = vmatmul.mubr.bf16.gmra.mrb[232].mxu0 %v20684_v32  ;;  %6543 = vmatmul.mubr.bf16.gmra.mrb[40].mxu1 %v20684_v32 }
 0x5dd   : > { %6218 = vmatprep.mubr.bf16.mxu0 %v20698_v18  ;;  %6550 = vmatprep.mubr.bf16.mxu1 %v20698_v18 }
 0x5df   : > { %v15708_v60 = vpop.f32.mrb[192].mxu1 }
 0x5e0   : > { %v15709_v40 = vpop.f32.mrb[193].mxu1 }
 0x5e1   : > { %v20794_v39 = vadd.f32 %v15709_v40, %v15708_v60  ;;  %v15711_v0 = vpop.f32.mrb[194].mxu1  ;;  %v18390_v60 = vld [vmem:[#allocation13 + $0x68] ss:$16 sps:$4 sm:$0xff]  }
 0x5e2   : > { %v15712_v49 = vpop.f32.mrb[195].mxu1 }
 0x5e3   : > { %v20796_v7 = vadd.f32 %v15712_v49, %v15711_v0 }
 0x5e4   : > { %6219 = vmatmul.mubr.bf16.gmra.mrb[236].mxu0 %v20696_v35  ;;  %6551 = vmatmul.mubr.bf16.gmra.mrb[44].mxu1 %v20696_v35 }
 0x5e5   : > { %6228 = vmatprep.mubr.bf16.mxu0 %v20710_v47  ;;  %6558 = vmatprep.mubr.bf16.mxu1 %v20710_v47 }
 0x5e7   : > { %v15714_v29 = vpop.f32.mrb[196].mxu1 }
 0x5e8   : > { %v15715_v58 = vpop.f32.mrb[197].mxu1 }
 0x5e9   : > { %v20802_v34 = vadd.f32 %v15715_v58, %v15714_v29  ;;  %v15717_v24 = vpop.f32.mrb[198].mxu1  ;;  %v18363_v58 = vld [vmem:[#allocation13 + $0x80] ss:$16 sps:$4 sm:$0xff]  }
 0x5ea   : > { %v15718_v3 = vpop.f32.mrb[199].mxu1 }
 0x5eb   : > { %v20804_v42 = vadd.f32 %v15718_v3, %v15717_v24  ;;  %v18398_v24 = vld [vmem:[#allocation13 + $0x8c] ss:$16 sps:$4 sm:$0xff]  }
 0x5ec   : > { %6229 = vmatmul.mubr.bf16.gmra.mrb[240].mxu0 %v20708_v4  ;;  %6559 = vmatmul.mubr.bf16.gmra.mrb[48].mxu1 %v20708_v4 }
 0x5ed   : > { %6238 = vmatprep.mubr.bf16.mxu0 %v20722_v25  ;;  %6566 = vmatprep.mubr.bf16.mxu1 %v20722_v25 }
 0x5ef   : > { %v15720_v32 = vpop.f32.mrb[200].mxu1 }
 0x5f0   : > { %v15721_v28 = vpop.f32.mrb[201].mxu1 }
 0x5f1   : > { %v20810_v35 = vadd.f32 %v15721_v28, %v15720_v32  ;;  %v15723_v18 = vpop.f32.mrb[202].mxu1  ;;  %v18368_v32 = vld [vmem:[#allocation13 + $0xa4] ss:$16 sps:$4 sm:$0xff]   ;;  %v18396_v28 = vld [vmem:[#allocation13 + $0x88] ss:$16 sps:$4 sm:$0xff]  }
 0x5f2   : > { %v15724_v47 = vpop.f32.mrb[203].mxu1 }
 0x5f3   : > { %v20812_v38 = vadd.f32 %v15724_v47, %v15723_v18  ;;  %v19073_v18 = vld [vmem:[%s19917_s29 + $0x10] sm:$0xff]  }
 0x5f4   : > { %6239 = vmatmul.mubr.bf16.gmra.mrb[244].mxu0 %v20720_v26  ;;  %6567 = vmatmul.mubr.bf16.gmra.mrb[52].mxu1 %v20720_v26  ;;  %v18401_v47 = vld [vmem:[#allocation13 + $0xac] ss:$16 sps:$4 sm:$0xff]  }
 0x5f5   : > { %6248 = vmatprep.mubr.bf16.mxu0 %v20734_v62  ;;  %6574 = vmatprep.mubr.bf16.mxu1 %v20734_v62 }
 0x5f7   : > { %v15726_v4 = vpop.f32.mrb[204].mxu1 }
 0x5f8   : > { %v15727_v46 = vpop.f32.mrb[205].mxu1 }
 0x5f9   : > { %v20818_v43 = vadd.f32 %v15727_v46, %v15726_v4  ;;  %v15729_v25 = vpop.f32.mrb[206].mxu1  ;;  %v18366_v4 = vld [vmem:[#allocation13 + $0xa0] ss:$16 sps:$4 sm:$0xff]  }
 0x5fa   : > { %v15730_v20 = vpop.f32.mrb[207].mxu1 }
 0x5fb   : > { %v20820_v63 = vadd.f32 %v15730_v20, %v15729_v25  ;;  %v18371_v25 = vld [vmem:[#allocation13 + $0xc4] ss:$16 sps:$4 sm:$0xff]   ;;  %v18399_v20 = vld [vmem:[#allocation13 + $0xa8] ss:$16 sps:$4 sm:$0xff]  }
 0x5fc   : > { %6249 = vmatmul.mubr.bf16.gmra.mrb[248].mxu0 %v20732_v52  ;;  %6575 = vmatmul.mubr.bf16.gmra.mrb[56].mxu1 %v20732_v52 }
 0x5fd   : > { %6258 = vmatprep.mubr.bf16.mxu0 %v20746_v17  ;;  %6582 = vmatprep.mubr.bf16.mxu1 %v20746_v17 }
 0x5ff   : > { %v15732_v26 = vpop.f32.mrb[208].mxu1 }
 0x600   : > { %v15733_v9 = vpop.f32.mrb[209].mxu1 }
 0x601   : > { %v20826_v51 = vadd.f32 %v15733_v9, %v15732_v26  ;;  %v15735_v62 = vpop.f32.mrb[210].mxu1 }
 0x602   : > { %v15736_v21 = vpop.f32.mrb[211].mxu1 }
 0x603   : > { %v20828_v23 = vadd.f32 %v15736_v21, %v15735_v62 }
 0x604   : > { %6259 = vmatmul.mubr.bf16.gmra.mrb[252].mxu0 %v20744_v48  ;;  %6583 = vmatmul.mubr.bf16.gmra.mrb[60].mxu1 %v20744_v48  ;;  %v18354_v48 = vld [vmem:[#allocation13 + $0x20] ss:$16 sps:$4 sm:$0xff]  }
 0x605   : > { %7055 = vmatprep.mubr.bf16.mxu0 %v22519_v1  ;;  %7248 = vmatprep.mubr.bf16.mxu1 %v22519_v1 }
 0x607   : > { %v15738_v52 = vpop.f32.mrb[212].mxu1 }
 0x608   : > { %v15739_v54 = vpop.f32.mrb[213].mxu1 }
 0x609   : > { %v20834_v17 = vadd.f32 %v15739_v54, %v15738_v52  ;;  %v15741_v61 = vpop.f32.mrb[214].mxu1  ;;  %v18369_v52 = vld [vmem:[#allocation13 + $0xc0] ss:$16 sps:$4 sm:$0xff]   ;;  %v18407_v54 = vld [vmem:[#allocation13 + $0xcc] ss:$16 sps:$4 sm:$0xff]  }
 0x60a   : > { %v15742_v11 = vpop.f32.mrb[215].mxu1 }
 0x60b   : > { %v20836_v2 = vadd.f32 %v15742_v11, %v15741_v61  ;;  %v18405_v11 = vld [vmem:[#allocation13 + $0xc8] ss:$16 sps:$4 sm:$0xff]  }
 0x60c   : > { %7056 = vmatmul.mubr.bf16.vlgmr.msra.gmra.mrb[0].mxu0 %v19071_v37  ;;  %7249 = vmatmul.mubr.bf16.vlgmr.msra.gmra.mrb[64].mxu1 %v19071_v37  ;;  %v18372_v37 = vld [vmem:[#allocation13 + $0xe0] ss:$16 sps:$4 sm:$0xff]  }
 0x60d   : > { %7890 = vmatpush1.bf16.msra.mxu0 %v18351_v59  ;;  %7065 = vmatprep.mubr.bf16.mxu0 %v22519_v1  ;;  %v18374_v59 = vld [vmem:[#allocation13 + $0xe4] ss:$16 sps:$4 sm:$0xff]  }
 0x60e   : > { %7258 = vmatprep.mubr.bf16.mxu1 %v22519_v1  ;;  %7891 = vmatprep.subr.bf16.mxu0 %v18356_v53  ;;  %v19074_v53 = vld [vmem:[%s19917_s29 + $0x18] sm:$0xff]  }
 0x60f   : > { %v15744_v50 = vpop.f32.mrb[216].mxu1  ;;  %8276 = vmatpush1.bf16.msra.mxu1 %v18378_v10  ;;  %v18410_v10 = vld [vmem:[#allocation13 + $0xec] ss:$16 sps:$4 sm:$0xff]  }
 0x610   : > { %v15745_v8 = vpop.f32.mrb[217].mxu1  ;;  %8277 = vmatprep.subr.bf16.mxu1 %v18383_v5 }
 0x611   : > { %v20841_v36 = vadd.f32 %v15745_v8, %v15744_v50  ;;  %v15747_v19 = vpop.f32.mrb[218].mxu1  ;;  %7892 = vmatpush1.bf16.msra.mxu0 %v18354_v48  ;;  %v18377_v48 = vld [vmem:[#allocation13 + $0x104] ss:$16 sps:$4 sm:$0xff]  }
 0x612   : > { %v15748_v15 = vpop.f32.mrb[219].mxu1  ;;  %7893 = vmatprep.subr.bf16.mxu0 %v18359_v13  ;;  %v18408_v13 = vld [vmem:[#allocation13 + $0xe8] ss:$16 sps:$4 sm:$0xff]  }
 0x613   : > { %v20843_v33 = vadd.f32 %v15748_v15, %v15747_v19  ;;  %8278 = vmatpush1.bf16.msra.mxu1 %v18381_v31  ;;  %v18375_v15 = vld [vmem:[#allocation13 + $0x100] ss:$16 sps:$4 sm:$0xff]  }
 0x614   : > { %7066 = vmatmul.mubr.bf16.gmra.mrb[4].mxu0 %v19072_v44  ;;  %7259 = vmatmul.mubr.bf16.gmra.mrb[68].mxu1 %v19072_v44  ;;  %v19075_v44 = vld [vmem:[%s19917_s29 + $0x20] sm:$0xff]  }
 0x615   : > { %7075 = vmatprep.mubr.bf16.mxu0 %v22519_v1  ;;  %7268 = vmatprep.mubr.bf16.mxu1 %v22519_v1 }
 0x616   : > { %7894 = vmatpush1.bf16.msra.mxu0 %v18357_v41  ;;  %8279 = vmatprep.subr.bf16.mxu1 %v18389_v16  ;;  %v18416_v41 = vld [vmem:[#allocation13 + $0x10c] ss:$16 sps:$4 sm:$0xff]  }
 0x617   : > { %v15750_v6 = vpop.f32.mrb[220].mxu1  ;;  %7895 = vmatprep.subr.bf16.mxu0 %v18362_v22  ;;  %8280 = vmatpush1.bf16.msra.mxu1 %v18387_v12  ;;  %v18386_v22 = vld [vmem:[#allocation13 + $0x124] ss:$16 sps:$4 sm:$0xff]   ;;  %v18414_v12 = vld [vmem:[#allocation13 + $0x108] ss:$16 sps:$4 sm:$0xff]  }
 0x618   : > { %v15751_v40 = vpop.f32.mrb[221].mxu1  ;;  %8281 = vmatprep.subr.bf16.mxu1 %v18392_v14  ;;  %v18419_v14 = vld [vmem:[#allocation13 + $0x12c] ss:$16 sps:$4 sm:$0xff]  }
 0x619   : > { %v20848_v0 = vadd.f32 %v15751_v40, %v15750_v6  ;;  %v15753_v49 = vpop.f32.mrb[222].mxu1 }
 0x61a   : > { %v15754_v29 = vpop.f32.mrb[223].mxu1  ;;  %7896 = vmatpush1.bf16.msra.mxu0 %v18360_v56  ;;  %v18384_v56 = vld [vmem:[#allocation13 + $0x120] ss:$16 sps:$4 sm:$0xff]  }
 0x61b   : > { %v20850_v3 = vadd.f32 %v15754_v29, %v15753_v49  ;;  %7897 = vmatprep.subr.bf16.mxu0 %v18365_v45  ;;  %8282 = vmatpush1.bf16.msra.mxu1 %v18390_v60  ;;  %v18395_v45 = vld [vmem:[#allocation13 + $0x144] ss:$16 sps:$4 sm:$0xff]   ;;  %v18417_v60 = vld [vmem:[#allocation13 + $0x128] ss:$16 sps:$4 sm:$0xff]  }
 0x61c   : > { %7076 = vmatmul.mubr.bf16.gmra.mrb[8].mxu0 %v19073_v18  ;;  %7269 = vmatmul.mubr.bf16.gmra.mrb[72].mxu1 %v19073_v18  ;;  %v18404_v18 = vld [vmem:[#allocation13 + $0x164] ss:$16 sps:$4 sm:$0xff]  }
 0x61d   : > { %7085 = vmatprep.mubr.bf16.mxu0 %v22519_v1  ;;  %7278 = vmatprep.mubr.bf16.mxu1 %v22519_v1 }
 0x61e   : > { %7898 = vmatpush1.bf16.msra.mxu0 %v18363_v58  ;;  %8283 = vmatprep.subr.bf16.mxu1 %v18398_v24  ;;  %v18393_v24 = vld [vmem:[#allocation13 + $0x140] ss:$16 sps:$4 sm:$0xff]  }
 0x61f   : > { %v15756_v46 = vpop.f32.mrb[224].mxu1  ;;  %7899 = vmatprep.subr.bf16.mxu0 %v18368_v32  ;;  %8284 = vmatpush1.bf16.msra.mxu1 %v18396_v28  ;;  %v18425_v32 = vld [vmem:[#allocation13 + $0x14c] ss:$16 sps:$4 sm:$0xff]  }
 0x620   : > { %v15757_v26 = vpop.f32.mrb[225].mxu1  ;;  %8285 = vmatprep.subr.bf16.mxu1 %v18401_v47  ;;  %v18423_v47 = vld [vmem:[#allocation13 + $0x148] ss:$16 sps:$4 sm:$0xff]  }
 0x621   : > { %v20855_v9 = vadd.f32 %v15757_v26, %v15756_v46  ;;  %v15759_v62 = vpop.f32.mrb[226].mxu1  ;;  %v18428_v46 = vld [vmem:[#allocation13 + $0x16c] ss:$16 sps:$4 sm:$0xff]   ;;  %v18413_v26 = vld [vmem:[#allocation13 + $0x184] ss:$16 sps:$4 sm:$0xff]  }
 0x622   : > { %v15760_v21 = vpop.f32.mrb[227].mxu1  ;;  %7900 = vmatpush1.bf16.msra.mxu0 %v18366_v4  ;;  %v19076_v4 = vld [vmem:[%s19917_s29 + $0x28] sm:$0xff]  }
 0x623   : > { %v20857_v61 = vadd.f32 %v15760_v21, %v15759_v62  ;;  %7901 = vmatprep.subr.bf16.mxu0 %v18371_v25  ;;  %8286 = vmatpush1.bf16.msra.mxu1 %v18399_v20  ;;  %v18402_v25 = vld [vmem:[#allocation13 + $0x160] ss:$16 sps:$4 sm:$0xff]   ;;  %v18426_v62 = vld [vmem:[#allocation13 + $0x168] ss:$16 sps:$4 sm:$0xff]  }
 0x624   : > { %7086 = vmatmul.mubr.bf16.gmra.mrb[12].mxu0 %v19074_v53  ;;  %7279 = vmatmul.mubr.bf16.gmra.mrb[76].mxu1 %v19074_v53  ;;  %v18434_v53 = vld [vmem:[#allocation13 + $0x18c] ss:$16 sps:$4 sm:$0xff]  }
 0x625   : > { %7095 = vmatprep.mubr.bf16.mxu0 %v22519_v1  ;;  %7288 = vmatprep.mubr.bf16.mxu1 %v22519_v1 }
 0x626   : > { %7902 = vmatpush1.bf16.msra.mxu0 %v18369_v52  ;;  %8287 = vmatprep.subr.bf16.mxu1 %v18407_v54 }
 0x627   : > { %v15762_v5 = vpop.f32.mrb[228].mxu1  ;;  %7903 = vmatprep.subr.bf16.mxu0 %v18374_v59  ;;  %8288 = vmatpush1.bf16.msra.mxu1 %v18405_v11  ;;  %v18411_v11 = vld [vmem:[#allocation13 + $0x180] ss:$16 sps:$4 sm:$0xff]  }
 0x628   : > { %v15763_v50 = vpop.f32.mrb[229].mxu1  ;;  %8289 = vmatprep.subr.bf16.mxu1 %v18410_v10 }
 0x629   : > { %v20862_v31 = vadd.f32 %v15763_v50, %v15762_v5  ;;  %v15765_v8 = vpop.f32.mrb[230].mxu1  ;;  %v18432_v5 = vld [vmem:[#allocation13 + $0x188] ss:$16 sps:$4 sm:$0xff]   ;;  %v18420_v50 = vld [vmem:[#allocation13 + $0x1a0] ss:$16 sps:$4 sm:$0xff]  }
 0x62a   : > { %v15766_v19 = vpop.f32.mrb[231].mxu1  ;;  %7904 = vmatpush1.bf16.msra.mxu0 %v18372_v37  ;;  %v18422_v37 = vld [vmem:[#allocation13 + $0x1a4] ss:$16 sps:$4 sm:$0xff]  }
 0x62b   : > { %v20864_v16 = vadd.f32 %v15766_v19, %v15765_v8  ;;  %7905 = vmatprep.subr.bf16.mxu0 %v18377_v48  ;;  %8290 = vmatpush1.bf16.msra.mxu1 %v18408_v13  ;;  %v19077_v48 = vld [vmem:[%s19917_s29 + $0x30] sm:$0xff]   ;;  %v18431_v19 = vld [vmem:[#allocation13 + $0x1c4] ss:$16 sps:$4 sm:$0xff]  }
 0x62c   : > { %7096 = vmatmul.mubr.bf16.gmra.mrb[16].mxu0 %v19075_v44  ;;  %7289 = vmatmul.mubr.bf16.gmra.mrb[80].mxu1 %v19075_v44  ;;  %v18437_v13 = vld [vmem:[#allocation13 + $0x1ac] ss:$16 sps:$4 sm:$0xff]  }
 0x62d   : > { %7105 = vmatprep.mubr.bf16.mxu0 %v22519_v1  ;;  %7298 = vmatprep.mubr.bf16.mxu1 %v22519_v1 }
 0x62e   : > { %7906 = vmatpush1.bf16.msra.mxu0 %v18375_v15  ;;  %8291 = vmatprep.subr.bf16.mxu1 %v18416_v41  ;;  %v18435_v15 = vld [vmem:[#allocation13 + $0x1a8] ss:$16 sps:$4 sm:$0xff]  }
 0x62f   : > { %v15768_v6 = vpop.f32.mrb[232].mxu1  ;;  %7907 = vmatprep.subr.bf16.mxu0 %v18386_v22  ;;  %8292 = vmatpush1.bf16.msra.mxu1 %v18414_v12 }
 0x630   : > { %v15769_v40 = vpop.f32.mrb[233].mxu1  ;;  %8293 = vmatprep.subr.bf16.mxu1 %v18419_v14  ;;  %v18429_v14 = vld [vmem:[#allocation13 + $0x1c0] ss:$16 sps:$4 sm:$0xff]  }
 0x631   : > { %v20869_v49 = vadd.f32 %v15769_v40, %v15768_v6  ;;  %v15771_v29 = vpop.f32.mrb[234].mxu1  ;;  %v19078_v40 = vld [vmem:[%s19917_s29 + $0x38] sm:$0xff]  }
 0x632   : > { %v15772_v58 = vpop.f32.mrb[235].mxu1  ;;  %7908 = vmatpush1.bf16.msra.mxu0 %v18384_v56  ;;  %v18443_v56 = vld [vmem:[#allocation13 + $0x1cc] ss:$16 sps:$4 sm:$0xff]  }
 0x633   : > { %v20871_v28 = vadd.f32 %v15772_v58, %v15771_v29  ;;  %7909 = vmatprep.subr.bf16.mxu0 %v18395_v45  ;;  %8294 = vmatpush1.bf16.msra.mxu1 %v18417_v60  ;;  %v18440_v45 = vld [vmem:[#allocation13 + $0x1e4] ss:$16 sps:$4 sm:$0xff]   ;;  %v18441_v60 = vld [vmem:[#allocation13 + $0x1c8] ss:$16 sps:$4 sm:$0xff]   ;;  %v18446_v29 = vld [vmem:[#allocation13 + $0x1ec] ss:$16 sps:$4 sm:$0xff]  }
 0x634   : > { %7106 = vmatmul.mubr.bf16.gmra.mrb[20].mxu0 %v19076_v4  ;;  %7299 = vmatmul.mubr.bf16.gmra.mrb[84].mxu1 %v19076_v4  ;;  %v18438_v58 = vld [vmem:[#allocation13 + $0x1e0] ss:$16 sps:$4 sm:$0xff]  }
 0x635   : > { %7115 = vmatprep.mubr.bf16.mxu0 %v22519_v1  ;;  %7308 = vmatprep.mubr.bf16.mxu1 %v22519_v1 }
 0x636   : > { %7910 = vmatpush1.bf16.msra.mxu0 %v18393_v24  ;;  %8295 = vmatprep.subr.bf16.mxu1 %v18425_v32  ;;  %v18444_v32 = vld [vmem:[#allocation13 + $0x1e8] ss:$16 sps:$4 sm:$0xff]  }
 0x637   : > { %v15774_v20 = vpop.f32.mrb[236].mxu1  ;;  %7911 = vmatprep.subr.bf16.mxu0 %v18404_v18  ;;  %8296 = vmatpush1.bf16.msra.mxu1 %v18423_v47  ;;  %v18449_v18 = vld [vmem:[#allocation13 + $0x204] ss:$16 sps:$4 sm:$0xff]  }
 0x638   : > { %v15775_v21 = vpop.f32.mrb[237].mxu1  ;;  %8297 = vmatprep.subr.bf16.mxu1 %v18428_v46 }
 0x639   : > { %v20876_v52 = vadd.f32 %v15775_v21, %v15774_v20  ;;  %v15777_v54 = vpop.f32.mrb[238].mxu1 }
 0x63a   : > { %v15778_v59 = vpop.f32.mrb[239].mxu1  ;;  %7912 = vmatpush1.bf16.msra.mxu0 %v18402_v25 }
 0x63b   : > { %v20878_v10 = vadd.f32 %v15778_v59, %v15777_v54  ;;  %7913 = vmatprep.subr.bf16.mxu0 %v18413_v26  ;;  %8298 = vmatpush1.bf16.msra.mxu1 %v18426_v62  ;;  %v19079_v26 = vld [vmem:[%s19917_s29 + $0x40] sm:$0xff]  }
 0x63c   : > { %7116 = vmatmul.mubr.bf16.gmra.mrb[24].mxu0 %v19077_v48  ;;  %7309 = vmatmul.mubr.bf16.gmra.mrb[88].mxu1 %v19077_v48 }
 0x63d   : > { %7125 = vmatprep.mubr.bf16.mxu0 %v22519_v1  ;;  %7318 = vmatprep.mubr.bf16.mxu1 %v22519_v1 }
 0x63e   : > { %7914 = vmatpush1.bf16.msra.mxu0 %v18411_v11  ;;  %8299 = vmatprep.subr.bf16.mxu1 %v18434_v53 }
 0x63f   : > { %v15780_v8 = vpop.f32.mrb[240].mxu1  ;;  %7915 = vmatprep.subr.bf16.mxu0 %v18422_v37  ;;  %8300 = vmatpush1.bf16.msra.mxu1 %v18432_v5  ;;  %v19080_v37 = vld [vmem:[%s19917_s29 + $0x48] sm:$0xff]  }
 0x640   : > { %v15781_v41 = vpop.f32.mrb[241].mxu1  ;;  %8301 = vmatprep.subr.bf16.mxu1 %v18437_v13 }
 0x641   : > { %v20883_v22 = vadd.f32 %v15781_v41, %v15780_v8  ;;  %v15783_v12 = vpop.f32.mrb[242].mxu1  ;;  %v5354_v8 = vld [vmem:[#allocation11] sm:$0x7]  ;;  %v19081_v41 = vld [vmem:[%s19917_s29 + $0x50] sm:$0xff]  }
 0x642   : > { %v15784_v44 = vpop.f32.mrb[243].mxu1  ;;  %7916 = vmatpush1.bf16.msra.mxu0 %v18420_v50 }
 0x643   : > { %v20885_v6 = vadd.f32 %v15784_v44, %v15783_v12  ;;  %7917 = vmatprep.subr.bf16.mxu0 %v18431_v19  ;;  %8302 = vmatpush1.bf16.msra.mxu1 %v18435_v15  ;;  %v20910_v12 = vrot.slane %v5354_v8, %v19991_v55  ;;  %v20913_v44 = vrot.slane %v5354_v8, %v20012_v27 }
 0x644   : > { %7126 = vmatmul.mubr.bf16.gmra.mrb[28].mxu0 %v19078_v40  ;;  %7319 = vmatmul.mubr.bf16.gmra.mrb[92].mxu1 %v19078_v40 }
 0x645   : > { %7135 = vmatprep.mubr.bf16.mxu0 %v22519_v1  ;;  %7328 = vmatprep.mubr.bf16.mxu1 %v22519_v1 }
 0x646   : > { %7918 = vmatpush1.bf16.msra.mxu0 %v18429_v14  ;;  %8303 = vmatprep.subr.bf16.mxu1 %v18443_v56  ;;  %v20916_v14 = vrot.slane %v5354_v8, %v19996_v57 }
 0x647   : > { %v15786_v24 = vpop.f32.mrb[244].mxu1  ;;  %7919 = vmatprep.subr.bf16.mxu0 %v18440_v45  ;;  %8304 = vmatpush1.bf16.msra.mxu1 %v18441_v60 }
 0x648   : > { %v15787_v47 = vpop.f32.mrb[245].mxu1  ;;  %8305 = vmatprep.subr.bf16.mxu1 %v18446_v29 }
 0x649   : > { %v20890_v4 = vadd.f32 %v15787_v47, %v15786_v24  ;;  %v15789_v46 = vpop.f32.mrb[246].mxu1 }
 0x64a   : > { %v15790_v25 = vpop.f32.mrb[247].mxu1  ;;  %7920 = vmatpush1.bf16.msra.mxu0 %v18438_v58  ;;  %v6304_v58 = vadd.f32 %v20794_v39, %v20913_v44 }
 0x64b   : > { %v20892_v20 = vadd.f32 %v15790_v25, %v15789_v46  ;;  %8306 = vmatpush1.bf16.msra.mxu1 %v18444_v32  ;;  %8082 = vmatprep.subr.bf16.mxu0 %v18449_v18 }
 0x64c   : > { %7136 = vmatmul.mubr.bf16.gmra.mrb[32].mxu0 %v19079_v26  ;;  %7329 = vmatmul.mubr.bf16.gmra.mrb[96].mxu1 %v19079_v26 }
 0x64d   : > { %7145 = vmatprep.mubr.bf16.mxu0 %v22519_v1  ;;  %7338 = vmatprep.mubr.bf16.mxu1 %v22519_v1 }
 0x64f   : > { %v15792_v62 = vpop.f32.mrb[248].mxu1 }
 0x650   : > { %v15793_v21 = vpop.f32.mrb[249].mxu1 }
 0x651   : > { %v20897_v54 = vadd.f32 %v15793_v21, %v15792_v62  ;;  %v15795_v59 = vpop.f32.mrb[250].mxu1  ;;  %v6307_v62 = vadd.f32 %v20796_v7, %v20913_v44 }
 0x652   : > { %v15796_v11 = vpop.f32.mrb[251].mxu1 }
 0x653   : > { %v20899_v53 = vadd.f32 %v15796_v11, %v15795_v59 }
 0x654   : > { %7146 = vmatmul.mubr.bf16.gmra.mrb[36].mxu0 %v19080_v37  ;;  %7339 = vmatmul.mubr.bf16.gmra.mrb[100].mxu1 %v19080_v37 }
 0x655   : > { %7155 = vmatprep.mubr.bf16.mxu0 %v22519_v1  ;;  %7348 = vmatprep.mubr.bf16.mxu1 %v22519_v1 }
 0x657   : > { %v15798_v5 = vpop.f32.mrb[252].mxu1 }
 0x658   : > { %v15799_v48 = vpop.f32.mrb[253].mxu1 }
 0x659   : > { %v20904_v13 = vadd.f32 %v15799_v48, %v15798_v5  ;;  %v15801_v50 = vpop.f32.mrb[254].mxu1  ;;  %v19082_v48 = vld [vmem:[%s19917_s29 + $0x58] sm:$0xff]  }
 0x65a   : > { %v15802_v19 = vpop.f32.mrb[255].mxu1 }
 0x65b   : > { %v20906_v15 = vadd.f32 %v15802_v19, %v15801_v50 }
 0x65c   : > { %7156 = vmatmul.mubr.bf16.gmra.mrb[40].mxu0 %v19081_v41  ;;  %7349 = vmatmul.mubr.bf16.gmra.mrb[104].mxu1 %v19081_v41 }
 0x65d   : > { %7165 = vmatprep.mubr.bf16.mxu0 %v22519_v1  ;;  %7358 = vmatprep.mubr.bf16.mxu1 %v22519_v1 }
 0x65f   : > { %v6110_v56 = vpop.f32.mrb[192].mxu0  ;;  %v15820_v45 = vpop.f32.mrb[0].mxu1 }
 0x660   : > { %v16172_v60 = vadd.f32 %v6110_v56, %v20910_v12  ;;  %v6112_v40 = vpop.f32.mrb[193].mxu0  ;;  %v15821_v29 = vpop.f32.mrb[1].mxu1 }
 0x661   : > { %v16173_v24 = vadd.f32 %v6112_v40, %v20916_v14  ;;  %v15822_v32 = vadd.f32 %v15821_v29, %v15820_v45  ;;  %v6114_v18 = vpop.f32.mrb[194].mxu0  ;;  %v15823_v47 = vpop.f32.mrb[2].mxu1 }
 0x662   : > { %v16174_v46 = vadd.f32 %v6114_v18, %v20910_v12  ;;  %v6116_v25 = vpop.f32.mrb[195].mxu0  ;;  %v15824_v26 = vpop.f32.mrb[3].mxu1  ;;  %v6591_v37 = vmax.f32 %v16172_v60, 0.0 }
 0x663   : > { %v6465_v21 = vadd.f32 %v15822_v32, %v6304_v58  ;;  %v16175_v59 = vadd.f32 %v6116_v25, %v20916_v14  ;;  %v15825_v11 = vadd.f32 %v15824_v26, %v15823_v47  ;;  %v6592_v50 = vmax.f32 %v16173_v24, 0.0 }
 0x664   : > { %v6594_v5 = vmax.f32 %v16174_v46, 0.0  ;;  %7166 = vmatmul.mubr.bf16.gmra.mrb[44].mxu0 %v19082_v48  ;;  %7359 = vmatmul.mubr.bf16.gmra.mrb[108].mxu1 %v19082_v48  ;;  %v6312_v32 = vadd.f32 %v20802_v34, %v20913_v44  ;;  %v18470_v34 = vld [vmem:[#allocation13 + $0x20c] ss:$16 sps:$4 sm:$0xff]  }
 0x665   : > { %v6468_v39 = vadd.f32 %v15825_v11, %v6307_v62  ;;  %7175 = vmatprep.mubr.bf16.mxu0 %v22519_v1  ;;  %7368 = vmatprep.mubr.bf16.mxu1 %v22519_v1  ;;  %v6595_v8 = vmax.f32 %v16175_v59, 0.0  ;;  %v6593_v41 = vmax.f32 %v6465_v21, 0.0  ;;  %v6315_v59 = vadd.f32 %v20804_v42, %v20913_v44 }
 0x666   : > { %v20931_v19 = vpack.c.bf16 %v6594_v5, %v6591_v37  ;;  %8468 = vmatprep.subr.bf16.mxu1 %v18470_v34  ;;  %v6323_v34 = vadd.f32 %v20812_v38, %v20913_v44 }
 0x667   : > { %v6596_v7 = vmax.f32 %v6468_v39, 0.0  ;;  %v6120_v56 = vpop.f32.mrb[196].mxu0  ;;  %v15826_v45 = vpop.f32.mrb[4].mxu1  ;;  %v20933_v40 = vpack.c.bf16 %v6595_v8, %v6592_v50  ;;  %v19083_v50 = vld [vmem:[%s19917_s29 + $0x60] sm:$0xff]  }
 0x668   : > { %v16176_v60 = vadd.f32 %v6120_v56, %v20910_v12  ;;  %v6122_v29 = vpop.f32.mrb[197].mxu0  ;;  %v15827_v58 = vpop.f32.mrb[5].mxu1 }
 0x669   : > { %v20938_v18 = vpack.c.bf16 %v6596_v7, %v6593_v41  ;;  %v16177_v24 = vadd.f32 %v6122_v29, %v20916_v14  ;;  %v15828_v47 = vadd.f32 %v15827_v58, %v15826_v45  ;;  %v6124_v46 = vpop.f32.mrb[198].mxu0  ;;  %v15829_v25 = vpop.f32.mrb[6].mxu1 }
 0x66a   : > { %v16178_v26 = vadd.f32 %v6124_v46, %v20910_v12  ;;  %v6126_v62 = vpop.f32.mrb[199].mxu0  ;;  %v15830_v21 = vpop.f32.mrb[7].mxu1  ;;  %v6597_v48 = vmax.f32 %v16176_v60, 0.0 }
 0x66b   : > { %v6473_v11 = vadd.f32 %v15828_v47, %v6312_v32  ;;  %v16179_v37 = vadd.f32 %v6126_v62, %v20916_v14  ;;  %v15831_v5 = vadd.f32 %v15830_v21, %v15829_v25  ;;  %v6598_v41 = vmax.f32 %v16177_v24, 0.0 }
 0x66c   : > { %v6600_v39 = vmax.f32 %v16178_v26, 0.0  ;;  %7176 = vmatmul.mubr.bf16.gmra.mrb[48].mxu0 %v19083_v50  ;;  %7369 = vmatmul.mubr.bf16.gmra.mrb[112].mxu1 %v19083_v50  ;;  %v6320_v25 = vadd.f32 %v20810_v35, %v20913_v44 }
 0x66d   : > { %v6476_v8 = vadd.f32 %v15831_v5, %v6315_v59  ;;  %7185 = vmatprep.mubr.bf16.mxu0 %v22519_v1  ;;  %7378 = vmatprep.mubr.bf16.mxu1 %v22519_v1  ;;  %v6601_v7 = vmax.f32 %v16179_v37, 0.0  ;;  %v6599_v42 = vmax.f32 %v6473_v11, 0.0 }
 0x66e   : > { %v20948_v56 = vpack.c.bf16 %v6600_v39, %v6597_v48 }
 0x66f   : > { %v6602_v45 = vmax.f32 %v6476_v8, 0.0  ;;  %v6130_v29 = vpop.f32.mrb[200].mxu0  ;;  %v15832_v58 = vpop.f32.mrb[8].mxu1  ;;  %v20950_v32 = vpack.c.bf16 %v6601_v7, %v6598_v41  ;;  %v19084_v41 = vld [vmem:[%s19917_s29 + $0x68] sm:$0xff]  }
 0x670   : > { %v16180_v60 = vadd.f32 %v6130_v29, %v20910_v12  ;;  %v6132_v47 = vpop.f32.mrb[201].mxu0  ;;  %v15833_v46 = vpop.f32.mrb[9].mxu1 }
 0x671   : > { %v20955_v26 = vpack.c.bf16 %v6602_v45, %v6599_v42  ;;  %v16181_v24 = vadd.f32 %v6132_v47, %v20916_v14  ;;  %v15834_v62 = vadd.f32 %v15833_v46, %v15832_v58  ;;  %v6134_v21 = vpop.f32.mrb[202].mxu0  ;;  %v15835_v59 = vpop.f32.mrb[10].mxu1 }
 0x672   : > { %v16182_v11 = vadd.f32 %v6134_v21, %v20910_v12  ;;  %v6136_v37 = vpop.f32.mrb[203].mxu0  ;;  %v15836_v5 = vpop.f32.mrb[11].mxu1  ;;  %v6603_v8 = vmax.f32 %v16180_v60, 0.0 }
 0x673   : > { %v6481_v48 = vadd.f32 %v15834_v62, %v6320_v25  ;;  %v16183_v39 = vadd.f32 %v6136_v37, %v20916_v14  ;;  %v15837_v50 = vadd.f32 %v15836_v5, %v15835_v59  ;;  %v6604_v42 = vmax.f32 %v16181_v24, 0.0 }
 0x674   : > { %v6606_v35 = vmax.f32 %v16182_v11, 0.0  ;;  %7186 = vmatmul.mubr.bf16.gmra.mrb[52].mxu0 %v19084_v41  ;;  %7379 = vmatmul.mubr.bf16.gmra.mrb[116].mxu1 %v19084_v41  ;;  %v6328_v59 = vadd.f32 %v20818_v43, %v20913_v44 }
 0x675   : > { %v6484_v7 = vadd.f32 %v15837_v50, %v6323_v34  ;;  %7195 = vmatprep.mubr.bf16.mxu0 %v22519_v1  ;;  %7388 = vmatprep.mubr.bf16.mxu1 %v22519_v1  ;;  %v6607_v45 = vmax.f32 %v16183_v39, 0.0  ;;  %v6605_v58 = vmax.f32 %v6481_v48, 0.0 }
 0x676   : > { %v20965_v29 = vpack.c.bf16 %v6606_v35, %v6603_v8  ;;  %v6331_v8 = vadd.f32 %v20820_v63, %v20913_v44 }
 0x677   : > { %v6608_v38 = vmax.f32 %v6484_v7, 0.0  ;;  %v6140_v47 = vpop.f32.mrb[204].mxu0  ;;  %v15838_v46 = vpop.f32.mrb[12].mxu1  ;;  %v20967_v25 = vpack.c.bf16 %v6607_v45, %v6604_v42  ;;  %v19085_v45 = vld [vmem:[%s19917_s29 + $0x70] sm:$0xff]  }
 0x678   : > { %v16184_v60 = vadd.f32 %v6140_v47, %v20910_v12  ;;  %v6142_v62 = vpop.f32.mrb[205].mxu0  ;;  %v15839_v21 = vpop.f32.mrb[13].mxu1 }
 0x679   : > { %v20972_v11 = vpack.c.bf16 %v6608_v38, %v6605_v58  ;;  %v16185_v24 = vadd.f32 %v6142_v62, %v20916_v14  ;;  %v15840_v37 = vadd.f32 %v15839_v21, %v15838_v46  ;;  %v6144_v5 = vpop.f32.mrb[206].mxu0  ;;  %v15841_v34 = vpop.f32.mrb[14].mxu1 }
 0x67a   : > { %v16186_v48 = vadd.f32 %v6144_v5, %v20910_v12  ;;  %v6146_v39 = vpop.f32.mrb[207].mxu0  ;;  %v15842_v50 = vpop.f32.mrb[15].mxu1  ;;  %v6609_v42 = vmax.f32 %v16184_v60, 0.0 }
 0x67b   : > { %v6489_v35 = vadd.f32 %v15840_v37, %v6328_v59  ;;  %v16187_v41 = vadd.f32 %v6146_v39, %v20916_v14  ;;  %v15843_v7 = vadd.f32 %v15842_v50, %v15841_v34  ;;  %v6610_v38 = vmax.f32 %v16185_v24, 0.0 }
 0x67c   : > { %v6612_v43 = vmax.f32 %v16186_v48, 0.0  ;;  %7196 = vmatmul.mubr.bf16.gmra.mrb[56].mxu0 %v19085_v45  ;;  %7389 = vmatmul.mubr.bf16.gmra.mrb[120].mxu1 %v19085_v45  ;;  %v6336_v48 = vadd.f32 %v20826_v51, %v20913_v44 }
 0x67d   : > { %v6492_v58 = vadd.f32 %v15843_v7, %v6331_v8  ;;  %7205 = vmatprep.mubr.bf16.mxu0 %v22519_v1  ;;  %7398 = vmatprep.mubr.bf16.mxu1 %v22519_v1  ;;  %v6613_v47 = vmax.f32 %v16187_v41, 0.0  ;;  %v6611_v62 = vmax.f32 %v6489_v35, 0.0 }
 0x67e   : > { %v20982_v46 = vpack.c.bf16 %v6612_v43, %v6609_v42  ;;  %v6339_v43 = vadd.f32 %v20828_v23, %v20913_v44 }
 0x67f   : > { %v6614_v63 = vmax.f32 %v6492_v58, 0.0  ;;  %v6150_v21 = vpop.f32.mrb[208].mxu0  ;;  %v15844_v59 = vpop.f32.mrb[16].mxu1  ;;  %v20984_v37 = vpack.c.bf16 %v6613_v47, %v6610_v38 }
 0x680   : > { %v16188_v60 = vadd.f32 %v6150_v21, %v20910_v12  ;;  %v6152_v5 = vpop.f32.mrb[209].mxu0  ;;  %v15845_v34 = vpop.f32.mrb[17].mxu1 }
 0x681   : > { %v20989_v39 = vpack.c.bf16 %v6614_v63, %v6611_v62  ;;  %v16189_v24 = vadd.f32 %v6152_v5, %v20916_v14  ;;  %v15846_v50 = vadd.f32 %v15845_v34, %v15844_v59  ;;  %v6154_v8 = vpop.f32.mrb[210].mxu0  ;;  %v15847_v35 = vpop.f32.mrb[18].mxu1  ;;  %v19086_v62 = vld [vmem:[%s19917_s29 + $0x78] sm:$0xff]  }
 0x682   : > { %v16190_v41 = vadd.f32 %v6154_v8, %v20910_v12  ;;  %v6156_v7 = vpop.f32.mrb[211].mxu0  ;;  %v15848_v42 = vpop.f32.mrb[19].mxu1  ;;  %v6615_v47 = vmax.f32 %v16188_v60, 0.0 }
 0x683   : > { %v6497_v45 = vadd.f32 %v15846_v50, %v6336_v48  ;;  %v16191_v58 = vadd.f32 %v6156_v7, %v20916_v14  ;;  %v15849_v38 = vadd.f32 %v15848_v42, %v15847_v35  ;;  %v6616_v21 = vmax.f32 %v16189_v24, 0.0 }
 0x684   : > { %v6618_v51 = vmax.f32 %v16190_v41, 0.0  ;;  %7206 = vmatmul.mubr.bf16.gmra.mrb[60].mxu0 %v19086_v62  ;;  %7399 = vmatmul.mubr.bf16.gmra.mrb[124].mxu1 %v19086_v62  ;;  %v6344_v7 = vadd.f32 %v20834_v17, %v20913_v44  ;;  %v18452_v62 = vld [vmem:[#allocation13 + $0x224] ss:$16 sps:$4 sm:$0xff]  }
 0x685   : > { %v6500_v63 = vadd.f32 %v15849_v38, %v6339_v43  ;;  %7921 = vmatprep.mubr.bf16.mxu0 %v20933_v40  ;;  %8307 = vmatprep.mubr.bf16.mxu1 %v20933_v40  ;;  %v6619_v59 = vmax.f32 %v16191_v58, 0.0  ;;  %v6617_v34 = vmax.f32 %v6497_v45, 0.0  ;;  %v18447_v45 = vld [vmem:[#allocation13 + $0x200] ss:$16 sps:$4 sm:$0xff]  }
 0x686   : > { %v20999_v5 = vpack.c.bf16 %v6618_v51, %v6615_v47 }
 0x687   : > { %v6620_v23 = vmax.f32 %v6500_v63, 0.0  ;;  %v6160_v48 = vpop.f32.mrb[212].mxu0  ;;  %v15850_v50 = vpop.f32.mrb[20].mxu1  ;;  %v21001_v8 = vpack.c.bf16 %v6619_v59, %v6616_v21  ;;  %v6347_v63 = vadd.f32 %v20836_v2, %v20913_v44 }
 0x688   : > { %v16192_v60 = vadd.f32 %v6160_v48, %v20910_v12  ;;  %v6162_v35 = vpop.f32.mrb[213].mxu0  ;;  %v15851_v41 = vpop.f32.mrb[21].mxu1 }
 0x689   : > { %v21006_v42 = vpack.c.bf16 %v6620_v23, %v6617_v34  ;;  %v16193_v40 = vadd.f32 %v6162_v35, %v20916_v14  ;;  %v15852_v24 = vadd.f32 %v15851_v41, %v15850_v50  ;;  %v6164_v43 = vpop.f32.mrb[214].mxu0  ;;  %v15853_v58 = vpop.f32.mrb[22].mxu1  ;;  %v18468_v34 = vld [vmem:[#allocation13 + $0x208] ss:$16 sps:$4 sm:$0xff]   ;;  %v18473_v50 = vld [vmem:[#allocation13 + $0x22c] ss:$16 sps:$4 sm:$0xff]  }
 0x68a   : > { %v16194_v38 = vadd.f32 %v6164_v43, %v20910_v12  ;;  %v6166_v47 = vpop.f32.mrb[215].mxu0  ;;  %v15854_v51 = vpop.f32.mrb[23].mxu1  ;;  %v6621_v23 = vmax.f32 %v16192_v60, 0.0  ;;  %v18450_v41 = vld [vmem:[#allocation13 + $0x220] ss:$16 sps:$4 sm:$0xff]  }
 0x68b   : > { %v6505_v21 = vadd.f32 %v15852_v24, %v6344_v7  ;;  %v16195_v59 = vadd.f32 %v6166_v47, %v20916_v14  ;;  %v15855_v17 = vadd.f32 %v15854_v51, %v15853_v58  ;;  %v6622_v43 = vmax.f32 %v16193_v40, 0.0  ;;  %v18455_v7 = vld [vmem:[#allocation13 + $0x244] ss:$16 sps:$4 sm:$0xff]  }
 0x68c   : > { %v6624_v48 = vmax.f32 %v16194_v38, 0.0  ;;  %7922 = vmatmul.mubr.bf16.vlgmr.msra.gmra.mrb[0].mxu0 %v20931_v19  ;;  %8308 = vmatmul.mubr.bf16.vlgmr.msra.gmra.mrb[64].mxu1 %v20931_v19  ;;  %v18471_v19 = vld [vmem:[#allocation13 + $0x228] ss:$16 sps:$4 sm:$0xff]   ;;  %v6352_v40 = vadd.f32 %v20841_v36, %v20913_v44 }
 0x68d   : > { %v6508_v35 = vadd.f32 %v15855_v17, %v6347_v63  ;;  %8083 = vmatpush1.bf16.msra.mxu0 %v18447_v45  ;;  %7931 = vmatprep.mubr.bf16.mxu0 %v20950_v32  ;;  %v6625_v1 = vmax.f32 %v16195_v59, 0.0  ;;  %v6623_v60 = vmax.f32 %v6505_v21, 0.0 }
 0x68e   : > { %v21016_v2 = vpack.c.bf16 %v6624_v48, %v6621_v23  ;;  %8317 = vmatprep.mubr.bf16.mxu1 %v20950_v32  ;;  %8084 = vmatprep.subr.bf16.mxu0 %v18452_v62  ;;  %v18453_v48 = vld [vmem:[#allocation13 + $0x240] ss:$16 sps:$4 sm:$0xff]  }
 0x68f   : > { %v6626_v24 = vmax.f32 %v6508_v35, 0.0  ;;  %v6170_v58 = vpop.f32.mrb[216].mxu0  ;;  %v15856_v38 = vpop.f32.mrb[24].mxu1  ;;  %v21019_v47 = vpack.c.bf16 %v6625_v1, %v6622_v43  ;;  %8469 = vmatpush1.bf16.msra.mxu1 %v18468_v34  ;;  %v18476_v35 = vld [vmem:[#allocation13 + $0x24c] ss:$16 sps:$4 sm:$0xff]  }
 0x690   : > { %v16196_v45 = vadd.f32 %v6170_v58, %v20910_v12  ;;  %v6172_v51 = vpop.f32.mrb[217].mxu0  ;;  %v15857_v63 = vpop.f32.mrb[25].mxu1  ;;  %8470 = vmatprep.subr.bf16.mxu1 %v18473_v50  ;;  %v6355_v50 = vadd.f32 %v20843_v33, %v20913_v44  ;;  %v18474_v58 = vld [vmem:[#allocation13 + $0x248] ss:$16 sps:$4 sm:$0xff]  }
 0x691   : > { %v21024_v59 = vpack.c.bf16 %v6626_v24, %v6623_v60  ;;  %v16197_v32 = vadd.f32 %v6172_v51, %v20916_v14  ;;  %v15858_v62 = vadd.f32 %v15857_v63, %v15856_v38  ;;  %v6174_v21 = vpop.f32.mrb[218].mxu0  ;;  %v15859_v17 = vpop.f32.mrb[26].mxu1  ;;  %8085 = vmatpush1.bf16.msra.mxu0 %v18450_v41  ;;  %v18458_v24 = vld [vmem:[#allocation13 + $0x264] ss:$16 sps:$4 sm:$0xff]   ;;  %v18479_v41 = vld [vmem:[#allocation13 + $0x26c] ss:$16 sps:$4 sm:$0xff]  }
 0x692   : > { %v16198_v1 = vadd.f32 %v6174_v21, %v20910_v12  ;;  %v6176_v34 = vpop.f32.mrb[219].mxu0  ;;  %v15860_v23 = vpop.f32.mrb[27].mxu1  ;;  %8086 = vmatprep.subr.bf16.mxu0 %v18455_v7  ;;  %v6627_v38 = vmax.f32 %v16196_v45, 0.0 }
 0x693   : > { %v6513_v43 = vadd.f32 %v15858_v62, %v6352_v40  ;;  %v16199_v36 = vadd.f32 %v6176_v34, %v20916_v14  ;;  %v15861_v60 = vadd.f32 %v15860_v23, %v15859_v17  ;;  %8471 = vmatpush1.bf16.msra.mxu1 %v18471_v19  ;;  %v6628_v33 = vmax.f32 %v16197_v32, 0.0  ;;  %v18456_v62 = vld [vmem:[#allocation13 + $0x260] ss:$16 sps:$4 sm:$0xff]   ;;  %v18461_v19 = vld [vmem:[#allocation13 + $0x284] ss:$16 sps:$4 sm:$0xff]  }
 0x694   : > { %v6630_v51 = vmax.f32 %v16198_v1, 0.0  ;;  %7932 = vmatmul.mubr.bf16.gmra.mrb[4].mxu0 %v20948_v56  ;;  %8318 = vmatmul.mubr.bf16.gmra.mrb[68].mxu1 %v20948_v56  ;;  %v18477_v56 = vld [vmem:[#allocation13 + $0x268] ss:$16 sps:$4 sm:$0xff]  }
 0x695   : > { %v6516_v63 = vadd.f32 %v15861_v60, %v6355_v50  ;;  %7941 = vmatprep.mubr.bf16.mxu0 %v20967_v25  ;;  %8327 = vmatprep.mubr.bf16.mxu1 %v20967_v25  ;;  %v6631_v7 = vmax.f32 %v16199_v36, 0.0  ;;  %v6629_v45 = vmax.f32 %v6513_v43, 0.0 }
 0x696   : > { %v21035_v40 = vpack.c.bf16 %v6630_v51, %v6627_v38  ;;  %8087 = vmatpush1.bf16.msra.mxu0 %v18453_v48  ;;  %8472 = vmatprep.subr.bf16.mxu1 %v18476_v35  ;;  %v6360_v48 = vadd.f32 %v20848_v0, %v20913_v44 }
 0x697   : > { %v6632_v21 = vmax.f32 %v6516_v63, 0.0  ;;  %v6180_v17 = vpop.f32.mrb[220].mxu0  ;;  %v15862_v1 = vpop.f32.mrb[28].mxu1  ;;  %v21037_v34 = vpack.c.bf16 %v6631_v7, %v6628_v33  ;;  %8088 = vmatprep.subr.bf16.mxu0 %v18458_v24  ;;  %8473 = vmatpush1.bf16.msra.mxu1 %v18474_v58  ;;  %v6363_v24 = vadd.f32 %v20850_v3, %v20913_v44  ;;  %v18459_v63 = vld [vmem:[#allocation13 + $0x280] ss:$16 sps:$4 sm:$0xff]  }
 0x698   : > { %v16200_v23 = vadd.f32 %v6180_v17, %v20910_v12  ;;  %v6182_v25 = vpop.f32.mrb[221].mxu0  ;;  %v15863_v32 = vpop.f32.mrb[29].mxu1  ;;  %8474 = vmatprep.subr.bf16.mxu1 %v18479_v41  ;;  %v18485_v41 = vld [vmem:[#allocation13 + $0x28c] ss:$16 sps:$4 sm:$0xff]  }
 0x699   : > { %v21042_v50 = vpack.c.bf16 %v6632_v21, %v6629_v45  ;;  %v16201_v35 = vadd.f32 %v6182_v25, %v20916_v14  ;;  %v15864_v43 = vadd.f32 %v15863_v32, %v15862_v1  ;;  %v6184_v36 = vpop.f32.mrb[222].mxu0  ;;  %v15865_v60 = vpop.f32.mrb[30].mxu1  ;;  %v18464_v45 = vld [vmem:[#allocation13 + $0x2a4] ss:$16 sps:$4 sm:$0xff]   ;;  %v18483_v21 = vld [vmem:[#allocation13 + $0x288] ss:$16 sps:$4 sm:$0xff]  }
 0x69a   : > { %v16202_v58 = vadd.f32 %v6184_v36, %v20910_v12  ;;  %v6186_v38 = vpop.f32.mrb[223].mxu0  ;;  %v15866_v51 = vpop.f32.mrb[31].mxu1  ;;  %8089 = vmatpush1.bf16.msra.mxu0 %v18456_v62  ;;  %v6633_v17 = vmax.f32 %v16200_v23, 0.0  ;;  %v18488_v3 = vld [vmem:[#allocation13 + $0x2ac] ss:$16 sps:$4 sm:$0xff]  }
 0x69b   : > { %v6521_v33 = vadd.f32 %v15864_v43, %v6360_v48  ;;  %v16203_v0 = vadd.f32 %v6186_v38, %v20916_v14  ;;  %v15867_v7 = vadd.f32 %v15866_v51, %v15865_v60  ;;  %8090 = vmatprep.subr.bf16.mxu0 %v18461_v19  ;;  %8475 = vmatpush1.bf16.msra.mxu1 %v18477_v56  ;;  %v6634_v62 = vmax.f32 %v16201_v35, 0.0  ;;  %v18462_v19 = vld [vmem:[#allocation13 + $0x2a0] ss:$16 sps:$4 sm:$0xff]   ;;  %v18467_v56 = vld [vmem:[#allocation13 + $0x2c4] ss:$16 sps:$4 sm:$0xff]  }
 0x69c   : > { %v6636_v1 = vmax.f32 %v16202_v58, 0.0  ;;  %7942 = vmatmul.mubr.bf16.gmra.mrb[8].mxu0 %v20965_v29  ;;  %8328 = vmatmul.mubr.bf16.gmra.mrb[72].mxu1 %v20965_v29  ;;  %v18486_v29 = vld [vmem:[#allocation13 + $0x2a8] ss:$16 sps:$4 sm:$0xff]   ;;  %v6368_v38 = vadd.f32 %v20855_v9, %v20913_v44 }
 0x69d   : > { %v6524_v25 = vadd.f32 %v15867_v7, %v6363_v24  ;;  %7951 = vmatprep.mubr.bf16.mxu0 %v20984_v37  ;;  %8337 = vmatprep.mubr.bf16.mxu1 %v20984_v37  ;;  %v6637_v32 = vmax.f32 %v16203_v0, 0.0  ;;  %v6635_v23 = vmax.f32 %v6521_v33, 0.0  ;;  %v6371_v7 = vadd.f32 %v20857_v61, %v20913_v44  ;;  %v18494_v61 = vld [vmem:[#allocation13 + $0x2ec] ss:$16 sps:$4 sm:$0xff]  }
 0x69e   : > { %v21053_v48 = vpack.c.bf16 %v6636_v1, %v6633_v17  ;;  %8091 = vmatpush1.bf16.msra.mxu0 %v18459_v63  ;;  %8476 = vmatprep.subr.bf16.mxu1 %v18485_v41  ;;  %v18465_v1 = vld [vmem:[#allocation13 + $0x2c0] ss:$16 sps:$4 sm:$0xff]  }
 0x69f   : > { %v6638_v43 = vmax.f32 %v6524_v25, 0.0  ;;  %v6190_v36 = vpop.f32.mrb[224].mxu0  ;;  %v15868_v60 = vpop.f32.mrb[32].mxu1  ;;  %v21055_v58 = vpack.c.bf16 %v6637_v32, %v6634_v62  ;;  %8092 = vmatprep.subr.bf16.mxu0 %v18464_v45  ;;  %8477 = vmatpush1.bf16.msra.mxu1 %v18483_v21  ;;  %v18482_v32 = vld [vmem:[#allocation13 + $0x2e4] ss:$16 sps:$4 sm:$0xff]  }
 0x6a0   : > { %v16204_v24 = vadd.f32 %v6190_v36, %v20910_v12  ;;  %v6192_v37 = vpop.f32.mrb[225].mxu0  ;;  %v15869_v35 = vpop.f32.mrb[33].mxu1  ;;  %8478 = vmatprep.subr.bf16.mxu1 %v18488_v3  ;;  %v18491_v3 = vld [vmem:[#allocation13 + $0x2cc] ss:$16 sps:$4 sm:$0xff]  }
 0x6a1   : > { %v21060_v51 = vpack.c.bf16 %v6638_v43, %v6635_v23  ;;  %v16205_v63 = vadd.f32 %v6192_v37, %v20916_v14  ;;  %v15870_v41 = vadd.f32 %v15869_v35, %v15868_v60  ;;  %v6194_v33 = vpop.f32.mrb[226].mxu0  ;;  %v15871_v0 = vpop.f32.mrb[34].mxu1  ;;  %v18489_v23 = vld [vmem:[#allocation13 + $0x2c8] ss:$16 sps:$4 sm:$0xff]  }
 0x6a2   : > { %v16206_v45 = vadd.f32 %v6194_v33, %v20910_v12  ;;  %v6196_v21 = vpop.f32.mrb[227].mxu0  ;;  %v15872_v17 = vpop.f32.mrb[35].mxu1  ;;  %8093 = vmatpush1.bf16.msra.mxu0 %v18462_v19  ;;  %v6639_v43 = vmax.f32 %v16204_v24, 0.0 }
 0x6a3   : > { %v6529_v25 = vadd.f32 %v15870_v41, %v6368_v38  ;;  %v16207_v9 = vadd.f32 %v6196_v21, %v20916_v14  ;;  %v15873_v62 = vadd.f32 %v15872_v17, %v15871_v0  ;;  %8094 = vmatprep.subr.bf16.mxu0 %v18467_v56  ;;  %8479 = vmatpush1.bf16.msra.mxu1 %v18486_v29  ;;  %v6640_v19 = vmax.f32 %v16205_v63, 0.0  ;;  %v18480_v56 = vld [vmem:[#allocation13 + $0x2e0] ss:$16 sps:$4 sm:$0xff]  }
 0x6a4   : > { %v6642_v36 = vmax.f32 %v16206_v45, 0.0  ;;  %7952 = vmatmul.mubr.bf16.gmra.mrb[12].mxu0 %v20982_v46  ;;  %8338 = vmatmul.mubr.bf16.gmra.mrb[76].mxu1 %v20982_v46  ;;  %v18492_v46 = vld [vmem:[#allocation13 + $0x2e8] ss:$16 sps:$4 sm:$0xff]   ;;  %v6376_v63 = vadd.f32 %v20862_v31, %v20913_v44 }
 0x6a5   : > { %v6532_v60 = vadd.f32 %v15873_v62, %v6371_v7  ;;  %7961 = vmatprep.mubr.bf16.mxu0 %v21001_v8  ;;  %8347 = vmatprep.mubr.bf16.mxu1 %v21001_v8  ;;  %v6643_v37 = vmax.f32 %v16207_v9, 0.0  ;;  %v6641_v29 = vmax.f32 %v6529_v25, 0.0 }
 0x6a6   : > { %v21071_v35 = vpack.c.bf16 %v6642_v36, %v6639_v43  ;;  %8095 = vmatpush1.bf16.msra.mxu0 %v18465_v1  ;;  %8480 = vmatprep.subr.bf16.mxu1 %v18491_v3 }
 0x6a7   : > { %v6644_v24 = vmax.f32 %v6532_v60, 0.0  ;;  %v6200_v38 = vpop.f32.mrb[228].mxu0  ;;  %v15874_v41 = vpop.f32.mrb[36].mxu1  ;;  %v21073_v33 = vpack.c.bf16 %v6643_v37, %v6640_v19  ;;  %8096 = vmatprep.subr.bf16.mxu0 %v18482_v32  ;;  %8481 = vmatpush1.bf16.msra.mxu1 %v18489_v23  ;;  %v6379_v32 = vadd.f32 %v20864_v16, %v20913_v44 }
 0x6a8   : > { %v16208_v0 = vadd.f32 %v6200_v38, %v20910_v12  ;;  %v6202_v7 = vpop.f32.mrb[229].mxu0  ;;  %v15875_v8 = vpop.f32.mrb[37].mxu1  ;;  %8482 = vmatprep.subr.bf16.mxu1 %v18494_v61 }
 0x6a9   : > { %v21078_v45 = vpack.c.bf16 %v6644_v24, %v6641_v29  ;;  %v16209_v21 = vadd.f32 %v6202_v7, %v20916_v14  ;;  %v15876_v17 = vadd.f32 %v15875_v8, %v15874_v41  ;;  %v6204_v1 = vpop.f32.mrb[230].mxu0  ;;  %v15877_v3 = vpop.f32.mrb[38].mxu1 }
 0x6aa   : > { %v16210_v25 = vadd.f32 %v6204_v1, %v20910_v12  ;;  %v6206_v9 = vpop.f32.mrb[231].mxu0  ;;  %v15878_v62 = vpop.f32.mrb[39].mxu1  ;;  %8097 = vmatpush1.bf16.msra.mxu0 %v18480_v56  ;;  %v6645_v31 = vmax.f32 %v16208_v0, 0.0 }
 0x6ab   : > { %v6537_v23 = vadd.f32 %v15876_v17, %v6376_v63  ;;  %v16211_v43 = vadd.f32 %v6206_v9, %v20916_v14  ;;  %v15879_v36 = vadd.f32 %v15878_v62, %v15877_v3  ;;  %8483 = vmatpush1.bf16.msra.mxu1 %v18492_v46  ;;  %v6646_v19 = vmax.f32 %v16209_v21, 0.0 }
 0x6ac   : > { %v6648_v61 = vmax.f32 %v16210_v25, 0.0  ;;  %7962 = vmatmul.mubr.bf16.gmra.mrb[16].mxu0 %v20999_v5  ;;  %8348 = vmatmul.mubr.bf16.gmra.mrb[80].mxu1 %v20999_v5  ;;  %v6384_v5 = vadd.f32 %v20869_v49, %v20913_v44  ;;  %v6387_v9 = vadd.f32 %v20871_v28, %v20913_v44 }
 0x6ad   : > { %v6540_v60 = vadd.f32 %v15879_v36, %v6379_v32  ;;  %7971 = vmatprep.mubr.bf16.mxu0 %v21019_v47  ;;  %8357 = vmatprep.mubr.bf16.mxu1 %v21019_v47  ;;  %v6649_v37 = vmax.f32 %v16211_v43, 0.0  ;;  %v6647_v16 = vmax.f32 %v6537_v23, 0.0 }
 0x6ae   : > { %v21089_v56 = vpack.c.bf16 %v6648_v61, %v6645_v31 }
 0x6af   : > { %v6650_v29 = vmax.f32 %v6540_v60, 0.0  ;;  %v6210_v24 = vpop.f32.mrb[232].mxu0  ;;  %v15880_v38 = vpop.f32.mrb[40].mxu1  ;;  %v21091_v41 = vpack.c.bf16 %v6649_v37, %v6646_v19 }
 0x6b0   : > { %v16212_v46 = vadd.f32 %v6210_v24, %v20910_v12  ;;  %v6212_v0 = vpop.f32.mrb[233].mxu0  ;;  %v15881_v7 = vpop.f32.mrb[41].mxu1 }
 0x6b1   : > { %v21096_v8 = vpack.c.bf16 %v6650_v29, %v6647_v16  ;;  %v16213_v47 = vadd.f32 %v6212_v0, %v20916_v14  ;;  %v15882_v63 = vadd.f32 %v15881_v7, %v15880_v38  ;;  %v6214_v21 = vpop.f32.mrb[234].mxu0  ;;  %v15883_v17 = vpop.f32.mrb[42].mxu1 }
 0x6b2   : > { %v16214_v1 = vadd.f32 %v6214_v21, %v20910_v12  ;;  %v6216_v3 = vpop.f32.mrb[235].mxu0  ;;  %v15884_v25 = vpop.f32.mrb[43].mxu1  ;;  %v6651_v43 = vmax.f32 %v16212_v46, 0.0 }
 0x6b3   : > { %v6545_v62 = vadd.f32 %v15882_v63, %v6384_v5  ;;  %v16215_v32 = vadd.f32 %v6216_v3, %v20916_v14  ;;  %v15885_v23 = vadd.f32 %v15884_v25, %v15883_v17  ;;  %v6652_v31 = vmax.f32 %v16213_v47, 0.0 }
 0x6b4   : > { %v6654_v49 = vmax.f32 %v16214_v1, 0.0  ;;  %7972 = vmatmul.mubr.bf16.gmra.mrb[20].mxu0 %v21016_v2  ;;  %8358 = vmatmul.mubr.bf16.gmra.mrb[84].mxu1 %v21016_v2  ;;  %v6392_v2 = vadd.f32 %v20876_v52, %v20913_v44  ;;  %v6395_v1 = vadd.f32 %v20878_v10, %v20913_v44 }
 0x6b5   : > { %v6548_v36 = vadd.f32 %v15885_v23, %v6387_v9  ;;  %7981 = vmatprep.mubr.bf16.mxu0 %v21037_v34  ;;  %8367 = vmatprep.mubr.bf16.mxu1 %v21037_v34  ;;  %v6655_v61 = vmax.f32 %v16215_v32, 0.0  ;;  %v6653_v28 = vmax.f32 %v6545_v62, 0.0 }
 0x6b6   : > { %v21107_v60 = vpack.c.bf16 %v6654_v49, %v6651_v43 }
 0x6b7   : > { %v6656_v19 = vmax.f32 %v6548_v36, 0.0  ;;  %v6220_v37 = vpop.f32.mrb[236].mxu0  ;;  %v15886_v16 = vpop.f32.mrb[44].mxu1  ;;  %v21109_v29 = vpack.c.bf16 %v6655_v61, %v6652_v31 }
 0x6b8   : > { %v16216_v24 = vadd.f32 %v6220_v37, %v20910_v12  ;;  %v6222_v38 = vpop.f32.mrb[237].mxu0  ;;  %v15887_v46 = vpop.f32.mrb[45].mxu1 }
 0x6b9   : > { %v21114_v0 = vpack.c.bf16 %v6656_v19, %v6653_v28  ;;  %v16217_v34 = vadd.f32 %v6222_v38, %v20916_v14  ;;  %v15888_v7 = vadd.f32 %v15887_v46, %v15886_v16  ;;  %v6224_v5 = vpop.f32.mrb[238].mxu0  ;;  %v15889_v47 = vpop.f32.mrb[46].mxu1 }
 0x6ba   : > { %v16218_v63 = vadd.f32 %v6224_v5, %v20910_v12  ;;  %v6226_v21 = vpop.f32.mrb[239].mxu0  ;;  %v15890_v17 = vpop.f32.mrb[47].mxu1  ;;  %v6657_v62 = vmax.f32 %v16216_v24, 0.0 }
 0x6bb   : > { %v6553_v3 = vadd.f32 %v15888_v7, %v6392_v2  ;;  %v16219_v25 = vadd.f32 %v6226_v21, %v20916_v14  ;;  %v15891_v9 = vadd.f32 %v15890_v17, %v15889_v47  ;;  %v6658_v23 = vmax.f32 %v16217_v34, 0.0 }
 0x6bc   : > { %v6660_v52 = vmax.f32 %v16218_v63, 0.0  ;;  %7982 = vmatmul.mubr.bf16.gmra.mrb[24].mxu0 %v21035_v40  ;;  %8368 = vmatmul.mubr.bf16.gmra.mrb[88].mxu1 %v21035_v40  ;;  %v6400_v40 = vadd.f32 %v20883_v22, %v20913_v44  ;;  %v6403_v47 = vadd.f32 %v20885_v6, %v20913_v44 }
 0x6bd   : > { %v6556_v32 = vadd.f32 %v15891_v9, %v6395_v1  ;;  %7991 = vmatprep.mubr.bf16.mxu0 %v21055_v58  ;;  %8377 = vmatprep.mubr.bf16.mxu1 %v21055_v58  ;;  %v6661_v43 = vmax.f32 %v16219_v25, 0.0  ;;  %v6659_v10 = vmax.f32 %v6553_v3, 0.0 }
 0x6be   : > { %v21125_v49 = vpack.c.bf16 %v6660_v52, %v6657_v62 }
 0x6bf   : > { %v6662_v36 = vmax.f32 %v6556_v32, 0.0  ;;  %v6230_v31 = vpop.f32.mrb[240].mxu0  ;;  %v15892_v61 = vpop.f32.mrb[48].mxu1  ;;  %v21127_v28 = vpack.c.bf16 %v6661_v43, %v6658_v23 }
 0x6c0   : > { %v16220_v19 = vadd.f32 %v6230_v31, %v20910_v12  ;;  %v6232_v37 = vpop.f32.mrb[241].mxu0  ;;  %v15893_v16 = vpop.f32.mrb[49].mxu1 }
 0x6c1   : > { %v21132_v24 = vpack.c.bf16 %v6662_v36, %v6659_v10  ;;  %v16221_v58 = vadd.f32 %v6232_v37, %v20916_v14  ;;  %v15894_v38 = vadd.f32 %v15893_v16, %v15892_v61  ;;  %v6234_v46 = vpop.f32.mrb[242].mxu0  ;;  %v15895_v2 = vpop.f32.mrb[50].mxu1 }
 0x6c2   : > { %v16222_v34 = vadd.f32 %v6234_v46, %v20910_v12  ;;  %v6236_v7 = vpop.f32.mrb[243].mxu0  ;;  %v15896_v5 = vpop.f32.mrb[51].mxu1  ;;  %v6663_v1 = vmax.f32 %v16220_v19, 0.0  ;;  %v6411_v46 = vadd.f32 %v20892_v20, %v20913_v44 }
 0x6c3   : > { %v6561_v63 = vadd.f32 %v15894_v38, %v6400_v40  ;;  %v16223_v21 = vadd.f32 %v6236_v7, %v20916_v14  ;;  %v15897_v17 = vadd.f32 %v15896_v5, %v15895_v2  ;;  %v6664_v25 = vmax.f32 %v16221_v58, 0.0 }
 0x6c4   : > { %v6666_v22 = vmax.f32 %v16222_v34, 0.0  ;;  %7992 = vmatmul.mubr.bf16.gmra.mrb[28].mxu0 %v21053_v48  ;;  %8378 = vmatmul.mubr.bf16.gmra.mrb[92].mxu1 %v21053_v48  ;;  %v6408_v48 = vadd.f32 %v20890_v4, %v20913_v44 }
 0x6c5   : > { %v6564_v3 = vadd.f32 %v15897_v17, %v6403_v47  ;;  %8001 = vmatprep.mubr.bf16.mxu0 %v21073_v33  ;;  %8387 = vmatprep.mubr.bf16.mxu1 %v21073_v33  ;;  %v6667_v9 = vmax.f32 %v16223_v21, 0.0  ;;  %v6665_v6 = vmax.f32 %v6561_v63, 0.0 }
 0x6c6   : > { %v21143_v62 = vpack.c.bf16 %v6666_v22, %v6663_v1 }
 0x6c7   : > { %v6668_v52 = vmax.f32 %v6564_v3, 0.0  ;;  %v6240_v32 = vpop.f32.mrb[244].mxu0  ;;  %v15898_v23 = vpop.f32.mrb[52].mxu1  ;;  %v21145_v43 = vpack.c.bf16 %v6667_v9, %v6664_v25 }
 0x6c8   : > { %v16224_v10 = vadd.f32 %v6240_v32, %v20910_v12  ;;  %v6242_v36 = vpop.f32.mrb[245].mxu0  ;;  %v15899_v31 = vpop.f32.mrb[53].mxu1 }
 0x6c9   : > { %v21150_v61 = vpack.c.bf16 %v6668_v52, %v6665_v6  ;;  %v16225_v33 = vadd.f32 %v6242_v36, %v20916_v14  ;;  %v15900_v19 = vadd.f32 %v15899_v31, %v15898_v23  ;;  %v6244_v37 = vpop.f32.mrb[246].mxu0  ;;  %v15901_v16 = vpop.f32.mrb[54].mxu1 }
 0x6ca   : > { %v16226_v40 = vadd.f32 %v6244_v37, %v20910_v12  ;;  %v6246_v58 = vpop.f32.mrb[247].mxu0  ;;  %v15902_v38 = vpop.f32.mrb[55].mxu1  ;;  %v6669_v5 = vmax.f32 %v16224_v10, 0.0 }
 0x6cb   : > { %v6569_v2 = vadd.f32 %v15900_v19, %v6408_v48  ;;  %v16227_v34 = vadd.f32 %v6246_v58, %v20916_v14  ;;  %v15903_v7 = vadd.f32 %v15902_v38, %v15901_v16  ;;  %v6670_v63 = vmax.f32 %v16225_v33, 0.0 }
 0x6cc   : > { %v6672_v4 = vmax.f32 %v16226_v40, 0.0  ;;  %8002 = vmatmul.mubr.bf16.gmra.mrb[32].mxu0 %v21071_v35  ;;  %8388 = vmatmul.mubr.bf16.gmra.mrb[96].mxu1 %v21071_v35  ;;  %v6416_v35 = vadd.f32 %v20897_v54, %v20913_v44  ;;  %v6419_v19 = vadd.f32 %v20899_v53, %v20913_v44 }
 0x6cd   : > { %v6572_v47 = vadd.f32 %v15903_v7, %v6411_v46  ;;  %8011 = vmatprep.mubr.bf16.mxu0 %v21091_v41  ;;  %8397 = vmatprep.mubr.bf16.mxu1 %v21091_v41  ;;  %v6673_v21 = vmax.f32 %v16227_v34, 0.0  ;;  %v6671_v20 = vmax.f32 %v6569_v2, 0.0 }
 0x6ce   : > { %v21161_v17 = vpack.c.bf16 %v6672_v4, %v6669_v5 }
 0x6cf   : > { %v6674_v1 = vmax.f32 %v6572_v47, 0.0  ;;  %v6250_v22 = vpop.f32.mrb[248].mxu0  ;;  %v15904_v3 = vpop.f32.mrb[56].mxu1  ;;  %v21163_v25 = vpack.c.bf16 %v6673_v21, %v6670_v63 }
 0x6d0   : > { %v16228_v9 = vadd.f32 %v6250_v22, %v20910_v12  ;;  %v6252_v6 = vpop.f32.mrb[249].mxu0  ;;  %v15905_v52 = vpop.f32.mrb[57].mxu1 }
 0x6d1   : > { %v21168_v32 = vpack.c.bf16 %v6674_v1, %v6671_v20  ;;  %v16229_v41 = vadd.f32 %v6252_v6, %v20916_v14  ;;  %v15906_v23 = vadd.f32 %v15905_v52, %v15904_v3  ;;  %v6254_v10 = vpop.f32.mrb[250].mxu0  ;;  %v15907_v36 = vpop.f32.mrb[58].mxu1 }
 0x6d2   : > { %v16230_v31 = vadd.f32 %v6254_v10, %v20910_v12  ;;  %v6256_v48 = vpop.f32.mrb[251].mxu0  ;;  %v15908_v33 = vpop.f32.mrb[59].mxu1  ;;  %v6675_v58 = vmax.f32 %v16228_v9, 0.0 }
 0x6d3   : > { %v6577_v37 = vadd.f32 %v15906_v23, %v6416_v35  ;;  %v16231_v16 = vadd.f32 %v6256_v48, %v20916_v14  ;;  %v15909_v40 = vadd.f32 %v15908_v33, %v15907_v36  ;;  %v6676_v46 = vmax.f32 %v16229_v41, 0.0 }
 0x6d4   : > { %v6678_v54 = vmax.f32 %v16230_v31, 0.0  ;;  %8012 = vmatmul.mubr.bf16.gmra.mrb[36].mxu0 %v21089_v56  ;;  %8398 = vmatmul.mubr.bf16.gmra.mrb[100].mxu1 %v21089_v56  ;;  %v6424_v56 = vadd.f32 %v20904_v13, %v20913_v44  ;;  %v6427_v41 = vadd.f32 %v20906_v15, %v20913_v44 }
 0x6d5   : > { %v6580_v38 = vadd.f32 %v15909_v40, %v6419_v19  ;;  %8021 = vmatprep.mubr.bf16.mxu0 %v21109_v29  ;;  %8407 = vmatprep.mubr.bf16.mxu1 %v21109_v29  ;;  %v6679_v2 = vmax.f32 %v16231_v16, 0.0  ;;  %v6677_v7 = vmax.f32 %v6577_v37, 0.0  ;;  %v18525_v40 = vld [vmem:[#allocation16 + $0x28] ss:$16 sps:$4 sm:$0xff]  }
 0x6d6   : > { %v6729_v34 = vpack.c.bf16 %v6678_v54, %v6675_v58  ;;  %v18503_v58 = vld [vmem:[#allocation16 + $0x44] ss:$16 sps:$4 sm:$0xff]   ;;  %v18533_v54 = vld [vmem:[#allocation16 + $0x4c] ss:$16 sps:$4 sm:$0xff]  }
 0x6d7   : > { %v6680_v53 = vmax.f32 %v6580_v38, 0.0  ;;  %v6260_v5 = vpop.f32.mrb[252].mxu0  ;;  %v15910_v4 = vpop.f32.mrb[60].mxu1  ;;  %v6730_v47 = vpack.c.bf16 %v6679_v2, %v6676_v46  ;;  %v18501_v38 = vld [vmem:[#allocation16 + $0x40] ss:$16 sps:$4 sm:$0xff]  }
 0x6d8   : > { %v16232_v63 = vadd.f32 %v6260_v5, %v20910_v12  ;;  %v6262_v21 = vpop.f32.mrb[253].mxu0  ;;  %v15911_v20 = vpop.f32.mrb[61].mxu1  ;;  %v18531_v46 = vld [vmem:[#allocation16 + $0x48] ss:$16 sps:$4 sm:$0xff]   ;;  %v18506_v2 = vld [vmem:[#allocation16 + $0x64] ss:$16 sps:$4 sm:$0xff]  }
 0x6d9   : > { %v21182_v1 = vpack.c.bf16 %v6680_v53, %v6677_v7  ;;  %v16233_v22 = vadd.f32 %v6262_v21, %v20916_v14  ;;  %v15912_v29 = vadd.f32 %v15911_v20, %v15910_v4  ;;  %v6264_v3 = vpop.f32.mrb[254].mxu0  ;;  %v15913_v9 = vpop.f32.mrb[62].mxu1  ;;  %v18534_v7 = vld [vmem:[#allocation16 + $0x68] ss:$16 sps:$4 sm:$0xff]   ;;  %v18509_v53 = vld [vmem:[#allocation16 + $0x84] ss:$16 sps:$4 sm:$0xff]  }
 0x6da   : > { %v16234_v6 = vadd.f32 %v6264_v3, %v20910_v12  ;;  %v6266_v52 = vpop.f32.mrb[255].mxu0  ;;  %v15914_v35 = vpop.f32.mrb[63].mxu1  ;;  %v6681_v31 = vmax.f32 %v16232_v63, 0.0  ;;  %v18542_v5 = vld [vmem:[#allocation16 + $0x8c] ss:$16 sps:$4 sm:$0xff]  }
 0x6db   : > { %v6585_v23 = vadd.f32 %v15912_v29, %v6424_v56  ;;  %v16235_v10 = vadd.f32 %v6266_v52, %v20916_v14  ;;  %v15915_v36 = vadd.f32 %v15914_v35, %v15913_v9  ;;  %v6682_v12 = vmax.f32 %v16233_v22, 0.0  ;;  %v18497_v14 = vld [vmem:[#allocation16 + $0x4] ss:$16 sps:$4 sm:$0xff]   ;;  %v18507_v4 = vld [vmem:[#allocation16 + $0x80] ss:$16 sps:$4 sm:$0xff]  }
 0x6dc   : > { %v6684_v13 = vmax.f32 %v16234_v6, 0.0  ;;  %8022 = vmatmul.mubr.bf16.gmra.mrb[40].mxu0 %v21107_v60  ;;  %8408 = vmatmul.mubr.bf16.gmra.mrb[104].mxu1 %v21107_v60  ;;  %v22556_v60 = vmov 0   ;;  %v18512_v63 = vld [vmem:[#allocation16 + $0xa4] ss:$16 sps:$4 sm:$0xff]   ;;  %v18510_v21 = vld [vmem:[#allocation16 + $0xa0] ss:$16 sps:$4 sm:$0xff]  }
 0x6dd   : > { %v6588_v48 = vadd.f32 %v15915_v36, %v6427_v41  ;;  %8031 = vmatprep.mubr.bf16.mxu0 %v21127_v28  ;;  %8417 = vmatprep.mubr.bf16.mxu1 %v21127_v28  ;;  %v6685_v33 = vmax.f32 %v16235_v10, 0.0  ;;  %v6683_v37 = vmax.f32 %v6585_v23, 0.0  ;;  %v18495_v28 = vld [vmem:[#allocation16] ss:$16 sps:$4 sm:$0xff]   ;;  %v18543_v20 = vld [vmem:[#allocation16 + $0xa8] ss:$16 sps:$4 sm:$0xff]  }
 0x6de   : > { %v6732_v19 = vpack.c.bf16 %v6684_v13, %v6681_v31  ;;  %9793 = vmatprep.subr.bf16.mxu0 %v18497_v14  ;;  %v18515_v56 = vld [vmem:[#allocation16 + $0xc4] ss:$16 sps:$4 sm:$0xff]   ;;  %v18551_v22 = vld [vmem:[#allocation16 + $0xcc] ss:$16 sps:$4 sm:$0xff]   ;;  %v18513_v29 = vld [vmem:[#allocation16 + $0xc0] ss:$16 sps:$4 sm:$0xff]  }
 0x6df   : > { %v6686_v15 = vmax.f32 %v6588_v48, 0.0  ;;  %v6733_v44 = vpack.c.bf16 %v6685_v33, %v6682_v12  ;;  %v18549_v3 = vld [vmem:[#allocation16 + $0xc8] ss:$16 sps:$4 sm:$0xff]   ;;  %v18518_v9 = vld [vmem:[#allocation16 + $0xe4] ss:$16 sps:$4 sm:$0xff]  }
 0x6e0   : > { %v18516_v6 = vld [vmem:[#allocation16 + $0xe0] ss:$16 sps:$4 sm:$0xff]   ;;  %v18552_v52 = vld [vmem:[#allocation16 + $0xe8] ss:$16 sps:$4 sm:$0xff]   ;;  %v18521_v35 = vld [vmem:[#allocation16 + $0x104] ss:$16 sps:$4 sm:$0xff]  }
 0x6e1   : > { %v21193_v16 = vpack.c.bf16 %v6686_v15, %v6683_v37  ;;  %v18560_v41 = vld [vmem:[#allocation16 + $0x10c] ss:$16 sps:$4 sm:$0xff]   ;;  %v18519_v23 = vld [vmem:[#allocation16 + $0x100] ss:$16 sps:$4 sm:$0xff]   ;;  %v18558_v10 = vld [vmem:[#allocation16 + $0x108] ss:$16 sps:$4 sm:$0xff]  }
 0x6e2   : > { %v18530_v36 = vld [vmem:[#allocation16 + $0x124] ss:$16 sps:$4 sm:$0xff]   ;;  %v18528_v31 = vld [vmem:[#allocation16 + $0x120] ss:$16 sps:$4 sm:$0xff]   ;;  %v18561_v13 = vld [vmem:[#allocation16 + $0x128] ss:$16 sps:$4 sm:$0xff]  }
 0x6e3   : > { %v18539_v48 = vld [vmem:[#allocation16 + $0x144] ss:$16 sps:$4 sm:$0xff]   ;;  %v18569_v12 = vld [vmem:[#allocation16 + $0x14c] ss:$16 sps:$4 sm:$0xff]   ;;  %v18537_v33 = vld [vmem:[#allocation16 + $0x140] ss:$16 sps:$4 sm:$0xff]  }
 0x6e4   : > { %8032 = vmatmul.mubr.bf16.gmra.mrb[44].mxu0 %v21125_v49  ;;  %8418 = vmatmul.mubr.bf16.gmra.mrb[108].mxu1 %v21125_v49  ;;  %v18524_v49 = vld [vmem:[#allocation16 + $0xc] ss:$16 sps:$4 sm:$0xff]   ;;  %v18548_v37 = vld [vmem:[#allocation16 + $0x164] ss:$16 sps:$4 sm:$0xff]   ;;  %v18546_v15 = vld [vmem:[#allocation16 + $0x160] ss:$16 sps:$4 sm:$0xff]  }
 0x6e5   : > { %8041 = vmatprep.mubr.bf16.mxu0 %v21145_v43  ;;  %8427 = vmatprep.mubr.bf16.mxu1 %v21145_v43  ;;  %v18500_v43 = vld [vmem:[#allocation16 + $0x24] ss:$16 sps:$4 sm:$0xff]  }
 0x6e6   : > { %10179 = vmatprep.subr.bf16.mxu1 %v18524_v49  ;;  %v18557_v14 = vld [vmem:[#allocation16 + $0x184] ss:$16 sps:$4 sm:$0xff]   ;;  %v18578_v49 = vld [vmem:[#allocation16 + $0x18c] ss:$16 sps:$4 sm:$0xff]  }
 0x6ec   : > { %8042 = vmatmul.mubr.bf16.gmra.mrb[48].mxu0 %v21143_v62  ;;  %8428 = vmatmul.mubr.bf16.gmra.mrb[112].mxu1 %v21143_v62  ;;  %v18522_v62 = vld [vmem:[#allocation16 + $0x8] ss:$16 sps:$4 sm:$0xff]  }
 0x6ed   : > { %8051 = vmatprep.mubr.bf16.mxu0 %v21163_v25  ;;  %8437 = vmatprep.mubr.bf16.mxu1 %v21163_v25  ;;  %v18527_v25 = vld [vmem:[#allocation16 + $0x2c] ss:$16 sps:$4 sm:$0xff]  }
 0x6f4   : > { %8052 = vmatmul.mubr.bf16.gmra.mrb[52].mxu0 %v21161_v17  ;;  %8438 = vmatmul.mubr.bf16.gmra.mrb[116].mxu1 %v21161_v17  ;;  %v18498_v17 = vld [vmem:[#allocation16 + $0x20] ss:$16 sps:$4 sm:$0xff]  }
 0x6f5   : > { %8061 = vmatprep.mubr.bf16.mxu0 %v6730_v47  ;;  %8447 = vmatprep.mubr.bf16.mxu1 %v6730_v47  ;;  %v18540_v47 = vld [vmem:[#allocation16 + $0x88] ss:$16 sps:$4 sm:$0xff]  }
 0x6fc   : > { %8062 = vmatmul.mubr.bf16.gmra.mrb[56].mxu0 %v6729_v34  ;;  %8448 = vmatmul.mubr.bf16.gmra.mrb[120].mxu1 %v6729_v34  ;;  %v18504_v34 = vld [vmem:[#allocation16 + $0x60] ss:$16 sps:$4 sm:$0xff]  }
 0x6fd   : > { %8071 = vmatprep.mubr.bf16.mxu0 %v6733_v44  ;;  %8457 = vmatprep.mubr.bf16.mxu1 %v6733_v44  ;;  %v18570_v44 = vld [vmem:[#allocation16 + $0x168] ss:$16 sps:$4 sm:$0xff]  }
 0x704   : > { %8072 = vmatmul.mubr.bf16.gmra.mrb[60].mxu0 %v6732_v19  ;;  %8458 = vmatmul.mubr.bf16.gmra.mrb[124].mxu1 %v6732_v19  ;;  %v18567_v19 = vld [vmem:[#allocation16 + $0x148] ss:$16 sps:$4 sm:$0xff]  }
 0x705   : > { %8114 = vmatprep.mubr.bf16.mxu0 %v22556_v60  ;;  %8500 = vmatprep.mubr.bf16.mxu1 %v22556_v60 }
 0x70c   : > { %8115 = vmatmul.mubr.bf16.vlgmr.msra.gmra.mrb[0].mxu0 %v20938_v18  ;;  %8501 = vmatmul.mubr.bf16.vlgmr.msra.gmra.mrb[64].mxu1 %v20938_v18  ;;  %v18536_v18 = vld [vmem:[#allocation16 + $0x6c] ss:$16 sps:$4 sm:$0xff]  }
 0x70d   : > { %8124 = vmatprep.mubr.bf16.mxu0 %v22556_v60  ;;  %8510 = vmatprep.mubr.bf16.mxu1 %v22556_v60 }
 0x70e   : > { %9794 = vmatpush1.bf16.msra.mxu0 %v18495_v28  ;;  %10180 = vmatpush1.bf16.msra.mxu1 %v18522_v62  ;;  %v18555_v28 = vld [vmem:[#allocation16 + $0x180] ss:$16 sps:$4 sm:$0xff]   ;;  %v18576_v62 = vld [vmem:[#allocation16 + $0x188] ss:$16 sps:$4 sm:$0xff]  }
 0x70f   : > { %9795 = vmatprep.subr.bf16.mxu0 %v18500_v43  ;;  %10181 = vmatprep.subr.bf16.mxu1 %v18527_v25  ;;  %v18566_v43 = vld [vmem:[#allocation16 + $0x1a4] ss:$16 sps:$4 sm:$0xff]   ;;  %v18564_v25 = vld [vmem:[#allocation16 + $0x1a0] ss:$16 sps:$4 sm:$0xff]  }
 0x712   : > { %9796 = vmatpush1.bf16.msra.mxu0 %v18498_v17  ;;  %10182 = vmatpush1.bf16.msra.mxu1 %v18525_v40  ;;  %v18579_v17 = vld [vmem:[#allocation16 + $0x1a8] ss:$16 sps:$4 sm:$0xff]   ;;  %v18575_v40 = vld [vmem:[#allocation16 + $0x1c4] ss:$16 sps:$4 sm:$0xff]  }
 0x713   : > { %9797 = vmatprep.subr.bf16.mxu0 %v18503_v58  ;;  %10183 = vmatprep.subr.bf16.mxu1 %v18533_v54  ;;  %v18573_v58 = vld [vmem:[#allocation16 + $0x1c0] ss:$16 sps:$4 sm:$0xff]  }
 0x714   : > { %8125 = vmatmul.mubr.bf16.gmra.mrb[4].mxu0 %v20955_v26  ;;  %8511 = vmatmul.mubr.bf16.gmra.mrb[68].mxu1 %v20955_v26  ;;  %v18545_v26 = vld [vmem:[#allocation16 + $0xac] ss:$16 sps:$4 sm:$0xff]   ;;  %v18582_v54 = vld [vmem:[#allocation16 + $0x1e0] ss:$16 sps:$4 sm:$0xff]  }
 0x715   : > { %8134 = vmatprep.mubr.bf16.mxu0 %v22556_v60  ;;  %8520 = vmatprep.mubr.bf16.mxu1 %v22556_v60 }
 0x716   : > { %9798 = vmatpush1.bf16.msra.mxu0 %v18501_v38  ;;  %10184 = vmatpush1.bf16.msra.mxu1 %v18531_v46 }
 0x717   : > { %9799 = vmatprep.subr.bf16.mxu0 %v18506_v2  ;;  %10185 = vmatprep.subr.bf16.mxu1 %v18536_v18 }
 0x71a   : > { %9800 = vmatpush1.bf16.msra.mxu0 %v18504_v34  ;;  %10186 = vmatpush1.bf16.msra.mxu1 %v18534_v7 }
 0x71b   : > { %9801 = vmatprep.subr.bf16.mxu0 %v18509_v53  ;;  %10187 = vmatprep.subr.bf16.mxu1 %v18542_v5 }
 0x71c   : > { %8135 = vmatmul.mubr.bf16.gmra.mrb[8].mxu0 %v20972_v11  ;;  %8521 = vmatmul.mubr.bf16.gmra.mrb[72].mxu1 %v20972_v11  ;;  %v18554_v11 = vld [vmem:[#allocation16 + $0xec] ss:$16 sps:$4 sm:$0xff]  }
 0x71d   : > { %8144 = vmatprep.mubr.bf16.mxu0 %v22556_v60  ;;  %8530 = vmatprep.mubr.bf16.mxu1 %v22556_v60 }
 0x71e   : > { %9802 = vmatpush1.bf16.msra.mxu0 %v18507_v4  ;;  %10188 = vmatpush1.bf16.msra.mxu1 %v18540_v47 }
 0x71f   : > { %9803 = vmatprep.subr.bf16.mxu0 %v18512_v63  ;;  %10189 = vmatprep.subr.bf16.mxu1 %v18545_v26 }
 0x722   : > { %9804 = vmatpush1.bf16.msra.mxu0 %v18510_v21  ;;  %10190 = vmatpush1.bf16.msra.mxu1 %v18543_v20 }
 0x723   : > { %9805 = vmatprep.subr.bf16.mxu0 %v18515_v56  ;;  %10191 = vmatprep.subr.bf16.mxu1 %v18551_v22 }
 0x724   : > { %8145 = vmatmul.mubr.bf16.gmra.mrb[12].mxu0 %v20989_v39  ;;  %8531 = vmatmul.mubr.bf16.gmra.mrb[76].mxu1 %v20989_v39  ;;  %v18563_v39 = vld [vmem:[#allocation16 + $0x12c] ss:$16 sps:$4 sm:$0xff]  }
 0x725   : > { %8154 = vmatprep.mubr.bf16.mxu0 %v22556_v60  ;;  %8540 = vmatprep.mubr.bf16.mxu1 %v22556_v60 }
 0x726   : > { %9806 = vmatpush1.bf16.msra.mxu0 %v18513_v29  ;;  %10192 = vmatpush1.bf16.msra.mxu1 %v18549_v3 }
 0x727   : > { %9807 = vmatprep.subr.bf16.mxu0 %v18518_v9  ;;  %10193 = vmatprep.subr.bf16.mxu1 %v18554_v11 }
 0x72a   : > { %9808 = vmatpush1.bf16.msra.mxu0 %v18516_v6  ;;  %10194 = vmatpush1.bf16.msra.mxu1 %v18552_v52 }
 0x72b   : > { %9809 = vmatprep.subr.bf16.mxu0 %v18521_v35  ;;  %10195 = vmatprep.subr.bf16.mxu1 %v18560_v41 }
 0x72c   : > { %8155 = vmatmul.mubr.bf16.gmra.mrb[16].mxu0 %v21006_v42  ;;  %8541 = vmatmul.mubr.bf16.gmra.mrb[80].mxu1 %v21006_v42  ;;  %v18572_v42 = vld [vmem:[#allocation16 + $0x16c] ss:$16 sps:$4 sm:$0xff]  }
 0x72d   : > { %8164 = vmatprep.mubr.bf16.mxu0 %v22556_v60  ;;  %8550 = vmatprep.mubr.bf16.mxu1 %v22556_v60 }
 0x72e   : > { %9810 = vmatpush1.bf16.msra.mxu0 %v18519_v23  ;;  %10196 = vmatpush1.bf16.msra.mxu1 %v18558_v10 }
 0x72f   : > { %9811 = vmatprep.subr.bf16.mxu0 %v18530_v36  ;;  %10197 = vmatprep.subr.bf16.mxu1 %v18563_v39 }
 0x732   : > { %9812 = vmatpush1.bf16.msra.mxu0 %v18528_v31  ;;  %10198 = vmatpush1.bf16.msra.mxu1 %v18561_v13 }
 0x733   : > { %9813 = vmatprep.subr.bf16.mxu0 %v18539_v48  ;;  %10199 = vmatprep.subr.bf16.mxu1 %v18569_v12  ;;  %v18591_v12 = vld [vmem:[#allocation16 + $0x200] ss:$16 sps:$4 sm:$0xff]  }
 0x734   : > { %8165 = vmatmul.mubr.bf16.gmra.mrb[20].mxu0 %v21024_v59  ;;  %8551 = vmatmul.mubr.bf16.gmra.mrb[84].mxu1 %v21024_v59  ;;  %v18581_v59 = vld [vmem:[#allocation16 + $0x1ac] ss:$16 sps:$4 sm:$0xff]  }
 0x735   : > { %8174 = vmatprep.mubr.bf16.mxu0 %v22556_v60  ;;  %8560 = vmatprep.mubr.bf16.mxu1 %v22556_v60 }
 0x736   : > { %9814 = vmatpush1.bf16.msra.mxu0 %v18537_v33  ;;  %10200 = vmatpush1.bf16.msra.mxu1 %v18567_v19  ;;  %v18618_v33 = vld [vmem:[#allocation16 + $0x208] ss:$16 sps:$4 sm:$0xff]  }
 0x737   : > { %9815 = vmatprep.subr.bf16.mxu0 %v18548_v37  ;;  %10201 = vmatprep.subr.bf16.mxu1 %v18572_v42 }
 0x73a   : > { %9816 = vmatpush1.bf16.msra.mxu0 %v18546_v15  ;;  %10202 = vmatpush1.bf16.msra.mxu1 %v18570_v44  ;;  %v18596_v44 = vld [vmem:[#allocation16 + $0x224] ss:$16 sps:$4 sm:$0xff]  }
 0x73b   : > { %9817 = vmatprep.subr.bf16.mxu0 %v18557_v14  ;;  %10203 = vmatprep.subr.bf16.mxu1 %v18578_v49  ;;  %v18623_v14 = vld [vmem:[#allocation16 + $0x22c] ss:$16 sps:$4 sm:$0xff]  }
 0x73c   : > { %8175 = vmatmul.mubr.bf16.gmra.mrb[24].mxu0 %v21042_v50  ;;  %8561 = vmatmul.mubr.bf16.gmra.mrb[88].mxu1 %v21042_v50  ;;  %v18587_v50 = vld [vmem:[#allocation16 + $0x1cc] ss:$16 sps:$4 sm:$0xff]  }
 0x73d   : > { %8184 = vmatprep.mubr.bf16.mxu0 %v22556_v60  ;;  %8570 = vmatprep.mubr.bf16.mxu1 %v22556_v60 }
 0x73e   : > { %9818 = vmatpush1.bf16.msra.mxu0 %v18555_v28  ;;  %10204 = vmatpush1.bf16.msra.mxu1 %v18576_v62 }
 0x73f   : > { %9819 = vmatprep.subr.bf16.mxu0 %v18566_v43  ;;  %10205 = vmatprep.subr.bf16.mxu1 %v18581_v59 }
 0x742   : > { %9820 = vmatpush1.bf16.msra.mxu0 %v18564_v25  ;;  %10206 = vmatpush1.bf16.msra.mxu1 %v18579_v17 }
 0x743   : > { %9821 = vmatprep.subr.bf16.mxu0 %v18575_v40  ;;  %10207 = vmatprep.subr.bf16.mxu1 %v18587_v50 }
 0x744   : > { %8185 = vmatmul.mubr.bf16.gmra.mrb[28].mxu0 %v21060_v51  ;;  %8571 = vmatmul.mubr.bf16.gmra.mrb[92].mxu1 %v21060_v51  ;;  %v18585_v51 = vld [vmem:[#allocation16 + $0x1c8] ss:$16 sps:$4 sm:$0xff]  }
 0x745   : > { %8194 = vmatprep.mubr.bf16.mxu0 %v22556_v60  ;;  %8580 = vmatprep.mubr.bf16.mxu1 %v22556_v60 }
 0x746   : > { %9822 = vmatpush1.bf16.msra.mxu0 %v18573_v58  ;;  %10208 = vmatpush1.bf16.msra.mxu1 %v18585_v51  ;;  %v18594_v51 = vld [vmem:[#allocation16 + $0x220] ss:$16 sps:$4 sm:$0xff]  }
 0x74c   : > { %8195 = vmatmul.mubr.bf16.gmra.mrb[32].mxu0 %v21078_v45  ;;  %8581 = vmatmul.mubr.bf16.gmra.mrb[96].mxu1 %v21078_v45  ;;  %v18584_v45 = vld [vmem:[#allocation16 + $0x1e4] ss:$16 sps:$4 sm:$0xff]  }
 0x74d   : > { %8204 = vmatprep.mubr.bf16.mxu0 %v22556_v60  ;;  %8590 = vmatprep.mubr.bf16.mxu1 %v22556_v60 }
 0x74e   : > { %9823 = vmatprep.subr.bf16.mxu0 %v18584_v45  ;;  %v18599_v45 = vld [vmem:[#allocation16 + $0x244] ss:$16 sps:$4 sm:$0xff]  }
 0x74f   : > { %9824 = vmatpush1.bf16.msra.mxu0 %v18582_v54 }
 0x754   : > { %8205 = vmatmul.mubr.bf16.gmra.mrb[36].mxu0 %v21096_v8  ;;  %8591 = vmatmul.mubr.bf16.gmra.mrb[100].mxu1 %v21096_v8  ;;  %v18590_v8 = vld [vmem:[#allocation16 + $0x1ec] ss:$16 sps:$4 sm:$0xff]  }
 0x755   : > { %8214 = vmatprep.mubr.bf16.mxu0 %v22556_v60  ;;  %8600 = vmatprep.mubr.bf16.mxu1 %v22556_v60 }
 0x756   : > { %10209 = vmatprep.subr.bf16.mxu1 %v18590_v8  ;;  %v18621_v8 = vld [vmem:[#allocation16 + $0x228] ss:$16 sps:$4 sm:$0xff]  }
 0x75c   : > { %8215 = vmatmul.mubr.bf16.gmra.mrb[40].mxu0 %v21114_v0  ;;  %8601 = vmatmul.mubr.bf16.gmra.mrb[104].mxu1 %v21114_v0  ;;  %v18588_v0 = vld [vmem:[#allocation16 + $0x1e8] ss:$16 sps:$4 sm:$0xff]  }
 0x75d   : > { %8224 = vmatprep.mubr.bf16.mxu0 %v22556_v60  ;;  %8610 = vmatprep.mubr.bf16.mxu1 %v22556_v60 }
 0x75e   : > { %10210 = vmatpush1.bf16.msra.mxu1 %v18588_v0 }
 0x764   : > { %8225 = vmatmul.mubr.bf16.gmra.mrb[44].mxu0 %v21132_v24  ;;  %8611 = vmatmul.mubr.bf16.gmra.mrb[108].mxu1 %v21132_v24  ;;  %v18593_v24 = vld [vmem:[#allocation16 + $0x204] ss:$16 sps:$4 sm:$0xff]  }
 0x765   : > { %8234 = vmatprep.mubr.bf16.mxu0 %v22556_v60  ;;  %8620 = vmatprep.mubr.bf16.mxu1 %v22556_v60 }
 0x766   : > { %9986 = vmatprep.subr.bf16.mxu0 %v18593_v24 }
 0x76c   : > { %8235 = vmatmul.mubr.bf16.gmra.mrb[48].mxu0 %v21150_v61  ;;  %8621 = vmatmul.mubr.bf16.gmra.mrb[112].mxu1 %v21150_v61  ;;  %v18620_v61 = vld [vmem:[#allocation16 + $0x20c] ss:$16 sps:$4 sm:$0xff]  }
 0x76d   : > { %8244 = vmatprep.mubr.bf16.mxu0 %v22556_v60  ;;  %8630 = vmatprep.mubr.bf16.mxu1 %v22556_v60 }
 0x76e   : > { %10372 = vmatprep.subr.bf16.mxu1 %v18620_v61 }
 0x774   : > { %8245 = vmatmul.mubr.bf16.gmra.mrb[52].mxu0 %v21168_v32  ;;  %8631 = vmatmul.mubr.bf16.gmra.mrb[116].mxu1 %v21168_v32  ;;  %v8661_v32 = vld [vmem:[%s22557_s17] sm:$0xf]  ;;  %s22375_s17 = scalar_lea.vmem %s22563_s11, %s14775_s4 }
 0x775   : > { %8254 = vmatprep.mubr.bf16.mxu0 %v22556_v60  ;;  %8640 = vmatprep.mubr.bf16.mxu1 %v22556_v60  ;;  %v21273_v38 = vrot.slane %v8661_v32, %v19991_v55  ;;  %v21276_v46 = vrot.slane %v8661_v32, %v20012_v27 }
 0x77c   : > { %8255 = vmatmul.mubr.bf16.gmra.mrb[56].mxu0 %v21182_v1  ;;  %8641 = vmatmul.mubr.bf16.gmra.mrb[120].mxu1 %v21182_v1  ;;  %v21279_v1 = vrot.slane %v8661_v32, %v19996_v57 }
 0x77d   : > { %8264 = vmatprep.mubr.bf16.mxu0 %v22556_v60  ;;  %8650 = vmatprep.mubr.bf16.mxu1 %v22556_v60  ;;  %v21282_v60 = vrot.slane %v8661_v32, %v20014_v30  ;;  %v18629_v32 = vld [vmem:[#allocation16 + $0x24c] ss:$16 sps:$4 sm:$0xff]  }
 0x784   : > { %8265 = vmatmul.mubr.bf16.gmra.mrb[60].mxu0 %v21193_v16  ;;  %8651 = vmatmul.mubr.bf16.gmra.mrb[124].mxu1 %v21193_v16 }
 0x7df   : > { %v8116_v2 = vpop.f32.mrb[0].mxu0  ;;  %v8502_v16 = vpop.f32.mrb[64].mxu1 }
 0x7e0   : > { %v8683_v18 = vadd.f32 %v21273_v38, %v8116_v2  ;;  %v8685_v34 = vadd.f32 %v21276_v46, %v8502_v16  ;;  %v8118_v7 = vpop.f32.mrb[1].mxu0  ;;  %v8504_v53 = vpop.f32.mrb[65].mxu1 }
 0x7e1   : > { %v8684_v5 = vadd.f32 %v21279_v1, %v8118_v7  ;;  %v8686_v4 = vadd.f32 %v21282_v60, %v8504_v53  ;;  %v8120_v47 = vpop.f32.mrb[2].mxu0  ;;  %v8506_v63 = vpop.f32.mrb[66].mxu1 }
 0x7e2   : > { %v8687_v26 = vadd.f32 %v21273_v38, %v8120_v47  ;;  %v8689_v21 = vadd.f32 %v21276_v46, %v8506_v63  ;;  %v8122_v20 = vpop.f32.mrb[3].mxu0  ;;  %v8508_v56 = vpop.f32.mrb[67].mxu1  ;;  %v8811_v3 = vmax.f32 %v8683_v18, 0.0  ;;  %v8813_v9 = vmax.f32 %v8685_v34, 0.0 }
 0x7e3   : > { %v8688_v22 = vadd.f32 %v21279_v1, %v8122_v20  ;;  %v8690_v29 = vadd.f32 %v21282_v60, %v8508_v56  ;;  %v8812_v52 = vmax.f32 %v8684_v5, 0.0  ;;  %v8814_v35 = vmax.f32 %v8686_v4, 0.0 }
 0x7e4   : > { %v8815_v11 = vmax.f32 %v8687_v26, 0.0  ;;  %v8817_v6 = vmax.f32 %v8689_v21, 0.0  ;;  %v18597_v26 = vld [vmem:[#allocation16 + $0x240] ss:$16 sps:$4 sm:$0xff]   ;;  %v18627_v21 = vld [vmem:[#allocation16 + $0x248] ss:$16 sps:$4 sm:$0xff]  }
 0x7e5   : > { %v8816_v41 = vmax.f32 %v8688_v22, 0.0  ;;  %v8818_v23 = vmax.f32 %v8690_v29, 0.0 }
 0x7e6   : > { %v8939_v10 = vpack.c.bf16 %v8815_v11, %v8811_v3  ;;  %v21292_v36 = vpack.c.bf16 %v8817_v6, %v8813_v9  ;;  %v18602_v3 = vld [vmem:[#allocation16 + $0x264] ss:$16 sps:$4 sm:$0xff]   ;;  %v18632_v9 = vld [vmem:[#allocation16 + $0x26c] ss:$16 sps:$4 sm:$0xff]  }
 0x7e7   : > { %v8940_v39 = vpack.c.bf16 %v8816_v41, %v8812_v52  ;;  %v21294_v31 = vpack.c.bf16 %v8818_v23, %v8814_v35  ;;  %v8126_v13 = vpop.f32.mrb[4].mxu0  ;;  %v8512_v48 = vpop.f32.mrb[68].mxu1 }
 0x7e8   : > { %v8691_v19 = vadd.f32 %v21273_v38, %v8126_v13  ;;  %v8693_v37 = vadd.f32 %v21276_v46, %v8512_v48  ;;  %v8128_v42 = vpop.f32.mrb[5].mxu0  ;;  %v8514_v15 = vpop.f32.mrb[69].mxu1 }
 0x7e9   : > { %v8692_v49 = vadd.f32 %v21279_v1, %v8128_v42  ;;  %v8694_v28 = vadd.f32 %v21282_v60, %v8514_v15  ;;  %v8130_v62 = vpop.f32.mrb[6].mxu0  ;;  %v8516_v43 = vpop.f32.mrb[70].mxu1  ;;  %9825 = vmatprep.mubr.bf16.mxu0 %v8940_v39  ;;  %10211 = vmatprep.mubr.bf16.mxu1 %v8940_v39 }
 0x7ea   : > { %v8695_v59 = vadd.f32 %v21273_v38, %v8130_v62  ;;  %v8697_v25 = vadd.f32 %v21276_v46, %v8516_v43  ;;  %v8132_v17 = vpop.f32.mrb[7].mxu0  ;;  %v8518_v40 = vpop.f32.mrb[71].mxu1  ;;  %9826 = vmatmul.mubr.bf16.vlgmr.msra.gmra.mrb[64].mxu0 %v8939_v10  ;;  %10212 = vmatmul.mubr.bf16.vlgmr.msra.gmra.mrb[128].mxu1 %v8939_v10  ;;  %v8819_v54 = vmax.f32 %v8691_v19, 0.0  ;;  %v8821_v0 = vmax.f32 %v8693_v37, 0.0  ;;  %v18630_v19 = vld [vmem:[#allocation16 + $0x268] ss:$16 sps:$4 sm:$0xff]  }
 0x7eb   : > { %v8696_v58 = vadd.f32 %v21279_v1, %v8132_v17  ;;  %v8698_v50 = vadd.f32 %v21282_v60, %v8518_v40  ;;  %9987 = vmatpush1.bf16.msra.mxu0 %v18591_v12  ;;  %10373 = vmatpush1.bf16.msra.mxu1 %v18618_v33  ;;  %v8820_v2 = vmax.f32 %v8692_v49, 0.0  ;;  %v8822_v16 = vmax.f32 %v8694_v28, 0.0  ;;  %v18600_v12 = vld [vmem:[#allocation16 + $0x260] ss:$16 sps:$4 sm:$0xff]   ;;  %v18605_v33 = vld [vmem:[#allocation16 + $0x284] ss:$16 sps:$4 sm:$0xff]  }
 0x7ec   : > { %v8823_v24 = vmax.f32 %v8695_v59, 0.0  ;;  %v8825_v61 = vmax.f32 %v8697_v25, 0.0  ;;  %9988 = vmatprep.subr.bf16.mxu0 %v18596_v44  ;;  %10374 = vmatprep.subr.bf16.mxu1 %v18623_v14  ;;  %v18638_v14 = vld [vmem:[#allocation16 + $0x28c] ss:$16 sps:$4 sm:$0xff]  }
 0x7ed   : > { %v8824_v18 = vmax.f32 %v8696_v58, 0.0  ;;  %v8826_v34 = vmax.f32 %v8698_v50, 0.0 }
 0x7ee   : > { %v8943_v7 = vpack.c.bf16 %v8823_v24, %v8819_v54  ;;  %v21304_v53 = vpack.c.bf16 %v8825_v61, %v8821_v0  ;;  %v18608_v61 = vld [vmem:[#allocation16 + $0x2a4] ss:$16 sps:$4 sm:$0xff]  }
 0x7ef   : > { %v8944_v5 = vpack.c.bf16 %v8824_v18, %v8820_v2  ;;  %v21306_v4 = vpack.c.bf16 %v8826_v34, %v8822_v16  ;;  %v8136_v47 = vpop.f32.mrb[8].mxu0  ;;  %v8522_v63 = vpop.f32.mrb[72].mxu1  ;;  %9989 = vmatpush1.bf16.msra.mxu0 %v18594_v51  ;;  %10375 = vmatpush1.bf16.msra.mxu1 %v18621_v8  ;;  %v18603_v51 = vld [vmem:[#allocation16 + $0x280] ss:$16 sps:$4 sm:$0xff]  }
 0x7f0   : > { %v8699_v20 = vadd.f32 %v21273_v38, %v8136_v47  ;;  %v8701_v56 = vadd.f32 %v21276_v46, %v8522_v63  ;;  %v8138_v22 = vpop.f32.mrb[9].mxu0  ;;  %v8524_v29 = vpop.f32.mrb[73].mxu1  ;;  %9990 = vmatprep.subr.bf16.mxu0 %v18599_v45  ;;  %10376 = vmatprep.subr.bf16.mxu1 %v18629_v32  ;;  %v18636_v45 = vld [vmem:[#allocation16 + $0x288] ss:$16 sps:$4 sm:$0xff]   ;;  %v18641_v32 = vld [vmem:[#allocation16 + $0x2ac] ss:$16 sps:$4 sm:$0xff]  }
 0x7f1   : > { %v8700_v11 = vadd.f32 %v21279_v1, %v8138_v22  ;;  %v8702_v6 = vadd.f32 %v21282_v60, %v8524_v29  ;;  %v8140_v52 = vpop.f32.mrb[10].mxu0  ;;  %v8526_v35 = vpop.f32.mrb[74].mxu1  ;;  %9835 = vmatprep.mubr.bf16.mxu0 %v8944_v5  ;;  %10221 = vmatprep.mubr.bf16.mxu1 %v8944_v5  ;;  %v18639_v22 = vld [vmem:[#allocation16 + $0x2a8] ss:$16 sps:$4 sm:$0xff]  }
 0x7f2   : > { %v8703_v41 = vadd.f32 %v21273_v38, %v8140_v52  ;;  %v8705_v23 = vadd.f32 %v21276_v46, %v8526_v35  ;;  %v8142_v10 = vpop.f32.mrb[11].mxu0  ;;  %v8528_v39 = vpop.f32.mrb[75].mxu1  ;;  %9836 = vmatmul.mubr.bf16.gmra.mrb[68].mxu0 %v8943_v7  ;;  %10222 = vmatmul.mubr.bf16.gmra.mrb[132].mxu1 %v8943_v7  ;;  %v8827_v37 = vmax.f32 %v8699_v20, 0.0  ;;  %v8829_v42 = vmax.f32 %v8701_v56, 0.0  ;;  %v18606_v20 = vld [vmem:[#allocation16 + $0x2a0] ss:$16 sps:$4 sm:$0xff]  }
 0x7f3   : > { %v8704_v13 = vadd.f32 %v21279_v1, %v8142_v10  ;;  %v8706_v48 = vadd.f32 %v21282_v60, %v8528_v39  ;;  %9991 = vmatpush1.bf16.msra.mxu0 %v18597_v26  ;;  %10377 = vmatpush1.bf16.msra.mxu1 %v18627_v21  ;;  %v8828_v49 = vmax.f32 %v8700_v11, 0.0  ;;  %v8830_v28 = vmax.f32 %v8702_v6, 0.0  ;;  %v18611_v56 = vld [vmem:[#allocation16 + $0x2c4] ss:$16 sps:$4 sm:$0xff]   ;;  %v18647_v6 = vld [vmem:[#allocation16 + $0x2cc] ss:$16 sps:$4 sm:$0xff]  }
 0x7f4   : > { %v8831_v15 = vmax.f32 %v8703_v41, 0.0  ;;  %v8833_v44 = vmax.f32 %v8705_v23, 0.0  ;;  %9992 = vmatprep.subr.bf16.mxu0 %v18602_v3  ;;  %10378 = vmatprep.subr.bf16.mxu1 %v18632_v9 }
 0x7f5   : > { %v8832_v62 = vmax.f32 %v8704_v13, 0.0  ;;  %v8834_v43 = vmax.f32 %v8706_v48, 0.0 }
 0x7f6   : > { %v8947_v59 = vpack.c.bf16 %v8831_v15, %v8827_v37  ;;  %v21316_v25 = vpack.c.bf16 %v8833_v44, %v8829_v42  ;;  %v18645_v37 = vld [vmem:[#allocation16 + $0x2c8] ss:$16 sps:$4 sm:$0xff]  }
 0x7f7   : > { %v8948_v17 = vpack.c.bf16 %v8832_v62, %v8828_v49  ;;  %v21318_v40 = vpack.c.bf16 %v8834_v43, %v8830_v28  ;;  %v8146_v58 = vpop.f32.mrb[12].mxu0  ;;  %v8532_v50 = vpop.f32.mrb[76].mxu1  ;;  %9993 = vmatpush1.bf16.msra.mxu0 %v18600_v12  ;;  %10379 = vmatpush1.bf16.msra.mxu1 %v18630_v19  ;;  %v18609_v19 = vld [vmem:[#allocation16 + $0x2c0] ss:$16 sps:$4 sm:$0xff]   ;;  %v18614_v49 = vld [vmem:[#allocation16 + $0x2e4] ss:$16 sps:$4 sm:$0xff]  }
 0x7f8   : > { %v8707_v8 = vadd.f32 %v21273_v38, %v8146_v58  ;;  %v8709_v54 = vadd.f32 %v21276_v46, %v8532_v50  ;;  %v8148_v0 = vpop.f32.mrb[13].mxu0  ;;  %v8534_v24 = vpop.f32.mrb[77].mxu1  ;;  %9994 = vmatprep.subr.bf16.mxu0 %v18605_v33  ;;  %10380 = vmatprep.subr.bf16.mxu1 %v18638_v14  ;;  %v18650_v28 = vld [vmem:[#allocation16 + $0x2ec] ss:$16 sps:$4 sm:$0xff]  }
 0x7f9   : > { %v8708_v2 = vadd.f32 %v21279_v1, %v8148_v0  ;;  %v8710_v16 = vadd.f32 %v21282_v60, %v8534_v24  ;;  %v8150_v18 = vpop.f32.mrb[14].mxu0  ;;  %v8536_v34 = vpop.f32.mrb[78].mxu1  ;;  %9845 = vmatprep.mubr.bf16.mxu0 %v8948_v17  ;;  %10231 = vmatprep.mubr.bf16.mxu1 %v8948_v17  ;;  %v18612_v0 = vld [vmem:[#allocation16 + $0x2e0] ss:$16 sps:$4 sm:$0xff]   ;;  %v18617_v24 = vld [vmem:[#allocation16 + $0x304] ss:$16 sps:$4 sm:$0xff]  }
 0x7fa   : > { %v8711_v7 = vadd.f32 %v21273_v38, %v8150_v18  ;;  %v8713_v5 = vadd.f32 %v21276_v46, %v8536_v34  ;;  %v8152_v47 = vpop.f32.mrb[15].mxu0  ;;  %v8538_v63 = vpop.f32.mrb[79].mxu1  ;;  %9846 = vmatmul.mubr.bf16.gmra.mrb[72].mxu0 %v8947_v59  ;;  %10232 = vmatmul.mubr.bf16.gmra.mrb[136].mxu1 %v8947_v59  ;;  %v8835_v29 = vmax.f32 %v8707_v8, 0.0  ;;  %v8837_v3 = vmax.f32 %v8709_v54, 0.0  ;;  %v18656_v34 = vld [vmem:[#allocation16 + $0x30c] ss:$16 sps:$4 sm:$0xff]  }
 0x7fb   : > { %v8712_v26 = vadd.f32 %v21279_v1, %v8152_v47  ;;  %v8714_v21 = vadd.f32 %v21282_v60, %v8538_v63  ;;  %9995 = vmatpush1.bf16.msra.mxu0 %v18603_v51  ;;  %10381 = vmatpush1.bf16.msra.mxu1 %v18636_v45  ;;  %v8836_v52 = vmax.f32 %v8708_v2, 0.0  ;;  %v8838_v35 = vmax.f32 %v8710_v16, 0.0 }
 0x7fc   : > { %v8839_v9 = vmax.f32 %v8711_v7, 0.0  ;;  %v8841_v11 = vmax.f32 %v8713_v5, 0.0  ;;  %9996 = vmatprep.subr.bf16.mxu0 %v18608_v61  ;;  %10382 = vmatprep.subr.bf16.mxu1 %v18641_v32  ;;  %v18648_v61 = vld [vmem:[#allocation16 + $0x2e8] ss:$16 sps:$4 sm:$0xff]  }
 0x7fd   : > { %v8840_v41 = vmax.f32 %v8712_v26, 0.0  ;;  %v8842_v23 = vmax.f32 %v8714_v21, 0.0 }
 0x7fe   : > { %v8951_v10 = vpack.c.bf16 %v8839_v9, %v8835_v29  ;;  %v21328_v39 = vpack.c.bf16 %v8841_v11, %v8837_v3  ;;  %v18615_v3 = vld [vmem:[#allocation16 + $0x300] ss:$16 sps:$4 sm:$0xff]   ;;  %v18654_v9 = vld [vmem:[#allocation16 + $0x308] ss:$16 sps:$4 sm:$0xff]  }
 0x7ff   : > { %v8952_v13 = vpack.c.bf16 %v8840_v41, %v8836_v52  ;;  %v21330_v48 = vpack.c.bf16 %v8842_v23, %v8838_v35  ;;  %v8156_v12 = vpop.f32.mrb[16].mxu0  ;;  %v8542_v33 = vpop.f32.mrb[80].mxu1  ;;  %9997 = vmatpush1.bf16.msra.mxu0 %v18606_v20  ;;  %10383 = vmatpush1.bf16.msra.mxu1 %v18639_v22  ;;  %v18626_v41 = vld [vmem:[#allocation16 + $0x324] ss:$16 sps:$4 sm:$0xff]   ;;  %v18659_v23 = vld [vmem:[#allocation16 + $0x32c] ss:$16 sps:$4 sm:$0xff]  }
 0x800   : > { %v8715_v42 = vadd.f32 %v21273_v38, %v8156_v12  ;;  %v8717_v15 = vadd.f32 %v21276_v46, %v8542_v33  ;;  %v8158_v44 = vpop.f32.mrb[17].mxu0  ;;  %v8544_v14 = vpop.f32.mrb[81].mxu1  ;;  %9998 = vmatprep.subr.bf16.mxu0 %v18611_v56  ;;  %10384 = vmatprep.subr.bf16.mxu1 %v18647_v6 }
 0x801   : > { %v8716_v62 = vadd.f32 %v21279_v1, %v8158_v44  ;;  %v8718_v43 = vadd.f32 %v21282_v60, %v8544_v14  ;;  %v8160_v59 = vpop.f32.mrb[18].mxu0  ;;  %v8546_v17 = vpop.f32.mrb[82].mxu1  ;;  %9855 = vmatprep.mubr.bf16.mxu0 %v8952_v13  ;;  %10241 = vmatprep.mubr.bf16.mxu1 %v8952_v13 }
 0x802   : > { %v8719_v58 = vadd.f32 %v21273_v38, %v8160_v59  ;;  %v8721_v50 = vadd.f32 %v21276_v46, %v8546_v17  ;;  %v8162_v51 = vpop.f32.mrb[19].mxu0  ;;  %v8548_v45 = vpop.f32.mrb[83].mxu1  ;;  %9856 = vmatmul.mubr.bf16.gmra.mrb[76].mxu0 %v8951_v10  ;;  %10242 = vmatmul.mubr.bf16.gmra.mrb[140].mxu1 %v8951_v10  ;;  %v8843_v32 = vmax.f32 %v8715_v42, 0.0  ;;  %v8845_v2 = vmax.f32 %v8717_v15, 0.0 }
 0x803   : > { %v8720_v8 = vadd.f32 %v21279_v1, %v8162_v51  ;;  %v8722_v54 = vadd.f32 %v21282_v60, %v8548_v45  ;;  %9999 = vmatpush1.bf16.msra.mxu0 %v18609_v19  ;;  %10385 = vmatpush1.bf16.msra.mxu1 %v18645_v37  ;;  %v8844_v7 = vmax.f32 %v8716_v62, 0.0  ;;  %v8846_v5 = vmax.f32 %v8718_v43, 0.0  ;;  %v18657_v62 = vld [vmem:[#allocation16 + $0x328] ss:$16 sps:$4 sm:$0xff]  }
 0x804   : > { %v8847_v16 = vmax.f32 %v8719_v58, 0.0  ;;  %v8849_v18 = vmax.f32 %v8721_v50, 0.0  ;;  %10000 = vmatprep.subr.bf16.mxu0 %v18614_v49  ;;  %10386 = vmatprep.subr.bf16.mxu1 %v18650_v28  ;;  %v18624_v49 = vld [vmem:[#allocation16 + $0x320] ss:$16 sps:$4 sm:$0xff]   ;;  %v18635_v28 = vld [vmem:[#allocation16 + $0x344] ss:$16 sps:$4 sm:$0xff]  }
 0x805   : > { %v8848_v47 = vmax.f32 %v8720_v8, 0.0  ;;  %v8850_v63 = vmax.f32 %v8722_v54, 0.0  ;;  %v18665_v50 = vld [vmem:[#allocation16 + $0x34c] ss:$16 sps:$4 sm:$0xff]  }
 0x806   : > { %v8955_v26 = vpack.c.bf16 %v8847_v16, %v8843_v32  ;;  %v21340_v21 = vpack.c.bf16 %v8849_v18, %v8845_v2  ;;  %v18633_v18 = vld [vmem:[#allocation16 + $0x340] ss:$16 sps:$4 sm:$0xff]  }
 0x807   : > { %v8956_v20 = vpack.c.bf16 %v8848_v47, %v8844_v7  ;;  %v21342_v56 = vpack.c.bf16 %v8850_v63, %v8846_v5  ;;  %v8166_v22 = vpop.f32.mrb[20].mxu0  ;;  %v8552_v29 = vpop.f32.mrb[84].mxu1  ;;  %10001 = vmatpush1.bf16.msra.mxu0 %v18612_v0  ;;  %10387 = vmatpush1.bf16.msra.mxu1 %v18648_v61 }
 0x808   : > { %v8723_v11 = vadd.f32 %v21273_v38, %v8166_v22  ;;  %v8725_v6 = vadd.f32 %v21276_v46, %v8552_v29  ;;  %v8168_v52 = vpop.f32.mrb[21].mxu0  ;;  %v8554_v35 = vpop.f32.mrb[85].mxu1  ;;  %10002 = vmatprep.subr.bf16.mxu0 %v18617_v24  ;;  %10388 = vmatprep.subr.bf16.mxu1 %v18656_v34  ;;  %v18663_v34 = vld [vmem:[#allocation16 + $0x348] ss:$16 sps:$4 sm:$0xff]  }
 0x809   : > { %v8724_v10 = vadd.f32 %v21279_v1, %v8168_v52  ;;  %v8726_v13 = vadd.f32 %v21282_v60, %v8554_v35  ;;  %v8170_v12 = vpop.f32.mrb[22].mxu0  ;;  %v8556_v33 = vpop.f32.mrb[86].mxu1  ;;  %9865 = vmatprep.mubr.bf16.mxu0 %v8956_v20  ;;  %10251 = vmatprep.mubr.bf16.mxu1 %v8956_v20  ;;  %v18668_v20 = vld [vmem:[#allocation16 + $0x36c] ss:$16 sps:$4 sm:$0xff]  }
 0x80a   : > { %v8727_v19 = vadd.f32 %v21273_v38, %v8170_v12  ;;  %v8729_v37 = vadd.f32 %v21276_v46, %v8556_v33  ;;  %v8172_v42 = vpop.f32.mrb[23].mxu0  ;;  %v8558_v15 = vpop.f32.mrb[87].mxu1  ;;  %9866 = vmatmul.mubr.bf16.gmra.mrb[80].mxu0 %v8955_v26  ;;  %10252 = vmatmul.mubr.bf16.gmra.mrb[144].mxu1 %v8955_v26  ;;  %v8851_v43 = vmax.f32 %v8723_v11, 0.0  ;;  %v8853_v59 = vmax.f32 %v8725_v6, 0.0  ;;  %v18644_v26 = vld [vmem:[#allocation16 + $0x364] ss:$16 sps:$4 sm:$0xff]  }
 0x80b   : > { %v8728_v44 = vadd.f32 %v21279_v1, %v8172_v42  ;;  %v8730_v14 = vadd.f32 %v21282_v60, %v8558_v15  ;;  %10003 = vmatpush1.bf16.msra.mxu0 %v18615_v3  ;;  %10389 = vmatpush1.bf16.msra.mxu1 %v18654_v9  ;;  %v8852_v51 = vmax.f32 %v8724_v10, 0.0  ;;  %v8854_v45 = vmax.f32 %v8726_v13, 0.0  ;;  %v18642_v10 = vld [vmem:[#allocation16 + $0x360] ss:$16 sps:$4 sm:$0xff]   ;;  %v18653_v13 = vld [vmem:[#allocation16 + $0x384] ss:$16 sps:$4 sm:$0xff]  }
 0x80c   : > { %v8855_v17 = vmax.f32 %v8727_v19, 0.0  ;;  %v8857_v58 = vmax.f32 %v8729_v37, 0.0  ;;  %10004 = vmatprep.subr.bf16.mxu0 %v18626_v41  ;;  %10390 = vmatprep.subr.bf16.mxu1 %v18659_v23  ;;  %v18666_v12 = vld [vmem:[#allocation16 + $0x368] ss:$16 sps:$4 sm:$0xff]   ;;  %v18674_v15 = vld [vmem:[#allocation16 + $0x38c] ss:$16 sps:$4 sm:$0xff]  }
 0x80d   : > { %v8856_v8 = vmax.f32 %v8728_v44, 0.0  ;;  %v8858_v54 = vmax.f32 %v8730_v14, 0.0 }
 0x80e   : > { %v8959_v0 = vpack.c.bf16 %v8855_v17, %v8851_v43  ;;  %v21352_v24 = vpack.c.bf16 %v8857_v58, %v8853_v59 }
 0x80f   : > { %v8960_v61 = vpack.c.bf16 %v8856_v8, %v8852_v51  ;;  %v21354_v32 = vpack.c.bf16 %v8858_v54, %v8854_v45  ;;  %v8176_v2 = vpop.f32.mrb[24].mxu0  ;;  %v8562_v16 = vpop.f32.mrb[88].mxu1  ;;  %10005 = vmatpush1.bf16.msra.mxu0 %v18624_v49  ;;  %10391 = vmatpush1.bf16.msra.mxu1 %v18657_v62  ;;  %v18651_v51 = vld [vmem:[#allocation16 + $0x380] ss:$16 sps:$4 sm:$0xff]   ;;  %v18672_v45 = vld [vmem:[#allocation16 + $0x388] ss:$16 sps:$4 sm:$0xff]  }
 0x810   : > { %v8731_v7 = vadd.f32 %v21273_v38, %v8176_v2  ;;  %v8733_v5 = vadd.f32 %v21276_v46, %v8562_v16  ;;  %v8178_v47 = vpop.f32.mrb[25].mxu0  ;;  %v8564_v63 = vpop.f32.mrb[89].mxu1  ;;  %10006 = vmatprep.subr.bf16.mxu0 %v18635_v28  ;;  %10392 = vmatprep.subr.bf16.mxu1 %v18665_v50  ;;  %v18662_v2 = vld [vmem:[#allocation16 + $0x3a4] ss:$16 sps:$4 sm:$0xff]   ;;  %v18677_v16 = vld [vmem:[#allocation16 + $0x3ac] ss:$16 sps:$4 sm:$0xff]  }
 0x811   : > { %v8732_v22 = vadd.f32 %v21279_v1, %v8178_v47  ;;  %v8734_v29 = vadd.f32 %v21282_v60, %v8564_v63  ;;  %v8180_v3 = vpop.f32.mrb[26].mxu0  ;;  %v8566_v9 = vpop.f32.mrb[90].mxu1  ;;  %9875 = vmatprep.mubr.bf16.mxu0 %v8960_v61  ;;  %10261 = vmatprep.mubr.bf16.mxu1 %v8960_v61 }
 0x812   : > { %v8735_v11 = vadd.f32 %v21273_v38, %v8180_v3  ;;  %v8737_v6 = vadd.f32 %v21276_v46, %v8566_v9  ;;  %v8182_v52 = vpop.f32.mrb[27].mxu0  ;;  %v8568_v35 = vpop.f32.mrb[91].mxu1  ;;  %9876 = vmatmul.mubr.bf16.gmra.mrb[84].mxu0 %v8959_v0  ;;  %10262 = vmatmul.mubr.bf16.gmra.mrb[148].mxu1 %v8959_v0  ;;  %v8859_v33 = vmax.f32 %v8731_v7, 0.0  ;;  %v8861_v19 = vmax.f32 %v8733_v5, 0.0  ;;  %v18660_v3 = vld [vmem:[#allocation16 + $0x3a0] ss:$16 sps:$4 sm:$0xff]  }
 0x813   : > { %v8736_v41 = vadd.f32 %v21279_v1, %v8182_v52  ;;  %v8738_v23 = vadd.f32 %v21282_v60, %v8568_v35  ;;  %10007 = vmatpush1.bf16.msra.mxu0 %v18633_v18  ;;  %10393 = vmatpush1.bf16.msra.mxu1 %v18663_v34  ;;  %v8860_v44 = vmax.f32 %v8732_v22, 0.0  ;;  %v8862_v14 = vmax.f32 %v8734_v29, 0.0  ;;  %v18671_v9 = vld [vmem:[#allocation16 + $0x3c4] ss:$16 sps:$4 sm:$0xff]  }
 0x814   : > { %v8863_v37 = vmax.f32 %v8735_v11, 0.0  ;;  %v8865_v42 = vmax.f32 %v8737_v6, 0.0  ;;  %10008 = vmatprep.subr.bf16.mxu0 %v18644_v26  ;;  %10394 = vmatprep.subr.bf16.mxu1 %v18668_v20  ;;  %v18675_v11 = vld [vmem:[#allocation16 + $0x3a8] ss:$16 sps:$4 sm:$0xff]  }
 0x815   : > { %v8864_v49 = vmax.f32 %v8736_v41, 0.0  ;;  %v8866_v28 = vmax.f32 %v8738_v23, 0.0  ;;  %v18683_v23 = vld [vmem:[#allocation16 + $0x3cc] ss:$16 sps:$4 sm:$0xff]  }
 0x816   : > { %v8963_v62 = vpack.c.bf16 %v8863_v37, %v8859_v33  ;;  %v21364_v43 = vpack.c.bf16 %v8865_v42, %v8861_v19 }
 0x817   : > { %v8964_v59 = vpack.c.bf16 %v8864_v49, %v8860_v44  ;;  %v21366_v17 = vpack.c.bf16 %v8866_v28, %v8862_v14  ;;  %v8186_v58 = vpop.f32.mrb[28].mxu0  ;;  %v8572_v50 = vpop.f32.mrb[92].mxu1  ;;  %10009 = vmatpush1.bf16.msra.mxu0 %v18642_v10  ;;  %10395 = vmatpush1.bf16.msra.mxu1 %v18666_v12  ;;  %v18669_v49 = vld [vmem:[#allocation16 + $0x3c0] ss:$16 sps:$4 sm:$0xff]   ;;  %v18681_v28 = vld [vmem:[#allocation16 + $0x3c8] ss:$16 sps:$4 sm:$0xff]  }
 0x818   : > { %v8739_v8 = vadd.f32 %v21273_v38, %v8186_v58  ;;  %v8741_v54 = vadd.f32 %v21276_v46, %v8572_v50  ;;  %v8188_v0 = vpop.f32.mrb[29].mxu0  ;;  %v8574_v61 = vpop.f32.mrb[93].mxu1  ;;  %10010 = vmatprep.subr.bf16.mxu0 %v18653_v13  ;;  %10396 = vmatprep.subr.bf16.mxu1 %v18674_v15 }
 0x819   : > { %v8740_v18 = vadd.f32 %v21279_v1, %v8188_v0  ;;  %v8742_v34 = vadd.f32 %v21282_v60, %v8574_v61  ;;  %v8190_v7 = vpop.f32.mrb[30].mxu0  ;;  %v8576_v5 = vpop.f32.mrb[94].mxu1  ;;  %9885 = vmatprep.mubr.bf16.mxu0 %v8964_v59  ;;  %10271 = vmatprep.mubr.bf16.mxu1 %v8964_v59 }
 0x81a   : > { %v8743_v47 = vadd.f32 %v21273_v38, %v8190_v7  ;;  %v8745_v63 = vadd.f32 %v21276_v46, %v8576_v5  ;;  %v8192_v26 = vpop.f32.mrb[31].mxu0  ;;  %v8578_v20 = vpop.f32.mrb[95].mxu1  ;;  %9886 = vmatmul.mubr.bf16.gmra.mrb[88].mxu0 %v8963_v62  ;;  %10272 = vmatmul.mubr.bf16.gmra.mrb[152].mxu1 %v8963_v62  ;;  %v8867_v6 = vmax.f32 %v8739_v8, 0.0  ;;  %v8869_v52 = vmax.f32 %v8741_v54, 0.0 }
 0x81b   : > { %v8744_v22 = vadd.f32 %v21279_v1, %v8192_v26  ;;  %v8746_v29 = vadd.f32 %v21282_v60, %v8578_v20  ;;  %10011 = vmatpush1.bf16.msra.mxu0 %v18651_v51  ;;  %10397 = vmatpush1.bf16.msra.mxu1 %v18672_v45  ;;  %v8868_v10 = vmax.f32 %v8740_v18, 0.0  ;;  %v8870_v13 = vmax.f32 %v8742_v34, 0.0  ;;  %v18680_v51 = vld [vmem:[#allocation16 + $0x3e4] ss:$16 sps:$4 sm:$0xff]   ;;  %v18686_v45 = vld [vmem:[#allocation16 + $0x3ec] ss:$16 sps:$4 sm:$0xff]  }
 0x81c   : > { %v8871_v35 = vmax.f32 %v8743_v47, 0.0  ;;  %v8873_v41 = vmax.f32 %v8745_v63, 0.0  ;;  %10012 = vmatprep.subr.bf16.mxu0 %v18662_v2  ;;  %10398 = vmatprep.subr.bf16.mxu1 %v18677_v16  ;;  %v18678_v47 = vld [vmem:[#allocation16 + $0x3e0] ss:$16 sps:$4 sm:$0xff]   ;;  %v18684_v63 = vld [vmem:[#allocation16 + $0x3e8] ss:$16 sps:$4 sm:$0xff]  }
 0x81d   : > { %v8872_v12 = vmax.f32 %v8744_v22, 0.0  ;;  %v8874_v33 = vmax.f32 %v8746_v29, 0.0 }
 0x81e   : > { %v8967_v19 = vpack.c.bf16 %v8871_v35, %v8867_v6  ;;  %v21376_v37 = vpack.c.bf16 %v8873_v41, %v8869_v52 }
 0x81f   : > { %v8968_v42 = vpack.c.bf16 %v8872_v12, %v8868_v10  ;;  %v21378_v15 = vpack.c.bf16 %v8874_v33, %v8870_v13  ;;  %v8196_v44 = vpop.f32.mrb[32].mxu0  ;;  %v8582_v14 = vpop.f32.mrb[96].mxu1  ;;  %10013 = vmatpush1.bf16.msra.mxu0 %v18660_v3  ;;  %10399 = vmatpush1.bf16.msra.mxu1 %v18675_v11 }
 0x820   : > { %v8747_v62 = vadd.f32 %v21273_v38, %v8196_v44  ;;  %v8749_v59 = vadd.f32 %v21276_v46, %v8582_v14  ;;  %v8198_v58 = vpop.f32.mrb[33].mxu0  ;;  %v8584_v50 = vpop.f32.mrb[97].mxu1  ;;  %10014 = vmatprep.subr.bf16.mxu0 %v18671_v9  ;;  %10400 = vmatprep.subr.bf16.mxu1 %v18683_v23 }
 0x821   : > { %v8748_v8 = vadd.f32 %v21279_v1, %v8198_v58  ;;  %v8750_v54 = vadd.f32 %v21282_v60, %v8584_v50  ;;  %v8200_v0 = vpop.f32.mrb[34].mxu0  ;;  %v8586_v61 = vpop.f32.mrb[98].mxu1  ;;  %9895 = vmatprep.mubr.bf16.mxu0 %v8968_v42  ;;  %10281 = vmatprep.mubr.bf16.mxu1 %v8968_v42 }
 0x822   : > { %v8751_v2 = vadd.f32 %v21273_v38, %v8200_v0  ;;  %v8753_v16 = vadd.f32 %v21276_v46, %v8586_v61  ;;  %v8202_v18 = vpop.f32.mrb[35].mxu0  ;;  %v8588_v34 = vpop.f32.mrb[99].mxu1  ;;  %9896 = vmatmul.mubr.bf16.gmra.mrb[92].mxu0 %v8967_v19  ;;  %10282 = vmatmul.mubr.bf16.gmra.mrb[156].mxu1 %v8967_v19  ;;  %v8875_v26 = vmax.f32 %v8747_v62, 0.0  ;;  %v8877_v20 = vmax.f32 %v8749_v59, 0.0 }
 0x823   : > { %v8752_v7 = vadd.f32 %v21279_v1, %v8202_v18  ;;  %v8754_v5 = vadd.f32 %v21282_v60, %v8588_v34  ;;  %10015 = vmatpush1.bf16.msra.mxu0 %v18669_v49  ;;  %10401 = vmatpush1.bf16.msra.mxu1 %v18681_v28  ;;  %v8876_v3 = vmax.f32 %v8748_v8, 0.0  ;;  %v8878_v9 = vmax.f32 %v8750_v54, 0.0 }
 0x824   : > { %v8879_v22 = vmax.f32 %v8751_v2, 0.0  ;;  %v8881_v29 = vmax.f32 %v8753_v16, 0.0  ;;  %10016 = vmatprep.subr.bf16.mxu0 %v18680_v51  ;;  %10402 = vmatprep.subr.bf16.mxu1 %v18686_v45 }
 0x825   : > { %v8880_v11 = vmax.f32 %v8752_v7, 0.0  ;;  %v8882_v6 = vmax.f32 %v8754_v5, 0.0 }
 0x826   : > { %v8971_v52 = vpack.c.bf16 %v8879_v22, %v8875_v26  ;;  %v21388_v35 = vpack.c.bf16 %v8881_v29, %v8877_v20 }
 0x827   : > { %v8972_v41 = vpack.c.bf16 %v8880_v11, %v8876_v3  ;;  %v21390_v23 = vpack.c.bf16 %v8882_v6, %v8878_v9  ;;  %v8206_v10 = vpop.f32.mrb[36].mxu0  ;;  %v8592_v13 = vpop.f32.mrb[100].mxu1  ;;  %10017 = vmatpush1.bf16.msra.mxu0 %v18678_v47  ;;  %10403 = vmatpush1.bf16.msra.mxu1 %v18684_v63 }
 0x828   : > { %v8755_v12 = vadd.f32 %v21273_v38, %v8206_v10  ;;  %v8757_v33 = vadd.f32 %v21276_v46, %v8592_v13  ;;  %v8208_v19 = vpop.f32.mrb[37].mxu0  ;;  %v8594_v42 = vpop.f32.mrb[101].mxu1 }
 0x829   : > { %v8756_v44 = vadd.f32 %v21279_v1, %v8208_v19  ;;  %v8758_v14 = vadd.f32 %v21282_v60, %v8594_v42  ;;  %v8210_v49 = vpop.f32.mrb[38].mxu0  ;;  %v8596_v28 = vpop.f32.mrb[102].mxu1  ;;  %9905 = vmatprep.mubr.bf16.mxu0 %v8972_v41  ;;  %10291 = vmatprep.mubr.bf16.mxu1 %v8972_v41 }
 0x82a   : > { %v8759_v62 = vadd.f32 %v21273_v38, %v8210_v49  ;;  %v8761_v59 = vadd.f32 %v21276_v46, %v8596_v28  ;;  %v8212_v58 = vpop.f32.mrb[39].mxu0  ;;  %v8598_v50 = vpop.f32.mrb[103].mxu1  ;;  %9906 = vmatmul.mubr.bf16.gmra.mrb[96].mxu0 %v8971_v52  ;;  %10292 = vmatmul.mubr.bf16.gmra.mrb[160].mxu1 %v8971_v52  ;;  %v8883_v8 = vmax.f32 %v8755_v12, 0.0  ;;  %v8885_v54 = vmax.f32 %v8757_v33, 0.0 }
 0x82b   : > { %v8760_v51 = vadd.f32 %v21279_v1, %v8212_v58  ;;  %v8762_v45 = vadd.f32 %v21282_v60, %v8598_v50  ;;  %v8884_v2 = vmax.f32 %v8756_v44, 0.0  ;;  %v8886_v16 = vmax.f32 %v8758_v14, 0.0 }
 0x82c   : > { %v8887_v0 = vmax.f32 %v8759_v62, 0.0  ;;  %v8889_v61 = vmax.f32 %v8761_v59, 0.0 }
 0x82d   : > { %v8888_v18 = vmax.f32 %v8760_v51, 0.0  ;;  %v8890_v34 = vmax.f32 %v8762_v45, 0.0 }
 0x82e   : > { %v8975_v7 = vpack.c.bf16 %v8887_v0, %v8883_v8  ;;  %v21400_v5 = vpack.c.bf16 %v8889_v61, %v8885_v54 }
 0x82f   : > { %v8976_v47 = vpack.c.bf16 %v8888_v18, %v8884_v2  ;;  %v21402_v63 = vpack.c.bf16 %v8890_v34, %v8886_v16  ;;  %v8216_v26 = vpop.f32.mrb[40].mxu0  ;;  %v8602_v20 = vpop.f32.mrb[104].mxu1 }
 0x830   : > { %v8763_v22 = vadd.f32 %v21273_v38, %v8216_v26  ;;  %v8765_v29 = vadd.f32 %v21276_v46, %v8602_v20  ;;  %v8218_v3 = vpop.f32.mrb[41].mxu0  ;;  %v8604_v9 = vpop.f32.mrb[105].mxu1 }
 0x831   : > { %v8764_v11 = vadd.f32 %v21279_v1, %v8218_v3  ;;  %v8766_v6 = vadd.f32 %v21282_v60, %v8604_v9  ;;  %v8220_v52 = vpop.f32.mrb[42].mxu0  ;;  %v8606_v41 = vpop.f32.mrb[106].mxu1  ;;  %9915 = vmatprep.mubr.bf16.mxu0 %v8976_v47  ;;  %10301 = vmatprep.mubr.bf16.mxu1 %v8976_v47 }
 0x832   : > { %v8767_v10 = vadd.f32 %v21273_v38, %v8220_v52  ;;  %v8769_v13 = vadd.f32 %v21276_v46, %v8606_v41  ;;  %v8222_v12 = vpop.f32.mrb[43].mxu0  ;;  %v8608_v33 = vpop.f32.mrb[107].mxu1  ;;  %9916 = vmatmul.mubr.bf16.gmra.mrb[100].mxu0 %v8975_v7  ;;  %10302 = vmatmul.mubr.bf16.gmra.mrb[164].mxu1 %v8975_v7  ;;  %v8891_v44 = vmax.f32 %v8763_v22, 0.0  ;;  %v8893_v14 = vmax.f32 %v8765_v29, 0.0 }
 0x833   : > { %v8768_v19 = vadd.f32 %v21279_v1, %v8222_v12  ;;  %v8770_v42 = vadd.f32 %v21282_v60, %v8608_v33  ;;  %v8892_v62 = vmax.f32 %v8764_v11, 0.0  ;;  %v8894_v59 = vmax.f32 %v8766_v6, 0.0 }
 0x834   : > { %v8895_v49 = vmax.f32 %v8767_v10, 0.0  ;;  %v8897_v28 = vmax.f32 %v8769_v13, 0.0 }
 0x835   : > { %v8896_v58 = vmax.f32 %v8768_v19, 0.0  ;;  %v8898_v50 = vmax.f32 %v8770_v42, 0.0 }
 0x836   : > { %v8979_v51 = vpack.c.bf16 %v8895_v49, %v8891_v44  ;;  %v21412_v45 = vpack.c.bf16 %v8897_v28, %v8893_v14 }
 0x837   : > { %v8980_v8 = vpack.c.bf16 %v8896_v58, %v8892_v62  ;;  %v21414_v54 = vpack.c.bf16 %v8898_v50, %v8894_v59  ;;  %v8226_v0 = vpop.f32.mrb[44].mxu0  ;;  %v8612_v61 = vpop.f32.mrb[108].mxu1 }
 0x838   : > { %v8771_v2 = vadd.f32 %v21273_v38, %v8226_v0  ;;  %v8773_v16 = vadd.f32 %v21276_v46, %v8612_v61  ;;  %v8228_v18 = vpop.f32.mrb[45].mxu0  ;;  %v8614_v34 = vpop.f32.mrb[109].mxu1 }
 0x839   : > { %v8772_v7 = vadd.f32 %v21279_v1, %v8228_v18  ;;  %v8774_v47 = vadd.f32 %v21282_v60, %v8614_v34  ;;  %v8230_v26 = vpop.f32.mrb[46].mxu0  ;;  %v8616_v20 = vpop.f32.mrb[110].mxu1  ;;  %9925 = vmatprep.mubr.bf16.mxu0 %v8980_v8  ;;  %10311 = vmatprep.mubr.bf16.mxu1 %v8980_v8 }
 0x83a   : > { %v8775_v22 = vadd.f32 %v21273_v38, %v8230_v26  ;;  %v8777_v29 = vadd.f32 %v21276_v46, %v8616_v20  ;;  %v8232_v3 = vpop.f32.mrb[47].mxu0  ;;  %v8618_v9 = vpop.f32.mrb[111].mxu1  ;;  %9926 = vmatmul.mubr.bf16.gmra.mrb[104].mxu0 %v8979_v51  ;;  %10312 = vmatmul.mubr.bf16.gmra.mrb[168].mxu1 %v8979_v51  ;;  %v8899_v52 = vmax.f32 %v8771_v2, 0.0  ;;  %v8901_v41 = vmax.f32 %v8773_v16, 0.0 }
 0x83b   : > { %v8776_v11 = vadd.f32 %v21279_v1, %v8232_v3  ;;  %v8778_v6 = vadd.f32 %v21282_v60, %v8618_v9  ;;  %v8900_v12 = vmax.f32 %v8772_v7, 0.0  ;;  %v8902_v33 = vmax.f32 %v8774_v47, 0.0 }
 0x83c   : > { %v8903_v10 = vmax.f32 %v8775_v22, 0.0  ;;  %v8905_v13 = vmax.f32 %v8777_v29, 0.0  ;;  %v18689_v22 = vld [vmem:[#allocation17 + $0x4] ss:$16 sps:$4 sm:$0xff]  }
 0x83d   : > { %v8904_v19 = vmax.f32 %v8776_v11, 0.0  ;;  %v8906_v42 = vmax.f32 %v8778_v6, 0.0  ;;  %11547 = vmatprep.subr.bf16.mxu0 %v18689_v22 }
 0x83e   : > { %v8983_v44 = vpack.c.bf16 %v8903_v10, %v8899_v52  ;;  %v21424_v14 = vpack.c.bf16 %v8905_v13, %v8901_v41 }
 0x83f   : > { %v8984_v49 = vpack.c.bf16 %v8904_v19, %v8900_v12  ;;  %v21426_v28 = vpack.c.bf16 %v8906_v42, %v8902_v33  ;;  %v8236_v62 = vpop.f32.mrb[48].mxu0  ;;  %v8622_v59 = vpop.f32.mrb[112].mxu1 }
 0x840   : > { %v8779_v58 = vadd.f32 %v21273_v38, %v8236_v62  ;;  %v8781_v50 = vadd.f32 %v21276_v46, %v8622_v59  ;;  %v8238_v51 = vpop.f32.mrb[49].mxu0  ;;  %v8624_v8 = vpop.f32.mrb[113].mxu1 }
 0x841   : > { %v8780_v0 = vadd.f32 %v21279_v1, %v8238_v51  ;;  %v8782_v61 = vadd.f32 %v21282_v60, %v8624_v8  ;;  %v8240_v2 = vpop.f32.mrb[50].mxu0  ;;  %v8626_v16 = vpop.f32.mrb[114].mxu1  ;;  %9935 = vmatprep.mubr.bf16.mxu0 %v8984_v49  ;;  %10321 = vmatprep.mubr.bf16.mxu1 %v8984_v49 }
 0x842   : > { %v8783_v18 = vadd.f32 %v21273_v38, %v8240_v2  ;;  %v8785_v34 = vadd.f32 %v21276_v46, %v8626_v16  ;;  %v8242_v7 = vpop.f32.mrb[51].mxu0  ;;  %v8628_v47 = vpop.f32.mrb[115].mxu1  ;;  %9936 = vmatmul.mubr.bf16.gmra.mrb[108].mxu0 %v8983_v44  ;;  %10322 = vmatmul.mubr.bf16.gmra.mrb[172].mxu1 %v8983_v44  ;;  %v8907_v29 = vmax.f32 %v8779_v58, 0.0  ;;  %v8909_v3 = vmax.f32 %v8781_v50, 0.0 }
 0x843   : > { %v8784_v26 = vadd.f32 %v21279_v1, %v8242_v7  ;;  %v8786_v20 = vadd.f32 %v21282_v60, %v8628_v47  ;;  %v8908_v6 = vmax.f32 %v8780_v0, 0.0  ;;  %v8910_v52 = vmax.f32 %v8782_v61, 0.0 }
 0x844   : > { %v8911_v9 = vmax.f32 %v8783_v18, 0.0  ;;  %v8913_v11 = vmax.f32 %v8785_v34, 0.0 }
 0x845   : > { %v8912_v41 = vmax.f32 %v8784_v26, 0.0  ;;  %v8914_v10 = vmax.f32 %v8786_v20, 0.0 }
 0x846   : > { %v8987_v13 = vpack.c.bf16 %v8911_v9, %v8907_v29  ;;  %v21436_v12 = vpack.c.bf16 %v8913_v11, %v8909_v3 }
 0x847   : > { %v8988_v33 = vpack.c.bf16 %v8912_v41, %v8908_v6  ;;  %v21438_v19 = vpack.c.bf16 %v8914_v10, %v8910_v52  ;;  %v8246_v42 = vpop.f32.mrb[52].mxu0  ;;  %v8632_v44 = vpop.f32.mrb[116].mxu1 }
 0x848   : > { %v8787_v49 = vadd.f32 %v21273_v38, %v8246_v42  ;;  %v8789_v62 = vadd.f32 %v21276_v46, %v8632_v44  ;;  %v8248_v59 = vpop.f32.mrb[53].mxu0  ;;  %v8634_v58 = vpop.f32.mrb[117].mxu1 }
 0x849   : > { %v8788_v50 = vadd.f32 %v21279_v1, %v8248_v59  ;;  %v8790_v51 = vadd.f32 %v21282_v60, %v8634_v58  ;;  %v8250_v8 = vpop.f32.mrb[54].mxu0  ;;  %v8636_v0 = vpop.f32.mrb[118].mxu1  ;;  %9945 = vmatprep.mubr.bf16.mxu0 %v8988_v33  ;;  %10331 = vmatprep.mubr.bf16.mxu1 %v8988_v33 }
 0x84a   : > { %v8791_v61 = vadd.f32 %v21273_v38, %v8250_v8  ;;  %v8793_v2 = vadd.f32 %v21276_v46, %v8636_v0  ;;  %v8252_v16 = vpop.f32.mrb[55].mxu0  ;;  %v8638_v18 = vpop.f32.mrb[119].mxu1  ;;  %9946 = vmatmul.mubr.bf16.gmra.mrb[112].mxu0 %v8987_v13  ;;  %10332 = vmatmul.mubr.bf16.gmra.mrb[176].mxu1 %v8987_v13  ;;  %v8915_v47 = vmax.f32 %v8787_v49, 0.0  ;;  %v8917_v26 = vmax.f32 %v8789_v62, 0.0 }
 0x84b   : > { %v8792_v34 = vadd.f32 %v21279_v1, %v8252_v16  ;;  %v8794_v7 = vadd.f32 %v21282_v60, %v8638_v18  ;;  %v8916_v29 = vmax.f32 %v8788_v50, 0.0  ;;  %v8918_v3 = vmax.f32 %v8790_v51, 0.0 }
 0x84c   : > { %v8919_v20 = vmax.f32 %v8791_v61, 0.0  ;;  %v8921_v22 = vmax.f32 %v8793_v2, 0.0 }
 0x84d   : > { %v8920_v9 = vmax.f32 %v8792_v34, 0.0  ;;  %v8922_v11 = vmax.f32 %v8794_v7, 0.0 }
 0x84e   : > { %v8991_v6 = vpack.c.bf16 %v8919_v20, %v8915_v47  ;;  %v21448_v52 = vpack.c.bf16 %v8921_v22, %v8917_v26 }
 0x84f   : > { %v8992_v41 = vpack.c.bf16 %v8920_v9, %v8916_v29  ;;  %v21450_v10 = vpack.c.bf16 %v8922_v11, %v8918_v3  ;;  %v8256_v33 = vpop.f32.mrb[56].mxu0  ;;  %v8642_v13 = vpop.f32.mrb[120].mxu1 }
 0x850   : > { %v8795_v42 = vadd.f32 %v21273_v38, %v8256_v33  ;;  %v8797_v44 = vadd.f32 %v21276_v46, %v8642_v13  ;;  %v8258_v49 = vpop.f32.mrb[57].mxu0  ;;  %v8644_v62 = vpop.f32.mrb[121].mxu1 }
 0x851   : > { %v8796_v59 = vadd.f32 %v21279_v1, %v8258_v49  ;;  %v8798_v58 = vadd.f32 %v21282_v60, %v8644_v62  ;;  %v8260_v50 = vpop.f32.mrb[58].mxu0  ;;  %v8646_v51 = vpop.f32.mrb[122].mxu1  ;;  %9955 = vmatprep.mubr.bf16.mxu0 %v8992_v41  ;;  %10341 = vmatprep.mubr.bf16.mxu1 %v8992_v41 }
 0x852   : > { %v8799_v8 = vadd.f32 %v21273_v38, %v8260_v50  ;;  %v8801_v0 = vadd.f32 %v21276_v46, %v8646_v51  ;;  %v8262_v61 = vpop.f32.mrb[59].mxu0  ;;  %v8648_v2 = vpop.f32.mrb[123].mxu1  ;;  %9956 = vmatmul.mubr.bf16.gmra.mrb[116].mxu0 %v8991_v6  ;;  %10342 = vmatmul.mubr.bf16.gmra.mrb[180].mxu1 %v8991_v6  ;;  %v8923_v34 = vmax.f32 %v8795_v42, 0.0  ;;  %v8925_v7 = vmax.f32 %v8797_v44, 0.0 }
 0x853   : > { %v8800_v16 = vadd.f32 %v21279_v1, %v8262_v61  ;;  %v8802_v18 = vadd.f32 %v21282_v60, %v8648_v2  ;;  %v8924_v20 = vmax.f32 %v8796_v59, 0.0  ;;  %v8926_v22 = vmax.f32 %v8798_v58, 0.0 }
 0x854   : > { %v8927_v47 = vmax.f32 %v8799_v8, 0.0  ;;  %v8929_v26 = vmax.f32 %v8801_v0, 0.0 }
 0x855   : > { %v8928_v29 = vmax.f32 %v8800_v16, 0.0  ;;  %v8930_v3 = vmax.f32 %v8802_v18, 0.0 }
 0x856   : > { %v8995_v9 = vpack.c.bf16 %v8927_v47, %v8923_v34  ;;  %v21460_v11 = vpack.c.bf16 %v8929_v26, %v8925_v7 }
 0x857   : > { %v8996_v41 = vpack.c.bf16 %v8928_v29, %v8924_v20  ;;  %v21462_v33 = vpack.c.bf16 %v8930_v3, %v8926_v22  ;;  %v8266_v13 = vpop.f32.mrb[60].mxu0  ;;  %v8652_v6 = vpop.f32.mrb[124].mxu1 }
 0x858   : > { %v8803_v49 = vadd.f32 %v21273_v38, %v8266_v13  ;;  %v8805_v62 = vadd.f32 %v21276_v46, %v8652_v6  ;;  %v8268_v42 = vpop.f32.mrb[61].mxu0  ;;  %v8654_v44 = vpop.f32.mrb[125].mxu1  ;;  %v18692_v6 = vld [vmem:[#allocation17 + $0x24] ss:$16 sps:$4 sm:$0xff]  }
 0x859   : > { %v8804_v50 = vadd.f32 %v21279_v1, %v8268_v42  ;;  %v8806_v59 = vadd.f32 %v21282_v60, %v8654_v44  ;;  %v8270_v58 = vpop.f32.mrb[62].mxu0  ;;  %v8656_v51 = vpop.f32.mrb[126].mxu1  ;;  %9965 = vmatprep.mubr.bf16.mxu0 %v8996_v41  ;;  %10351 = vmatprep.mubr.bf16.mxu1 %v8996_v41  ;;  %v18717_v42 = vld [vmem:[#allocation17 + $0x28] ss:$16 sps:$4 sm:$0xff]   ;;  %v18725_v44 = vld [vmem:[#allocation17 + $0x4c] ss:$16 sps:$4 sm:$0xff]  }
 0x85a   : > { %v8807_v8 = vadd.f32 %v21273_v38, %v8270_v58  ;;  %v8809_v0 = vadd.f32 %v21276_v46, %v8656_v51  ;;  %v8272_v61 = vpop.f32.mrb[63].mxu0  ;;  %v8658_v2 = vpop.f32.mrb[127].mxu1  ;;  %9966 = vmatmul.mubr.bf16.gmra.mrb[120].mxu0 %v8995_v9  ;;  %10352 = vmatmul.mubr.bf16.gmra.mrb[184].mxu1 %v8995_v9  ;;  %v8931_v34 = vmax.f32 %v8803_v49, 0.0  ;;  %v8933_v7 = vmax.f32 %v8805_v62, 0.0  ;;  %v18714_v9 = vld [vmem:[#allocation17 + $0x8] ss:$16 sps:$4 sm:$0xff]  }
 0x85b   : > { %v8808_v16 = vadd.f32 %v21279_v1, %v8272_v61  ;;  %v8810_v18 = vadd.f32 %v21282_v60, %v8658_v2  ;;  %v8932_v20 = vmax.f32 %v8804_v50, 0.0  ;;  %v8934_v22 = vmax.f32 %v8806_v59, 0.0  ;;  %v18716_v1 = vld [vmem:[#allocation17 + $0xc] ss:$16 sps:$4 sm:$0xff]   ;;  %v18687_v60 = vld [vmem:[#allocation17] ss:$16 sps:$4 sm:$0xff]  }
 0x85c   : > { %v8935_v47 = vmax.f32 %v8807_v8, 0.0  ;;  %v8937_v26 = vmax.f32 %v8809_v0, 0.0  ;;  %11933 = vmatprep.subr.bf16.mxu1 %v18716_v1  ;;  %v18719_v49 = vld [vmem:[#allocation17 + $0x2c] ss:$16 sps:$4 sm:$0xff]   ;;  %v18690_v62 = vld [vmem:[#allocation17 + $0x20] ss:$16 sps:$4 sm:$0xff]  }
 0x85d   : > { %v8936_v29 = vmax.f32 %v8808_v16, 0.0  ;;  %v8938_v3 = vmax.f32 %v8810_v18, 0.0  ;;  %v18693_v50 = vld [vmem:[#allocation17 + $0x40] ss:$16 sps:$4 sm:$0xff]   ;;  %v18723_v59 = vld [vmem:[#allocation17 + $0x48] ss:$16 sps:$4 sm:$0xff]  }
 0x85e   : > { %v8999_v41 = vpack.c.bf16 %v8935_v47, %v8931_v34  ;;  %v21472_v38 = vpack.c.bf16 %v8937_v26, %v8933_v7  ;;  %v18698_v58 = vld [vmem:[#allocation17 + $0x64] ss:$16 sps:$4 sm:$0xff]   ;;  %v18726_v51 = vld [vmem:[#allocation17 + $0x68] ss:$16 sps:$4 sm:$0xff]   ;;  %v18734_v0 = vld [vmem:[#allocation17 + $0x8c] ss:$16 sps:$4 sm:$0xff]  }
 0x85f   : > { %v9000_v46 = vpack.c.bf16 %v8936_v29, %v8932_v20  ;;  %v21474_v13 = vpack.c.bf16 %v8938_v3, %v8934_v22  ;;  %v18701_v8 = vld [vmem:[#allocation17 + $0x84] ss:$16 sps:$4 sm:$0xff]   ;;  %v18699_v61 = vld [vmem:[#allocation17 + $0x80] ss:$16 sps:$4 sm:$0xff]   ;;  %v18732_v2 = vld [vmem:[#allocation17 + $0x88] ss:$16 sps:$4 sm:$0xff]  }
 0x860   : > { %v18704_v16 = vld [vmem:[#allocation17 + $0xa4] ss:$16 sps:$4 sm:$0xff]   ;;  %v18735_v18 = vld [vmem:[#allocation17 + $0xa8] ss:$16 sps:$4 sm:$0xff]   ;;  %v18743_v7 = vld [vmem:[#allocation17 + $0xcc] ss:$16 sps:$4 sm:$0xff]  }
 0x861   : > { %9975 = vmatprep.mubr.bf16.mxu0 %v9000_v46  ;;  %10361 = vmatprep.mubr.bf16.mxu1 %v9000_v46  ;;  %v18707_v34 = vld [vmem:[#allocation17 + $0xc4] ss:$16 sps:$4 sm:$0xff]   ;;  %v18705_v47 = vld [vmem:[#allocation17 + $0xc0] ss:$16 sps:$4 sm:$0xff]   ;;  %v18741_v26 = vld [vmem:[#allocation17 + $0xc8] ss:$16 sps:$4 sm:$0xff]  }
 0x862   : > { %9976 = vmatmul.mubr.bf16.gmra.mrb[124].mxu0 %v8999_v41  ;;  %10362 = vmatmul.mubr.bf16.gmra.mrb[188].mxu1 %v8999_v41  ;;  %v18710_v20 = vld [vmem:[#allocation17 + $0xe4] ss:$16 sps:$4 sm:$0xff]   ;;  %v18744_v22 = vld [vmem:[#allocation17 + $0xe8] ss:$16 sps:$4 sm:$0xff]   ;;  %v18752_v3 = vld [vmem:[#allocation17 + $0x10c] ss:$16 sps:$4 sm:$0xff]  }
 0x863   : > { %10018 = vmatprep.mubr.bf16.mxu0 %v21294_v31  ;;  %10404 = vmatprep.mubr.bf16.mxu1 %v21294_v31  ;;  %v18695_v31 = vld [vmem:[#allocation17 + $0x44] ss:$16 sps:$4 sm:$0xff]   ;;  %v18711_v41 = vld [vmem:[#allocation17 + $0x100] ss:$16 sps:$4 sm:$0xff]   ;;  %v18750_v46 = vld [vmem:[#allocation17 + $0x108] ss:$16 sps:$4 sm:$0xff]  }
 0x864   : > { %v18713_v29 = vld [vmem:[#allocation17 + $0x104] ss:$16 sps:$4 sm:$0xff]  }
 0x865   : > { %v18722_v1 = vld [vmem:[#allocation17 + $0x124] ss:$16 sps:$4 sm:$0xff]  }
 0x86a   : > { %10019 = vmatmul.mubr.bf16.vlgmr.msra.gmra.mrb[64].mxu0 %v21292_v36  ;;  %10405 = vmatmul.mubr.bf16.vlgmr.msra.gmra.mrb[128].mxu1 %v21292_v36  ;;  %v18728_v36 = vld [vmem:[#allocation17 + $0x6c] ss:$16 sps:$4 sm:$0xff]  }
 0x86b   : > { %10028 = vmatprep.mubr.bf16.mxu0 %v21306_v4  ;;  %10414 = vmatprep.mubr.bf16.mxu1 %v21306_v4  ;;  %v18696_v4 = vld [vmem:[#allocation17 + $0x60] ss:$16 sps:$4 sm:$0xff]  }
 0x86c   : > { %11548 = vmatpush1.bf16.msra.mxu0 %v18687_v60  ;;  %11934 = vmatpush1.bf16.msra.mxu1 %v18714_v9  ;;  %v18753_v60 = vld [vmem:[#allocation17 + $0x128] ss:$16 sps:$4 sm:$0xff]   ;;  %v18731_v9 = vld [vmem:[#allocation17 + $0x144] ss:$16 sps:$4 sm:$0xff]  }
 0x86d   : > { %11549 = vmatprep.subr.bf16.mxu0 %v18692_v6  ;;  %11935 = vmatprep.subr.bf16.mxu1 %v18719_v49  ;;  %v18761_v6 = vld [vmem:[#allocation17 + $0x14c] ss:$16 sps:$4 sm:$0xff]   ;;  %v18729_v49 = vld [vmem:[#allocation17 + $0x140] ss:$16 sps:$4 sm:$0xff]  }
 0x870   : > { %11550 = vmatpush1.bf16.msra.mxu0 %v18690_v62  ;;  %11936 = vmatpush1.bf16.msra.mxu1 %v18717_v42  ;;  %v18759_v62 = vld [vmem:[#allocation17 + $0x148] ss:$16 sps:$4 sm:$0xff]   ;;  %v18740_v42 = vld [vmem:[#allocation17 + $0x164] ss:$16 sps:$4 sm:$0xff]  }
 0x871   : > { %11551 = vmatprep.subr.bf16.mxu0 %v18695_v31  ;;  %11937 = vmatprep.subr.bf16.mxu1 %v18725_v44  ;;  %v18762_v31 = vld [vmem:[#allocation17 + $0x168] ss:$16 sps:$4 sm:$0xff]   ;;  %v18749_v44 = vld [vmem:[#allocation17 + $0x184] ss:$16 sps:$4 sm:$0xff]  }
 0x872   : > { %10029 = vmatmul.mubr.bf16.gmra.mrb[68].mxu0 %v21304_v53  ;;  %10415 = vmatmul.mubr.bf16.gmra.mrb[132].mxu1 %v21304_v53  ;;  %v18737_v53 = vld [vmem:[#allocation17 + $0xac] ss:$16 sps:$4 sm:$0xff]  }
 0x873   : > { %10038 = vmatprep.mubr.bf16.mxu0 %v21318_v40  ;;  %10424 = vmatprep.mubr.bf16.mxu1 %v21318_v40  ;;  %v18702_v40 = vld [vmem:[#allocation17 + $0xa0] ss:$16 sps:$4 sm:$0xff]  }
 0x874   : > { %11552 = vmatpush1.bf16.msra.mxu0 %v18693_v50  ;;  %11938 = vmatpush1.bf16.msra.mxu1 %v18723_v59  ;;  %v18770_v50 = vld [vmem:[#allocation17 + $0x18c] ss:$16 sps:$4 sm:$0xff]   ;;  %v18747_v59 = vld [vmem:[#allocation17 + $0x180] ss:$16 sps:$4 sm:$0xff]  }
 0x875   : > { %11553 = vmatprep.subr.bf16.mxu0 %v18698_v58  ;;  %11939 = vmatprep.subr.bf16.mxu1 %v18728_v36  ;;  %v18768_v58 = vld [vmem:[#allocation17 + $0x188] ss:$16 sps:$4 sm:$0xff]   ;;  %v18758_v36 = vld [vmem:[#allocation17 + $0x1a4] ss:$16 sps:$4 sm:$0xff]  }
 0x878   : > { %11554 = vmatpush1.bf16.msra.mxu0 %v18696_v4  ;;  %11940 = vmatpush1.bf16.msra.mxu1 %v18726_v51  ;;  %v18771_v4 = vld [vmem:[#allocation17 + $0x1a8] ss:$16 sps:$4 sm:$0xff]   ;;  %v18767_v51 = vld [vmem:[#allocation17 + $0x1c4] ss:$16 sps:$4 sm:$0xff]  }
 0x879   : > { %11555 = vmatprep.subr.bf16.mxu0 %v18701_v8  ;;  %11941 = vmatprep.subr.bf16.mxu1 %v18734_v0  ;;  %v18765_v8 = vld [vmem:[#allocation17 + $0x1c0] ss:$16 sps:$4 sm:$0xff]  }
 0x87a   : > { %10039 = vmatmul.mubr.bf16.gmra.mrb[72].mxu0 %v21316_v25  ;;  %10425 = vmatmul.mubr.bf16.gmra.mrb[136].mxu1 %v21316_v25  ;;  %v18746_v25 = vld [vmem:[#allocation17 + $0xec] ss:$16 sps:$4 sm:$0xff]  }
 0x87b   : > { %10048 = vmatprep.mubr.bf16.mxu0 %v21330_v48  ;;  %10434 = vmatprep.mubr.bf16.mxu1 %v21330_v48  ;;  %v18708_v48 = vld [vmem:[#allocation17 + $0xe0] ss:$16 sps:$4 sm:$0xff]  }
 0x87c   : > { %11556 = vmatpush1.bf16.msra.mxu0 %v18699_v61  ;;  %11942 = vmatpush1.bf16.msra.mxu1 %v18732_v2 }
 0x87d   : > { %11557 = vmatprep.subr.bf16.mxu0 %v18704_v16  ;;  %11943 = vmatprep.subr.bf16.mxu1 %v18737_v53 }
 0x880   : > { %11558 = vmatpush1.bf16.msra.mxu0 %v18702_v40  ;;  %11944 = vmatpush1.bf16.msra.mxu1 %v18735_v18 }
 0x881   : > { %11559 = vmatprep.subr.bf16.mxu0 %v18707_v34  ;;  %11945 = vmatprep.subr.bf16.mxu1 %v18743_v7 }
 0x882   : > { %10049 = vmatmul.mubr.bf16.gmra.mrb[76].mxu0 %v21328_v39  ;;  %10435 = vmatmul.mubr.bf16.gmra.mrb[140].mxu1 %v21328_v39  ;;  %v18755_v39 = vld [vmem:[#allocation17 + $0x12c] ss:$16 sps:$4 sm:$0xff]  }
 0x883   : > { %10058 = vmatprep.mubr.bf16.mxu0 %v21342_v56  ;;  %10444 = vmatprep.mubr.bf16.mxu1 %v21342_v56  ;;  %v18720_v56 = vld [vmem:[#allocation17 + $0x120] ss:$16 sps:$4 sm:$0xff]  }
 0x884   : > { %11560 = vmatpush1.bf16.msra.mxu0 %v18705_v47  ;;  %11946 = vmatpush1.bf16.msra.mxu1 %v18741_v26 }
 0x885   : > { %11561 = vmatprep.subr.bf16.mxu0 %v18710_v20  ;;  %11947 = vmatprep.subr.bf16.mxu1 %v18746_v25 }
 0x888   : > { %11562 = vmatpush1.bf16.msra.mxu0 %v18708_v48  ;;  %11948 = vmatpush1.bf16.msra.mxu1 %v18744_v22 }
 0x889   : > { %11563 = vmatprep.subr.bf16.mxu0 %v18713_v29  ;;  %11949 = vmatprep.subr.bf16.mxu1 %v18752_v3 }
 0x88a   : > { %10059 = vmatmul.mubr.bf16.gmra.mrb[80].mxu0 %v21340_v21  ;;  %10445 = vmatmul.mubr.bf16.gmra.mrb[144].mxu1 %v21340_v21  ;;  %v18764_v21 = vld [vmem:[#allocation17 + $0x16c] ss:$16 sps:$4 sm:$0xff]  }
 0x88b   : > { %10068 = vmatprep.mubr.bf16.mxu0 %v21354_v32  ;;  %10454 = vmatprep.mubr.bf16.mxu1 %v21354_v32  ;;  %v18738_v32 = vld [vmem:[#allocation17 + $0x160] ss:$16 sps:$4 sm:$0xff]  }
 0x88c   : > { %11564 = vmatpush1.bf16.msra.mxu0 %v18711_v41  ;;  %11950 = vmatpush1.bf16.msra.mxu1 %v18750_v46 }
 0x88d   : > { %11565 = vmatprep.subr.bf16.mxu0 %v18722_v1  ;;  %11951 = vmatprep.subr.bf16.mxu1 %v18755_v39 }
 0x890   : > { %11566 = vmatpush1.bf16.msra.mxu0 %v18720_v56  ;;  %11952 = vmatpush1.bf16.msra.mxu1 %v18753_v60 }
 0x891   : > { %11567 = vmatprep.subr.bf16.mxu0 %v18731_v9  ;;  %11953 = vmatprep.subr.bf16.mxu1 %v18761_v6  ;;  %v18783_v6 = vld [vmem:[#allocation17 + $0x200] ss:$16 sps:$4 sm:$0xff]  }
 0x892   : > { %10069 = vmatmul.mubr.bf16.gmra.mrb[84].mxu0 %v21352_v24  ;;  %10455 = vmatmul.mubr.bf16.gmra.mrb[148].mxu1 %v21352_v24  ;;  %v18773_v24 = vld [vmem:[#allocation17 + $0x1ac] ss:$16 sps:$4 sm:$0xff]  }
 0x893   : > { %10078 = vmatprep.mubr.bf16.mxu0 %v21366_v17  ;;  %10464 = vmatprep.mubr.bf16.mxu1 %v21366_v17  ;;  %v18756_v17 = vld [vmem:[#allocation17 + $0x1a0] ss:$16 sps:$4 sm:$0xff]  }
 0x894   : > { %11568 = vmatpush1.bf16.msra.mxu0 %v18729_v49  ;;  %11954 = vmatpush1.bf16.msra.mxu1 %v18759_v62  ;;  %v18810_v49 = vld [vmem:[#allocation17 + $0x208] ss:$16 sps:$4 sm:$0xff]  }
 0x895   : > { %11569 = vmatprep.subr.bf16.mxu0 %v18740_v42  ;;  %11955 = vmatprep.subr.bf16.mxu1 %v18764_v21 }
 0x898   : > { %11570 = vmatpush1.bf16.msra.mxu0 %v18738_v32  ;;  %11956 = vmatpush1.bf16.msra.mxu1 %v18762_v31  ;;  %v18788_v31 = vld [vmem:[#allocation17 + $0x224] ss:$16 sps:$4 sm:$0xff]  }
 0x899   : > { %11571 = vmatprep.subr.bf16.mxu0 %v18749_v44  ;;  %11957 = vmatprep.subr.bf16.mxu1 %v18770_v50  ;;  %v18815_v44 = vld [vmem:[#allocation17 + $0x22c] ss:$16 sps:$4 sm:$0xff]  }
 0x89a   : > { %10079 = vmatmul.mubr.bf16.gmra.mrb[88].mxu0 %v21364_v43  ;;  %10465 = vmatmul.mubr.bf16.gmra.mrb[152].mxu1 %v21364_v43  ;;  %v18779_v43 = vld [vmem:[#allocation17 + $0x1cc] ss:$16 sps:$4 sm:$0xff]  }
 0x89b   : > { %10088 = vmatprep.mubr.bf16.mxu0 %v21378_v15  ;;  %10474 = vmatprep.mubr.bf16.mxu1 %v21378_v15  ;;  %v18776_v15 = vld [vmem:[#allocation17 + $0x1e4] ss:$16 sps:$4 sm:$0xff]  }
 0x89c   : > { %11572 = vmatpush1.bf16.msra.mxu0 %v18747_v59  ;;  %11958 = vmatpush1.bf16.msra.mxu1 %v18768_v58 }
 0x89d   : > { %11573 = vmatprep.subr.bf16.mxu0 %v18758_v36  ;;  %11959 = vmatprep.subr.bf16.mxu1 %v18773_v24 }
 0x8a0   : > { %11574 = vmatpush1.bf16.msra.mxu0 %v18756_v17  ;;  %11960 = vmatpush1.bf16.msra.mxu1 %v18771_v4 }
 0x8a1   : > { %11575 = vmatprep.subr.bf16.mxu0 %v18767_v51  ;;  %11961 = vmatprep.subr.bf16.mxu1 %v18779_v43 }
 0x8a2   : > { %10089 = vmatmul.mubr.bf16.gmra.mrb[92].mxu0 %v21376_v37  ;;  %10475 = vmatmul.mubr.bf16.gmra.mrb[156].mxu1 %v21376_v37  ;;  %v18777_v37 = vld [vmem:[#allocation17 + $0x1c8] ss:$16 sps:$4 sm:$0xff]  }
 0x8a3   : > { %10098 = vmatprep.mubr.bf16.mxu0 %v21390_v23  ;;  %10484 = vmatprep.mubr.bf16.mxu1 %v21390_v23  ;;  %v18774_v23 = vld [vmem:[#allocation17 + $0x1e0] ss:$16 sps:$4 sm:$0xff]  }
 0x8a4   : > { %11576 = vmatpush1.bf16.msra.mxu0 %v18765_v8  ;;  %11962 = vmatpush1.bf16.msra.mxu1 %v18777_v37  ;;  %v18786_v37 = vld [vmem:[#allocation17 + $0x220] ss:$16 sps:$4 sm:$0xff]  }
 0x8a5   : > { %11577 = vmatprep.subr.bf16.mxu0 %v18776_v15  ;;  %v18791_v15 = vld [vmem:[#allocation17 + $0x244] ss:$16 sps:$4 sm:$0xff]  }
 0x8a8   : > { %11578 = vmatpush1.bf16.msra.mxu0 %v18774_v23 }
 0x8aa   : > { %10099 = vmatmul.mubr.bf16.gmra.mrb[96].mxu0 %v21388_v35  ;;  %10485 = vmatmul.mubr.bf16.gmra.mrb[160].mxu1 %v21388_v35  ;;  %v18782_v35 = vld [vmem:[#allocation17 + $0x1ec] ss:$16 sps:$4 sm:$0xff]  }
 0x8ab   : > { %10108 = vmatprep.mubr.bf16.mxu0 %v21402_v63  ;;  %10494 = vmatprep.mubr.bf16.mxu1 %v21402_v63  ;;  %v18785_v63 = vld [vmem:[#allocation17 + $0x204] ss:$16 sps:$4 sm:$0xff]  }
 0x8ac   : > { %11963 = vmatprep.subr.bf16.mxu1 %v18782_v35  ;;  %11740 = vmatprep.subr.bf16.mxu0 %v18785_v63  ;;  %v18813_v35 = vld [vmem:[#allocation17 + $0x228] ss:$16 sps:$4 sm:$0xff]  }
 0x8b2   : > { %10109 = vmatmul.mubr.bf16.gmra.mrb[100].mxu0 %v21400_v5  ;;  %10495 = vmatmul.mubr.bf16.gmra.mrb[164].mxu1 %v21400_v5  ;;  %v18780_v5 = vld [vmem:[#allocation17 + $0x1e8] ss:$16 sps:$4 sm:$0xff]  }
 0x8b3   : > { %10118 = vmatprep.mubr.bf16.mxu0 %v21414_v54  ;;  %10504 = vmatprep.mubr.bf16.mxu1 %v21414_v54  ;;  %v9131_v54 = vld [vmem:[%s22558_s23] sm:$0xf] }
 0x8b4   : > { %11964 = vmatpush1.bf16.msra.mxu1 %v18780_v5 }
 0x8ba   : > { %10119 = vmatmul.mubr.bf16.gmra.mrb[104].mxu0 %v21412_v45  ;;  %10505 = vmatmul.mubr.bf16.gmra.mrb[168].mxu1 %v21412_v45  ;;  %v18812_v45 = vld [vmem:[#allocation17 + $0x20c] ss:$16 sps:$4 sm:$0xff]  }
 0x8bb   : > { %10128 = vmatprep.mubr.bf16.mxu0 %v21426_v28  ;;  %10514 = vmatprep.mubr.bf16.mxu1 %v21426_v28  ;;  %v21547_v28 = vrot.slane %v9131_v54, %v20012_v27 }
 0x8bc   : > { %12126 = vmatprep.subr.bf16.mxu1 %v18812_v45 }
 0x8c2   : > { %10129 = vmatmul.mubr.bf16.gmra.mrb[108].mxu0 %v21424_v14  ;;  %10515 = vmatmul.mubr.bf16.gmra.mrb[172].mxu1 %v21424_v14  ;;  %v21544_v14 = vrot.slane %v9131_v54, %v19991_v55 }
 0x8c3   : > { %10138 = vmatprep.mubr.bf16.mxu0 %v21438_v19  ;;  %10524 = vmatprep.mubr.bf16.mxu1 %v21438_v19  ;;  %v21553_v19 = vrot.slane %v9131_v54, %v20014_v30 }
 0x8ca   : > { %10139 = vmatmul.mubr.bf16.gmra.mrb[112].mxu0 %v21436_v12  ;;  %10525 = vmatmul.mubr.bf16.gmra.mrb[176].mxu1 %v21436_v12  ;;  %v21550_v12 = vrot.slane %v9131_v54, %v19996_v57  ;;  %v18821_v54 = vld [vmem:[#allocation17 + $0x24c] ss:$16 sps:$4 sm:$0xff]  }
 0x8cb   : > { %10148 = vmatprep.mubr.bf16.mxu0 %v21450_v10  ;;  %10534 = vmatprep.mubr.bf16.mxu1 %v21450_v10 }
 0x8d2   : > { %10149 = vmatmul.mubr.bf16.gmra.mrb[116].mxu0 %v21448_v52  ;;  %10535 = vmatmul.mubr.bf16.gmra.mrb[180].mxu1 %v21448_v52 }
 0x8d3   : > { %10158 = vmatprep.mubr.bf16.mxu0 %v21462_v33  ;;  %10544 = vmatprep.mubr.bf16.mxu1 %v21462_v33 }
 0x8da   : > { %10159 = vmatmul.mubr.bf16.gmra.mrb[120].mxu0 %v21460_v11  ;;  %10545 = vmatmul.mubr.bf16.gmra.mrb[184].mxu1 %v21460_v11 }
 0x8db   : > { %10168 = vmatprep.mubr.bf16.mxu0 %v21474_v13  ;;  %10554 = vmatprep.mubr.bf16.mxu1 %v21474_v13 }
 0x8e2   : > { %10169 = vmatmul.mubr.bf16.gmra.mrb[124].mxu0 %v21472_v38  ;;  %10555 = vmatmul.mubr.bf16.gmra.mrb[188].mxu1 %v21472_v38 }
 0x93d   : > { %v10020_v52 = vpop.f32.mrb[64].mxu0  ;;  %v10406_v10 = vpop.f32.mrb[128].mxu1 }
 0x93e   : > { %v16236_v11 = vadd.f32 %v10020_v52, %v21544_v14  ;;  %v16300_v33 = vadd.f32 %v10406_v10, %v21547_v28  ;;  %v10022_v38 = vpop.f32.mrb[65].mxu0  ;;  %v10408_v13 = vpop.f32.mrb[129].mxu1 }
 0x93f   : > { %v16237_v0 = vadd.f32 %v10022_v38, %v21550_v12  ;;  %v16301_v61 = vadd.f32 %v10408_v13, %v21553_v19  ;;  %v10024_v2 = vpop.f32.mrb[66].mxu0  ;;  %v10410_v16 = vpop.f32.mrb[130].mxu1 }
 0x940   : > { %v16238_v53 = vadd.f32 %v10024_v2, %v21544_v14  ;;  %v16302_v40 = vadd.f32 %v10410_v16, %v21547_v28  ;;  %v10026_v18 = vpop.f32.mrb[67].mxu0  ;;  %v10412_v34 = vpop.f32.mrb[131].mxu1  ;;  %v10565_v26 = vmax.f32 %v16236_v11, 0.0  ;;  %v10567_v20 = vmax.f32 %v16300_v33, 0.0 }
 0x941   : > { %v16239_v7 = vadd.f32 %v10026_v18, %v21550_v12  ;;  %v16303_v47 = vadd.f32 %v10412_v34, %v21553_v19  ;;  %v10566_v22 = vmax.f32 %v16237_v0, 0.0  ;;  %v10568_v29 = vmax.f32 %v16301_v61, 0.0 }
 0x942   : > { %v10569_v25 = vmax.f32 %v16238_v53, 0.0  ;;  %v10571_v48 = vmax.f32 %v16302_v40, 0.0  ;;  %v18789_v53 = vld [vmem:[#allocation17 + $0x240] ss:$16 sps:$4 sm:$0xff]   ;;  %v18819_v40 = vld [vmem:[#allocation17 + $0x248] ss:$16 sps:$4 sm:$0xff]  }
 0x943   : > { %v10570_v3 = vmax.f32 %v16239_v7, 0.0  ;;  %v10572_v41 = vmax.f32 %v16303_v47, 0.0 }
 0x944   : > { %v10693_v46 = vpack.c.bf16 %v10569_v25, %v10565_v26  ;;  %v21563_v1 = vpack.c.bf16 %v10571_v48, %v10567_v20  ;;  %v18794_v26 = vld [vmem:[#allocation17 + $0x264] ss:$16 sps:$4 sm:$0xff]   ;;  %v18824_v20 = vld [vmem:[#allocation17 + $0x26c] ss:$16 sps:$4 sm:$0xff]  }
 0x945   : > { %v10694_v39 = vpack.c.bf16 %v10570_v3, %v10566_v22  ;;  %v21565_v56 = vpack.c.bf16 %v10572_v41, %v10568_v29  ;;  %v10030_v60 = vpop.f32.mrb[68].mxu0  ;;  %v10416_v9 = vpop.f32.mrb[132].mxu1 }
 0x946   : > { %v16240_v62 = vadd.f32 %v10030_v60, %v21544_v14  ;;  %v16304_v42 = vadd.f32 %v10416_v9, %v21547_v28  ;;  %v10032_v21 = vpop.f32.mrb[69].mxu0  ;;  %v10418_v32 = vpop.f32.mrb[133].mxu1 }
 0x947   : > { %v16241_v50 = vadd.f32 %v10032_v21, %v21550_v12  ;;  %v16305_v59 = vadd.f32 %v10418_v32, %v21553_v19  ;;  %v10034_v58 = vpop.f32.mrb[70].mxu0  ;;  %v10420_v36 = vpop.f32.mrb[134].mxu1  ;;  %11579 = vmatprep.mubr.bf16.mxu0 %v10694_v39  ;;  %11965 = vmatprep.mubr.bf16.mxu1 %v10694_v39 }
 0x948   : > { %v16242_v24 = vadd.f32 %v10034_v58, %v21544_v14  ;;  %v16306_v17 = vadd.f32 %v10420_v36, %v21547_v28  ;;  %v10036_v4 = vpop.f32.mrb[71].mxu0  ;;  %v10422_v51 = vpop.f32.mrb[135].mxu1  ;;  %11580 = vmatmul.mubr.bf16.vlgmr.msra.gmra.mrb[128].mxu0 %v10693_v46  ;;  %11966 = vmatmul.mubr.bf16.vlgmr.msra.gmra.mrb[192].mxu1 %v10693_v46  ;;  %v10573_v23 = vmax.f32 %v16240_v62, 0.0  ;;  %v10575_v5 = vmax.f32 %v16304_v42, 0.0  ;;  %v18822_v62 = vld [vmem:[#allocation17 + $0x268] ss:$16 sps:$4 sm:$0xff]  }
 0x949   : > { %v16243_v8 = vadd.f32 %v10036_v4, %v21550_v12  ;;  %v16307_v43 = vadd.f32 %v10422_v51, %v21553_v19  ;;  %11741 = vmatpush1.bf16.msra.mxu0 %v18783_v6  ;;  %12127 = vmatpush1.bf16.msra.mxu1 %v18810_v49  ;;  %v10574_v52 = vmax.f32 %v16241_v50, 0.0  ;;  %v10576_v10 = vmax.f32 %v16305_v59, 0.0  ;;  %v18792_v6 = vld [vmem:[#allocation17 + $0x260] ss:$16 sps:$4 sm:$0xff]   ;;  %v18797_v49 = vld [vmem:[#allocation17 + $0x284] ss:$16 sps:$4 sm:$0xff]  }
 0x94a   : > { %v10577_v63 = vmax.f32 %v16242_v24, 0.0  ;;  %v10579_v45 = vmax.f32 %v16306_v17, 0.0  ;;  %11742 = vmatprep.subr.bf16.mxu0 %v18788_v31  ;;  %12128 = vmatprep.subr.bf16.mxu1 %v18815_v44  ;;  %v18830_v44 = vld [vmem:[#allocation17 + $0x28c] ss:$16 sps:$4 sm:$0xff]  }
 0x94b   : > { %v10578_v11 = vmax.f32 %v16243_v8, 0.0  ;;  %v10580_v33 = vmax.f32 %v16307_v43, 0.0 }
 0x94c   : > { %v10697_v38 = vpack.c.bf16 %v10577_v63, %v10573_v23  ;;  %v21575_v13 = vpack.c.bf16 %v10579_v45, %v10575_v5  ;;  %v18800_v45 = vld [vmem:[#allocation17 + $0x2a4] ss:$16 sps:$4 sm:$0xff]  }
 0x94d   : > { %v10698_v0 = vpack.c.bf16 %v10578_v11, %v10574_v52  ;;  %v21577_v61 = vpack.c.bf16 %v10580_v33, %v10576_v10  ;;  %v10040_v2 = vpop.f32.mrb[72].mxu0  ;;  %v10426_v16 = vpop.f32.mrb[136].mxu1  ;;  %11743 = vmatpush1.bf16.msra.mxu0 %v18786_v37  ;;  %12129 = vmatpush1.bf16.msra.mxu1 %v18813_v35  ;;  %v18795_v37 = vld [vmem:[#allocation17 + $0x280] ss:$16 sps:$4 sm:$0xff]  }
 0x94e   : > { %v16244_v18 = vadd.f32 %v10040_v2, %v21544_v14  ;;  %v16308_v34 = vadd.f32 %v10426_v16, %v21547_v28  ;;  %v10042_v7 = vpop.f32.mrb[73].mxu0  ;;  %v10428_v47 = vpop.f32.mrb[137].mxu1  ;;  %11744 = vmatprep.subr.bf16.mxu0 %v18791_v15  ;;  %12130 = vmatprep.subr.bf16.mxu1 %v18821_v54  ;;  %v18828_v15 = vld [vmem:[#allocation17 + $0x288] ss:$16 sps:$4 sm:$0xff]   ;;  %v18833_v54 = vld [vmem:[#allocation17 + $0x2ac] ss:$16 sps:$4 sm:$0xff]  }
 0x94f   : > { %v16245_v25 = vadd.f32 %v10042_v7, %v21550_v12  ;;  %v16309_v48 = vadd.f32 %v10428_v47, %v21553_v19  ;;  %v10044_v22 = vpop.f32.mrb[74].mxu0  ;;  %v10430_v29 = vpop.f32.mrb[138].mxu1  ;;  %11589 = vmatprep.mubr.bf16.mxu0 %v10698_v0  ;;  %11975 = vmatprep.mubr.bf16.mxu1 %v10698_v0  ;;  %v18831_v7 = vld [vmem:[#allocation17 + $0x2a8] ss:$16 sps:$4 sm:$0xff]  }
 0x950   : > { %v16246_v3 = vadd.f32 %v10044_v22, %v21544_v14  ;;  %v16310_v41 = vadd.f32 %v10430_v29, %v21547_v28  ;;  %v10046_v46 = vpop.f32.mrb[75].mxu0  ;;  %v10432_v39 = vpop.f32.mrb[139].mxu1  ;;  %11590 = vmatmul.mubr.bf16.gmra.mrb[132].mxu0 %v10697_v38  ;;  %11976 = vmatmul.mubr.bf16.gmra.mrb[196].mxu1 %v10697_v38  ;;  %v10581_v42 = vmax.f32 %v16244_v18, 0.0  ;;  %v10583_v21 = vmax.f32 %v16308_v34, 0.0  ;;  %v18798_v18 = vld [vmem:[#allocation17 + $0x2a0] ss:$16 sps:$4 sm:$0xff]  }
 0x951   : > { %v16247_v60 = vadd.f32 %v10046_v46, %v21550_v12  ;;  %v16311_v9 = vadd.f32 %v10432_v39, %v21553_v19  ;;  %11745 = vmatpush1.bf16.msra.mxu0 %v18789_v53  ;;  %12131 = vmatpush1.bf16.msra.mxu1 %v18819_v40  ;;  %v10582_v50 = vmax.f32 %v16245_v25, 0.0  ;;  %v10584_v59 = vmax.f32 %v16309_v48, 0.0  ;;  %v18803_v34 = vld [vmem:[#allocation17 + $0x2c4] ss:$16 sps:$4 sm:$0xff]   ;;  %v18839_v48 = vld [vmem:[#allocation17 + $0x2cc] ss:$16 sps:$4 sm:$0xff]  }
 0x952   : > { %v10585_v32 = vmax.f32 %v16246_v3, 0.0  ;;  %v10587_v31 = vmax.f32 %v16310_v41, 0.0  ;;  %11746 = vmatprep.subr.bf16.mxu0 %v18794_v26  ;;  %12132 = vmatprep.subr.bf16.mxu1 %v18824_v20 }
 0x953   : > { %v10586_v58 = vmax.f32 %v16247_v60, 0.0  ;;  %v10588_v36 = vmax.f32 %v16311_v9, 0.0 }
 0x954   : > { %v10701_v24 = vpack.c.bf16 %v10585_v32, %v10581_v42  ;;  %v21587_v17 = vpack.c.bf16 %v10587_v31, %v10583_v21  ;;  %v18837_v42 = vld [vmem:[#allocation17 + $0x2c8] ss:$16 sps:$4 sm:$0xff]  }
 0x955   : > { %v10702_v4 = vpack.c.bf16 %v10586_v58, %v10582_v50  ;;  %v21589_v51 = vpack.c.bf16 %v10588_v36, %v10584_v59  ;;  %v10050_v8 = vpop.f32.mrb[76].mxu0  ;;  %v10436_v43 = vpop.f32.mrb[140].mxu1  ;;  %11747 = vmatpush1.bf16.msra.mxu0 %v18792_v6  ;;  %12133 = vmatpush1.bf16.msra.mxu1 %v18822_v62  ;;  %v18801_v62 = vld [vmem:[#allocation17 + $0x2c0] ss:$16 sps:$4 sm:$0xff]   ;;  %v18806_v50 = vld [vmem:[#allocation17 + $0x2e4] ss:$16 sps:$4 sm:$0xff]  }
 0x956   : > { %v16248_v35 = vadd.f32 %v10050_v8, %v21544_v14  ;;  %v16312_v23 = vadd.f32 %v10436_v43, %v21547_v28  ;;  %v10052_v5 = vpop.f32.mrb[77].mxu0  ;;  %v10438_v63 = vpop.f32.mrb[141].mxu1  ;;  %11748 = vmatprep.subr.bf16.mxu0 %v18797_v49  ;;  %12134 = vmatprep.subr.bf16.mxu1 %v18830_v44  ;;  %v18842_v59 = vld [vmem:[#allocation17 + $0x2ec] ss:$16 sps:$4 sm:$0xff]  }
 0x957   : > { %v16249_v52 = vadd.f32 %v10052_v5, %v21550_v12  ;;  %v16313_v10 = vadd.f32 %v10438_v63, %v21553_v19  ;;  %v10054_v11 = vpop.f32.mrb[78].mxu0  ;;  %v10440_v33 = vpop.f32.mrb[142].mxu1  ;;  %11599 = vmatprep.mubr.bf16.mxu0 %v10702_v4  ;;  %11985 = vmatprep.mubr.bf16.mxu1 %v10702_v4  ;;  %v18804_v5 = vld [vmem:[#allocation17 + $0x2e0] ss:$16 sps:$4 sm:$0xff]   ;;  %v18809_v63 = vld [vmem:[#allocation17 + $0x304] ss:$16 sps:$4 sm:$0xff]  }
 0x958   : > { %v16250_v38 = vadd.f32 %v10054_v11, %v21544_v14  ;;  %v16314_v0 = vadd.f32 %v10440_v33, %v21547_v28  ;;  %v10056_v2 = vpop.f32.mrb[79].mxu0  ;;  %v10442_v16 = vpop.f32.mrb[143].mxu1  ;;  %11600 = vmatmul.mubr.bf16.gmra.mrb[136].mxu0 %v10701_v24  ;;  %11986 = vmatmul.mubr.bf16.gmra.mrb[200].mxu1 %v10701_v24  ;;  %v10589_v47 = vmax.f32 %v16248_v35, 0.0  ;;  %v10591_v26 = vmax.f32 %v16312_v23, 0.0  ;;  %v18848_v33 = vld [vmem:[#allocation17 + $0x30c] ss:$16 sps:$4 sm:$0xff]  }
 0x959   : > { %v16251_v53 = vadd.f32 %v10056_v2, %v21550_v12  ;;  %v16315_v40 = vadd.f32 %v10442_v16, %v21553_v19  ;;  %11749 = vmatpush1.bf16.msra.mxu0 %v18795_v37  ;;  %12135 = vmatpush1.bf16.msra.mxu1 %v18828_v15  ;;  %v10590_v22 = vmax.f32 %v16249_v52, 0.0  ;;  %v10592_v29 = vmax.f32 %v16313_v10, 0.0 }
 0x95a   : > { %v10593_v20 = vmax.f32 %v16250_v38, 0.0  ;;  %v10595_v25 = vmax.f32 %v16314_v0, 0.0  ;;  %11750 = vmatprep.subr.bf16.mxu0 %v18800_v45  ;;  %12136 = vmatprep.subr.bf16.mxu1 %v18833_v54  ;;  %v18840_v45 = vld [vmem:[#allocation17 + $0x2e8] ss:$16 sps:$4 sm:$0xff]  }
 0x95b   : > { %v10594_v3 = vmax.f32 %v16251_v53, 0.0  ;;  %v10596_v41 = vmax.f32 %v16315_v40, 0.0 }
 0x95c   : > { %v10705_v46 = vpack.c.bf16 %v10593_v20, %v10589_v47  ;;  %v21599_v39 = vpack.c.bf16 %v10595_v25, %v10591_v26  ;;  %v18807_v26 = vld [vmem:[#allocation17 + $0x300] ss:$16 sps:$4 sm:$0xff]   ;;  %v18846_v20 = vld [vmem:[#allocation17 + $0x308] ss:$16 sps:$4 sm:$0xff]  }
 0x95d   : > { %v10706_v60 = vpack.c.bf16 %v10594_v3, %v10590_v22  ;;  %v21601_v9 = vpack.c.bf16 %v10596_v41, %v10592_v29  ;;  %v10060_v6 = vpop.f32.mrb[80].mxu0  ;;  %v10446_v49 = vpop.f32.mrb[144].mxu1  ;;  %11751 = vmatpush1.bf16.msra.mxu0 %v18798_v18  ;;  %12137 = vmatpush1.bf16.msra.mxu1 %v18831_v7  ;;  %v18818_v3 = vld [vmem:[#allocation17 + $0x324] ss:$16 sps:$4 sm:$0xff]   ;;  %v18851_v41 = vld [vmem:[#allocation17 + $0x32c] ss:$16 sps:$4 sm:$0xff]  }
 0x95e   : > { %v16252_v21 = vadd.f32 %v10060_v6, %v21544_v14  ;;  %v16316_v32 = vadd.f32 %v10446_v49, %v21547_v28  ;;  %v10062_v31 = vpop.f32.mrb[81].mxu0  ;;  %v10448_v44 = vpop.f32.mrb[145].mxu1  ;;  %11752 = vmatprep.subr.bf16.mxu0 %v18803_v34  ;;  %12138 = vmatprep.subr.bf16.mxu1 %v18839_v48 }
 0x95f   : > { %v16253_v58 = vadd.f32 %v10062_v31, %v21550_v12  ;;  %v16317_v36 = vadd.f32 %v10448_v44, %v21553_v19  ;;  %v10064_v24 = vpop.f32.mrb[82].mxu0  ;;  %v10450_v4 = vpop.f32.mrb[146].mxu1  ;;  %11609 = vmatprep.mubr.bf16.mxu0 %v10706_v60  ;;  %11995 = vmatprep.mubr.bf16.mxu1 %v10706_v60 }
 0x960   : > { %v16254_v8 = vadd.f32 %v10064_v24, %v21544_v14  ;;  %v16318_v43 = vadd.f32 %v10450_v4, %v21547_v28  ;;  %v10066_v37 = vpop.f32.mrb[83].mxu0  ;;  %v10452_v15 = vpop.f32.mrb[147].mxu1  ;;  %11610 = vmatmul.mubr.bf16.gmra.mrb[140].mxu0 %v10705_v46  ;;  %11996 = vmatmul.mubr.bf16.gmra.mrb[204].mxu1 %v10705_v46  ;;  %v10597_v54 = vmax.f32 %v16252_v21, 0.0  ;;  %v10599_v52 = vmax.f32 %v16316_v32, 0.0 }
 0x961   : > { %v16255_v35 = vadd.f32 %v10066_v37, %v21550_v12  ;;  %v16319_v23 = vadd.f32 %v10452_v15, %v21553_v19  ;;  %11753 = vmatpush1.bf16.msra.mxu0 %v18801_v62  ;;  %12139 = vmatpush1.bf16.msra.mxu1 %v18837_v42  ;;  %v10598_v38 = vmax.f32 %v16253_v58, 0.0  ;;  %v10600_v0 = vmax.f32 %v16317_v36, 0.0  ;;  %v18849_v58 = vld [vmem:[#allocation17 + $0x328] ss:$16 sps:$4 sm:$0xff]  }
 0x962   : > { %v10601_v10 = vmax.f32 %v16254_v8, 0.0  ;;  %v10603_v11 = vmax.f32 %v16318_v43, 0.0  ;;  %11754 = vmatprep.subr.bf16.mxu0 %v18806_v50  ;;  %12140 = vmatprep.subr.bf16.mxu1 %v18842_v59  ;;  %v18816_v50 = vld [vmem:[#allocation17 + $0x320] ss:$16 sps:$4 sm:$0xff]   ;;  %v18827_v59 = vld [vmem:[#allocation17 + $0x344] ss:$16 sps:$4 sm:$0xff]  }
 0x963   : > { %v10602_v2 = vmax.f32 %v16255_v35, 0.0  ;;  %v10604_v16 = vmax.f32 %v16319_v23, 0.0  ;;  %v18857_v43 = vld [vmem:[#allocation17 + $0x34c] ss:$16 sps:$4 sm:$0xff]  }
 0x964   : > { %v10709_v53 = vpack.c.bf16 %v10601_v10, %v10597_v54  ;;  %v21611_v40 = vpack.c.bf16 %v10603_v11, %v10599_v52  ;;  %v18825_v11 = vld [vmem:[#allocation17 + $0x340] ss:$16 sps:$4 sm:$0xff]  }
 0x965   : > { %v10710_v18 = vpack.c.bf16 %v10602_v2, %v10598_v38  ;;  %v21613_v34 = vpack.c.bf16 %v10604_v16, %v10600_v0  ;;  %v10070_v7 = vpop.f32.mrb[84].mxu0  ;;  %v10456_v47 = vpop.f32.mrb[148].mxu1  ;;  %11755 = vmatpush1.bf16.msra.mxu0 %v18804_v5  ;;  %12141 = vmatpush1.bf16.msra.mxu1 %v18840_v45 }
 0x966   : > { %v16256_v25 = vadd.f32 %v10070_v7, %v21544_v14  ;;  %v16320_v48 = vadd.f32 %v10456_v47, %v21547_v28  ;;  %v10072_v22 = vpop.f32.mrb[85].mxu0  ;;  %v10458_v29 = vpop.f32.mrb[149].mxu1  ;;  %11756 = vmatprep.subr.bf16.mxu0 %v18809_v63  ;;  %12142 = vmatprep.subr.bf16.mxu1 %v18848_v33  ;;  %v18855_v33 = vld [vmem:[#allocation17 + $0x348] ss:$16 sps:$4 sm:$0xff]  }
 0x967   : > { %v16257_v46 = vadd.f32 %v10072_v22, %v21550_v12  ;;  %v16321_v60 = vadd.f32 %v10458_v29, %v21553_v19  ;;  %v10074_v6 = vpop.f32.mrb[86].mxu0  ;;  %v10460_v49 = vpop.f32.mrb[150].mxu1  ;;  %11619 = vmatprep.mubr.bf16.mxu0 %v10710_v18  ;;  %12005 = vmatprep.mubr.bf16.mxu1 %v10710_v18  ;;  %v18860_v18 = vld [vmem:[#allocation17 + $0x36c] ss:$16 sps:$4 sm:$0xff]  }
 0x968   : > { %v16258_v62 = vadd.f32 %v10074_v6, %v21544_v14  ;;  %v16322_v42 = vadd.f32 %v10460_v49, %v21547_v28  ;;  %v10076_v21 = vpop.f32.mrb[87].mxu0  ;;  %v10462_v32 = vpop.f32.mrb[151].mxu1  ;;  %11620 = vmatmul.mubr.bf16.gmra.mrb[144].mxu0 %v10709_v53  ;;  %12006 = vmatmul.mubr.bf16.gmra.mrb[208].mxu1 %v10709_v53  ;;  %v10605_v36 = vmax.f32 %v16256_v25, 0.0  ;;  %v10607_v24 = vmax.f32 %v16320_v48, 0.0  ;;  %v18836_v53 = vld [vmem:[#allocation17 + $0x364] ss:$16 sps:$4 sm:$0xff]  }
 0x969   : > { %v16259_v31 = vadd.f32 %v10076_v21, %v21550_v12  ;;  %v16323_v44 = vadd.f32 %v10462_v32, %v21553_v19  ;;  %11757 = vmatpush1.bf16.msra.mxu0 %v18807_v26  ;;  %12143 = vmatpush1.bf16.msra.mxu1 %v18846_v20  ;;  %v10606_v37 = vmax.f32 %v16257_v46, 0.0  ;;  %v10608_v15 = vmax.f32 %v16321_v60, 0.0  ;;  %v18834_v46 = vld [vmem:[#allocation17 + $0x360] ss:$16 sps:$4 sm:$0xff]   ;;  %v18845_v60 = vld [vmem:[#allocation17 + $0x384] ss:$16 sps:$4 sm:$0xff]  }
 0x96a   : > { %v10609_v4 = vmax.f32 %v16258_v62, 0.0  ;;  %v10611_v8 = vmax.f32 %v16322_v42, 0.0  ;;  %11758 = vmatprep.subr.bf16.mxu0 %v18818_v3  ;;  %12144 = vmatprep.subr.bf16.mxu1 %v18851_v41  ;;  %v18858_v6 = vld [vmem:[#allocation17 + $0x368] ss:$16 sps:$4 sm:$0xff]   ;;  %v18866_v32 = vld [vmem:[#allocation17 + $0x38c] ss:$16 sps:$4 sm:$0xff]  }
 0x96b   : > { %v10610_v35 = vmax.f32 %v16259_v31, 0.0  ;;  %v10612_v23 = vmax.f32 %v16323_v44, 0.0 }
 0x96c   : > { %v10713_v5 = vpack.c.bf16 %v10609_v4, %v10605_v36  ;;  %v21623_v63 = vpack.c.bf16 %v10611_v8, %v10607_v24 }
 0x96d   : > { %v10714_v45 = vpack.c.bf16 %v10610_v35, %v10606_v37  ;;  %v21625_v54 = vpack.c.bf16 %v10612_v23, %v10608_v15  ;;  %v10080_v52 = vpop.f32.mrb[88].mxu0  ;;  %v10466_v10 = vpop.f32.mrb[152].mxu1  ;;  %11759 = vmatpush1.bf16.msra.mxu0 %v18816_v50  ;;  %12145 = vmatpush1.bf16.msra.mxu1 %v18849_v58  ;;  %v18843_v37 = vld [vmem:[#allocation17 + $0x380] ss:$16 sps:$4 sm:$0xff]   ;;  %v18864_v15 = vld [vmem:[#allocation17 + $0x388] ss:$16 sps:$4 sm:$0xff]  }
 0x96e   : > { %v16260_v38 = vadd.f32 %v10080_v52, %v21544_v14  ;;  %v16324_v0 = vadd.f32 %v10466_v10, %v21547_v28  ;;  %v10082_v2 = vpop.f32.mrb[89].mxu0  ;;  %v10468_v16 = vpop.f32.mrb[153].mxu1  ;;  %11760 = vmatprep.subr.bf16.mxu0 %v18827_v59  ;;  %12146 = vmatprep.subr.bf16.mxu1 %v18857_v43  ;;  %v18854_v52 = vld [vmem:[#allocation17 + $0x3a4] ss:$16 sps:$4 sm:$0xff]   ;;  %v18869_v10 = vld [vmem:[#allocation17 + $0x3ac] ss:$16 sps:$4 sm:$0xff]  }
 0x96f   : > { %v16261_v7 = vadd.f32 %v10082_v2, %v21550_v12  ;;  %v16325_v47 = vadd.f32 %v10468_v16, %v21553_v19  ;;  %v10084_v26 = vpop.f32.mrb[90].mxu0  ;;  %v10470_v20 = vpop.f32.mrb[154].mxu1  ;;  %11629 = vmatprep.mubr.bf16.mxu0 %v10714_v45  ;;  %12015 = vmatprep.mubr.bf16.mxu1 %v10714_v45 }
 0x970   : > { %v16262_v25 = vadd.f32 %v10084_v26, %v21544_v14  ;;  %v16326_v48 = vadd.f32 %v10470_v20, %v21547_v28  ;;  %v10086_v22 = vpop.f32.mrb[91].mxu0  ;;  %v10472_v29 = vpop.f32.mrb[155].mxu1  ;;  %11630 = vmatmul.mubr.bf16.gmra.mrb[148].mxu0 %v10713_v5  ;;  %12016 = vmatmul.mubr.bf16.gmra.mrb[212].mxu1 %v10713_v5  ;;  %v10613_v49 = vmax.f32 %v16260_v38, 0.0  ;;  %v10615_v62 = vmax.f32 %v16324_v0, 0.0  ;;  %v18852_v26 = vld [vmem:[#allocation17 + $0x3a0] ss:$16 sps:$4 sm:$0xff]  }
 0x971   : > { %v16263_v3 = vadd.f32 %v10086_v22, %v21550_v12  ;;  %v16327_v41 = vadd.f32 %v10472_v29, %v21553_v19  ;;  %11761 = vmatpush1.bf16.msra.mxu0 %v18825_v11  ;;  %12147 = vmatpush1.bf16.msra.mxu1 %v18855_v33  ;;  %v10614_v31 = vmax.f32 %v16261_v7, 0.0  ;;  %v10616_v44 = vmax.f32 %v16325_v47, 0.0  ;;  %v18863_v20 = vld [vmem:[#allocation17 + $0x3c4] ss:$16 sps:$4 sm:$0xff]  }
 0x972   : > { %v10617_v42 = vmax.f32 %v16262_v25, 0.0  ;;  %v10619_v21 = vmax.f32 %v16326_v48, 0.0  ;;  %11762 = vmatprep.subr.bf16.mxu0 %v18836_v53  ;;  %12148 = vmatprep.subr.bf16.mxu1 %v18860_v18  ;;  %v18867_v25 = vld [vmem:[#allocation17 + $0x3a8] ss:$16 sps:$4 sm:$0xff]  }
 0x973   : > { %v10618_v50 = vmax.f32 %v16263_v3, 0.0  ;;  %v10620_v59 = vmax.f32 %v16327_v41, 0.0  ;;  %v18875_v41 = vld [vmem:[#allocation17 + $0x3cc] ss:$16 sps:$4 sm:$0xff]  }
 0x974   : > { %v10717_v58 = vpack.c.bf16 %v10617_v42, %v10613_v49  ;;  %v21635_v36 = vpack.c.bf16 %v10619_v21, %v10615_v62 }
 0x975   : > { %v10718_v24 = vpack.c.bf16 %v10618_v50, %v10614_v31  ;;  %v21637_v4 = vpack.c.bf16 %v10620_v59, %v10616_v44  ;;  %v10090_v8 = vpop.f32.mrb[92].mxu0  ;;  %v10476_v43 = vpop.f32.mrb[156].mxu1  ;;  %11763 = vmatpush1.bf16.msra.mxu0 %v18834_v46  ;;  %12149 = vmatpush1.bf16.msra.mxu1 %v18858_v6  ;;  %v18861_v50 = vld [vmem:[#allocation17 + $0x3c0] ss:$16 sps:$4 sm:$0xff]   ;;  %v18873_v59 = vld [vmem:[#allocation17 + $0x3c8] ss:$16 sps:$4 sm:$0xff]  }
 0x976   : > { %v16264_v35 = vadd.f32 %v10090_v8, %v21544_v14  ;;  %v16328_v23 = vadd.f32 %v10476_v43, %v21547_v28  ;;  %v10092_v5 = vpop.f32.mrb[93].mxu0  ;;  %v10478_v45 = vpop.f32.mrb[157].mxu1  ;;  %11764 = vmatprep.subr.bf16.mxu0 %v18845_v60  ;;  %12150 = vmatprep.subr.bf16.mxu1 %v18866_v32 }
 0x977   : > { %v16265_v11 = vadd.f32 %v10092_v5, %v21550_v12  ;;  %v16329_v33 = vadd.f32 %v10478_v45, %v21553_v19  ;;  %v10094_v38 = vpop.f32.mrb[94].mxu0  ;;  %v10480_v0 = vpop.f32.mrb[158].mxu1  ;;  %11639 = vmatprep.mubr.bf16.mxu0 %v10718_v24  ;;  %12025 = vmatprep.mubr.bf16.mxu1 %v10718_v24 }
 0x978   : > { %v16266_v2 = vadd.f32 %v10094_v38, %v21544_v14  ;;  %v16330_v16 = vadd.f32 %v10480_v0, %v21547_v28  ;;  %v10096_v53 = vpop.f32.mrb[95].mxu0  ;;  %v10482_v18 = vpop.f32.mrb[159].mxu1  ;;  %11640 = vmatmul.mubr.bf16.gmra.mrb[152].mxu0 %v10717_v58  ;;  %12026 = vmatmul.mubr.bf16.gmra.mrb[216].mxu1 %v10717_v58  ;;  %v10621_v48 = vmax.f32 %v16264_v35, 0.0  ;;  %v10623_v22 = vmax.f32 %v16328_v23, 0.0 }
 0x979   : > { %v16267_v7 = vadd.f32 %v10096_v53, %v21550_v12  ;;  %v16331_v47 = vadd.f32 %v10482_v18, %v21553_v19  ;;  %11765 = vmatpush1.bf16.msra.mxu0 %v18843_v37  ;;  %12151 = vmatpush1.bf16.msra.mxu1 %v18864_v15  ;;  %v10622_v46 = vmax.f32 %v16265_v11, 0.0  ;;  %v10624_v60 = vmax.f32 %v16329_v33, 0.0  ;;  %v18872_v37 = vld [vmem:[#allocation17 + $0x3e4] ss:$16 sps:$4 sm:$0xff]   ;;  %v18878_v15 = vld [vmem:[#allocation17 + $0x3ec] ss:$16 sps:$4 sm:$0xff]  }
 0x97a   : > { %v10625_v29 = vmax.f32 %v16266_v2, 0.0  ;;  %v10627_v3 = vmax.f32 %v16330_v16, 0.0  ;;  %11766 = vmatprep.subr.bf16.mxu0 %v18854_v52  ;;  %12152 = vmatprep.subr.bf16.mxu1 %v18869_v10  ;;  %v18870_v2 = vld [vmem:[#allocation17 + $0x3e0] ss:$16 sps:$4 sm:$0xff]   ;;  %v18876_v16 = vld [vmem:[#allocation17 + $0x3e8] ss:$16 sps:$4 sm:$0xff]  }
 0x97b   : > { %v10626_v6 = vmax.f32 %v16267_v7, 0.0  ;;  %v10628_v49 = vmax.f32 %v16331_v47, 0.0 }
 0x97c   : > { %v10721_v62 = vpack.c.bf16 %v10625_v29, %v10621_v48  ;;  %v21647_v42 = vpack.c.bf16 %v10627_v3, %v10623_v22 }
 0x97d   : > { %v10722_v21 = vpack.c.bf16 %v10626_v6, %v10622_v46  ;;  %v21649_v32 = vpack.c.bf16 %v10628_v49, %v10624_v60  ;;  %v10100_v31 = vpop.f32.mrb[96].mxu0  ;;  %v10486_v44 = vpop.f32.mrb[160].mxu1  ;;  %11767 = vmatpush1.bf16.msra.mxu0 %v18852_v26  ;;  %12153 = vmatpush1.bf16.msra.mxu1 %v18867_v25 }
 0x97e   : > { %v16268_v58 = vadd.f32 %v10100_v31, %v21544_v14  ;;  %v16332_v24 = vadd.f32 %v10486_v44, %v21547_v28  ;;  %v10102_v8 = vpop.f32.mrb[97].mxu0  ;;  %v10488_v43 = vpop.f32.mrb[161].mxu1  ;;  %11768 = vmatprep.subr.bf16.mxu0 %v18863_v20  ;;  %12154 = vmatprep.subr.bf16.mxu1 %v18875_v41 }
 0x97f   : > { %v16269_v35 = vadd.f32 %v10102_v8, %v21550_v12  ;;  %v16333_v23 = vadd.f32 %v10488_v43, %v21553_v19  ;;  %v10104_v5 = vpop.f32.mrb[98].mxu0  ;;  %v10490_v45 = vpop.f32.mrb[162].mxu1  ;;  %11649 = vmatprep.mubr.bf16.mxu0 %v10722_v21  ;;  %12035 = vmatprep.mubr.bf16.mxu1 %v10722_v21 }
 0x980   : > { %v16270_v52 = vadd.f32 %v10104_v5, %v21544_v14  ;;  %v16334_v10 = vadd.f32 %v10490_v45, %v21547_v28  ;;  %v10106_v11 = vpop.f32.mrb[99].mxu0  ;;  %v10492_v33 = vpop.f32.mrb[163].mxu1  ;;  %11650 = vmatmul.mubr.bf16.gmra.mrb[156].mxu0 %v10721_v62  ;;  %12036 = vmatmul.mubr.bf16.gmra.mrb[220].mxu1 %v10721_v62  ;;  %v10629_v53 = vmax.f32 %v16268_v58, 0.0  ;;  %v10631_v18 = vmax.f32 %v16332_v24, 0.0 }
 0x981   : > { %v16271_v38 = vadd.f32 %v10106_v11, %v21550_v12  ;;  %v16335_v0 = vadd.f32 %v10492_v33, %v21553_v19  ;;  %11769 = vmatpush1.bf16.msra.mxu0 %v18861_v50  ;;  %12155 = vmatpush1.bf16.msra.mxu1 %v18873_v59  ;;  %v10630_v26 = vmax.f32 %v16269_v35, 0.0  ;;  %v10632_v20 = vmax.f32 %v16333_v23, 0.0 }
 0x982   : > { %v10633_v7 = vmax.f32 %v16270_v52, 0.0  ;;  %v10635_v47 = vmax.f32 %v16334_v10, 0.0  ;;  %11770 = vmatprep.subr.bf16.mxu0 %v18872_v37  ;;  %12156 = vmatprep.subr.bf16.mxu1 %v18878_v15 }
 0x983   : > { %v10634_v25 = vmax.f32 %v16271_v38, 0.0  ;;  %v10636_v48 = vmax.f32 %v16335_v0, 0.0 }
 0x984   : > { %v10725_v22 = vpack.c.bf16 %v10633_v7, %v10629_v53  ;;  %v21659_v29 = vpack.c.bf16 %v10635_v47, %v10631_v18 }
 0x985   : > { %v10726_v3 = vpack.c.bf16 %v10634_v25, %v10630_v26  ;;  %v21661_v41 = vpack.c.bf16 %v10636_v48, %v10632_v20  ;;  %v10110_v46 = vpop.f32.mrb[100].mxu0  ;;  %v10496_v60 = vpop.f32.mrb[164].mxu1  ;;  %11771 = vmatpush1.bf16.msra.mxu0 %v18870_v2  ;;  %12157 = vmatpush1.bf16.msra.mxu1 %v18876_v16 }
 0x986   : > { %v16272_v6 = vadd.f32 %v10110_v46, %v21544_v14  ;;  %v16336_v49 = vadd.f32 %v10496_v60, %v21547_v28  ;;  %v10112_v62 = vpop.f32.mrb[101].mxu0  ;;  %v10498_v21 = vpop.f32.mrb[165].mxu1 }
 0x987   : > { %v16273_v31 = vadd.f32 %v10112_v62, %v21550_v12  ;;  %v16337_v44 = vadd.f32 %v10498_v21, %v21553_v19  ;;  %v10114_v50 = vpop.f32.mrb[102].mxu0  ;;  %v10500_v59 = vpop.f32.mrb[166].mxu1  ;;  %11659 = vmatprep.mubr.bf16.mxu0 %v10726_v3  ;;  %12045 = vmatprep.mubr.bf16.mxu1 %v10726_v3 }
 0x988   : > { %v16274_v58 = vadd.f32 %v10114_v50, %v21544_v14  ;;  %v16338_v24 = vadd.f32 %v10500_v59, %v21547_v28  ;;  %v10116_v8 = vpop.f32.mrb[103].mxu0  ;;  %v10502_v43 = vpop.f32.mrb[167].mxu1  ;;  %11660 = vmatmul.mubr.bf16.gmra.mrb[160].mxu0 %v10725_v22  ;;  %12046 = vmatmul.mubr.bf16.gmra.mrb[224].mxu1 %v10725_v22  ;;  %v10637_v35 = vmax.f32 %v16272_v6, 0.0  ;;  %v10639_v23 = vmax.f32 %v16336_v49, 0.0 }
 0x989   : > { %v16275_v37 = vadd.f32 %v10116_v8, %v21550_v12  ;;  %v16339_v15 = vadd.f32 %v10502_v43, %v21553_v19  ;;  %v10638_v52 = vmax.f32 %v16273_v31, 0.0  ;;  %v10640_v10 = vmax.f32 %v16337_v44, 0.0 }
 0x98a   : > { %v10641_v5 = vmax.f32 %v16274_v58, 0.0  ;;  %v10643_v45 = vmax.f32 %v16338_v24, 0.0 }
 0x98b   : > { %v10642_v11 = vmax.f32 %v16275_v37, 0.0  ;;  %v10644_v33 = vmax.f32 %v16339_v15, 0.0 }
 0x98c   : > { %v10729_v38 = vpack.c.bf16 %v10641_v5, %v10637_v35  ;;  %v21671_v0 = vpack.c.bf16 %v10643_v45, %v10639_v23 }
 0x98d   : > { %v10730_v2 = vpack.c.bf16 %v10642_v11, %v10638_v52  ;;  %v21673_v16 = vpack.c.bf16 %v10644_v33, %v10640_v10  ;;  %v10120_v53 = vpop.f32.mrb[104].mxu0  ;;  %v10506_v18 = vpop.f32.mrb[168].mxu1 }
 0x98e   : > { %v16276_v7 = vadd.f32 %v10120_v53, %v21544_v14  ;;  %v16340_v47 = vadd.f32 %v10506_v18, %v21547_v28  ;;  %v10122_v26 = vpop.f32.mrb[105].mxu0  ;;  %v10508_v20 = vpop.f32.mrb[169].mxu1 }
 0x98f   : > { %v16277_v25 = vadd.f32 %v10122_v26, %v21550_v12  ;;  %v16341_v48 = vadd.f32 %v10508_v20, %v21553_v19  ;;  %v10124_v22 = vpop.f32.mrb[106].mxu0  ;;  %v10510_v3 = vpop.f32.mrb[170].mxu1  ;;  %11669 = vmatprep.mubr.bf16.mxu0 %v10730_v2  ;;  %12055 = vmatprep.mubr.bf16.mxu1 %v10730_v2 }
 0x990   : > { %v16278_v46 = vadd.f32 %v10124_v22, %v21544_v14  ;;  %v16342_v60 = vadd.f32 %v10510_v3, %v21547_v28  ;;  %v10126_v6 = vpop.f32.mrb[107].mxu0  ;;  %v10512_v49 = vpop.f32.mrb[171].mxu1  ;;  %11670 = vmatmul.mubr.bf16.gmra.mrb[164].mxu0 %v10729_v38  ;;  %12056 = vmatmul.mubr.bf16.gmra.mrb[228].mxu1 %v10729_v38  ;;  %v10645_v31 = vmax.f32 %v16276_v7, 0.0  ;;  %v10647_v44 = vmax.f32 %v16340_v47, 0.0 }
 0x991   : > { %v16279_v62 = vadd.f32 %v10126_v6, %v21550_v12  ;;  %v16343_v21 = vadd.f32 %v10512_v49, %v21553_v19  ;;  %v10646_v58 = vmax.f32 %v16277_v25, 0.0  ;;  %v10648_v24 = vmax.f32 %v16341_v48, 0.0 }
 0x992   : > { %v10649_v50 = vmax.f32 %v16278_v46, 0.0  ;;  %v10651_v59 = vmax.f32 %v16342_v60, 0.0 }
 0x993   : > { %v10650_v8 = vmax.f32 %v16279_v62, 0.0  ;;  %v10652_v43 = vmax.f32 %v16343_v21, 0.0 }
 0x994   : > { %v10733_v37 = vpack.c.bf16 %v10649_v50, %v10645_v31  ;;  %v21683_v15 = vpack.c.bf16 %v10651_v59, %v10647_v44 }
 0x995   : > { %v10734_v35 = vpack.c.bf16 %v10650_v8, %v10646_v58  ;;  %v21685_v23 = vpack.c.bf16 %v10652_v43, %v10648_v24  ;;  %v10130_v5 = vpop.f32.mrb[108].mxu0  ;;  %v10516_v45 = vpop.f32.mrb[172].mxu1 }
 0x996   : > { %v16280_v52 = vadd.f32 %v10130_v5, %v21544_v14  ;;  %v16344_v10 = vadd.f32 %v10516_v45, %v21547_v28  ;;  %v10132_v11 = vpop.f32.mrb[109].mxu0  ;;  %v10518_v33 = vpop.f32.mrb[173].mxu1 }
 0x997   : > { %v16281_v38 = vadd.f32 %v10132_v11, %v21550_v12  ;;  %v16345_v2 = vadd.f32 %v10518_v33, %v21553_v19  ;;  %v10134_v53 = vpop.f32.mrb[110].mxu0  ;;  %v10520_v18 = vpop.f32.mrb[174].mxu1  ;;  %11679 = vmatprep.mubr.bf16.mxu0 %v10734_v35  ;;  %12065 = vmatprep.mubr.bf16.mxu1 %v10734_v35 }
 0x998   : > { %v16282_v7 = vadd.f32 %v10134_v53, %v21544_v14  ;;  %v16346_v47 = vadd.f32 %v10520_v18, %v21547_v28  ;;  %v10136_v26 = vpop.f32.mrb[111].mxu0  ;;  %v10522_v20 = vpop.f32.mrb[175].mxu1  ;;  %11680 = vmatmul.mubr.bf16.gmra.mrb[168].mxu0 %v10733_v37  ;;  %12066 = vmatmul.mubr.bf16.gmra.mrb[232].mxu1 %v10733_v37  ;;  %v10653_v22 = vmax.f32 %v16280_v52, 0.0  ;;  %v10655_v3 = vmax.f32 %v16344_v10, 0.0 }
 0x999   : > { %v16283_v25 = vadd.f32 %v10136_v26, %v21550_v12  ;;  %v16347_v48 = vadd.f32 %v10522_v20, %v21553_v19  ;;  %v10654_v6 = vmax.f32 %v16281_v38, 0.0  ;;  %v10656_v49 = vmax.f32 %v16345_v2, 0.0 }
 0x99a   : > { %v10657_v46 = vmax.f32 %v16282_v7, 0.0  ;;  %v10659_v60 = vmax.f32 %v16346_v47, 0.0  ;;  %v18881_v7 = vld [vmem:[#allocation19 + $0x4] ss:$16 sps:$4 sm:$0xff]  }
 0x99b   : > { %v10658_v62 = vmax.f32 %v16283_v25, 0.0  ;;  %v10660_v21 = vmax.f32 %v16347_v48, 0.0  ;;  %13301 = vmatprep.subr.bf16.mxu0 %v18881_v7 }
 0x99c   : > { %v10737_v31 = vpack.c.bf16 %v10657_v46, %v10653_v22  ;;  %v21695_v44 = vpack.c.bf16 %v10659_v60, %v10655_v3 }
 0x99d   : > { %v10738_v50 = vpack.c.bf16 %v10658_v62, %v10654_v6  ;;  %v21697_v59 = vpack.c.bf16 %v10660_v21, %v10656_v49  ;;  %v10140_v58 = vpop.f32.mrb[112].mxu0  ;;  %v10526_v24 = vpop.f32.mrb[176].mxu1 }
 0x99e   : > { %v16284_v8 = vadd.f32 %v10140_v58, %v21544_v14  ;;  %v16348_v43 = vadd.f32 %v10526_v24, %v21547_v28  ;;  %v10142_v37 = vpop.f32.mrb[113].mxu0  ;;  %v10528_v35 = vpop.f32.mrb[177].mxu1 }
 0x99f   : > { %v16285_v5 = vadd.f32 %v10142_v37, %v21550_v12  ;;  %v16349_v45 = vadd.f32 %v10528_v35, %v21553_v19  ;;  %v10144_v52 = vpop.f32.mrb[114].mxu0  ;;  %v10530_v10 = vpop.f32.mrb[178].mxu1  ;;  %11689 = vmatprep.mubr.bf16.mxu0 %v10738_v50  ;;  %12075 = vmatprep.mubr.bf16.mxu1 %v10738_v50 }
 0x9a0   : > { %v16286_v11 = vadd.f32 %v10144_v52, %v21544_v14  ;;  %v16350_v33 = vadd.f32 %v10530_v10, %v21547_v28  ;;  %v10146_v38 = vpop.f32.mrb[115].mxu0  ;;  %v10532_v2 = vpop.f32.mrb[179].mxu1  ;;  %11690 = vmatmul.mubr.bf16.gmra.mrb[172].mxu0 %v10737_v31  ;;  %12076 = vmatmul.mubr.bf16.gmra.mrb[236].mxu1 %v10737_v31  ;;  %v10661_v47 = vmax.f32 %v16284_v8, 0.0  ;;  %v10663_v26 = vmax.f32 %v16348_v43, 0.0 }
 0x9a1   : > { %v16287_v53 = vadd.f32 %v10146_v38, %v21550_v12  ;;  %v16351_v18 = vadd.f32 %v10532_v2, %v21553_v19  ;;  %v10662_v48 = vmax.f32 %v16285_v5, 0.0  ;;  %v10664_v22 = vmax.f32 %v16349_v45, 0.0  ;;  %v18884_v2 = vld [vmem:[#allocation19 + $0xc] ss:$16 sps:$4 sm:$0xff]  }
 0x9a2   : > { %v10665_v20 = vmax.f32 %v16286_v11, 0.0  ;;  %v10667_v25 = vmax.f32 %v16350_v33, 0.0  ;;  %13687 = vmatprep.subr.bf16.mxu1 %v18884_v2 }
 0x9a3   : > { %v10666_v3 = vmax.f32 %v16287_v53, 0.0  ;;  %v10668_v46 = vmax.f32 %v16351_v18, 0.0 }
 0x9a4   : > { %v10741_v60 = vpack.c.bf16 %v10665_v20, %v10661_v47  ;;  %v21707_v6 = vpack.c.bf16 %v10667_v25, %v10663_v26 }
 0x9a5   : > { %v10742_v49 = vpack.c.bf16 %v10666_v3, %v10662_v48  ;;  %v21709_v62 = vpack.c.bf16 %v10668_v46, %v10664_v22  ;;  %v10150_v21 = vpop.f32.mrb[116].mxu0  ;;  %v10536_v31 = vpop.f32.mrb[180].mxu1 }
 0x9a6   : > { %v16288_v50 = vadd.f32 %v10150_v21, %v21544_v14  ;;  %v16352_v58 = vadd.f32 %v10536_v31, %v21547_v28  ;;  %v10152_v24 = vpop.f32.mrb[117].mxu0  ;;  %v10538_v8 = vpop.f32.mrb[181].mxu1 }
 0x9a7   : > { %v16289_v43 = vadd.f32 %v10152_v24, %v21550_v12  ;;  %v16353_v37 = vadd.f32 %v10538_v8, %v21553_v19  ;;  %v10154_v35 = vpop.f32.mrb[118].mxu0  ;;  %v10540_v5 = vpop.f32.mrb[182].mxu1  ;;  %11699 = vmatprep.mubr.bf16.mxu0 %v10742_v49  ;;  %12085 = vmatprep.mubr.bf16.mxu1 %v10742_v49 }
 0x9a8   : > { %v16290_v45 = vadd.f32 %v10154_v35, %v21544_v14  ;;  %v16354_v52 = vadd.f32 %v10540_v5, %v21547_v28  ;;  %v10156_v10 = vpop.f32.mrb[119].mxu0  ;;  %v10542_v11 = vpop.f32.mrb[183].mxu1  ;;  %11700 = vmatmul.mubr.bf16.gmra.mrb[176].mxu0 %v10741_v60  ;;  %12086 = vmatmul.mubr.bf16.gmra.mrb[240].mxu1 %v10741_v60  ;;  %v10669_v53 = vmax.f32 %v16288_v50, 0.0  ;;  %v10671_v18 = vmax.f32 %v16352_v58, 0.0 }
 0x9a9   : > { %v16291_v33 = vadd.f32 %v10156_v10, %v21550_v12  ;;  %v16355_v38 = vadd.f32 %v10542_v11, %v21553_v19  ;;  %v10670_v26 = vmax.f32 %v16289_v43, 0.0  ;;  %v10672_v20 = vmax.f32 %v16353_v37, 0.0 }
 0x9aa   : > { %v10673_v7 = vmax.f32 %v16290_v45, 0.0  ;;  %v10675_v47 = vmax.f32 %v16354_v52, 0.0 }
 0x9ab   : > { %v10674_v25 = vmax.f32 %v16291_v33, 0.0  ;;  %v10676_v48 = vmax.f32 %v16355_v38, 0.0 }
 0x9ac   : > { %v10745_v22 = vpack.c.bf16 %v10673_v7, %v10669_v53  ;;  %v21719_v3 = vpack.c.bf16 %v10675_v47, %v10671_v18 }
 0x9ad   : > { %v10746_v46 = vpack.c.bf16 %v10674_v25, %v10670_v26  ;;  %v21721_v49 = vpack.c.bf16 %v10676_v48, %v10672_v20  ;;  %v10160_v60 = vpop.f32.mrb[120].mxu0  ;;  %v10546_v21 = vpop.f32.mrb[184].mxu1 }
 0x9ae   : > { %v16292_v31 = vadd.f32 %v10160_v60, %v21544_v14  ;;  %v16356_v50 = vadd.f32 %v10546_v21, %v21547_v28  ;;  %v10162_v58 = vpop.f32.mrb[121].mxu0  ;;  %v10548_v24 = vpop.f32.mrb[185].mxu1 }
 0x9af   : > { %v16293_v8 = vadd.f32 %v10162_v58, %v21550_v12  ;;  %v16357_v43 = vadd.f32 %v10548_v24, %v21553_v19  ;;  %v10164_v37 = vpop.f32.mrb[122].mxu0  ;;  %v10550_v35 = vpop.f32.mrb[186].mxu1  ;;  %11709 = vmatprep.mubr.bf16.mxu0 %v10746_v46  ;;  %12095 = vmatprep.mubr.bf16.mxu1 %v10746_v46 }
 0x9b0   : > { %v16294_v5 = vadd.f32 %v10164_v37, %v21544_v14  ;;  %v16358_v45 = vadd.f32 %v10550_v35, %v21547_v28  ;;  %v10166_v52 = vpop.f32.mrb[123].mxu0  ;;  %v10552_v10 = vpop.f32.mrb[187].mxu1  ;;  %11710 = vmatmul.mubr.bf16.gmra.mrb[180].mxu0 %v10745_v22  ;;  %12096 = vmatmul.mubr.bf16.gmra.mrb[244].mxu1 %v10745_v22  ;;  %v10677_v38 = vmax.f32 %v16292_v31, 0.0  ;;  %v10679_v2 = vmax.f32 %v16356_v50, 0.0 }
 0x9b1   : > { %v16295_v11 = vadd.f32 %v10166_v52, %v21550_v12  ;;  %v16359_v33 = vadd.f32 %v10552_v10, %v21553_v19  ;;  %v10678_v7 = vmax.f32 %v16293_v8, 0.0  ;;  %v10680_v47 = vmax.f32 %v16357_v43, 0.0 }
 0x9b2   : > { %v10681_v53 = vmax.f32 %v16294_v5, 0.0  ;;  %v10683_v18 = vmax.f32 %v16358_v45, 0.0 }
 0x9b3   : > { %v10682_v26 = vmax.f32 %v16295_v11, 0.0  ;;  %v10684_v20 = vmax.f32 %v16359_v33, 0.0 }
 0x9b4   : > { %v10749_v25 = vpack.c.bf16 %v10681_v53, %v10677_v38  ;;  %v21731_v48 = vpack.c.bf16 %v10683_v18, %v10679_v2 }
 0x9b5   : > { %v10750_v46 = vpack.c.bf16 %v10682_v26, %v10678_v7  ;;  %v21733_v60 = vpack.c.bf16 %v10684_v20, %v10680_v47  ;;  %v10170_v21 = vpop.f32.mrb[124].mxu0  ;;  %v10556_v22 = vpop.f32.mrb[188].mxu1 }
 0x9b6   : > { %v16296_v58 = vadd.f32 %v10170_v21, %v21544_v14  ;;  %v16360_v24 = vadd.f32 %v10556_v22, %v21547_v28  ;;  %v10172_v31 = vpop.f32.mrb[125].mxu0  ;;  %v10558_v50 = vpop.f32.mrb[189].mxu1  ;;  %v18890_v22 = vld [vmem:[#allocation19 + $0x2c] ss:$16 sps:$4 sm:$0xff]  }
 0x9b7   : > { %v16297_v37 = vadd.f32 %v10172_v31, %v21550_v12  ;;  %v16361_v8 = vadd.f32 %v10558_v50, %v21553_v19  ;;  %v10174_v43 = vpop.f32.mrb[126].mxu0  ;;  %v10560_v35 = vpop.f32.mrb[190].mxu1  ;;  %11719 = vmatprep.mubr.bf16.mxu0 %v10750_v46  ;;  %12105 = vmatprep.mubr.bf16.mxu1 %v10750_v46  ;;  %v18893_v31 = vld [vmem:[#allocation19 + $0x44] ss:$16 sps:$4 sm:$0xff]   ;;  %v18891_v50 = vld [vmem:[#allocation19 + $0x40] ss:$16 sps:$4 sm:$0xff]  }
 0x9b8   : > { %v16298_v5 = vadd.f32 %v10174_v43, %v21544_v14  ;;  %v16362_v45 = vadd.f32 %v10560_v35, %v21547_v28  ;;  %v10176_v52 = vpop.f32.mrb[127].mxu0  ;;  %v10562_v10 = vpop.f32.mrb[191].mxu1  ;;  %11720 = vmatmul.mubr.bf16.gmra.mrb[184].mxu0 %v10749_v25  ;;  %12106 = vmatmul.mubr.bf16.gmra.mrb[248].mxu1 %v10749_v25  ;;  %v10685_v38 = vmax.f32 %v16296_v58, 0.0  ;;  %v10687_v2 = vmax.f32 %v16360_v24, 0.0  ;;  %v18887_v25 = vld [vmem:[#allocation19 + $0x24] ss:$16 sps:$4 sm:$0xff]  }
 0x9b9   : > { %v16299_v11 = vadd.f32 %v10176_v52, %v21550_v12  ;;  %v16363_v33 = vadd.f32 %v10562_v10, %v21553_v19  ;;  %v10686_v7 = vmax.f32 %v16297_v37, 0.0  ;;  %v10688_v47 = vmax.f32 %v16361_v8, 0.0  ;;  %v18879_v12 = vld [vmem:[#allocation19] ss:$16 sps:$4 sm:$0xff]   ;;  %v18882_v19 = vld [vmem:[#allocation19 + $0x8] ss:$16 sps:$4 sm:$0xff]  }
 0x9ba   : > { %v10689_v53 = vmax.f32 %v16298_v5, 0.0  ;;  %v10691_v18 = vmax.f32 %v16362_v45, 0.0  ;;  %v18885_v58 = vld [vmem:[#allocation19 + $0x20] ss:$16 sps:$4 sm:$0xff]   ;;  %v18888_v24 = vld [vmem:[#allocation19 + $0x28] ss:$16 sps:$4 sm:$0xff]  }
 0x9bb   : > { %v10690_v26 = vmax.f32 %v16299_v11, 0.0  ;;  %v10692_v20 = vmax.f32 %v16363_v33, 0.0  ;;  %v18894_v37 = vld [vmem:[#allocation19 + $0x48] ss:$16 sps:$4 sm:$0xff]   ;;  %v18899_v8 = vld [vmem:[#allocation19 + $0x64] ss:$16 sps:$4 sm:$0xff]  }
 0x9bc   : > { %v10753_v46 = vpack.c.bf16 %v10689_v53, %v10685_v38  ;;  %v21743_v14 = vpack.c.bf16 %v10691_v18, %v10687_v2  ;;  %v18900_v43 = vld [vmem:[#allocation19 + $0x68] ss:$16 sps:$4 sm:$0xff]   ;;  %v18905_v35 = vld [vmem:[#allocation19 + $0x84] ss:$16 sps:$4 sm:$0xff]   ;;  %v18908_v5 = vld [vmem:[#allocation19 + $0x8c] ss:$16 sps:$4 sm:$0xff]  }
 0x9bd   : > { %v10754_v28 = vpack.c.bf16 %v10690_v26, %v10686_v7  ;;  %v21745_v21 = vpack.c.bf16 %v10692_v20, %v10688_v47  ;;  %v18903_v45 = vld [vmem:[#allocation19 + $0x80] ss:$16 sps:$4 sm:$0xff]   ;;  %v18906_v52 = vld [vmem:[#allocation19 + $0x88] ss:$16 sps:$4 sm:$0xff]   ;;  %v18911_v10 = vld [vmem:[#allocation19 + $0xa4] ss:$16 sps:$4 sm:$0xff]  }
 0x9be   : > { %v18912_v11 = vld [vmem:[#allocation19 + $0xa8] ss:$16 sps:$4 sm:$0xff]   ;;  %v18917_v33 = vld [vmem:[#allocation19 + $0xc4] ss:$16 sps:$4 sm:$0xff]   ;;  %v18920_v38 = vld [vmem:[#allocation19 + $0xcc] ss:$16 sps:$4 sm:$0xff]  }
 0x9bf   : > { %11729 = vmatprep.mubr.bf16.mxu0 %v10754_v28  ;;  %12115 = vmatprep.mubr.bf16.mxu1 %v10754_v28  ;;  %v18915_v2 = vld [vmem:[#allocation19 + $0xc0] ss:$16 sps:$4 sm:$0xff]   ;;  %v18918_v53 = vld [vmem:[#allocation19 + $0xc8] ss:$16 sps:$4 sm:$0xff]   ;;  %v18923_v18 = vld [vmem:[#allocation19 + $0xe4] ss:$16 sps:$4 sm:$0xff]  }
 0x9c0   : > { %11730 = vmatmul.mubr.bf16.gmra.mrb[188].mxu0 %v10753_v46  ;;  %12116 = vmatmul.mubr.bf16.gmra.mrb[252].mxu1 %v10753_v46  ;;  %v18924_v7 = vld [vmem:[#allocation19 + $0xe8] ss:$16 sps:$4 sm:$0xff]   ;;  %v18929_v47 = vld [vmem:[#allocation19 + $0x104] ss:$16 sps:$4 sm:$0xff]   ;;  %v18932_v26 = vld [vmem:[#allocation19 + $0x10c] ss:$16 sps:$4 sm:$0xff]  }
 0x9c1   : > { %11772 = vmatprep.mubr.bf16.mxu0 %v21565_v56  ;;  %12158 = vmatprep.mubr.bf16.mxu1 %v21565_v56  ;;  %v18896_v56 = vld [vmem:[#allocation19 + $0x4c] ss:$16 sps:$4 sm:$0xff]   ;;  %v18927_v20 = vld [vmem:[#allocation19 + $0x100] ss:$16 sps:$4 sm:$0xff]   ;;  %v18930_v46 = vld [vmem:[#allocation19 + $0x108] ss:$16 sps:$4 sm:$0xff]  }
 0x9c2   : > { %v18935_v28 = vld [vmem:[#allocation19 + $0x124] ss:$16 sps:$4 sm:$0xff]  }
 0x9c8   : > { %11773 = vmatmul.mubr.bf16.vlgmr.msra.gmra.mrb[128].mxu0 %v21563_v1  ;;  %12159 = vmatmul.mubr.bf16.vlgmr.msra.gmra.mrb[192].mxu1 %v21563_v1  ;;  %v18902_v1 = vld [vmem:[#allocation19 + $0x6c] ss:$16 sps:$4 sm:$0xff]  }
 0x9c9   : > { %11782 = vmatprep.mubr.bf16.mxu0 %v21577_v61  ;;  %12168 = vmatprep.mubr.bf16.mxu1 %v21577_v61  ;;  %v18897_v61 = vld [vmem:[#allocation19 + $0x60] ss:$16 sps:$4 sm:$0xff]  }
 0x9ca   : > { %13302 = vmatpush1.bf16.msra.mxu0 %v18879_v12  ;;  %13688 = vmatpush1.bf16.msra.mxu1 %v18882_v19  ;;  %v18936_v12 = vld [vmem:[#allocation19 + $0x128] ss:$16 sps:$4 sm:$0xff]   ;;  %v18941_v19 = vld [vmem:[#allocation19 + $0x144] ss:$16 sps:$4 sm:$0xff]  }
 0x9cb   : > { %13303 = vmatprep.subr.bf16.mxu0 %v18887_v25  ;;  %13689 = vmatprep.subr.bf16.mxu1 %v18890_v22  ;;  %v18944_v25 = vld [vmem:[#allocation19 + $0x14c] ss:$16 sps:$4 sm:$0xff]   ;;  %v18939_v22 = vld [vmem:[#allocation19 + $0x140] ss:$16 sps:$4 sm:$0xff]  }
 0x9ce   : > { %13304 = vmatpush1.bf16.msra.mxu0 %v18885_v58  ;;  %13690 = vmatpush1.bf16.msra.mxu1 %v18888_v24  ;;  %v18942_v58 = vld [vmem:[#allocation19 + $0x148] ss:$16 sps:$4 sm:$0xff]   ;;  %v18947_v24 = vld [vmem:[#allocation19 + $0x164] ss:$16 sps:$4 sm:$0xff]  }
 0x9cf   : > { %13305 = vmatprep.subr.bf16.mxu0 %v18893_v31  ;;  %13691 = vmatprep.subr.bf16.mxu1 %v18896_v56  ;;  %v18948_v31 = vld [vmem:[#allocation19 + $0x168] ss:$16 sps:$4 sm:$0xff]   ;;  %v18953_v56 = vld [vmem:[#allocation19 + $0x184] ss:$16 sps:$4 sm:$0xff]  }
 0x9d0   : > { %11783 = vmatmul.mubr.bf16.gmra.mrb[132].mxu0 %v21575_v13  ;;  %12169 = vmatmul.mubr.bf16.gmra.mrb[196].mxu1 %v21575_v13  ;;  %v18914_v13 = vld [vmem:[#allocation19 + $0xac] ss:$16 sps:$4 sm:$0xff]  }
 0x9d1   : > { %11792 = vmatprep.mubr.bf16.mxu0 %v21589_v51  ;;  %12178 = vmatprep.mubr.bf16.mxu1 %v21589_v51  ;;  %v18909_v51 = vld [vmem:[#allocation19 + $0xa0] ss:$16 sps:$4 sm:$0xff]  }
 0x9d2   : > { %13306 = vmatpush1.bf16.msra.mxu0 %v18891_v50  ;;  %13692 = vmatpush1.bf16.msra.mxu1 %v18894_v37  ;;  %v18956_v50 = vld [vmem:[#allocation19 + $0x18c] ss:$16 sps:$4 sm:$0xff]   ;;  %v18951_v37 = vld [vmem:[#allocation19 + $0x180] ss:$16 sps:$4 sm:$0xff]  }
 0x9d3   : > { %13307 = vmatprep.subr.bf16.mxu0 %v18899_v8  ;;  %13693 = vmatprep.subr.bf16.mxu1 %v18902_v1  ;;  %v18954_v8 = vld [vmem:[#allocation19 + $0x188] ss:$16 sps:$4 sm:$0xff]   ;;  %v18959_v1 = vld [vmem:[#allocation19 + $0x1a4] ss:$16 sps:$4 sm:$0xff]  }
 0x9d6   : > { %13308 = vmatpush1.bf16.msra.mxu0 %v18897_v61  ;;  %13694 = vmatpush1.bf16.msra.mxu1 %v18900_v43  ;;  %v18960_v61 = vld [vmem:[#allocation19 + $0x1a8] ss:$16 sps:$4 sm:$0xff]   ;;  %v18965_v43 = vld [vmem:[#allocation19 + $0x1c4] ss:$16 sps:$4 sm:$0xff]  }
 0x9d7   : > { %13309 = vmatprep.subr.bf16.mxu0 %v18905_v35  ;;  %13695 = vmatprep.subr.bf16.mxu1 %v18908_v5  ;;  %v18968_v35 = vld [vmem:[#allocation19 + $0x1cc] ss:$16 sps:$4 sm:$0xff]   ;;  %v18963_v5 = vld [vmem:[#allocation19 + $0x1c0] ss:$16 sps:$4 sm:$0xff]  }
 0x9d8   : > { %11793 = vmatmul.mubr.bf16.gmra.mrb[136].mxu0 %v21587_v17  ;;  %12179 = vmatmul.mubr.bf16.gmra.mrb[200].mxu1 %v21587_v17  ;;  %v18926_v17 = vld [vmem:[#allocation19 + $0xec] ss:$16 sps:$4 sm:$0xff]  }
 0x9d9   : > { %11802 = vmatprep.mubr.bf16.mxu0 %v21601_v9  ;;  %12188 = vmatprep.mubr.bf16.mxu1 %v21601_v9  ;;  %v18921_v9 = vld [vmem:[#allocation19 + $0xe0] ss:$16 sps:$4 sm:$0xff]  }
 0x9da   : > { %13310 = vmatpush1.bf16.msra.mxu0 %v18903_v45  ;;  %13696 = vmatpush1.bf16.msra.mxu1 %v18906_v52  ;;  %v18966_v45 = vld [vmem:[#allocation19 + $0x1c8] ss:$16 sps:$4 sm:$0xff]  }
 0x9db   : > { %13311 = vmatprep.subr.bf16.mxu0 %v18911_v10  ;;  %13697 = vmatprep.subr.bf16.mxu1 %v18914_v13 }
 0x9de   : > { %13312 = vmatpush1.bf16.msra.mxu0 %v18909_v51  ;;  %13698 = vmatpush1.bf16.msra.mxu1 %v18912_v11 }
 0x9df   : > { %13313 = vmatprep.subr.bf16.mxu0 %v18917_v33  ;;  %13699 = vmatprep.subr.bf16.mxu1 %v18920_v38 }
 0x9e0   : > { %11803 = vmatmul.mubr.bf16.gmra.mrb[140].mxu0 %v21599_v39  ;;  %12189 = vmatmul.mubr.bf16.gmra.mrb[204].mxu1 %v21599_v39  ;;  %v18938_v39 = vld [vmem:[#allocation19 + $0x12c] ss:$16 sps:$4 sm:$0xff]  }
 0x9e1   : > { %11812 = vmatprep.mubr.bf16.mxu0 %v21613_v34  ;;  %12198 = vmatprep.mubr.bf16.mxu1 %v21613_v34  ;;  %v18933_v34 = vld [vmem:[#allocation19 + $0x120] ss:$16 sps:$4 sm:$0xff]  }
 0x9e2   : > { %13314 = vmatpush1.bf16.msra.mxu0 %v18915_v2  ;;  %13700 = vmatpush1.bf16.msra.mxu1 %v18918_v53 }
 0x9e3   : > { %13315 = vmatprep.subr.bf16.mxu0 %v18923_v18  ;;  %13701 = vmatprep.subr.bf16.mxu1 %v18926_v17 }
 0x9e6   : > { %13316 = vmatpush1.bf16.msra.mxu0 %v18921_v9  ;;  %13702 = vmatpush1.bf16.msra.mxu1 %v18924_v7 }
 0x9e7   : > { %13317 = vmatprep.subr.bf16.mxu0 %v18929_v47  ;;  %13703 = vmatprep.subr.bf16.mxu1 %v18932_v26 }
 0x9e8   : > { %11813 = vmatmul.mubr.bf16.gmra.mrb[144].mxu0 %v21611_v40  ;;  %12199 = vmatmul.mubr.bf16.gmra.mrb[208].mxu1 %v21611_v40  ;;  %v18950_v40 = vld [vmem:[#allocation19 + $0x16c] ss:$16 sps:$4 sm:$0xff]  }
 0x9e9   : > { %11822 = vmatprep.mubr.bf16.mxu0 %v21625_v54  ;;  %12208 = vmatprep.mubr.bf16.mxu1 %v21625_v54  ;;  %v18945_v54 = vld [vmem:[#allocation19 + $0x160] ss:$16 sps:$4 sm:$0xff]  }
 0x9ea   : > { %13318 = vmatpush1.bf16.msra.mxu0 %v18927_v20  ;;  %13704 = vmatpush1.bf16.msra.mxu1 %v18930_v46 }
 0x9eb   : > { %13319 = vmatprep.subr.bf16.mxu0 %v18935_v28  ;;  %13705 = vmatprep.subr.bf16.mxu1 %v18938_v39 }
 0x9ee   : > { %13320 = vmatpush1.bf16.msra.mxu0 %v18933_v34  ;;  %13706 = vmatpush1.bf16.msra.mxu1 %v18936_v12 }
 0x9ef   : > { %13321 = vmatprep.subr.bf16.mxu0 %v18941_v19  ;;  %13707 = vmatprep.subr.bf16.mxu1 %v18944_v25  ;;  %v18975_v25 = vld [vmem:[#allocation19 + $0x200] ss:$16 sps:$4 sm:$0xff]  }
 0x9f0   : > { %11823 = vmatmul.mubr.bf16.gmra.mrb[148].mxu0 %v21623_v63  ;;  %12209 = vmatmul.mubr.bf16.gmra.mrb[212].mxu1 %v21623_v63  ;;  %v18962_v63 = vld [vmem:[#allocation19 + $0x1ac] ss:$16 sps:$4 sm:$0xff]  }
 0x9f1   : > { %11832 = vmatprep.mubr.bf16.mxu0 %v21637_v4  ;;  %12218 = vmatprep.mubr.bf16.mxu1 %v21637_v4  ;;  %v18957_v4 = vld [vmem:[#allocation19 + $0x1a0] ss:$16 sps:$4 sm:$0xff]  }
 0x9f2   : > { %13322 = vmatpush1.bf16.msra.mxu0 %v18939_v22  ;;  %13708 = vmatpush1.bf16.msra.mxu1 %v18942_v58  ;;  %v18978_v22 = vld [vmem:[#allocation19 + $0x208] ss:$16 sps:$4 sm:$0xff]  }
 0x9f3   : > { %13323 = vmatprep.subr.bf16.mxu0 %v18947_v24  ;;  %13709 = vmatprep.subr.bf16.mxu1 %v18950_v40 }
 0x9f6   : > { %13324 = vmatpush1.bf16.msra.mxu0 %v18945_v54  ;;  %13710 = vmatpush1.bf16.msra.mxu1 %v18948_v31  ;;  %v18983_v31 = vld [vmem:[#allocation19 + $0x224] ss:$16 sps:$4 sm:$0xff]  }
 0x9f7   : > { %13325 = vmatprep.subr.bf16.mxu0 %v18953_v56  ;;  %13711 = vmatprep.subr.bf16.mxu1 %v18956_v50  ;;  %v18986_v56 = vld [vmem:[#allocation19 + $0x22c] ss:$16 sps:$4 sm:$0xff]  }
 0x9f8   : > { %11833 = vmatmul.mubr.bf16.gmra.mrb[152].mxu0 %v21635_v36  ;;  %12219 = vmatmul.mubr.bf16.gmra.mrb[216].mxu1 %v21635_v36  ;;  %v18971_v36 = vld [vmem:[#allocation19 + $0x1e4] ss:$16 sps:$4 sm:$0xff]  }
 0x9f9   : > { %11842 = vmatprep.mubr.bf16.mxu0 %v21649_v32  ;;  %12228 = vmatprep.mubr.bf16.mxu1 %v21649_v32  ;;  %v18969_v32 = vld [vmem:[#allocation19 + $0x1e0] ss:$16 sps:$4 sm:$0xff]  }
 0x9fa   : > { %13326 = vmatpush1.bf16.msra.mxu0 %v18951_v37  ;;  %13712 = vmatpush1.bf16.msra.mxu1 %v18954_v8 }
 0x9fb   : > { %13327 = vmatprep.subr.bf16.mxu0 %v18959_v1  ;;  %13713 = vmatprep.subr.bf16.mxu1 %v18962_v63 }
 0x9fe   : > { %13328 = vmatpush1.bf16.msra.mxu0 %v18957_v4  ;;  %13714 = vmatpush1.bf16.msra.mxu1 %v18960_v61 }
 0x9ff   : > { %13329 = vmatprep.subr.bf16.mxu0 %v18965_v43  ;;  %13715 = vmatprep.subr.bf16.mxu1 %v18968_v35 }
 0xa00   : > { %11843 = vmatmul.mubr.bf16.gmra.mrb[156].mxu0 %v21647_v42  ;;  %12229 = vmatmul.mubr.bf16.gmra.mrb[220].mxu1 %v21647_v42  ;;  %v18974_v42 = vld [vmem:[#allocation19 + $0x1ec] ss:$16 sps:$4 sm:$0xff]  }
 0xa01   : > { %11852 = vmatprep.mubr.bf16.mxu0 %v21661_v41  ;;  %12238 = vmatprep.mubr.bf16.mxu1 %v21661_v41  ;;  %v18977_v41 = vld [vmem:[#allocation19 + $0x204] ss:$16 sps:$4 sm:$0xff]  }
 0xa02   : > { %13330 = vmatpush1.bf16.msra.mxu0 %v18963_v5  ;;  %13716 = vmatpush1.bf16.msra.mxu1 %v18966_v45  ;;  %v18981_v45 = vld [vmem:[#allocation19 + $0x220] ss:$16 sps:$4 sm:$0xff]  }
 0xa03   : > { %13331 = vmatprep.subr.bf16.mxu0 %v18971_v36  ;;  %13717 = vmatprep.subr.bf16.mxu1 %v18974_v42  ;;  %v18984_v36 = vld [vmem:[#allocation19 + $0x228] ss:$16 sps:$4 sm:$0xff]   ;;  %v18989_v42 = vld [vmem:[#allocation19 + $0x244] ss:$16 sps:$4 sm:$0xff]  }
 0xa06   : > { %13332 = vmatpush1.bf16.msra.mxu0 %v18969_v32 }
 0xa07   : > { %13494 = vmatprep.subr.bf16.mxu0 %v18977_v41 }
 0xa08   : > { %11853 = vmatmul.mubr.bf16.gmra.mrb[160].mxu0 %v21659_v29  ;;  %12239 = vmatmul.mubr.bf16.gmra.mrb[224].mxu1 %v21659_v29  ;;  %v18972_v29 = vld [vmem:[#allocation19 + $0x1e8] ss:$16 sps:$4 sm:$0xff]  }
 0xa09   : > { %11862 = vmatprep.mubr.bf16.mxu0 %v21673_v16  ;;  %12248 = vmatprep.mubr.bf16.mxu1 %v21673_v16  ;;  %v10885_v16 = vld [vmem:[%s22559_s22] sm:$0xf] }
 0xa0a   : > { %13718 = vmatpush1.bf16.msra.mxu1 %v18972_v29 }
 0xa10   : > { %11863 = vmatmul.mubr.bf16.gmra.mrb[164].mxu0 %v21671_v0  ;;  %12249 = vmatmul.mubr.bf16.gmra.mrb[228].mxu1 %v21671_v0  ;;  %v18980_v0 = vld [vmem:[#allocation19 + $0x20c] ss:$16 sps:$4 sm:$0xff]  }
 0xa11   : > { %11872 = vmatprep.mubr.bf16.mxu0 %v21685_v23  ;;  %12258 = vmatprep.mubr.bf16.mxu1 %v21685_v23  ;;  %v21818_v23 = vrot.slane %v10885_v16, %v20012_v27 }
 0xa12   : > { %13880 = vmatprep.subr.bf16.mxu1 %v18980_v0 }
 0xa18   : > { %11873 = vmatmul.mubr.bf16.gmra.mrb[168].mxu0 %v21683_v15  ;;  %12259 = vmatmul.mubr.bf16.gmra.mrb[232].mxu1 %v21683_v15  ;;  %v21815_v15 = vrot.slane %v10885_v16, %v19991_v55 }
 0xa19   : > { %11882 = vmatprep.mubr.bf16.mxu0 %v21697_v59  ;;  %12268 = vmatprep.mubr.bf16.mxu1 %v21697_v59  ;;  %v21824_v59 = vrot.slane %v10885_v16, %v20014_v30 }
 0xa20   : > { %11883 = vmatmul.mubr.bf16.gmra.mrb[172].mxu0 %v21695_v44  ;;  %12269 = vmatmul.mubr.bf16.gmra.mrb[236].mxu1 %v21695_v44  ;;  %v21821_v44 = vrot.slane %v10885_v16, %v19996_v57  ;;  %v18992_v16 = vld [vmem:[#allocation19 + $0x24c] ss:$16 sps:$4 sm:$0xff]  }
 0xa21   : > { %11892 = vmatprep.mubr.bf16.mxu0 %v21709_v62  ;;  %12278 = vmatprep.mubr.bf16.mxu1 %v21709_v62 }
 0xa28   : > { %11893 = vmatmul.mubr.bf16.gmra.mrb[176].mxu0 %v21707_v6  ;;  %12279 = vmatmul.mubr.bf16.gmra.mrb[240].mxu1 %v21707_v6 }
 0xa29   : > { %11902 = vmatprep.mubr.bf16.mxu0 %v21721_v49  ;;  %12288 = vmatprep.mubr.bf16.mxu1 %v21721_v49 }
 0xa30   : > { %11903 = vmatmul.mubr.bf16.gmra.mrb[180].mxu0 %v21719_v3  ;;  %12289 = vmatmul.mubr.bf16.gmra.mrb[244].mxu1 %v21719_v3 }
 0xa31   : > { %11912 = vmatprep.mubr.bf16.mxu0 %v21733_v60  ;;  %12298 = vmatprep.mubr.bf16.mxu1 %v21733_v60 }
 0xa38   : > { %11913 = vmatmul.mubr.bf16.gmra.mrb[184].mxu0 %v21731_v48  ;;  %12299 = vmatmul.mubr.bf16.gmra.mrb[248].mxu1 %v21731_v48 }
 0xa39   : > { %11922 = vmatprep.mubr.bf16.mxu0 %v21745_v21  ;;  %12308 = vmatprep.mubr.bf16.mxu1 %v21745_v21 }
 0xa40   : > { %11923 = vmatmul.mubr.bf16.gmra.mrb[188].mxu0 %v21743_v14  ;;  %12309 = vmatmul.mubr.bf16.gmra.mrb[252].mxu1 %v21743_v14 }
 0xa9b   : > { %v11774_v6 = vpop.f32.mrb[128].mxu0  ;;  %v12160_v62 = vpop.f32.mrb[192].mxu1 }
 0xa9c   : > { %v16364_v3 = vadd.f32 %v11774_v6, %v21815_v15  ;;  %v16428_v49 = vadd.f32 %v12160_v62, %v21818_v23  ;;  %v11776_v48 = vpop.f32.mrb[129].mxu0  ;;  %v12162_v60 = vpop.f32.mrb[193].mxu1 }
 0xa9d   : > { %v16365_v14 = vadd.f32 %v11776_v48, %v21821_v44  ;;  %v16429_v21 = vadd.f32 %v12162_v60, %v21824_v59  ;;  %v11778_v52 = vpop.f32.mrb[130].mxu0  ;;  %v12164_v10 = vpop.f32.mrb[194].mxu1 }
 0xa9e   : > { %v16366_v13 = vadd.f32 %v11778_v52, %v21815_v15  ;;  %v16430_v51 = vadd.f32 %v12164_v10, %v21818_v23  ;;  %v11780_v11 = vpop.f32.mrb[131].mxu0  ;;  %v12166_v33 = vpop.f32.mrb[195].mxu1  ;;  %v12319_v53 = vmax.f32 %v16364_v3, 0.0  ;;  %v12321_v18 = vmax.f32 %v16428_v49, 0.0 }
 0xa9f   : > { %v16367_v38 = vadd.f32 %v11780_v11, %v21821_v44  ;;  %v16431_v2 = vadd.f32 %v12166_v33, %v21824_v59  ;;  %v12320_v7 = vmax.f32 %v16365_v14, 0.0  ;;  %v12322_v47 = vmax.f32 %v16429_v21, 0.0 }
 0xaa0   : > { %v12323_v17 = vmax.f32 %v16366_v13, 0.0  ;;  %v12325_v9 = vmax.f32 %v16430_v51, 0.0  ;;  %v18987_v13 = vld [vmem:[#allocation19 + $0x240] ss:$16 sps:$4 sm:$0xff]   ;;  %v18990_v51 = vld [vmem:[#allocation19 + $0x248] ss:$16 sps:$4 sm:$0xff]  }
 0xaa1   : > { %v12324_v26 = vmax.f32 %v16367_v38, 0.0  ;;  %v12326_v20 = vmax.f32 %v16431_v2, 0.0 }
 0xaa2   : > { %v12447_v46 = vpack.c.bf16 %v12323_v17, %v12319_v53  ;;  %v21834_v28 = vpack.c.bf16 %v12325_v9, %v12321_v18  ;;  %v18995_v53 = vld [vmem:[#allocation19 + $0x264] ss:$16 sps:$4 sm:$0xff]   ;;  %v18998_v18 = vld [vmem:[#allocation19 + $0x26c] ss:$16 sps:$4 sm:$0xff]  }
 0xaa3   : > { %v12448_v39 = vpack.c.bf16 %v12324_v26, %v12320_v7  ;;  %v21836_v34 = vpack.c.bf16 %v12326_v20, %v12322_v47  ;;  %v11784_v12 = vpop.f32.mrb[132].mxu0  ;;  %v12170_v19 = vpop.f32.mrb[196].mxu1 }
 0xaa4   : > { %v16368_v58 = vadd.f32 %v11784_v12, %v21815_v15  ;;  %v16432_v24 = vadd.f32 %v12170_v19, %v21818_v23  ;;  %v11786_v40 = vpop.f32.mrb[133].mxu0  ;;  %v12172_v54 = vpop.f32.mrb[197].mxu1 }
 0xaa5   : > { %v16369_v50 = vadd.f32 %v11786_v40, %v21821_v44  ;;  %v16433_v37 = vadd.f32 %v12172_v54, %v21824_v59  ;;  %v11788_v8 = vpop.f32.mrb[134].mxu0  ;;  %v12174_v1 = vpop.f32.mrb[198].mxu1  ;;  %13333 = vmatprep.mubr.bf16.mxu0 %v12448_v39  ;;  %13719 = vmatprep.mubr.bf16.mxu1 %v12448_v39 }
 0xaa6   : > { %v16370_v63 = vadd.f32 %v11788_v8, %v21815_v15  ;;  %v16434_v4 = vadd.f32 %v12174_v1, %v21818_v23  ;;  %v11790_v61 = vpop.f32.mrb[135].mxu0  ;;  %v12176_v43 = vpop.f32.mrb[199].mxu1  ;;  %13334 = vmatmul.mubr.bf16.vlgmr.msra.gmra.mrb[192].mxu0 %v12447_v46  ;;  %13720 = vmatmul.mubr.bf16.vlgmr.msra.gmra.mrb[0].mxu1 %v12447_v46  ;;  %v12327_v32 = vmax.f32 %v16368_v58, 0.0  ;;  %v12329_v29 = vmax.f32 %v16432_v24, 0.0  ;;  %v19001_v58 = vld [vmem:[#allocation19 + $0x284] ss:$16 sps:$4 sm:$0xff]  }
 0xaa7   : > { %v16371_v35 = vadd.f32 %v11790_v61, %v21821_v44  ;;  %v16435_v5 = vadd.f32 %v12176_v43, %v21824_v59  ;;  %13495 = vmatpush1.bf16.msra.mxu0 %v18975_v25  ;;  %13881 = vmatpush1.bf16.msra.mxu1 %v18978_v22  ;;  %v12328_v6 = vmax.f32 %v16369_v50, 0.0  ;;  %v12330_v62 = vmax.f32 %v16433_v37, 0.0  ;;  %v18993_v25 = vld [vmem:[#allocation19 + $0x260] ss:$16 sps:$4 sm:$0xff]   ;;  %v18996_v22 = vld [vmem:[#allocation19 + $0x268] ss:$16 sps:$4 sm:$0xff]  }
 0xaa8   : > { %v12331_v41 = vmax.f32 %v16370_v63, 0.0  ;;  %v12333_v0 = vmax.f32 %v16434_v4, 0.0  ;;  %13496 = vmatprep.subr.bf16.mxu0 %v18983_v31  ;;  %13882 = vmatprep.subr.bf16.mxu1 %v18986_v56  ;;  %v19004_v56 = vld [vmem:[#allocation19 + $0x28c] ss:$16 sps:$4 sm:$0xff]  }
 0xaa9   : > { %v12332_v3 = vmax.f32 %v16371_v35, 0.0  ;;  %v12334_v49 = vmax.f32 %v16435_v5, 0.0 }
 0xaaa   : > { %v12451_v48 = vpack.c.bf16 %v12331_v41, %v12327_v32  ;;  %v21846_v60 = vpack.c.bf16 %v12333_v0, %v12329_v29  ;;  %v19007_v0 = vld [vmem:[#allocation19 + $0x2a4] ss:$16 sps:$4 sm:$0xff]  }
 0xaab   : > { %v12452_v14 = vpack.c.bf16 %v12332_v3, %v12328_v6  ;;  %v21848_v21 = vpack.c.bf16 %v12334_v49, %v12330_v62  ;;  %v11794_v52 = vpop.f32.mrb[136].mxu0  ;;  %v12180_v10 = vpop.f32.mrb[200].mxu1  ;;  %13497 = vmatpush1.bf16.msra.mxu0 %v18981_v45  ;;  %13883 = vmatpush1.bf16.msra.mxu1 %v18984_v36  ;;  %v18999_v45 = vld [vmem:[#allocation19 + $0x280] ss:$16 sps:$4 sm:$0xff]   ;;  %v19002_v36 = vld [vmem:[#allocation19 + $0x288] ss:$16 sps:$4 sm:$0xff]  }
 0xaac   : > { %v16372_v11 = vadd.f32 %v11794_v52, %v21815_v15  ;;  %v16436_v33 = vadd.f32 %v12180_v10, %v21818_v23  ;;  %v11796_v38 = vpop.f32.mrb[137].mxu0  ;;  %v12182_v2 = vpop.f32.mrb[201].mxu1  ;;  %13498 = vmatprep.subr.bf16.mxu0 %v18989_v42  ;;  %13884 = vmatprep.subr.bf16.mxu1 %v18992_v16  ;;  %v19010_v16 = vld [vmem:[#allocation19 + $0x2ac] ss:$16 sps:$4 sm:$0xff]  }
 0xaad   : > { %v16373_v17 = vadd.f32 %v11796_v38, %v21821_v44  ;;  %v16437_v9 = vadd.f32 %v12182_v2, %v21824_v59  ;;  %v11798_v7 = vpop.f32.mrb[138].mxu0  ;;  %v12184_v47 = vpop.f32.mrb[202].mxu1  ;;  %13343 = vmatprep.mubr.bf16.mxu0 %v12452_v14  ;;  %13729 = vmatprep.mubr.bf16.mxu1 %v12452_v14  ;;  %v19013_v38 = vld [vmem:[#allocation19 + $0x2c4] ss:$16 sps:$4 sm:$0xff]  }
 0xaae   : > { %v16374_v26 = vadd.f32 %v11798_v7, %v21815_v15  ;;  %v16438_v20 = vadd.f32 %v12184_v47, %v21818_v23  ;;  %v11800_v46 = vpop.f32.mrb[139].mxu0  ;;  %v12186_v39 = vpop.f32.mrb[203].mxu1  ;;  %13344 = vmatmul.mubr.bf16.gmra.mrb[196].mxu0 %v12451_v48  ;;  %13730 = vmatmul.mubr.bf16.gmra.mrb[4].mxu1 %v12451_v48  ;;  %v12335_v24 = vmax.f32 %v16372_v11, 0.0  ;;  %v12337_v40 = vmax.f32 %v16436_v33, 0.0  ;;  %v19005_v11 = vld [vmem:[#allocation19 + $0x2a0] ss:$16 sps:$4 sm:$0xff]  }
 0xaaf   : > { %v16375_v12 = vadd.f32 %v11800_v46, %v21821_v44  ;;  %v16439_v19 = vadd.f32 %v12186_v39, %v21824_v59  ;;  %13499 = vmatpush1.bf16.msra.mxu0 %v18987_v13  ;;  %13885 = vmatpush1.bf16.msra.mxu1 %v18990_v51  ;;  %v12336_v50 = vmax.f32 %v16373_v17, 0.0  ;;  %v12338_v37 = vmax.f32 %v16437_v9, 0.0  ;;  %v19008_v33 = vld [vmem:[#allocation19 + $0x2a8] ss:$16 sps:$4 sm:$0xff]   ;;  %v19016_v9 = vld [vmem:[#allocation19 + $0x2cc] ss:$16 sps:$4 sm:$0xff]  }
 0xab0   : > { %v12339_v54 = vmax.f32 %v16374_v26, 0.0  ;;  %v12341_v31 = vmax.f32 %v16438_v20, 0.0  ;;  %13500 = vmatprep.subr.bf16.mxu0 %v18995_v53  ;;  %13886 = vmatprep.subr.bf16.mxu1 %v18998_v18 }
 0xab1   : > { %v12340_v8 = vmax.f32 %v16375_v12, 0.0  ;;  %v12342_v1 = vmax.f32 %v16439_v19, 0.0 }
 0xab2   : > { %v12455_v63 = vpack.c.bf16 %v12339_v54, %v12335_v24  ;;  %v21858_v4 = vpack.c.bf16 %v12341_v31, %v12337_v40  ;;  %v19014_v24 = vld [vmem:[#allocation19 + $0x2c8] ss:$16 sps:$4 sm:$0xff]  }
 0xab3   : > { %v12456_v61 = vpack.c.bf16 %v12340_v8, %v12336_v50  ;;  %v21860_v43 = vpack.c.bf16 %v12342_v1, %v12338_v37  ;;  %v11804_v35 = vpop.f32.mrb[140].mxu0  ;;  %v12190_v5 = vpop.f32.mrb[204].mxu1  ;;  %13501 = vmatpush1.bf16.msra.mxu0 %v18993_v25  ;;  %13887 = vmatpush1.bf16.msra.mxu1 %v18996_v22  ;;  %v19019_v50 = vld [vmem:[#allocation19 + $0x2e4] ss:$16 sps:$4 sm:$0xff]   ;;  %v19022_v37 = vld [vmem:[#allocation19 + $0x2ec] ss:$16 sps:$4 sm:$0xff]  }
 0xab4   : > { %v16376_v42 = vadd.f32 %v11804_v35, %v21815_v15  ;;  %v16440_v32 = vadd.f32 %v12190_v5, %v21818_v23  ;;  %v11806_v29 = vpop.f32.mrb[141].mxu0  ;;  %v12192_v41 = vpop.f32.mrb[205].mxu1  ;;  %13502 = vmatprep.subr.bf16.mxu0 %v19001_v58  ;;  %13888 = vmatprep.subr.bf16.mxu1 %v19004_v56  ;;  %v19011_v58 = vld [vmem:[#allocation19 + $0x2c0] ss:$16 sps:$4 sm:$0xff]  }
 0xab5   : > { %v16377_v6 = vadd.f32 %v11806_v29, %v21821_v44  ;;  %v16441_v62 = vadd.f32 %v12192_v41, %v21824_v59  ;;  %v11808_v3 = vpop.f32.mrb[142].mxu0  ;;  %v12194_v49 = vpop.f32.mrb[206].mxu1  ;;  %13353 = vmatprep.mubr.bf16.mxu0 %v12456_v61  ;;  %13739 = vmatprep.mubr.bf16.mxu1 %v12456_v61  ;;  %v19017_v29 = vld [vmem:[#allocation19 + $0x2e0] ss:$16 sps:$4 sm:$0xff]   ;;  %v19020_v41 = vld [vmem:[#allocation19 + $0x2e8] ss:$16 sps:$4 sm:$0xff]  }
 0xab6   : > { %v16378_v48 = vadd.f32 %v11808_v3, %v21815_v15  ;;  %v16442_v14 = vadd.f32 %v12194_v49, %v21818_v23  ;;  %v11810_v52 = vpop.f32.mrb[143].mxu0  ;;  %v12196_v10 = vpop.f32.mrb[207].mxu1  ;;  %13354 = vmatmul.mubr.bf16.gmra.mrb[200].mxu0 %v12455_v63  ;;  %13740 = vmatmul.mubr.bf16.gmra.mrb[8].mxu1 %v12455_v63  ;;  %v12343_v2 = vmax.f32 %v16376_v42, 0.0  ;;  %v12345_v53 = vmax.f32 %v16440_v32, 0.0  ;;  %v19028_v49 = vld [vmem:[#allocation19 + $0x30c] ss:$16 sps:$4 sm:$0xff]  }
 0xab7   : > { %v16379_v13 = vadd.f32 %v11810_v52, %v21821_v44  ;;  %v16443_v51 = vadd.f32 %v12196_v10, %v21824_v59  ;;  %13503 = vmatpush1.bf16.msra.mxu0 %v18999_v45  ;;  %13889 = vmatpush1.bf16.msra.mxu1 %v19002_v36  ;;  %v12344_v7 = vmax.f32 %v16377_v6, 0.0  ;;  %v12346_v47 = vmax.f32 %v16441_v62, 0.0 }
 0xab8   : > { %v12347_v18 = vmax.f32 %v16378_v48, 0.0  ;;  %v12349_v17 = vmax.f32 %v16442_v14, 0.0  ;;  %13504 = vmatprep.subr.bf16.mxu0 %v19007_v0  ;;  %13890 = vmatprep.subr.bf16.mxu1 %v19010_v16  ;;  %v19025_v0 = vld [vmem:[#allocation19 + $0x304] ss:$16 sps:$4 sm:$0xff]  }
 0xab9   : > { %v12348_v26 = vmax.f32 %v16379_v13, 0.0  ;;  %v12350_v20 = vmax.f32 %v16443_v51, 0.0 }
 0xaba   : > { %v12459_v46 = vpack.c.bf16 %v12347_v18, %v12343_v2  ;;  %v21870_v39 = vpack.c.bf16 %v12349_v17, %v12345_v53  ;;  %v19023_v53 = vld [vmem:[#allocation19 + $0x300] ss:$16 sps:$4 sm:$0xff]   ;;  %v19026_v18 = vld [vmem:[#allocation19 + $0x308] ss:$16 sps:$4 sm:$0xff]  }
 0xabb   : > { %v12460_v12 = vpack.c.bf16 %v12348_v26, %v12344_v7  ;;  %v21872_v19 = vpack.c.bf16 %v12350_v20, %v12346_v47  ;;  %v11814_v25 = vpop.f32.mrb[144].mxu0  ;;  %v12200_v22 = vpop.f32.mrb[208].mxu1  ;;  %13505 = vmatpush1.bf16.msra.mxu0 %v19005_v11  ;;  %13891 = vmatpush1.bf16.msra.mxu1 %v19008_v33  ;;  %v19031_v26 = vld [vmem:[#allocation19 + $0x324] ss:$16 sps:$4 sm:$0xff]   ;;  %v19034_v20 = vld [vmem:[#allocation19 + $0x32c] ss:$16 sps:$4 sm:$0xff]  }
 0xabc   : > { %v16380_v40 = vadd.f32 %v11814_v25, %v21815_v15  ;;  %v16444_v54 = vadd.f32 %v12200_v22, %v21818_v23  ;;  %v11816_v31 = vpop.f32.mrb[145].mxu0  ;;  %v12202_v56 = vpop.f32.mrb[209].mxu1  ;;  %13506 = vmatprep.subr.bf16.mxu0 %v19013_v38  ;;  %13892 = vmatprep.subr.bf16.mxu1 %v19016_v9 }
 0xabd   : > { %v16381_v8 = vadd.f32 %v11816_v31, %v21821_v44  ;;  %v16445_v1 = vadd.f32 %v12202_v56, %v21824_v59  ;;  %v11818_v63 = vpop.f32.mrb[146].mxu0  ;;  %v12204_v61 = vpop.f32.mrb[210].mxu1  ;;  %13363 = vmatprep.mubr.bf16.mxu0 %v12460_v12  ;;  %13749 = vmatprep.mubr.bf16.mxu1 %v12460_v12 }
 0xabe   : > { %v16382_v35 = vadd.f32 %v11818_v63, %v21815_v15  ;;  %v16446_v5 = vadd.f32 %v12204_v61, %v21818_v23  ;;  %v11820_v45 = vpop.f32.mrb[147].mxu0  ;;  %v12206_v36 = vpop.f32.mrb[211].mxu1  ;;  %13364 = vmatmul.mubr.bf16.gmra.mrb[204].mxu0 %v12459_v46  ;;  %13750 = vmatmul.mubr.bf16.gmra.mrb[12].mxu1 %v12459_v46  ;;  %v12351_v16 = vmax.f32 %v16380_v40, 0.0  ;;  %v12353_v6 = vmax.f32 %v16444_v54, 0.0 }
 0xabf   : > { %v16383_v42 = vadd.f32 %v11820_v45, %v21821_v44  ;;  %v16447_v32 = vadd.f32 %v12206_v36, %v21824_v59  ;;  %13507 = vmatpush1.bf16.msra.mxu0 %v19011_v58  ;;  %13893 = vmatpush1.bf16.msra.mxu1 %v19014_v24  ;;  %v12352_v48 = vmax.f32 %v16381_v8, 0.0  ;;  %v12354_v14 = vmax.f32 %v16445_v1, 0.0  ;;  %v19037_v8 = vld [vmem:[#allocation19 + $0x344] ss:$16 sps:$4 sm:$0xff]  }
 0xac0   : > { %v12355_v62 = vmax.f32 %v16382_v35, 0.0  ;;  %v12357_v3 = vmax.f32 %v16446_v5, 0.0  ;;  %13508 = vmatprep.subr.bf16.mxu0 %v19019_v50  ;;  %13894 = vmatprep.subr.bf16.mxu1 %v19022_v37  ;;  %v19029_v50 = vld [vmem:[#allocation19 + $0x320] ss:$16 sps:$4 sm:$0xff]   ;;  %v19032_v37 = vld [vmem:[#allocation19 + $0x328] ss:$16 sps:$4 sm:$0xff]  }
 0xac1   : > { %v12356_v52 = vmax.f32 %v16383_v42, 0.0  ;;  %v12358_v10 = vmax.f32 %v16447_v32, 0.0  ;;  %v19040_v5 = vld [vmem:[#allocation19 + $0x34c] ss:$16 sps:$4 sm:$0xff]  }
 0xac2   : > { %v12463_v13 = vpack.c.bf16 %v12355_v62, %v12351_v16  ;;  %v21882_v51 = vpack.c.bf16 %v12357_v3, %v12353_v6  ;;  %v19035_v3 = vld [vmem:[#allocation19 + $0x340] ss:$16 sps:$4 sm:$0xff]  }
 0xac3   : > { %v12464_v11 = vpack.c.bf16 %v12356_v52, %v12352_v48  ;;  %v21884_v33 = vpack.c.bf16 %v12358_v10, %v12354_v14  ;;  %v11824_v38 = vpop.f32.mrb[148].mxu0  ;;  %v12210_v2 = vpop.f32.mrb[212].mxu1  ;;  %13509 = vmatpush1.bf16.msra.mxu0 %v19017_v29  ;;  %13895 = vmatpush1.bf16.msra.mxu1 %v19020_v41 }
 0xac4   : > { %v16384_v17 = vadd.f32 %v11824_v38, %v21815_v15  ;;  %v16448_v9 = vadd.f32 %v12210_v2, %v21818_v23  ;;  %v11826_v7 = vpop.f32.mrb[149].mxu0  ;;  %v12212_v47 = vpop.f32.mrb[213].mxu1  ;;  %13510 = vmatprep.subr.bf16.mxu0 %v19025_v0  ;;  %13896 = vmatprep.subr.bf16.mxu1 %v19028_v49  ;;  %v19038_v49 = vld [vmem:[#allocation19 + $0x348] ss:$16 sps:$4 sm:$0xff]  }
 0xac5   : > { %v16385_v46 = vadd.f32 %v11826_v7, %v21821_v44  ;;  %v16449_v12 = vadd.f32 %v12212_v47, %v21824_v59  ;;  %v11828_v25 = vpop.f32.mrb[150].mxu0  ;;  %v12214_v22 = vpop.f32.mrb[214].mxu1  ;;  %13373 = vmatprep.mubr.bf16.mxu0 %v12464_v11  ;;  %13759 = vmatprep.mubr.bf16.mxu1 %v12464_v11  ;;  %v19046_v11 = vld [vmem:[#allocation19 + $0x36c] ss:$16 sps:$4 sm:$0xff]  }
 0xac6   : > { %v16386_v58 = vadd.f32 %v11828_v25, %v21815_v15  ;;  %v16450_v24 = vadd.f32 %v12214_v22, %v21818_v23  ;;  %v11830_v40 = vpop.f32.mrb[151].mxu0  ;;  %v12216_v54 = vpop.f32.mrb[215].mxu1  ;;  %13374 = vmatmul.mubr.bf16.gmra.mrb[208].mxu0 %v12463_v13  ;;  %13760 = vmatmul.mubr.bf16.gmra.mrb[16].mxu1 %v12463_v13  ;;  %v12359_v1 = vmax.f32 %v16384_v17, 0.0  ;;  %v12361_v63 = vmax.f32 %v16448_v9, 0.0  ;;  %v19043_v13 = vld [vmem:[#allocation19 + $0x364] ss:$16 sps:$4 sm:$0xff]  }
 0xac7   : > { %v16387_v31 = vadd.f32 %v11830_v40, %v21821_v44  ;;  %v16451_v56 = vadd.f32 %v12216_v54, %v21824_v59  ;;  %13511 = vmatpush1.bf16.msra.mxu0 %v19023_v53  ;;  %13897 = vmatpush1.bf16.msra.mxu1 %v19026_v18  ;;  %v12360_v45 = vmax.f32 %v16385_v46, 0.0  ;;  %v12362_v36 = vmax.f32 %v16449_v12, 0.0  ;;  %v19041_v46 = vld [vmem:[#allocation19 + $0x360] ss:$16 sps:$4 sm:$0xff]   ;;  %v19044_v12 = vld [vmem:[#allocation19 + $0x368] ss:$16 sps:$4 sm:$0xff]  }
 0xac8   : > { %v12363_v61 = vmax.f32 %v16386_v58, 0.0  ;;  %v12365_v35 = vmax.f32 %v16450_v24, 0.0  ;;  %13512 = vmatprep.subr.bf16.mxu0 %v19031_v26  ;;  %13898 = vmatprep.subr.bf16.mxu1 %v19034_v20  ;;  %v19049_v25 = vld [vmem:[#allocation19 + $0x384] ss:$16 sps:$4 sm:$0xff]   ;;  %v19052_v54 = vld [vmem:[#allocation19 + $0x38c] ss:$16 sps:$4 sm:$0xff]  }
 0xac9   : > { %v12364_v42 = vmax.f32 %v16387_v31, 0.0  ;;  %v12366_v32 = vmax.f32 %v16451_v56, 0.0 }
 0xaca   : > { %v12467_v29 = vpack.c.bf16 %v12363_v61, %v12359_v1  ;;  %v21894_v41 = vpack.c.bf16 %v12365_v35, %v12361_v63 }
 0xacb   : > { %v12468_v0 = vpack.c.bf16 %v12364_v42, %v12360_v45  ;;  %v21896_v16 = vpack.c.bf16 %v12366_v32, %v12362_v36  ;;  %v11834_v6 = vpop.f32.mrb[152].mxu0  ;;  %v12220_v62 = vpop.f32.mrb[216].mxu1  ;;  %13513 = vmatpush1.bf16.msra.mxu0 %v19029_v50  ;;  %13899 = vmatpush1.bf16.msra.mxu1 %v19032_v37  ;;  %v19047_v45 = vld [vmem:[#allocation19 + $0x380] ss:$16 sps:$4 sm:$0xff]   ;;  %v19050_v36 = vld [vmem:[#allocation19 + $0x388] ss:$16 sps:$4 sm:$0xff]  }
 0xacc   : > { %v16388_v48 = vadd.f32 %v11834_v6, %v21815_v15  ;;  %v16452_v14 = vadd.f32 %v12220_v62, %v21818_v23  ;;  %v11836_v52 = vpop.f32.mrb[153].mxu0  ;;  %v12222_v10 = vpop.f32.mrb[217].mxu1  ;;  %13514 = vmatprep.subr.bf16.mxu0 %v19037_v8  ;;  %13900 = vmatprep.subr.bf16.mxu1 %v19040_v5  ;;  %v19055_v6 = vld [vmem:[#allocation19 + $0x3a4] ss:$16 sps:$4 sm:$0xff]   ;;  %v19058_v62 = vld [vmem:[#allocation19 + $0x3ac] ss:$16 sps:$4 sm:$0xff]  }
 0xacd   : > { %v16389_v38 = vadd.f32 %v11836_v52, %v21821_v44  ;;  %v16453_v2 = vadd.f32 %v12222_v10, %v21824_v59  ;;  %v11838_v53 = vpop.f32.mrb[154].mxu0  ;;  %v12224_v18 = vpop.f32.mrb[218].mxu1  ;;  %13383 = vmatprep.mubr.bf16.mxu0 %v12468_v0  ;;  %13769 = vmatprep.mubr.bf16.mxu1 %v12468_v0 }
 0xace   : > { %v16390_v17 = vadd.f32 %v11838_v53, %v21815_v15  ;;  %v16454_v9 = vadd.f32 %v12224_v18, %v21818_v23  ;;  %v11840_v7 = vpop.f32.mrb[155].mxu0  ;;  %v12226_v47 = vpop.f32.mrb[219].mxu1  ;;  %13384 = vmatmul.mubr.bf16.gmra.mrb[212].mxu0 %v12467_v29  ;;  %13770 = vmatmul.mubr.bf16.gmra.mrb[20].mxu1 %v12467_v29  ;;  %v12367_v22 = vmax.f32 %v16388_v48, 0.0  ;;  %v12369_v58 = vmax.f32 %v16452_v14, 0.0  ;;  %v19053_v53 = vld [vmem:[#allocation19 + $0x3a0] ss:$16 sps:$4 sm:$0xff]  }
 0xacf   : > { %v16391_v26 = vadd.f32 %v11840_v7, %v21821_v44  ;;  %v16455_v20 = vadd.f32 %v12226_v47, %v21824_v59  ;;  %13515 = vmatpush1.bf16.msra.mxu0 %v19035_v3  ;;  %13901 = vmatpush1.bf16.msra.mxu1 %v19038_v49  ;;  %v12368_v31 = vmax.f32 %v16389_v38, 0.0  ;;  %v12370_v56 = vmax.f32 %v16453_v2, 0.0  ;;  %v19056_v18 = vld [vmem:[#allocation19 + $0x3a8] ss:$16 sps:$4 sm:$0xff]  }
 0xad0   : > { %v12371_v24 = vmax.f32 %v16390_v17, 0.0  ;;  %v12373_v40 = vmax.f32 %v16454_v9, 0.0  ;;  %13516 = vmatprep.subr.bf16.mxu0 %v19043_v13  ;;  %13902 = vmatprep.subr.bf16.mxu1 %v19046_v11  ;;  %v19061_v17 = vld [vmem:[#allocation19 + $0x3c4] ss:$16 sps:$4 sm:$0xff]  }
 0xad1   : > { %v12372_v50 = vmax.f32 %v16391_v26, 0.0  ;;  %v12374_v37 = vmax.f32 %v16455_v20, 0.0  ;;  %v19064_v20 = vld [vmem:[#allocation19 + $0x3cc] ss:$16 sps:$4 sm:$0xff]  }
 0xad2   : > { %v12471_v8 = vpack.c.bf16 %v12371_v24, %v12367_v22  ;;  %v21906_v1 = vpack.c.bf16 %v12373_v40, %v12369_v58 }
 0xad3   : > { %v12472_v63 = vpack.c.bf16 %v12372_v50, %v12368_v31  ;;  %v21908_v61 = vpack.c.bf16 %v12374_v37, %v12370_v56  ;;  %v11844_v35 = vpop.f32.mrb[156].mxu0  ;;  %v12230_v5 = vpop.f32.mrb[220].mxu1  ;;  %13517 = vmatpush1.bf16.msra.mxu0 %v19041_v46  ;;  %13903 = vmatpush1.bf16.msra.mxu1 %v19044_v12  ;;  %v19059_v50 = vld [vmem:[#allocation19 + $0x3c0] ss:$16 sps:$4 sm:$0xff]   ;;  %v19062_v37 = vld [vmem:[#allocation19 + $0x3c8] ss:$16 sps:$4 sm:$0xff]  }
 0xad4   : > { %v16392_v42 = vadd.f32 %v11844_v35, %v21815_v15  ;;  %v16456_v32 = vadd.f32 %v12230_v5, %v21818_v23  ;;  %v11846_v29 = vpop.f32.mrb[157].mxu0  ;;  %v12232_v0 = vpop.f32.mrb[221].mxu1  ;;  %13518 = vmatprep.subr.bf16.mxu0 %v19049_v25  ;;  %13904 = vmatprep.subr.bf16.mxu1 %v19052_v54 }
 0xad5   : > { %v16393_v3 = vadd.f32 %v11846_v29, %v21821_v44  ;;  %v16457_v49 = vadd.f32 %v12232_v0, %v21824_v59  ;;  %v11848_v48 = vpop.f32.mrb[158].mxu0  ;;  %v12234_v14 = vpop.f32.mrb[222].mxu1  ;;  %13393 = vmatprep.mubr.bf16.mxu0 %v12472_v63  ;;  %13779 = vmatprep.mubr.bf16.mxu1 %v12472_v63 }
 0xad6   : > { %v16394_v52 = vadd.f32 %v11848_v48, %v21815_v15  ;;  %v16458_v10 = vadd.f32 %v12234_v14, %v21818_v23  ;;  %v11850_v13 = vpop.f32.mrb[159].mxu0  ;;  %v12236_v11 = vpop.f32.mrb[223].mxu1  ;;  %13394 = vmatmul.mubr.bf16.gmra.mrb[216].mxu0 %v12471_v8  ;;  %13780 = vmatmul.mubr.bf16.gmra.mrb[24].mxu1 %v12471_v8  ;;  %v12375_v9 = vmax.f32 %v16392_v42, 0.0  ;;  %v12377_v7 = vmax.f32 %v16456_v32, 0.0 }
 0xad7   : > { %v16395_v38 = vadd.f32 %v11850_v13, %v21821_v44  ;;  %v16459_v2 = vadd.f32 %v12236_v11, %v21824_v59  ;;  %13519 = vmatpush1.bf16.msra.mxu0 %v19047_v45  ;;  %13905 = vmatpush1.bf16.msra.mxu1 %v19050_v36  ;;  %v12376_v46 = vmax.f32 %v16393_v3, 0.0  ;;  %v12378_v12 = vmax.f32 %v16457_v49, 0.0  ;;  %v19067_v45 = vld [vmem:[#allocation19 + $0x3e4] ss:$16 sps:$4 sm:$0xff]   ;;  %v19070_v36 = vld [vmem:[#allocation19 + $0x3ec] ss:$16 sps:$4 sm:$0xff]  }
 0xad8   : > { %v12379_v47 = vmax.f32 %v16394_v52, 0.0  ;;  %v12381_v26 = vmax.f32 %v16458_v10, 0.0  ;;  %13520 = vmatprep.subr.bf16.mxu0 %v19055_v6  ;;  %13906 = vmatprep.subr.bf16.mxu1 %v19058_v62  ;;  %v19065_v52 = vld [vmem:[#allocation19 + $0x3e0] ss:$16 sps:$4 sm:$0xff]   ;;  %v19068_v10 = vld [vmem:[#allocation19 + $0x3e8] ss:$16 sps:$4 sm:$0xff]  }
 0xad9   : > { %v12380_v25 = vmax.f32 %v16395_v38, 0.0  ;;  %v12382_v22 = vmax.f32 %v16459_v2, 0.0 }
 0xada   : > { %v12475_v58 = vpack.c.bf16 %v12379_v47, %v12375_v9  ;;  %v21918_v24 = vpack.c.bf16 %v12381_v26, %v12377_v7 }
 0xadb   : > { %v12476_v40 = vpack.c.bf16 %v12380_v25, %v12376_v46  ;;  %v21920_v54 = vpack.c.bf16 %v12382_v22, %v12378_v12  ;;  %v11854_v31 = vpop.f32.mrb[160].mxu0  ;;  %v12240_v56 = vpop.f32.mrb[224].mxu1  ;;  %13521 = vmatpush1.bf16.msra.mxu0 %v19053_v53  ;;  %13907 = vmatpush1.bf16.msra.mxu1 %v19056_v18 }
 0xadc   : > { %v16396_v8 = vadd.f32 %v11854_v31, %v21815_v15  ;;  %v16460_v63 = vadd.f32 %v12240_v56, %v21818_v23  ;;  %v11856_v35 = vpop.f32.mrb[161].mxu0  ;;  %v12242_v5 = vpop.f32.mrb[225].mxu1  ;;  %13522 = vmatprep.subr.bf16.mxu0 %v19061_v17  ;;  %13908 = vmatprep.subr.bf16.mxu1 %v19064_v20 }
 0xadd   : > { %v16397_v42 = vadd.f32 %v11856_v35, %v21821_v44  ;;  %v16461_v32 = vadd.f32 %v12242_v5, %v21824_v59  ;;  %v11858_v29 = vpop.f32.mrb[162].mxu0  ;;  %v12244_v0 = vpop.f32.mrb[226].mxu1  ;;  %13403 = vmatprep.mubr.bf16.mxu0 %v12476_v40  ;;  %13789 = vmatprep.mubr.bf16.mxu1 %v12476_v40 }
 0xade   : > { %v16398_v6 = vadd.f32 %v11858_v29, %v21815_v15  ;;  %v16462_v62 = vadd.f32 %v12244_v0, %v21818_v23  ;;  %v11860_v3 = vpop.f32.mrb[163].mxu0  ;;  %v12246_v49 = vpop.f32.mrb[227].mxu1  ;;  %13404 = vmatmul.mubr.bf16.gmra.mrb[220].mxu0 %v12475_v58  ;;  %13790 = vmatmul.mubr.bf16.gmra.mrb[28].mxu1 %v12475_v58  ;;  %v12383_v13 = vmax.f32 %v16396_v8, 0.0  ;;  %v12385_v11 = vmax.f32 %v16460_v63, 0.0 }
 0xadf   : > { %v16399_v48 = vadd.f32 %v11860_v3, %v21821_v44  ;;  %v16463_v14 = vadd.f32 %v12246_v49, %v21824_v59  ;;  %13523 = vmatpush1.bf16.msra.mxu0 %v19059_v50  ;;  %13909 = vmatpush1.bf16.msra.mxu1 %v19062_v37  ;;  %v12384_v53 = vmax.f32 %v16397_v42, 0.0  ;;  %v12386_v18 = vmax.f32 %v16461_v32, 0.0 }
 0xae0   : > { %v12387_v38 = vmax.f32 %v16398_v6, 0.0  ;;  %v12389_v2 = vmax.f32 %v16462_v62, 0.0  ;;  %13524 = vmatprep.subr.bf16.mxu0 %v19067_v45  ;;  %13910 = vmatprep.subr.bf16.mxu1 %v19070_v36 }
 0xae1   : > { %v12388_v17 = vmax.f32 %v16399_v48, 0.0  ;;  %v12390_v9 = vmax.f32 %v16463_v14, 0.0 }
 0xae2   : > { %v12479_v7 = vpack.c.bf16 %v12387_v38, %v12383_v13  ;;  %v21930_v47 = vpack.c.bf16 %v12389_v2, %v12385_v11 }
 0xae3   : > { %v12480_v26 = vpack.c.bf16 %v12388_v17, %v12384_v53  ;;  %v21932_v20 = vpack.c.bf16 %v12390_v9, %v12386_v18  ;;  %v11864_v46 = vpop.f32.mrb[164].mxu0  ;;  %v12250_v12 = vpop.f32.mrb[228].mxu1  ;;  %13525 = vmatpush1.bf16.msra.mxu0 %v19065_v52  ;;  %13911 = vmatpush1.bf16.msra.mxu1 %v19068_v10 }
 0xae4   : > { %v16400_v25 = vadd.f32 %v11864_v46, %v21815_v15  ;;  %v16464_v22 = vadd.f32 %v12250_v12, %v21818_v23  ;;  %v11866_v58 = vpop.f32.mrb[165].mxu0  ;;  %v12252_v40 = vpop.f32.mrb[229].mxu1 }
 0xae5   : > { %v16401_v31 = vadd.f32 %v11866_v58, %v21821_v44  ;;  %v16465_v56 = vadd.f32 %v12252_v40, %v21824_v59  ;;  %v11868_v50 = vpop.f32.mrb[166].mxu0  ;;  %v12254_v37 = vpop.f32.mrb[230].mxu1  ;;  %13413 = vmatprep.mubr.bf16.mxu0 %v12480_v26  ;;  %13799 = vmatprep.mubr.bf16.mxu1 %v12480_v26 }
 0xae6   : > { %v16402_v8 = vadd.f32 %v11868_v50, %v21815_v15  ;;  %v16466_v63 = vadd.f32 %v12254_v37, %v21818_v23  ;;  %v11870_v35 = vpop.f32.mrb[167].mxu0  ;;  %v12256_v5 = vpop.f32.mrb[231].mxu1  ;;  %13414 = vmatmul.mubr.bf16.gmra.mrb[224].mxu0 %v12479_v7  ;;  %13800 = vmatmul.mubr.bf16.gmra.mrb[32].mxu1 %v12479_v7  ;;  %v12391_v42 = vmax.f32 %v16400_v25, 0.0  ;;  %v12393_v32 = vmax.f32 %v16464_v22, 0.0 }
 0xae7   : > { %v16403_v45 = vadd.f32 %v11870_v35, %v21821_v44  ;;  %v16467_v36 = vadd.f32 %v12256_v5, %v21824_v59  ;;  %v12392_v6 = vmax.f32 %v16401_v31, 0.0  ;;  %v12394_v62 = vmax.f32 %v16465_v56, 0.0 }
 0xae8   : > { %v12395_v29 = vmax.f32 %v16402_v8, 0.0  ;;  %v12397_v0 = vmax.f32 %v16466_v63, 0.0 }
 0xae9   : > { %v12396_v3 = vmax.f32 %v16403_v45, 0.0  ;;  %v12398_v49 = vmax.f32 %v16467_v36, 0.0 }
 0xaea   : > { %v12483_v48 = vpack.c.bf16 %v12395_v29, %v12391_v42  ;;  %v21942_v14 = vpack.c.bf16 %v12397_v0, %v12393_v32 }
 0xaeb   : > { %v12484_v52 = vpack.c.bf16 %v12396_v3, %v12392_v6  ;;  %v21944_v10 = vpack.c.bf16 %v12398_v49, %v12394_v62  ;;  %v11874_v13 = vpop.f32.mrb[168].mxu0  ;;  %v12260_v11 = vpop.f32.mrb[232].mxu1 }
 0xaec   : > { %v16404_v38 = vadd.f32 %v11874_v13, %v21815_v15  ;;  %v16468_v2 = vadd.f32 %v12260_v11, %v21818_v23  ;;  %v11876_v53 = vpop.f32.mrb[169].mxu0  ;;  %v12262_v18 = vpop.f32.mrb[233].mxu1 }
 0xaed   : > { %v16405_v17 = vadd.f32 %v11876_v53, %v21821_v44  ;;  %v16469_v9 = vadd.f32 %v12262_v18, %v21824_v59  ;;  %v11878_v7 = vpop.f32.mrb[170].mxu0  ;;  %v12264_v26 = vpop.f32.mrb[234].mxu1  ;;  %13423 = vmatprep.mubr.bf16.mxu0 %v12484_v52  ;;  %13809 = vmatprep.mubr.bf16.mxu1 %v12484_v52 }
 0xaee   : > { %v16406_v46 = vadd.f32 %v11878_v7, %v21815_v15  ;;  %v16470_v12 = vadd.f32 %v12264_v26, %v21818_v23  ;;  %v11880_v25 = vpop.f32.mrb[171].mxu0  ;;  %v12266_v22 = vpop.f32.mrb[235].mxu1  ;;  %13424 = vmatmul.mubr.bf16.gmra.mrb[228].mxu0 %v12483_v48  ;;  %13810 = vmatmul.mubr.bf16.gmra.mrb[36].mxu1 %v12483_v48  ;;  %v12399_v31 = vmax.f32 %v16404_v38, 0.0  ;;  %v12401_v56 = vmax.f32 %v16468_v2, 0.0 }
 0xaef   : > { %v16407_v58 = vadd.f32 %v11880_v25, %v21821_v44  ;;  %v16471_v40 = vadd.f32 %v12266_v22, %v21824_v59  ;;  %v12400_v8 = vmax.f32 %v16405_v17, 0.0  ;;  %v12402_v63 = vmax.f32 %v16469_v9, 0.0 }
 0xaf0   : > { %v12403_v50 = vmax.f32 %v16406_v46, 0.0  ;;  %v12405_v37 = vmax.f32 %v16470_v12, 0.0 }
 0xaf1   : > { %v12404_v35 = vmax.f32 %v16407_v58, 0.0  ;;  %v12406_v5 = vmax.f32 %v16471_v40, 0.0 }
 0xaf2   : > { %v12487_v45 = vpack.c.bf16 %v12403_v50, %v12399_v31  ;;  %v21954_v36 = vpack.c.bf16 %v12405_v37, %v12401_v56 }
 0xaf3   : > { %v12488_v42 = vpack.c.bf16 %v12404_v35, %v12400_v8  ;;  %v21956_v32 = vpack.c.bf16 %v12406_v5, %v12402_v63  ;;  %v11884_v29 = vpop.f32.mrb[172].mxu0  ;;  %v12270_v0 = vpop.f32.mrb[236].mxu1 }
 0xaf4   : > { %v16408_v6 = vadd.f32 %v11884_v29, %v21815_v15  ;;  %v16472_v62 = vadd.f32 %v12270_v0, %v21818_v23  ;;  %v11886_v3 = vpop.f32.mrb[173].mxu0  ;;  %v12272_v49 = vpop.f32.mrb[237].mxu1 }
 0xaf5   : > { %v16409_v48 = vadd.f32 %v11886_v3, %v21821_v44  ;;  %v16473_v52 = vadd.f32 %v12272_v49, %v21824_v59  ;;  %v11888_v13 = vpop.f32.mrb[174].mxu0  ;;  %v12274_v11 = vpop.f32.mrb[238].mxu1  ;;  %13433 = vmatprep.mubr.bf16.mxu0 %v12488_v42  ;;  %13819 = vmatprep.mubr.bf16.mxu1 %v12488_v42 }
 0xaf6   : > { %v16410_v38 = vadd.f32 %v11888_v13, %v21815_v15  ;;  %v16474_v2 = vadd.f32 %v12274_v11, %v21818_v23  ;;  %v11890_v53 = vpop.f32.mrb[175].mxu0  ;;  %v12276_v18 = vpop.f32.mrb[239].mxu1  ;;  %13434 = vmatmul.mubr.bf16.gmra.mrb[232].mxu0 %v12487_v45  ;;  %13820 = vmatmul.mubr.bf16.gmra.mrb[40].mxu1 %v12487_v45  ;;  %v12407_v7 = vmax.f32 %v16408_v6, 0.0  ;;  %v12409_v26 = vmax.f32 %v16472_v62, 0.0 }
 0xaf7   : > { %v16411_v17 = vadd.f32 %v11890_v53, %v21821_v44  ;;  %v16475_v9 = vadd.f32 %v12276_v18, %v21824_v59  ;;  %v12408_v25 = vmax.f32 %v16409_v48, 0.0  ;;  %v12410_v22 = vmax.f32 %v16473_v52, 0.0 }
 0xaf8   : > { %v12411_v46 = vmax.f32 %v16410_v38, 0.0  ;;  %v12413_v12 = vmax.f32 %v16474_v2, 0.0 }
 0xaf9   : > { %v12412_v58 = vmax.f32 %v16411_v17, 0.0  ;;  %v12414_v40 = vmax.f32 %v16475_v9, 0.0 }
 0xafa   : > { %v12491_v31 = vpack.c.bf16 %v12411_v46, %v12407_v7  ;;  %v21966_v56 = vpack.c.bf16 %v12413_v12, %v12409_v26 }
 0xafb   : > { %v12492_v50 = vpack.c.bf16 %v12412_v58, %v12408_v25  ;;  %v21968_v37 = vpack.c.bf16 %v12414_v40, %v12410_v22  ;;  %v11894_v8 = vpop.f32.mrb[176].mxu0  ;;  %v12280_v63 = vpop.f32.mrb[240].mxu1 }
 0xafc   : > { %v16412_v35 = vadd.f32 %v11894_v8, %v21815_v15  ;;  %v16476_v5 = vadd.f32 %v12280_v63, %v21818_v23  ;;  %v11896_v45 = vpop.f32.mrb[177].mxu0  ;;  %v12282_v42 = vpop.f32.mrb[241].mxu1 }
 0xafd   : > { %v16413_v29 = vadd.f32 %v11896_v45, %v21821_v44  ;;  %v16477_v0 = vadd.f32 %v12282_v42, %v21824_v59  ;;  %v11898_v6 = vpop.f32.mrb[178].mxu0  ;;  %v12284_v62 = vpop.f32.mrb[242].mxu1  ;;  %13443 = vmatprep.mubr.bf16.mxu0 %v12492_v50  ;;  %13829 = vmatprep.mubr.bf16.mxu1 %v12492_v50 }
 0xafe   : > { %v16414_v3 = vadd.f32 %v11898_v6, %v21815_v15  ;;  %v16478_v49 = vadd.f32 %v12284_v62, %v21818_v23  ;;  %v11900_v48 = vpop.f32.mrb[179].mxu0  ;;  %v12286_v52 = vpop.f32.mrb[243].mxu1  ;;  %13444 = vmatmul.mubr.bf16.gmra.mrb[236].mxu0 %v12491_v31  ;;  %13830 = vmatmul.mubr.bf16.gmra.mrb[44].mxu1 %v12491_v31  ;;  %v12415_v38 = vmax.f32 %v16412_v35, 0.0  ;;  %v12417_v2 = vmax.f32 %v16476_v5, 0.0 }
 0xaff   : > { %v16415_v13 = vadd.f32 %v11900_v48, %v21821_v44  ;;  %v16479_v11 = vadd.f32 %v12286_v52, %v21824_v59  ;;  %v12416_v17 = vmax.f32 %v16413_v29, 0.0  ;;  %v12418_v9 = vmax.f32 %v16477_v0, 0.0 }
 0xb00   : > { %v12419_v53 = vmax.f32 %v16414_v3, 0.0  ;;  %v12421_v18 = vmax.f32 %v16478_v49, 0.0 }
 0xb01   : > { %v12420_v7 = vmax.f32 %v16415_v13, 0.0  ;;  %v12422_v26 = vmax.f32 %v16479_v11, 0.0 }
 0xb02   : > { %v12495_v46 = vpack.c.bf16 %v12419_v53, %v12415_v38  ;;  %v21978_v12 = vpack.c.bf16 %v12421_v18, %v12417_v2 }
 0xb03   : > { %v12496_v25 = vpack.c.bf16 %v12420_v7, %v12416_v17  ;;  %v21980_v22 = vpack.c.bf16 %v12422_v26, %v12418_v9  ;;  %v11904_v58 = vpop.f32.mrb[180].mxu0  ;;  %v12290_v40 = vpop.f32.mrb[244].mxu1 }
 0xb04   : > { %v16416_v31 = vadd.f32 %v11904_v58, %v21815_v15  ;;  %v16480_v50 = vadd.f32 %v12290_v40, %v21818_v23  ;;  %v11906_v8 = vpop.f32.mrb[181].mxu0  ;;  %v12292_v63 = vpop.f32.mrb[245].mxu1 }
 0xb05   : > { %v16417_v35 = vadd.f32 %v11906_v8, %v21821_v44  ;;  %v16481_v5 = vadd.f32 %v12292_v63, %v21824_v59  ;;  %v11908_v45 = vpop.f32.mrb[182].mxu0  ;;  %v12294_v42 = vpop.f32.mrb[246].mxu1  ;;  %13453 = vmatprep.mubr.bf16.mxu0 %v12496_v25  ;;  %13839 = vmatprep.mubr.bf16.mxu1 %v12496_v25 }
 0xb06   : > { %v16418_v29 = vadd.f32 %v11908_v45, %v21815_v15  ;;  %v16482_v0 = vadd.f32 %v12294_v42, %v21818_v23  ;;  %v11910_v6 = vpop.f32.mrb[183].mxu0  ;;  %v12296_v62 = vpop.f32.mrb[247].mxu1  ;;  %13454 = vmatmul.mubr.bf16.gmra.mrb[240].mxu0 %v12495_v46  ;;  %13840 = vmatmul.mubr.bf16.gmra.mrb[48].mxu1 %v12495_v46  ;;  %v12423_v48 = vmax.f32 %v16416_v31, 0.0  ;;  %v12425_v52 = vmax.f32 %v16480_v50, 0.0 }
 0xb07   : > { %v16419_v3 = vadd.f32 %v11910_v6, %v21821_v44  ;;  %v16483_v49 = vadd.f32 %v12296_v62, %v21824_v59  ;;  %v12424_v38 = vmax.f32 %v16417_v35, 0.0  ;;  %v12426_v2 = vmax.f32 %v16481_v5, 0.0 }
 0xb08   : > { %v12427_v13 = vmax.f32 %v16418_v29, 0.0  ;;  %v12429_v11 = vmax.f32 %v16482_v0, 0.0 }
 0xb09   : > { %v12428_v53 = vmax.f32 %v16419_v3, 0.0  ;;  %v12430_v18 = vmax.f32 %v16483_v49, 0.0 }
 0xb0a   : > { %v12499_v17 = vpack.c.bf16 %v12427_v13, %v12423_v48  ;;  %v21990_v9 = vpack.c.bf16 %v12429_v11, %v12425_v52 }
 0xb0b   : > { %v12500_v7 = vpack.c.bf16 %v12428_v53, %v12424_v38  ;;  %v21992_v26 = vpack.c.bf16 %v12430_v18, %v12426_v2  ;;  %v11914_v25 = vpop.f32.mrb[184].mxu0  ;;  %v12300_v46 = vpop.f32.mrb[248].mxu1 }
 0xb0c   : > { %v16420_v58 = vadd.f32 %v11914_v25, %v21815_v15  ;;  %v16484_v40 = vadd.f32 %v12300_v46, %v21818_v23  ;;  %v11916_v31 = vpop.f32.mrb[185].mxu0  ;;  %v12302_v50 = vpop.f32.mrb[249].mxu1 }
 0xb0d   : > { %v16421_v8 = vadd.f32 %v11916_v31, %v21821_v44  ;;  %v16485_v63 = vadd.f32 %v12302_v50, %v21824_v59  ;;  %v11918_v35 = vpop.f32.mrb[186].mxu0  ;;  %v12304_v5 = vpop.f32.mrb[250].mxu1  ;;  %13463 = vmatprep.mubr.bf16.mxu0 %v12500_v7  ;;  %13849 = vmatprep.mubr.bf16.mxu1 %v12500_v7 }
 0xb0e   : > { %v16422_v45 = vadd.f32 %v11918_v35, %v21815_v15  ;;  %v16486_v42 = vadd.f32 %v12304_v5, %v21818_v23  ;;  %v11920_v29 = vpop.f32.mrb[187].mxu0  ;;  %v12306_v0 = vpop.f32.mrb[251].mxu1  ;;  %13464 = vmatmul.mubr.bf16.gmra.mrb[244].mxu0 %v12499_v17  ;;  %13850 = vmatmul.mubr.bf16.gmra.mrb[52].mxu1 %v12499_v17  ;;  %v12431_v3 = vmax.f32 %v16420_v58, 0.0  ;;  %v12433_v49 = vmax.f32 %v16484_v40, 0.0 }
 0xb0f   : > { %v16423_v6 = vadd.f32 %v11920_v29, %v21821_v44  ;;  %v16487_v62 = vadd.f32 %v12306_v0, %v21824_v59  ;;  %v12432_v13 = vmax.f32 %v16421_v8, 0.0  ;;  %v12434_v11 = vmax.f32 %v16485_v63, 0.0 }
 0xb10   : > { %v12435_v48 = vmax.f32 %v16422_v45, 0.0  ;;  %v12437_v52 = vmax.f32 %v16486_v42, 0.0 }
 0xb11   : > { %v12436_v38 = vmax.f32 %v16423_v6, 0.0  ;;  %v12438_v2 = vmax.f32 %v16487_v62, 0.0 }
 0xb12   : > { %v12503_v53 = vpack.c.bf16 %v12435_v48, %v12431_v3  ;;  %v22002_v18 = vpack.c.bf16 %v12437_v52, %v12433_v49 }
 0xb13   : > { %v12504_v7 = vpack.c.bf16 %v12436_v38, %v12432_v13  ;;  %v22004_v25 = vpack.c.bf16 %v12438_v2, %v12434_v11  ;;  %v11924_v46 = vpop.f32.mrb[188].mxu0  ;;  %v12310_v17 = vpop.f32.mrb[252].mxu1 }
 0xb14   : > { %v16424_v31 = vadd.f32 %v11924_v46, %v21815_v15  ;;  %v16488_v50 = vadd.f32 %v12310_v17, %v21818_v23  ;;  %v11926_v58 = vpop.f32.mrb[189].mxu0  ;;  %v12312_v40 = vpop.f32.mrb[253].mxu1 }
 0xb15   : > { %v16425_v35 = vadd.f32 %v11926_v58, %v21821_v44  ;;  %v16489_v8 = vadd.f32 %v12312_v40, %v21824_v59  ;;  %v11928_v63 = vpop.f32.mrb[190].mxu0  ;;  %v12314_v5 = vpop.f32.mrb[254].mxu1  ;;  %13473 = vmatprep.mubr.bf16.mxu0 %v12504_v7  ;;  %13859 = vmatprep.mubr.bf16.mxu1 %v12504_v7 }
 0xb16   : > { %v16426_v45 = vadd.f32 %v11928_v63, %v21815_v15  ;;  %v16490_v42 = vadd.f32 %v12314_v5, %v21818_v23  ;;  %v11930_v29 = vpop.f32.mrb[191].mxu0  ;;  %v12316_v0 = vpop.f32.mrb[255].mxu1  ;;  %13474 = vmatmul.mubr.bf16.gmra.mrb[248].mxu0 %v12503_v53  ;;  %13860 = vmatmul.mubr.bf16.gmra.mrb[56].mxu1 %v12503_v53  ;;  %v12439_v3 = vmax.f32 %v16424_v31, 0.0  ;;  %v12441_v49 = vmax.f32 %v16488_v50, 0.0 }
 0xb17   : > { %v16427_v6 = vadd.f32 %v11930_v29, %v21821_v44  ;;  %v16491_v62 = vadd.f32 %v12316_v0, %v21824_v59  ;;  %v12440_v13 = vmax.f32 %v16425_v35, 0.0  ;;  %v12442_v11 = vmax.f32 %v16489_v8, 0.0  ;;  %v12639_v44 = vld [vmem:[%s22560_s28] sm:$0xf] }
 0xb18   : > { %v12443_v48 = vmax.f32 %v16426_v45, 0.0  ;;  %v12445_v52 = vmax.f32 %v16490_v42, 0.0  ;;  %v22086_v59 = vrot.slane %v12639_v44, %v19991_v55 }
 0xb19   : > { %v12444_v38 = vmax.f32 %v16427_v6, 0.0  ;;  %v12446_v2 = vmax.f32 %v16491_v62, 0.0 }
 0xb1a   : > { %v12507_v7 = vpack.c.bf16 %v12443_v48, %v12439_v3  ;;  %v22014_v15 = vpack.c.bf16 %v12445_v52, %v12441_v49 }
 0xb1b   : > { %v12508_v23 = vpack.c.bf16 %v12444_v38, %v12440_v13  ;;  %v22016_v46 = vpack.c.bf16 %v12446_v2, %v12442_v11 }
 0xb1d   : > { %13483 = vmatprep.mubr.bf16.mxu0 %v12508_v23  ;;  %13869 = vmatprep.mubr.bf16.mxu1 %v12508_v23 }
 0xb1e   : > { %13484 = vmatmul.mubr.bf16.gmra.mrb[252].mxu0 %v12507_v7  ;;  %13870 = vmatmul.mubr.bf16.gmra.mrb[60].mxu1 %v12507_v7 }
 0xb1f   : > { %13526 = vmatprep.mubr.bf16.mxu0 %v21836_v34  ;;  %13912 = vmatprep.mubr.bf16.mxu1 %v21836_v34  ;;  %v14201_v34 = vld [vmem:[%s22561_s1] sm:$0xf] }
 0xb20   : > { %v22121_v53 = vrot.slane %v14201_v34, %v20014_v30 }
 0xb26   : > { %13527 = vmatmul.mubr.bf16.vlgmr.msra.gmra.mrb[192].mxu0 %v21834_v28  ;;  %13913 = vmatmul.mubr.bf16.vlgmr.msra.gmra.mrb[0].mxu1 %v21834_v28  ;;  %v22089_v28 = vrot.slane %v12639_v44, %v20012_v27 }
 0xb27   : > { %13536 = vmatprep.mubr.bf16.mxu0 %v21848_v21  ;;  %13922 = vmatprep.mubr.bf16.mxu1 %v21848_v21 }
 0xb2e   : > { %13537 = vmatmul.mubr.bf16.gmra.mrb[196].mxu0 %v21846_v60  ;;  %13923 = vmatmul.mubr.bf16.gmra.mrb[4].mxu1 %v21846_v60  ;;  %v22095_v60 = vrot.slane %v12639_v44, %v19996_v57 }
 0xb2f   : > { %13546 = vmatprep.mubr.bf16.mxu0 %v21860_v43  ;;  %13932 = vmatprep.mubr.bf16.mxu1 %v21860_v43  ;;  %v22098_v43 = vrot.slane %v12639_v44, %v20014_v30 }
 0xb36   : > { %13547 = vmatmul.mubr.bf16.gmra.mrb[200].mxu0 %v21858_v4  ;;  %13933 = vmatmul.mubr.bf16.gmra.mrb[8].mxu1 %v21858_v4 }
 0xb37   : > { %13556 = vmatprep.mubr.bf16.mxu0 %v21872_v19  ;;  %13942 = vmatprep.mubr.bf16.mxu1 %v21872_v19  ;;  %v22102_v19 = vrot.slane %v14201_v34, %v19991_v55 }
 0xb3e   : > { %13557 = vmatmul.mubr.bf16.gmra.mrb[204].mxu0 %v21870_v39  ;;  %13943 = vmatmul.mubr.bf16.gmra.mrb[12].mxu1 %v21870_v39 }
 0xb3f   : > { %13566 = vmatprep.mubr.bf16.mxu0 %v21884_v33  ;;  %13952 = vmatprep.mubr.bf16.mxu1 %v21884_v33 }
 0xb46   : > { %13567 = vmatmul.mubr.bf16.gmra.mrb[208].mxu0 %v21882_v51  ;;  %13953 = vmatmul.mubr.bf16.gmra.mrb[16].mxu1 %v21882_v51 }
 0xb47   : > { %13576 = vmatprep.mubr.bf16.mxu0 %v21896_v16  ;;  %13962 = vmatprep.mubr.bf16.mxu1 %v21896_v16 }
 0xb4e   : > { %13577 = vmatmul.mubr.bf16.gmra.mrb[212].mxu0 %v21894_v41  ;;  %13963 = vmatmul.mubr.bf16.gmra.mrb[20].mxu1 %v21894_v41 }
 0xb4f   : > { %13586 = vmatprep.mubr.bf16.mxu0 %v21908_v61  ;;  %13972 = vmatprep.mubr.bf16.mxu1 %v21908_v61 }
 0xb56   : > { %13587 = vmatmul.mubr.bf16.gmra.mrb[216].mxu0 %v21906_v1  ;;  %13973 = vmatmul.mubr.bf16.gmra.mrb[24].mxu1 %v21906_v1  ;;  %v22107_v1 = vrot.slane %v14201_v34, %v19996_v57 }
 0xb57   : > { %13596 = vmatprep.mubr.bf16.mxu0 %v21920_v54  ;;  %13982 = vmatprep.mubr.bf16.mxu1 %v21920_v54 }
 0xb5e   : > { %13597 = vmatmul.mubr.bf16.gmra.mrb[220].mxu0 %v21918_v24  ;;  %13983 = vmatmul.mubr.bf16.gmra.mrb[28].mxu1 %v21918_v24 }
 0xb5f   : > { %13606 = vmatprep.mubr.bf16.mxu0 %v21932_v20  ;;  %13992 = vmatprep.mubr.bf16.mxu1 %v21932_v20 }
 0xb66   : > { %13607 = vmatmul.mubr.bf16.gmra.mrb[224].mxu0 %v21930_v47  ;;  %13993 = vmatmul.mubr.bf16.gmra.mrb[32].mxu1 %v21930_v47  ;;  %v22110_v47 = vrot.slane %v14201_v34, %v20012_v27 }
 0xb67   : > { %13616 = vmatprep.mubr.bf16.mxu0 %v21944_v10  ;;  %14002 = vmatprep.mubr.bf16.mxu1 %v21944_v10 }
 0xb6e   : > { %13617 = vmatmul.mubr.bf16.gmra.mrb[228].mxu0 %v21942_v14  ;;  %14003 = vmatmul.mubr.bf16.gmra.mrb[36].mxu1 %v21942_v14 }
 0xb6f   : > { %13626 = vmatprep.mubr.bf16.mxu0 %v21956_v32  ;;  %14012 = vmatprep.mubr.bf16.mxu1 %v21956_v32 }
 0xb76   : > { %13627 = vmatmul.mubr.bf16.gmra.mrb[232].mxu0 %v21954_v36  ;;  %14013 = vmatmul.mubr.bf16.gmra.mrb[40].mxu1 %v21954_v36 }
 0xb77   : > { %13636 = vmatprep.mubr.bf16.mxu0 %v21968_v37  ;;  %14022 = vmatprep.mubr.bf16.mxu1 %v21968_v37 }
 0xb7e   : > { %13637 = vmatmul.mubr.bf16.gmra.mrb[236].mxu0 %v21966_v56  ;;  %14023 = vmatmul.mubr.bf16.gmra.mrb[44].mxu1 %v21966_v56 }
 0xb7f   : > { %13646 = vmatprep.mubr.bf16.mxu0 %v21980_v22  ;;  %14032 = vmatprep.mubr.bf16.mxu1 %v21980_v22 }
 0xb86   : > { %13647 = vmatmul.mubr.bf16.gmra.mrb[240].mxu0 %v21978_v12  ;;  %14033 = vmatmul.mubr.bf16.gmra.mrb[48].mxu1 %v21978_v12 }
 0xb87   : > { %13656 = vmatprep.mubr.bf16.mxu0 %v21992_v26  ;;  %14042 = vmatprep.mubr.bf16.mxu1 %v21992_v26 }
 0xb8e   : > { %13657 = vmatmul.mubr.bf16.gmra.mrb[244].mxu0 %v21990_v9  ;;  %14043 = vmatmul.mubr.bf16.gmra.mrb[52].mxu1 %v21990_v9 }
 0xb8f   : > { %13666 = vmatprep.mubr.bf16.mxu0 %v22004_v25  ;;  %14052 = vmatprep.mubr.bf16.mxu1 %v22004_v25 }
 0xb96   : > { %13667 = vmatmul.mubr.bf16.gmra.mrb[248].mxu0 %v22002_v18  ;;  %14053 = vmatmul.mubr.bf16.gmra.mrb[56].mxu1 %v22002_v18 }
 0xb97   : > { %13676 = vmatprep.mubr.bf16.mxu0 %v22016_v46  ;;  %14062 = vmatprep.mubr.bf16.mxu1 %v22016_v46 }
 0xb9e   : > { %13677 = vmatmul.mubr.bf16.gmra.mrb[252].mxu0 %v22014_v15  ;;  %14063 = vmatmul.mubr.bf16.gmra.mrb[60].mxu1 %v22014_v15 }
 0xbf9   : > { %v13528_v21 = vpop.f32.mrb[192].mxu0  ;;  %v13914_v4 = vpop.f32.mrb[0].mxu1 }
 0xbfa   : > { %v16492_v39 = vadd.f32 %v13528_v21, %v22086_v59  ;;  %v16556_v51 = vadd.f32 %v13914_v4, %v22089_v28  ;;  %v13530_v33 = vpop.f32.mrb[193].mxu0  ;;  %v13916_v41 = vpop.f32.mrb[1].mxu1 }
 0xbfb   : > { %v16493_v16 = vadd.f32 %v13530_v33, %v22095_v60  ;;  %v13532_v61 = vpop.f32.mrb[194].mxu0  ;;  %v13918_v24 = vpop.f32.mrb[2].mxu1  ;;  %v16557_v32 = vadd.f32 %v13916_v41, %v22098_v43 }
 0xbfc   : > { %v14073_v54 = vmax.f32 %v16492_v39, 0.0  ;;  %v16494_v20 = vadd.f32 %v13532_v61, %v22086_v59  ;;  %v13534_v14 = vpop.f32.mrb[195].mxu0  ;;  %v13920_v55 = vpop.f32.mrb[3].mxu1  ;;  %v14075_v10 = vmax.f32 %v16556_v51, 0.0  ;;  %v16558_v12 = vadd.f32 %v13918_v24, %v22089_v28 }
 0xbfd   : > { %v14074_v36 = vmax.f32 %v16493_v16, 0.0  ;;  %v16495_v56 = vadd.f32 %v13534_v14, %v22095_v60  ;;  %v16559_v26 = vadd.f32 %v13920_v55, %v22098_v43  ;;  %v14076_v25 = vmax.f32 %v16557_v32, 0.0 }
 0xbfe   : > { %v14223_v37 = vmul.f32 %v22102_v19, %v14073_v54  ;;  %v14077_v57 = vmax.f32 %v16494_v20, 0.0  ;;  %v14225_v18 = vmul.f32 %v22110_v47, %v14075_v10  ;;  %v14079_v40 = vmax.f32 %v16558_v12, 0.0 }
 0xbff   : > { %v14224_v22 = vmul.f32 %v22107_v1, %v14074_v36  ;;  %v14078_v9 = vmax.f32 %v16495_v56, 0.0  ;;  %v14080_v6 = vmax.f32 %v16559_v26, 0.0  ;;  %v14226_v2 = vmul.f32 %v22121_v53, %v14076_v25 }
 0xc00   : > { %v14227_v27 = vmul.f32 %v22102_v19, %v14077_v57  ;;  %v14229_v7 = vmul.f32 %v22110_v47, %v14079_v40 }
 0xc01   : > { %v14228_v17 = vmul.f32 %v22107_v1, %v14078_v9  ;;  %v13538_v31 = vpop.f32.mrb[196].mxu0  ;;  %v13924_v50 = vpop.f32.mrb[4].mxu1  ;;  %v14351_v58 = vadd.f32 %v14224_v22, %v14223_v37  ;;  %v14230_v39 = vmul.f32 %v22121_v53, %v14080_v6 }
 0xc02   : > { %v16496_v35 = vadd.f32 %v13538_v31, %v22086_v59  ;;  %v16560_v8 = vadd.f32 %v13924_v50, %v22089_v28  ;;  %v13540_v63 = vpop.f32.mrb[197].mxu0  ;;  %v13926_v5 = vpop.f32.mrb[5].mxu1 }
 0xc03   : > { %v14356_v45 = vadd.f32 %v14228_v17, %v14227_v27  ;;  %v16497_v42 = vadd.f32 %v13540_v63, %v22095_v60  ;;  %v13542_v30 = vpop.f32.mrb[198].mxu0  ;;  %v13928_v29 = vpop.f32.mrb[6].mxu1  ;;  %v14352_v0 = vadd.f32 %v14351_v58, %v14225_v18  ;;  %v16561_v23 = vadd.f32 %v13926_v5, %v22098_v43 }
 0xc04   : > { %v14081_v62 = vmax.f32 %v16496_v35, 0.0  ;;  %v16498_v3 = vadd.f32 %v13542_v30, %v22086_v59  ;;  %v16562_v49 = vadd.f32 %v13928_v29, %v22089_v28  ;;  %v13544_v48 = vpop.f32.mrb[199].mxu0  ;;  %v13930_v52 = vpop.f32.mrb[7].mxu1  ;;  %v14083_v13 = vmax.f32 %v16560_v8, 0.0 }
 0xc05   : > { %v14082_v11 = vmax.f32 %v16497_v42, 0.0  ;;  %v16499_v38 = vadd.f32 %v13544_v48, %v22095_v60  ;;  %v16563_v21 = vadd.f32 %v13930_v52, %v22098_v43  ;;  %v14353_v4 = vadd.f32 %v14352_v0, %v14226_v2 }
 0xc06   : > { %v14231_v15 = vmul.f32 %v22102_v19, %v14081_v62  ;;  %v14085_v46 = vmax.f32 %v16498_v3, 0.0  ;;  %v14087_v33 = vmax.f32 %v16562_v49, 0.0  ;;  %v14357_v41 = vadd.f32 %v14356_v45, %v14229_v7 }
 0xc07   : > { %v14232_v44 = vmul.f32 %v22107_v1, %v14082_v11  ;;  %v14086_v34 = vmax.f32 %v16499_v38, 0.0  ;;  %v14233_v16 = vmul.f32 %v22110_v47, %v14083_v13  ;;  %14354 = vadd.xlane.f32.xlu0 %v14353_v4  ;;  %v14084_v14 = vmax.f32 %v16561_v23, 0.0 }
 0xc08   : > { %v14235_v51 = vmul.f32 %v22102_v19, %v14085_v46  ;;  %v14358_v56 = vadd.f32 %v14357_v41, %v14230_v39  ;;  %v14088_v57 = vmax.f32 %v16563_v21, 0.0  ;;  %v14237_v26 = vmul.f32 %v22110_v47, %v14087_v33 }
 0xc09   : > { %v14236_v61 = vmul.f32 %v22107_v1, %v14086_v34  ;;  %v13548_v24 = vpop.f32.mrb[200].mxu0  ;;  %v13934_v54 = vpop.f32.mrb[8].mxu1  ;;  %v14361_v20 = vadd.f32 %v14232_v44, %v14231_v15  ;;  %v14234_v42 = vmul.f32 %v22121_v53, %v14084_v14 }
 0xc0a   : > { %v16500_v55 = vadd.f32 %v13548_v24, %v22086_v59  ;;  %v16564_v10 = vadd.f32 %v13934_v54, %v22089_v28  ;;  %v13550_v36 = vpop.f32.mrb[201].mxu0  ;;  %v13936_v32 = vpop.f32.mrb[9].mxu1  ;;  %v14238_v30 = vmul.f32 %v22121_v53, %v14088_v57 }
 0xc0b   : > { %v14366_v37 = vadd.f32 %v14236_v61, %v14235_v51  ;;  %v16501_v12 = vadd.f32 %v13550_v36, %v22095_v60  ;;  %v13552_v22 = vpop.f32.mrb[202].mxu0  ;;  %v13938_v9 = vpop.f32.mrb[10].mxu1  ;;  %v14362_v27 = vadd.f32 %v14361_v20, %v14233_v16  ;;  %v16565_v25 = vadd.f32 %v13936_v32, %v22098_v43  ;;  %14359 = vadd.xlane.f32.xlu0 %v14358_v56 }
 0xc0c   : > { %v14089_v18 = vmax.f32 %v16500_v55, 0.0  ;;  %v16502_v17 = vadd.f32 %v13552_v22, %v22086_v59  ;;  %v13554_v31 = vpop.f32.mrb[203].mxu0  ;;  %v13940_v50 = vpop.f32.mrb[11].mxu1  ;;  %v14091_v58 = vmax.f32 %v16564_v10, 0.0  ;;  %v16566_v35 = vadd.f32 %v13938_v9, %v22089_v28 }
 0xc0d   : > { %v14090_v40 = vmax.f32 %v16501_v12, 0.0  ;;  %v16503_v8 = vadd.f32 %v13554_v31, %v22095_v60  ;;  %v16567_v45 = vadd.f32 %v13940_v50, %v22098_v43  ;;  %v14092_v6 = vmax.f32 %v16565_v25, 0.0 }
 0xc0e   : > { %v14239_v63 = vmul.f32 %v22102_v19, %v14089_v18  ;;  %v14093_v5 = vmax.f32 %v16502_v17, 0.0  ;;  %v14363_v3 = vadd.f32 %v14362_v27, %v14234_v42  ;;  %v14367_v49 = vadd.f32 %v14366_v37, %v14237_v26 }
 0xc0f   : > { %v14240_v29 = vmul.f32 %v22107_v1, %v14090_v40  ;;  %v14094_v0 = vmax.f32 %v16503_v8, 0.0  ;;  %v14241_v48 = vmul.f32 %v22110_v47, %v14091_v58  ;;  %v14095_v13 = vmax.f32 %v16566_v35, 0.0 }
 0xc10   : > { %v14243_v62 = vmul.f32 %v22102_v19, %v14093_v5  ;;  %v14096_v7 = vmax.f32 %v16567_v45, 0.0  ;;  %14364 = vadd.xlane.f32.xlu1 %v14363_v3  ;;  %v14368_v34 = vadd.f32 %v14367_v49, %v14238_v30  ;;  %v14242_v20 = vmul.f32 %v22121_v53, %v14092_v6 }
 0xc11   : > { %v14371_v52 = vadd.f32 %v14240_v29, %v14239_v63  ;;  %v14244_v11 = vmul.f32 %v22107_v1, %v14094_v0  ;;  %v13558_v38 = vpop.f32.mrb[204].mxu0  ;;  %v13944_v2 = vpop.f32.mrb[12].mxu1  ;;  %v14245_v36 = vmul.f32 %v22110_v47, %v14095_v13 }
 0xc12   : > { %v16504_v15 = vadd.f32 %v13558_v38, %v22086_v59  ;;  %v16568_v23 = vadd.f32 %v13944_v2, %v22089_v28  ;;  %v13560_v46 = vpop.f32.mrb[205].mxu0  ;;  %v13946_v44 = vpop.f32.mrb[13].mxu1  ;;  %v14246_v57 = vmul.f32 %v22121_v53, %v14096_v7 }
 0xc13   : > { %v14376_v21 = vadd.f32 %v14244_v11, %v14243_v62  ;;  %v16505_v4 = vadd.f32 %v13560_v46, %v22095_v60  ;;  %v16569_v39 = vadd.f32 %v13946_v44, %v22098_v43  ;;  %v13562_v51 = vpop.f32.mrb[206].mxu0  ;;  %v13948_v33 = vpop.f32.mrb[14].mxu1  ;;  %v14372_v41 = vadd.f32 %v14371_v52, %v14241_v48 }
 0xc14   : > { %v14097_v16 = vmax.f32 %v16504_v15, 0.0  ;;  %v16506_v61 = vadd.f32 %v13562_v51, %v22086_v59  ;;  %v13564_v24 = vpop.f32.mrb[207].mxu0  ;;  %v13950_v54 = vpop.f32.mrb[15].mxu1  ;;  %v14099_v14 = vmax.f32 %v16568_v23, 0.0  ;;  %v16570_v37 = vadd.f32 %v13948_v33, %v22089_v28  ;;  %14369 = vadd.xlane.f32.xlu1 %v14368_v34 }
 0xc15   : > { %v14098_v55 = vmax.f32 %v16505_v4, 0.0  ;;  %v16507_v10 = vadd.f32 %v13564_v24, %v22095_v60  ;;  %v14100_v22 = vmax.f32 %v16569_v39, 0.0  ;;  %v16571_v26 = vadd.f32 %v13950_v54, %v22098_v43 }
 0xc16   : > { %v14247_v32 = vmul.f32 %v22102_v19, %v14097_v16  ;;  %v14101_v56 = vmax.f32 %v16506_v61, 0.0  ;;  %v14373_v18 = vadd.f32 %v14372_v41, %v14242_v20  ;;  %v14377_v25 = vadd.f32 %v14376_v21, %v14245_v36 }
 0xc17   : > { %v14248_v12 = vmul.f32 %v22107_v1, %v14098_v55  ;;  %v14102_v9 = vmax.f32 %v16507_v10, 0.0  ;;  %v14249_v17 = vmul.f32 %v22110_v47, %v14099_v14  ;;  %v14103_v35 = vmax.f32 %v16570_v37, 0.0 }
 0xc18   : > { %v14251_v27 = vmul.f32 %v22102_v19, %v14101_v56  ;;  %14374 = vadd.xlane.f32.xlu0 %v14373_v18  ;;  %v14378_v5 = vadd.f32 %v14377_v25, %v14246_v57  ;;  %v14250_v3 = vmul.f32 %v22121_v53, %v14100_v22  ;;  %v14104_v49 = vmax.f32 %v16571_v26, 0.0 }
 0xc19   : > { %v14381_v31 = vadd.f32 %v14248_v12, %v14247_v32  ;;  %v14252_v50 = vmul.f32 %v22107_v1, %v14102_v9  ;;  %v13568_v58 = vpop.f32.mrb[208].mxu0  ;;  %v13954_v40 = vpop.f32.mrb[16].mxu1  ;;  %v14253_v23 = vmul.f32 %v22110_v47, %v14103_v35 }
 0xc1a   : > { %v16508_v8 = vadd.f32 %v13568_v58, %v22086_v59  ;;  %v16572_v63 = vadd.f32 %v13954_v40, %v22089_v28  ;;  %v13570_v45 = vpop.f32.mrb[209].mxu0  ;;  %v13956_v42 = vpop.f32.mrb[17].mxu1  ;;  %14379 = vadd.xlane.f32.xlu1 %v14378_v5  ;;  %v14254_v51 = vmul.f32 %v22121_v53, %v14104_v49 }
 0xc1b   : > { %v14386_v30 = vadd.f32 %v14252_v50, %v14251_v27  ;;  %v16509_v29 = vadd.f32 %v13570_v45, %v22095_v60  ;;  %v13572_v0 = vpop.f32.mrb[210].mxu0  ;;  %v13958_v6 = vpop.f32.mrb[18].mxu1  ;;  %v14382_v62 = vadd.f32 %v14381_v31, %v14249_v17  ;;  %v16573_v7 = vadd.f32 %v13956_v42, %v22098_v43 }
 0xc1c   : > { %v14105_v48 = vmax.f32 %v16508_v8, 0.0  ;;  %v16510_v52 = vadd.f32 %v13572_v0, %v22086_v59  ;;  %v13574_v13 = vpop.f32.mrb[211].mxu0  ;;  %v13960_v11 = vpop.f32.mrb[19].mxu1  ;;  %v14107_v38 = vmax.f32 %v16572_v63, 0.0  ;;  %v16574_v34 = vadd.f32 %v13958_v6, %v22089_v28 }
 0xc1d   : > { %v14106_v2 = vmax.f32 %v16509_v29, 0.0  ;;  %v16511_v15 = vadd.f32 %v13574_v13, %v22095_v60  ;;  %v16575_v39 = vadd.f32 %v13960_v11, %v22098_v43  ;;  %v14383_v41 = vadd.f32 %v14382_v62, %v14250_v3 }
 0xc1e   : > { %v14255_v46 = vmul.f32 %v22102_v19, %v14105_v48  ;;  %v14109_v44 = vmax.f32 %v16510_v52, 0.0  ;;  %v14387_v16 = vadd.f32 %v14386_v30, %v14253_v23  ;;  %v14257_v61 = vmul.f32 %v22110_v47, %v14107_v38 }
 0xc1f   : > { %v14256_v21 = vmul.f32 %v22107_v1, %v14106_v2  ;;  %v14110_v4 = vmax.f32 %v16511_v15, 0.0  ;;  %v14108_v54 = vmax.f32 %v16573_v7, 0.0  ;;  %v14111_v10 = vmax.f32 %v16574_v34, 0.0  ;;  %14384 = vadd.xlane.f32.xlu0 %v14383_v41 }
 0xc20   : > { %v14259_v33 = vmul.f32 %v22102_v19, %v14109_v44  ;;  %v14388_v56 = vadd.f32 %v14387_v16, %v14254_v51  ;;  %v14112_v22 = vmax.f32 %v16575_v39, 0.0 }
 0xc21   : > { %v14391_v24 = vadd.f32 %v14256_v21, %v14255_v46  ;;  %v14260_v20 = vmul.f32 %v22107_v1, %v14110_v4  ;;  %v13578_v14 = vpop.f32.mrb[212].mxu0  ;;  %v13964_v55 = vpop.f32.mrb[20].mxu1  ;;  %v14258_v40 = vmul.f32 %v22121_v53, %v14108_v54  ;;  %v14261_v5 = vmul.f32 %v22110_v47, %v14111_v10 }
 0xc22   : > { %v16512_v36 = vadd.f32 %v13578_v14, %v22086_v59  ;;  %v16576_v32 = vadd.f32 %v13964_v55, %v22089_v28  ;;  %v13580_v37 = vpop.f32.mrb[213].mxu0  ;;  %v13966_v57 = vpop.f32.mrb[21].mxu1  ;;  %14389 = vadd.xlane.f32.xlu1 %v14388_v56  ;;  %v14262_v29 = vmul.f32 %v22121_v53, %v14112_v22 }
 0xc23   : > { %v14396_v12 = vadd.f32 %v14260_v20, %v14259_v33  ;;  %v16513_v9 = vadd.f32 %v13580_v37, %v22095_v60  ;;  %v13582_v27 = vpop.f32.mrb[214].mxu0  ;;  %v13968_v26 = vpop.f32.mrb[22].mxu1  ;;  %v14392_v18 = vadd.f32 %v14391_v24, %v14257_v61  ;;  %v16577_v17 = vadd.f32 %v13966_v57, %v22098_v43 }
 0xc24   : > { %v14113_v25 = vmax.f32 %v16512_v36, 0.0  ;;  %v16514_v31 = vadd.f32 %v13582_v27, %v22086_v59  ;;  %v13584_v50 = vpop.f32.mrb[215].mxu0  ;;  %v13970_v58 = vpop.f32.mrb[23].mxu1  ;;  %v14115_v35 = vmax.f32 %v16576_v32, 0.0  ;;  %v16578_v30 = vadd.f32 %v13968_v26, %v22089_v28 }
 0xc25   : > { %v14114_v8 = vmax.f32 %v16513_v9, 0.0  ;;  %v16515_v63 = vadd.f32 %v13584_v50, %v22095_v60  ;;  %v16579_v62 = vadd.f32 %v13970_v58, %v22098_v43  ;;  %v14116_v3 = vmax.f32 %v16577_v17, 0.0 }
 0xc26   : > { %v14263_v45 = vmul.f32 %v22102_v19, %v14113_v25  ;;  %v14117_v42 = vmax.f32 %v16514_v31, 0.0  ;;  %v14393_v48 = vadd.f32 %v14392_v18, %v14258_v40  ;;  %v14397_v52 = vadd.f32 %v14396_v12, %v14261_v5 }
 0xc27   : > { %v14264_v0 = vmul.f32 %v22107_v1, %v14114_v8  ;;  %v14118_v6 = vmax.f32 %v16515_v63, 0.0  ;;  %v14265_v13 = vmul.f32 %v22110_v47, %v14115_v35  ;;  %v14119_v15 = vmax.f32 %v16578_v30, 0.0 }
 0xc28   : > { %v14267_v49 = vmul.f32 %v22102_v19, %v14117_v42  ;;  %14394 = vadd.xlane.f32.xlu0 %v14393_v48  ;;  %v14398_v44 = vadd.f32 %v14397_v52, %v14262_v29  ;;  %v14120_v39 = vmax.f32 %v16579_v62, 0.0  ;;  %v14266_v61 = vmul.f32 %v22121_v53, %v14116_v3 }
 0xc29   : > { %v14401_v11 = vadd.f32 %v14264_v0, %v14263_v45  ;;  %v14268_v38 = vmul.f32 %v22107_v1, %v14118_v6  ;;  %v13588_v2 = vpop.f32.mrb[216].mxu0  ;;  %v13974_v7 = vpop.f32.mrb[24].mxu1  ;;  %v14269_v37 = vmul.f32 %v22110_v47, %v14119_v15 }
 0xc2a   : > { %v16516_v23 = vadd.f32 %v13588_v2, %v22086_v59  ;;  %v16580_v46 = vadd.f32 %v13974_v7, %v22089_v28  ;;  %v13590_v34 = vpop.f32.mrb[217].mxu0  ;;  %v13976_v21 = vpop.f32.mrb[25].mxu1  ;;  %14399 = vadd.xlane.f32.xlu1 %v14398_v44  ;;  %v14270_v9 = vmul.f32 %v22121_v53, %v14120_v39 }
 0xc2b   : > { %v14406_v4 = vadd.f32 %v14268_v38, %v14267_v49  ;;  %v16517_v51 = vadd.f32 %v13590_v34, %v22095_v60  ;;  %v13592_v33 = vpop.f32.mrb[218].mxu0  ;;  %v13978_v41 = vpop.f32.mrb[26].mxu1  ;;  %v14402_v16 = vadd.f32 %v14401_v11, %v14265_v13  ;;  %v16581_v54 = vadd.f32 %v13976_v21, %v22098_v43 }
 0xc2c   : > { %v14121_v24 = vmax.f32 %v16516_v23, 0.0  ;;  %v16518_v20 = vadd.f32 %v13592_v33, %v22086_v59  ;;  %v13594_v14 = vpop.f32.mrb[219].mxu0  ;;  %v13980_v55 = vpop.f32.mrb[27].mxu1  ;;  %v14123_v10 = vmax.f32 %v16580_v46, 0.0  ;;  %v16582_v32 = vadd.f32 %v13978_v41, %v22089_v28 }
 0xc2d   : > { %v14122_v36 = vmax.f32 %v16517_v51, 0.0  ;;  %v16519_v56 = vadd.f32 %v13594_v14, %v22095_v60  ;;  %v16583_v22 = vadd.f32 %v13980_v55, %v22098_v43  ;;  %v14124_v18 = vmax.f32 %v16581_v54, 0.0 }
 0xc2e   : > { %v14271_v57 = vmul.f32 %v22102_v19, %v14121_v24  ;;  %v14125_v12 = vmax.f32 %v16518_v20, 0.0  ;;  %v14403_v17 = vadd.f32 %v14402_v16, %v14266_v61  ;;  %v14407_v31 = vadd.f32 %v14406_v4, %v14269_v37 }
 0xc2f   : > { %v14272_v27 = vmul.f32 %v22107_v1, %v14122_v36  ;;  %v14126_v26 = vmax.f32 %v16519_v56, 0.0  ;;  %v14273_v50 = vmul.f32 %v22110_v47, %v14123_v10  ;;  %v14127_v40 = vmax.f32 %v16582_v32, 0.0 }
 0xc30   : > { %v14275_v25 = vmul.f32 %v22102_v19, %v14125_v12  ;;  %v14128_v5 = vmax.f32 %v16583_v22, 0.0  ;;  %14404 = vadd.xlane.f32.xlu0 %v14403_v17  ;;  %v14408_v30 = vadd.f32 %v14407_v31, %v14270_v9  ;;  %v14274_v7 = vmul.f32 %v22121_v53, %v14124_v18 }
 0xc31   : > { %v14411_v58 = vadd.f32 %v14272_v27, %v14271_v57  ;;  %v14276_v35 = vmul.f32 %v22107_v1, %v14126_v26  ;;  %v13598_v8 = vpop.f32.mrb[220].mxu0  ;;  %v13984_v63 = vpop.f32.mrb[28].mxu1  ;;  %v14277_v44 = vmul.f32 %v22110_v47, %v14127_v40 }
 0xc32   : > { %v16520_v45 = vadd.f32 %v13598_v8, %v22086_v59  ;;  %v16584_v42 = vadd.f32 %v13984_v63, %v22089_v28  ;;  %v13600_v29 = vpop.f32.mrb[221].mxu0  ;;  %v13986_v0 = vpop.f32.mrb[29].mxu1  ;;  %14409 = vadd.xlane.f32.xlu1 %v14408_v30  ;;  %v14278_v39 = vmul.f32 %v22121_v53, %v14128_v5 }
 0xc33   : > { %v14416_v6 = vadd.f32 %v14276_v35, %v14275_v25  ;;  %v16521_v62 = vadd.f32 %v13600_v29, %v22095_v60  ;;  %v16585_v3 = vadd.f32 %v13986_v0, %v22098_v43  ;;  %v13602_v49 = vpop.f32.mrb[222].mxu0  ;;  %v13988_v48 = vpop.f32.mrb[30].mxu1  ;;  %v14412_v52 = vadd.f32 %v14411_v58, %v14273_v50 }
 0xc34   : > { %v14129_v13 = vmax.f32 %v16520_v45, 0.0  ;;  %v16522_v11 = vadd.f32 %v13602_v49, %v22086_v59  ;;  %v13604_v38 = vpop.f32.mrb[223].mxu0  ;;  %v13990_v2 = vpop.f32.mrb[31].mxu1  ;;  %v14131_v15 = vmax.f32 %v16584_v42, 0.0  ;;  %v16586_v4 = vadd.f32 %v13988_v48, %v22089_v28 }
 0xc35   : > { %v14130_v23 = vmax.f32 %v16521_v62, 0.0  ;;  %v16523_v46 = vadd.f32 %v13604_v38, %v22095_v60  ;;  %v14132_v33 = vmax.f32 %v16585_v3, 0.0  ;;  %v16587_v61 = vadd.f32 %v13990_v2, %v22098_v43 }
 0xc36   : > { %v14279_v34 = vmul.f32 %v22102_v19, %v14129_v13  ;;  %v14133_v21 = vmax.f32 %v16522_v11, 0.0  ;;  %v14413_v24 = vadd.f32 %v14412_v52, %v14274_v7  ;;  %v14417_v54 = vadd.f32 %v14416_v6, %v14277_v44 }
 0xc37   : > { %v14280_v51 = vmul.f32 %v22107_v1, %v14130_v23  ;;  %v14134_v41 = vmax.f32 %v16523_v46, 0.0  ;;  %v14281_v20 = vmul.f32 %v22110_v47, %v14131_v15  ;;  %v14135_v32 = vmax.f32 %v16586_v4, 0.0 }
 0xc38   : > { %v14283_v16 = vmul.f32 %v22102_v19, %v14133_v21  ;;  %14414 = vadd.xlane.f32.xlu0 %v14413_v24  ;;  %v14418_v57 = vadd.f32 %v14417_v54, %v14278_v39  ;;  %v14282_v17 = vmul.f32 %v22121_v53, %v14132_v33  ;;  %v14136_v31 = vmax.f32 %v16587_v61, 0.0 }
 0xc39   : > { %v14421_v14 = vadd.f32 %v14280_v51, %v14279_v34  ;;  %v14284_v55 = vmul.f32 %v22107_v1, %v14134_v41  ;;  %v13608_v10 = vpop.f32.mrb[224].mxu0  ;;  %v13994_v36 = vpop.f32.mrb[32].mxu1  ;;  %v14285_v42 = vmul.f32 %v22110_v47, %v14135_v32 }
 0xc3a   : > { %v16524_v56 = vadd.f32 %v13608_v10, %v22086_v59  ;;  %v16588_v37 = vadd.f32 %v13994_v36, %v22089_v28  ;;  %v13610_v12 = vpop.f32.mrb[225].mxu0  ;;  %v13996_v22 = vpop.f32.mrb[33].mxu1  ;;  %14419 = vadd.xlane.f32.xlu1 %v14418_v57  ;;  %v14286_v49 = vmul.f32 %v22121_v53, %v14136_v31 }
 0xc3b   : > { %v14426_v9 = vadd.f32 %v14284_v55, %v14283_v16  ;;  %v16525_v27 = vadd.f32 %v13610_v12, %v22095_v60  ;;  %v13612_v26 = vpop.f32.mrb[226].mxu0  ;;  %v13998_v18 = vpop.f32.mrb[34].mxu1  ;;  %v14422_v25 = vadd.f32 %v14421_v14, %v14281_v20  ;;  %v16589_v5 = vadd.f32 %v13996_v22, %v22098_v43 }
 0xc3c   : > { %v14137_v50 = vmax.f32 %v16524_v56, 0.0  ;;  %v16526_v58 = vadd.f32 %v13612_v26, %v22086_v59  ;;  %v13614_v40 = vpop.f32.mrb[227].mxu0  ;;  %v14000_v35 = vpop.f32.mrb[35].mxu1  ;;  %v14139_v8 = vmax.f32 %v16588_v37, 0.0  ;;  %v16590_v0 = vadd.f32 %v13998_v18, %v22089_v28 }
 0xc3d   : > { %v14138_v63 = vmax.f32 %v16525_v27, 0.0  ;;  %v16527_v45 = vadd.f32 %v13614_v40, %v22095_v60  ;;  %v16591_v3 = vadd.f32 %v14000_v35, %v22098_v43  ;;  %v14423_v52 = vadd.f32 %v14422_v25, %v14282_v17 }
 0xc3e   : > { %v14287_v30 = vmul.f32 %v22102_v19, %v14137_v50  ;;  %v14141_v29 = vmax.f32 %v16526_v58, 0.0  ;;  %v14427_v13 = vadd.f32 %v14426_v9, %v14285_v42  ;;  %v14289_v11 = vmul.f32 %v22110_v47, %v14139_v8 }
 0xc3f   : > { %v14288_v6 = vmul.f32 %v22107_v1, %v14138_v63  ;;  %v14142_v62 = vmax.f32 %v16527_v45, 0.0  ;;  %v14140_v2 = vmax.f32 %v16589_v5, 0.0  ;;  %v14143_v46 = vmax.f32 %v16590_v0, 0.0  ;;  %14424 = vadd.xlane.f32.xlu0 %v14423_v52 }
 0xc40   : > { %v14291_v48 = vmul.f32 %v22102_v19, %v14141_v29  ;;  %v14428_v21 = vadd.f32 %v14427_v13, %v14286_v49  ;;  %v14144_v33 = vmax.f32 %v16591_v3, 0.0 }
 0xc41   : > { %v14431_v38 = vadd.f32 %v14288_v6, %v14287_v30  ;;  %v14292_v7 = vmul.f32 %v22107_v1, %v14142_v62  ;;  %v13618_v15 = vpop.f32.mrb[228].mxu0  ;;  %v14004_v23 = vpop.f32.mrb[36].mxu1  ;;  %v14290_v36 = vmul.f32 %v22121_v53, %v14140_v2  ;;  %v14293_v57 = vmul.f32 %v22110_v47, %v14143_v46 }
 0xc42   : > { %v16528_v44 = vadd.f32 %v13618_v15, %v22086_v59  ;;  %v16592_v34 = vadd.f32 %v14004_v23, %v22089_v28  ;;  %v13620_v4 = vpop.f32.mrb[229].mxu0  ;;  %v14006_v39 = vpop.f32.mrb[37].mxu1  ;;  %14429 = vadd.xlane.f32.xlu1 %v14428_v21  ;;  %v14294_v27 = vmul.f32 %v22121_v53, %v14144_v33 }
 0xc43   : > { %v14436_v51 = vadd.f32 %v14292_v7, %v14291_v48  ;;  %v16529_v41 = vadd.f32 %v13620_v4, %v22095_v60  ;;  %v13622_v16 = vpop.f32.mrb[230].mxu0  ;;  %v14008_v61 = vpop.f32.mrb[38].mxu1  ;;  %v14432_v24 = vadd.f32 %v14431_v38, %v14289_v11  ;;  %v16593_v20 = vadd.f32 %v14006_v39, %v22098_v43 }
 0xc44   : > { %v14145_v54 = vmax.f32 %v16528_v44, 0.0  ;;  %v16530_v14 = vadd.f32 %v13622_v16, %v22086_v59  ;;  %v13624_v55 = vpop.f32.mrb[231].mxu0  ;;  %v14010_v10 = vpop.f32.mrb[39].mxu1  ;;  %v14147_v32 = vmax.f32 %v16592_v34, 0.0  ;;  %v16594_v9 = vadd.f32 %v14008_v61, %v22089_v28 }
 0xc45   : > { %v14146_v56 = vmax.f32 %v16529_v41, 0.0  ;;  %v16531_v37 = vadd.f32 %v13624_v55, %v22095_v60  ;;  %v16595_v25 = vadd.f32 %v14010_v10, %v22098_v43  ;;  %v14148_v17 = vmax.f32 %v16593_v20, 0.0 }
 0xc46   : > { %v14295_v12 = vmul.f32 %v22102_v19, %v14145_v54  ;;  %v14149_v22 = vmax.f32 %v16530_v14, 0.0  ;;  %v14433_v50 = vadd.f32 %v14432_v24, %v14290_v36  ;;  %v14437_v58 = vadd.f32 %v14436_v51, %v14293_v57 }
 0xc47   : > { %v14296_v26 = vmul.f32 %v22107_v1, %v14146_v56  ;;  %v14150_v18 = vmax.f32 %v16531_v37, 0.0  ;;  %v14297_v40 = vmul.f32 %v22110_v47, %v14147_v32  ;;  %v14151_v45 = vmax.f32 %v16594_v9, 0.0 }
 0xc48   : > { %v14299_v31 = vmul.f32 %v22102_v19, %v14149_v22  ;;  %14434 = vadd.xlane.f32.xlu0 %v14433_v50  ;;  %v14438_v29 = vadd.f32 %v14437_v58, %v14294_v27  ;;  %v14152_v3 = vmax.f32 %v16595_v25, 0.0  ;;  %v14298_v11 = vmul.f32 %v22121_v53, %v14148_v17 }
 0xc49   : > { %v14441_v35 = vadd.f32 %v14296_v26, %v14295_v12  ;;  %v14300_v8 = vmul.f32 %v22107_v1, %v14150_v18  ;;  %v13628_v63 = vpop.f32.mrb[232].mxu0  ;;  %v14014_v5 = vpop.f32.mrb[40].mxu1  ;;  %v14301_v4 = vmul.f32 %v22110_v47, %v14151_v45 }
 0xc4a   : > { %v16532_v42 = vadd.f32 %v13628_v63, %v22086_v59  ;;  %v16596_v30 = vadd.f32 %v14014_v5, %v22089_v28  ;;  %v13630_v0 = vpop.f32.mrb[233].mxu0  ;;  %v14016_v6 = vpop.f32.mrb[41].mxu1  ;;  %14439 = vadd.xlane.f32.xlu1 %v14438_v29  ;;  %v14302_v41 = vmul.f32 %v22121_v53, %v14152_v3 }
 0xc4b   : > { %v14446_v62 = vadd.f32 %v14300_v8, %v14299_v31  ;;  %v16533_v49 = vadd.f32 %v13630_v0, %v22095_v60  ;;  %v13632_v48 = vpop.f32.mrb[234].mxu0  ;;  %v14018_v52 = vpop.f32.mrb[42].mxu1  ;;  %v14442_v13 = vadd.f32 %v14441_v35, %v14297_v40  ;;  %v16597_v2 = vadd.f32 %v14016_v6, %v22098_v43 }
 0xc4c   : > { %v14153_v38 = vmax.f32 %v16532_v42, 0.0  ;;  %v16534_v7 = vadd.f32 %v13632_v48, %v22086_v59  ;;  %v13634_v15 = vpop.f32.mrb[235].mxu0  ;;  %v14020_v23 = vpop.f32.mrb[43].mxu1  ;;  %v14155_v46 = vmax.f32 %v16596_v30, 0.0  ;;  %v16598_v34 = vadd.f32 %v14018_v52, %v22089_v28 }
 0xc4d   : > { %v14154_v44 = vmax.f32 %v16533_v49, 0.0  ;;  %v16535_v21 = vadd.f32 %v13634_v15, %v22095_v60  ;;  %v16599_v33 = vadd.f32 %v14020_v23, %v22098_v43  ;;  %v14156_v24 = vmax.f32 %v16597_v2, 0.0 }
 0xc4e   : > { %v14303_v39 = vmul.f32 %v22102_v19, %v14153_v38  ;;  %v14157_v51 = vmax.f32 %v16534_v7, 0.0  ;;  %v14443_v20 = vadd.f32 %v14442_v13, %v14298_v11  ;;  %v14447_v14 = vadd.f32 %v14446_v62, %v14301_v4 }
 0xc4f   : > { %v14304_v16 = vmul.f32 %v22107_v1, %v14154_v44  ;;  %v14158_v61 = vmax.f32 %v16535_v21, 0.0  ;;  %v14305_v55 = vmul.f32 %v22110_v47, %v14155_v46  ;;  %v14159_v36 = vmax.f32 %v16598_v34, 0.0 }
 0xc50   : > { %v14307_v54 = vmul.f32 %v22102_v19, %v14157_v51  ;;  %v14160_v57 = vmax.f32 %v16599_v33, 0.0  ;;  %14444 = vadd.xlane.f32.xlu0 %v14443_v20  ;;  %v14448_v9 = vadd.f32 %v14447_v14, %v14302_v41  ;;  %v14306_v5 = vmul.f32 %v22121_v53, %v14156_v24 }
 0xc51   : > { %v14451_v10 = vadd.f32 %v14304_v16, %v14303_v39  ;;  %v14308_v32 = vmul.f32 %v22107_v1, %v14158_v61  ;;  %v13638_v56 = vpop.f32.mrb[236].mxu0  ;;  %v14024_v37 = vpop.f32.mrb[44].mxu1  ;;  %v14309_v29 = vmul.f32 %v22110_v47, %v14159_v36 }
 0xc52   : > { %v16536_v12 = vadd.f32 %v13638_v56, %v22086_v59  ;;  %v16600_v22 = vadd.f32 %v14024_v37, %v22089_v28  ;;  %v13640_v27 = vpop.f32.mrb[237].mxu0  ;;  %v14026_v26 = vpop.f32.mrb[45].mxu1  ;;  %14449 = vadd.xlane.f32.xlu1 %v14448_v9  ;;  %v14310_v3 = vmul.f32 %v22121_v53, %v14160_v57 }
 0xc53   : > { %v14456_v18 = vadd.f32 %v14308_v32, %v14307_v54  ;;  %v16537_v25 = vadd.f32 %v13640_v27, %v22095_v60  ;;  %v16601_v17 = vadd.f32 %v14026_v26, %v22098_v43  ;;  %v13642_v31 = vpop.f32.mrb[238].mxu0  ;;  %v14028_v50 = vpop.f32.mrb[46].mxu1  ;;  %v14452_v58 = vadd.f32 %v14451_v10, %v14305_v55 }
 0xc54   : > { %v14161_v40 = vmax.f32 %v16536_v12, 0.0  ;;  %v16538_v35 = vadd.f32 %v13642_v31, %v22086_v59  ;;  %v13644_v8 = vpop.f32.mrb[239].mxu0  ;;  %v14030_v63 = vpop.f32.mrb[47].mxu1  ;;  %v14163_v45 = vmax.f32 %v16600_v22, 0.0  ;;  %v16602_v62 = vadd.f32 %v14028_v50, %v22089_v28 }
 0xc55   : > { %v14162_v42 = vmax.f32 %v16537_v25, 0.0  ;;  %v16539_v30 = vadd.f32 %v13644_v8, %v22095_v60  ;;  %v14164_v48 = vmax.f32 %v16601_v17, 0.0  ;;  %v16603_v11 = vadd.f32 %v14030_v63, %v22098_v43 }
 0xc56   : > { %v14311_v0 = vmul.f32 %v22102_v19, %v14161_v40  ;;  %v14165_v6 = vmax.f32 %v16538_v35, 0.0  ;;  %v14453_v38 = vadd.f32 %v14452_v58, %v14306_v5  ;;  %v14457_v2 = vadd.f32 %v14456_v18, %v14309_v29 }
 0xc57   : > { %v14312_v49 = vmul.f32 %v22107_v1, %v14162_v42  ;;  %v14166_v52 = vmax.f32 %v16539_v30, 0.0  ;;  %v14313_v7 = vmul.f32 %v22110_v47, %v14163_v45  ;;  %v14167_v34 = vmax.f32 %v16602_v62, 0.0 }
 0xc58   : > { %v14315_v13 = vmul.f32 %v22102_v19, %v14165_v6  ;;  %14454 = vadd.xlane.f32.xlu0 %v14453_v38  ;;  %v14458_v39 = vadd.f32 %v14457_v2, %v14310_v3  ;;  %v14314_v20 = vmul.f32 %v22121_v53, %v14164_v48  ;;  %v14168_v14 = vmax.f32 %v16603_v11, 0.0 }
 0xc59   : > { %v14461_v15 = vadd.f32 %v14312_v49, %v14311_v0  ;;  %v14316_v23 = vmul.f32 %v22107_v1, %v14166_v52  ;;  %v13648_v46 = vpop.f32.mrb[240].mxu0  ;;  %v14034_v44 = vpop.f32.mrb[48].mxu1  ;;  %v14317_v22 = vmul.f32 %v22110_v47, %v14167_v34 }
 0xc5a   : > { %v16540_v21 = vadd.f32 %v13648_v46, %v22086_v59  ;;  %v16604_v4 = vadd.f32 %v14034_v44, %v22089_v28  ;;  %v13650_v51 = vpop.f32.mrb[241].mxu0  ;;  %v14036_v33 = vpop.f32.mrb[49].mxu1  ;;  %14459 = vadd.xlane.f32.xlu1 %v14458_v39  ;;  %v14318_v31 = vmul.f32 %v22121_v53, %v14168_v14 }
 0xc5b   : > { %v14466_v41 = vadd.f32 %v14316_v23, %v14315_v13  ;;  %v16541_v16 = vadd.f32 %v13650_v51, %v22095_v60  ;;  %v13652_v61 = vpop.f32.mrb[242].mxu0  ;;  %v14038_v24 = vpop.f32.mrb[50].mxu1  ;;  %v14462_v54 = vadd.f32 %v14461_v15, %v14313_v7  ;;  %v16605_v57 = vadd.f32 %v14036_v33, %v22098_v43 }
 0xc5c   : > { %v14169_v55 = vmax.f32 %v16540_v21, 0.0  ;;  %v16542_v10 = vadd.f32 %v13652_v61, %v22086_v59  ;;  %v13654_v36 = vpop.f32.mrb[243].mxu0  ;;  %v14040_v32 = vpop.f32.mrb[51].mxu1  ;;  %v14171_v56 = vmax.f32 %v16604_v4, 0.0  ;;  %v16606_v26 = vadd.f32 %v14038_v24, %v22089_v28 }
 0xc5d   : > { %v14170_v37 = vmax.f32 %v16541_v16, 0.0  ;;  %v16543_v12 = vadd.f32 %v13654_v36, %v22095_v60  ;;  %v16607_v17 = vadd.f32 %v14040_v32, %v22098_v43  ;;  %v14463_v58 = vadd.f32 %v14462_v54, %v14314_v20 }
 0xc5e   : > { %v14319_v9 = vmul.f32 %v22102_v19, %v14169_v55  ;;  %v14173_v27 = vmax.f32 %v16542_v10, 0.0  ;;  %v14467_v40 = vadd.f32 %v14466_v41, %v14317_v22  ;;  %v14321_v35 = vmul.f32 %v22110_v47, %v14171_v56 }
 0xc5f   : > { %v14320_v18 = vmul.f32 %v22107_v1, %v14170_v37  ;;  %v14174_v25 = vmax.f32 %v16543_v12, 0.0  ;;  %v14172_v63 = vmax.f32 %v16605_v57, 0.0  ;;  %v14175_v30 = vmax.f32 %v16606_v26, 0.0  ;;  %14464 = vadd.xlane.f32.xlu0 %v14463_v58 }
 0xc60   : > { %v14323_v50 = vmul.f32 %v22102_v19, %v14173_v27  ;;  %v14468_v6 = vadd.f32 %v14467_v40, %v14318_v31  ;;  %v14176_v48 = vmax.f32 %v16607_v17, 0.0 }
 0xc61   : > { %v14471_v8 = vadd.f32 %v14320_v18, %v14319_v9  ;;  %v14324_v5 = vmul.f32 %v22107_v1, %v14174_v25  ;;  %v13658_v45 = vpop.f32.mrb[244].mxu0  ;;  %v14044_v42 = vpop.f32.mrb[52].mxu1  ;;  %v14322_v44 = vmul.f32 %v22121_v53, %v14172_v63  ;;  %v14325_v39 = vmul.f32 %v22110_v47, %v14175_v30 }
 0xc62   : > { %v16544_v29 = vadd.f32 %v13658_v45, %v22086_v59  ;;  %v16608_v0 = vadd.f32 %v14044_v42, %v22089_v28  ;;  %v13660_v62 = vpop.f32.mrb[245].mxu0  ;;  %v14046_v3 = vpop.f32.mrb[53].mxu1  ;;  %14469 = vadd.xlane.f32.xlu1 %v14468_v6  ;;  %v14326_v16 = vmul.f32 %v22121_v53, %v14176_v48 }
 0xc63   : > { %v14476_v49 = vadd.f32 %v14324_v5, %v14323_v50  ;;  %v16545_v52 = vadd.f32 %v13660_v62, %v22095_v60  ;;  %v13662_v13 = vpop.f32.mrb[246].mxu0  ;;  %v14048_v11 = vpop.f32.mrb[54].mxu1  ;;  %v14472_v38 = vadd.f32 %v14471_v8, %v14321_v35  ;;  %v16609_v7 = vadd.f32 %v14046_v3, %v22098_v43 }
 0xc64   : > { %v14177_v2 = vmax.f32 %v16544_v29, 0.0  ;;  %v16546_v15 = vadd.f32 %v13662_v13, %v22086_v59  ;;  %v13664_v23 = vpop.f32.mrb[247].mxu0  ;;  %v14050_v46 = vpop.f32.mrb[55].mxu1  ;;  %v14179_v34 = vmax.f32 %v16608_v0, 0.0  ;;  %v16610_v41 = vadd.f32 %v14048_v11, %v22089_v28 }
 0xc65   : > { %v14178_v21 = vmax.f32 %v16545_v52, 0.0  ;;  %v16547_v4 = vadd.f32 %v13664_v23, %v22095_v60  ;;  %v16611_v54 = vadd.f32 %v14050_v46, %v22098_v43  ;;  %v14180_v20 = vmax.f32 %v16609_v7, 0.0 }
 0xc66   : > { %v14327_v51 = vmul.f32 %v22102_v19, %v14177_v2  ;;  %v14181_v33 = vmax.f32 %v16546_v15, 0.0  ;;  %v14473_v55 = vadd.f32 %v14472_v38, %v14322_v44  ;;  %v14477_v10 = vadd.f32 %v14476_v49, %v14325_v39 }
 0xc67   : > { %v14328_v61 = vmul.f32 %v22107_v1, %v14178_v21  ;;  %v14182_v24 = vmax.f32 %v16547_v4, 0.0  ;;  %v14329_v36 = vmul.f32 %v22110_v47, %v14179_v34  ;;  %v14183_v12 = vmax.f32 %v16610_v41, 0.0 }
 0xc68   : > { %v14331_v14 = vmul.f32 %v22102_v19, %v14181_v33  ;;  %14474 = vadd.xlane.f32.xlu0 %v14473_v55  ;;  %v14478_v27 = vadd.f32 %v14477_v10, %v14326_v16  ;;  %v14184_v17 = vmax.f32 %v16611_v54, 0.0  ;;  %v14330_v35 = vmul.f32 %v22121_v53, %v14180_v20 }
 0xc69   : > { %v14481_v32 = vadd.f32 %v14328_v61, %v14327_v51  ;;  %v14332_v56 = vmul.f32 %v22107_v1, %v14182_v24  ;;  %v13668_v37 = vpop.f32.mrb[248].mxu0  ;;  %v14054_v57 = vpop.f32.mrb[56].mxu1  ;;  %v14333_v6 = vmul.f32 %v22110_v47, %v14183_v12 }
 0xc6a   : > { %v16548_v22 = vadd.f32 %v13668_v37, %v22086_v59  ;;  %v16612_v9 = vadd.f32 %v14054_v57, %v22089_v28  ;;  %v13670_v26 = vpop.f32.mrb[249].mxu0  ;;  %v14056_v18 = vpop.f32.mrb[57].mxu1  ;;  %14479 = vadd.xlane.f32.xlu1 %v14478_v27  ;;  %v14334_v48 = vmul.f32 %v22121_v53, %v14184_v17 }
 0xc6b   : > { %v14486_v25 = vadd.f32 %v14332_v56, %v14331_v14  ;;  %v16549_v31 = vadd.f32 %v13670_v26, %v22095_v60  ;;  %v13672_v50 = vpop.f32.mrb[250].mxu0  ;;  %v14058_v58 = vpop.f32.mrb[58].mxu1  ;;  %v14482_v40 = vadd.f32 %v14481_v32, %v14329_v36  ;;  %v16613_v29 = vadd.f32 %v14056_v18, %v22098_v43 }
 0xc6c   : > { %v14185_v8 = vmax.f32 %v16548_v22, 0.0  ;;  %v16550_v63 = vadd.f32 %v13672_v50, %v22086_v59  ;;  %v13674_v5 = vpop.f32.mrb[251].mxu0  ;;  %v14060_v45 = vpop.f32.mrb[59].mxu1  ;;  %v14187_v42 = vmax.f32 %v16612_v9, 0.0  ;;  %v16614_v49 = vadd.f32 %v14058_v58, %v22089_v28 }
 0xc6d   : > { %v14186_v30 = vmax.f32 %v16549_v31, 0.0  ;;  %v16551_v0 = vadd.f32 %v13674_v5, %v22095_v60  ;;  %v16615_v38 = vadd.f32 %v14060_v45, %v22098_v43  ;;  %v14483_v2 = vadd.f32 %v14482_v40, %v14330_v35 }
 0xc6e   : > { %v14335_v62 = vmul.f32 %v22102_v19, %v14185_v8  ;;  %v14189_v3 = vmax.f32 %v16550_v63, 0.0  ;;  %v14487_v7 = vadd.f32 %v14486_v25, %v14333_v6  ;;  %v14337_v15 = vmul.f32 %v22110_v47, %v14187_v42 }
 0xc6f   : > { %v14336_v52 = vmul.f32 %v22107_v1, %v14186_v30  ;;  %v14190_v13 = vmax.f32 %v16551_v0, 0.0  ;;  %v14188_v46 = vmax.f32 %v16613_v29, 0.0  ;;  %v14191_v4 = vmax.f32 %v16614_v49, 0.0  ;;  %14484 = vadd.xlane.f32.xlu0 %v14483_v2 }
 0xc70   : > { %v14339_v11 = vmul.f32 %v22102_v19, %v14189_v3  ;;  %v14488_v33 = vadd.f32 %v14487_v7, %v14334_v48  ;;  %v14192_v10 = vmax.f32 %v16615_v38, 0.0 }
 0xc71   : > { %v14491_v23 = vadd.f32 %v14336_v52, %v14335_v62  ;;  %v14340_v44 = vmul.f32 %v22107_v1, %v14190_v13  ;;  %v13678_v34 = vpop.f32.mrb[252].mxu0  ;;  %v14064_v21 = vpop.f32.mrb[60].mxu1  ;;  %v14338_v26 = vmul.f32 %v22121_v53, %v14188_v46  ;;  %v14341_v18 = vmul.f32 %v22110_v47, %v14191_v4 }
 0xc72   : > { %v16552_v39 = vadd.f32 %v13678_v34, %v22086_v59  ;;  %v16616_v51 = vadd.f32 %v14064_v21, %v22089_v28  ;;  %v13680_v41 = vpop.f32.mrb[253].mxu0  ;;  %v14066_v16 = vpop.f32.mrb[61].mxu1  ;;  %14489 = vadd.xlane.f32.xlu1 %v14488_v33  ;;  %v14342_v58 = vmul.f32 %v22121_v53, %v14192_v10 }
 0xc73   : > { %v14496_v61 = vadd.f32 %v14340_v44, %v14339_v11  ;;  %v16553_v24 = vadd.f32 %v13680_v41, %v22095_v60  ;;  %v16617_v54 = vadd.f32 %v14066_v16, %v22098_v43  ;;  %v13682_v20 = vpop.f32.mrb[254].mxu0  ;;  %v14068_v14 = vpop.f32.mrb[62].mxu1  ;;  %v14492_v55 = vadd.f32 %v14491_v23, %v14337_v15 }
 0xc74   : > { %v14193_v36 = vmax.f32 %v16552_v39, 0.0  ;;  %v16554_v32 = vadd.f32 %v13682_v20, %v22086_v59  ;;  %v16618_v56 = vadd.f32 %v14068_v14, %v22089_v28  ;;  %v13684_v37 = vpop.f32.mrb[255].mxu0  ;;  %v14070_v57 = vpop.f32.mrb[63].mxu1  ;;  %v14195_v12 = vmax.f32 %v16616_v51, 0.0 }
 0xc75   : > { %v14194_v22 = vmax.f32 %v16553_v24, 0.0  ;;  %v16555_v9 = vadd.f32 %v13684_v37, %v22095_v60  ;;  %v16619_v27 = vadd.f32 %v14070_v57, %v22098_v43  ;;  %v14196_v59 = vmax.f32 %v16617_v54, 0.0 }
 0xc76   : > { %v14343_v25 = vmul.f32 %v22102_v19, %v14193_v36  ;;  %v14197_v17 = vmax.f32 %v16554_v32, 0.0  ;;  %v14199_v50 = vmax.f32 %v16618_v56, 0.0  ;;  %v14493_v35 = vadd.f32 %v14492_v55, %v14338_v26 }
 0xc77   : > { %v14344_v31 = vmul.f32 %v22107_v1, %v14194_v22  ;;  %v14198_v28 = vmax.f32 %v16555_v9, 0.0  ;;  %v14497_v60 = vadd.f32 %v14496_v61, %v14341_v18  ;;  %v14345_v43 = vmul.f32 %v22110_v47, %v14195_v12 }
 0xc78   : > { %v14347_v40 = vmul.f32 %v22102_v19, %v14197_v17  ;;  %v14200_v5 = vmax.f32 %v16619_v27, 0.0  ;;  %14494 = vadd.xlane.f32.xlu0 %v14493_v35  ;;  %v14346_v42 = vmul.f32 %v22121_v53, %v14196_v59  ;;  %v14349_v30 = vmul.f32 %v22110_v47, %v14199_v50 }
 0xc79   : > { %v14501_v8 = vadd.f32 %v14344_v31, %v14343_v25  ;;  %v14348_v63 = vmul.f32 %v22107_v1, %v14198_v28  ;;  %v14498_v45 = vadd.f32 %v14497_v60, %v14342_v58  ;;  %v22370_v1 = vld [vmem:[#allocation2] ss:$0 sm:$0xff] }
 0xc7a   : > { %v14350_v19 = vmul.f32 %v22121_v53, %v14200_v5 }
 0xc7b   : > { %v14506_v29 = vadd.f32 %v14348_v63, %v14347_v40  ;;  %v14502_v0 = vadd.f32 %v14501_v8, %v14345_v43  ;;  %14499 = vadd.xlane.f32.xlu1 %v14498_v45 }
 0xc7d   : > { %v14503_v6 = vadd.f32 %v14502_v0, %v14346_v42  ;;  %v14507_v62 = vadd.f32 %v14506_v29, %v14349_v30 }
 0xc7f   : > { %14504 = vadd.xlane.f32.xlu0 %v14503_v6  ;;  %v14508_v3 = vadd.f32 %v14507_v62, %v14350_v19 }
 0xc81   : > { %14509 = vadd.xlane.f32.xlu1 %v14508_v3 }
 0xc94   : > { %v14355_v47 = vpop.xlane.xlu0 %14354 }
 0xc95   : > { %v14518_v53 = vadd.f32 %v22370_v1, %v14355_v47 }
 0xc97   : > { %14551 = vst.msk [vmem:[%s22375_s17] sm:$0xff] %vm14550_vm0, %v14518_v53 }
 0xc98   : > { %v14360_v49 = vpop.xlane.xlu0 %14359 }
 0xc99   : > { %v14519_v48 = vadd.f32 %v22370_v1, %v14360_v49 }
 0xc9b   : > { %14552 = vst.msk [vmem:[%s22375_s17 + $0x8] sm:$0xff] %vm14550_vm0, %v14519_v48 }
 0xc9d   : > { %v14365_v52 = vpop.xlane.xlu1 %14364 }
 0xc9e   : > { %v14520_v13 = vadd.f32 %v22370_v1, %v14365_v52 }
 0xca0   : > { %14553 = vst.msk [vmem:[%s22375_s17 + $0x10] sm:$0xff] %vm14550_vm0, %v14520_v13 }
 0xca1   : > { %v14370_v11 = vpop.xlane.xlu1 %14369 }
 0xca2   : > { %v14521_v38 = vadd.f32 %v22370_v1, %v14370_v11 }
 0xca4   : > { %14554 = vst.msk [vmem:[%s22375_s17 + $0x18] sm:$0xff] %vm14550_vm0, %v14521_v38 }
 0xca5   : > { %v14375_v2 = vpop.xlane.xlu0 %14374 }
 0xca6   : > { %v14522_v7 = vadd.f32 %v22370_v1, %v14375_v2 }
 0xca7   : > { %v14380_v15 = vpop.xlane.xlu1 %14379 }
 0xca8   : > { %14555 = vst.msk [vmem:[%s22375_s17 + $0x20] sm:$0xff] %vm14550_vm0, %v14522_v7  ;;  %v14523_v23 = vadd.f32 %v22370_v1, %v14380_v15 }
 0xcaa   : > { %14556 = vst.msk [vmem:[%s22375_s17 + $0x28] sm:$0xff] %vm14550_vm0, %v14523_v23 }
 0xcac   : > { %v14385_v46 = vpop.xlane.xlu0 %14384 }
 0xcad   : > { %v14524_v44 = vadd.f32 %v22370_v1, %v14385_v46 }
 0xcaf   : > { %v14390_v34 = vpop.xlane.xlu1 %14389  ;;  %14557 = vst.msk [vmem:[%s22375_s17 + $0x30] sm:$0xff] %vm14550_vm0, %v14524_v44 }
 0xcb0   : > { %v14525_v21 = vadd.f32 %v22370_v1, %v14390_v34 }
 0xcb2   : > { %14558 = vst.msk [vmem:[%s22375_s17 + $0x38] sm:$0xff] %vm14550_vm0, %v14525_v21 }
 0xcb5   : > { %v14395_v4 = vpop.xlane.xlu0 %14394 }
 0xcb6   : > { %v14526_v39 = vadd.f32 %v22370_v1, %v14395_v4 }
 0xcb7   : > { %v14400_v51 = vpop.xlane.xlu1 %14399 }
 0xcb8   : > { %14559 = vst.msk [vmem:[%s22375_s17 + $0x40] sm:$0xff] %vm14550_vm0, %v14526_v39  ;;  %v14527_v33 = vadd.f32 %v22370_v1, %v14400_v51 }
 0xcba   : > { %14560 = vst.msk [vmem:[%s22375_s17 + $0x48] sm:$0xff] %vm14550_vm0, %v14527_v33 }
 0xcbd   : > { %v14405_v41 = vpop.xlane.xlu0 %14404 }
 0xcbe   : > { %v14528_v16 = vadd.f32 %v22370_v1, %v14405_v41 }
 0xcbf   : > { %v14410_v61 = vpop.xlane.xlu1 %14409 }
 0xcc0   : > { %14561 = vst.msk [vmem:[%s22375_s17 + $0x50] sm:$0xff] %vm14550_vm0, %v14528_v16  ;;  %v14529_v24 = vadd.f32 %v22370_v1, %v14410_v61 }
 0xcc2   : > { %14562 = vst.msk [vmem:[%s22375_s17 + $0x58] sm:$0xff] %vm14550_vm0, %v14529_v24 }
 0xcc5   : > { %v14415_v54 = vpop.xlane.xlu0 %14414 }
 0xcc6   : > { %v14530_v20 = vadd.f32 %v22370_v1, %v14415_v54 }
 0xcc7   : > { %v14420_v14 = vpop.xlane.xlu1 %14419 }
 0xcc8   : > { %14563 = vst.msk [vmem:[%s22375_s17 + $0x60] sm:$0xff] %vm14550_vm0, %v14530_v20  ;;  %v14531_v55 = vadd.f32 %v22370_v1, %v14420_v14 }
 0xcca   : > { %14564 = vst.msk [vmem:[%s22375_s17 + $0x68] sm:$0xff] %vm14550_vm0, %v14531_v55 }
 0xccc   : > { %v14425_v10 = vpop.xlane.xlu0 %14424 }
 0xccd   : > { %v14532_v36 = vadd.f32 %v22370_v1, %v14425_v10 }
 0xccf   : > { %v14430_v32 = vpop.xlane.xlu1 %14429  ;;  %14565 = vst.msk [vmem:[%s22375_s17 + $0x70] sm:$0xff] %vm14550_vm0, %v14532_v36 }
 0xcd0   : > { %v14533_v56 = vadd.f32 %v22370_v1, %v14430_v32 }
 0xcd2   : > { %14566 = vst.msk [vmem:[%s22375_s17 + $0x78] sm:$0xff] %vm14550_vm0, %v14533_v56 }
 0xcd5   : > { %v14435_v37 = vpop.xlane.xlu0 %14434 }
 0xcd6   : > { %v14534_v57 = vadd.f32 %v22370_v1, %v14435_v37 }
 0xcd7   : > { %v14440_v12 = vpop.xlane.xlu1 %14439 }
 0xcd8   : > { %14567 = vst.msk [vmem:[%s22375_s17 + $0x80] sm:$0xff] %vm14550_vm0, %v14534_v57  ;;  %v14535_v22 = vadd.f32 %v22370_v1, %v14440_v12 }
 0xcda   : > { %14568 = vst.msk [vmem:[%s22375_s17 + $0x88] sm:$0xff] %vm14550_vm0, %v14535_v22 }
 0xcdd   : > { %v14445_v9 = vpop.xlane.xlu0 %14444 }
 0xcde   : > { %v14536_v27 = vadd.f32 %v22370_v1, %v14445_v9 }
 0xcdf   : > { %v14450_v26 = vpop.xlane.xlu1 %14449 }
 0xce0   : > { %14569 = vst.msk [vmem:[%s22375_s17 + $0x90] sm:$0xff] %vm14550_vm0, %v14536_v27  ;;  %v14537_v18 = vadd.f32 %v22370_v1, %v14450_v26 }
 0xce2   : > { %14570 = vst.msk [vmem:[%s22375_s17 + $0x98] sm:$0xff] %vm14550_vm0, %v14537_v18 }
 0xce5   : > { %v14455_v25 = vpop.xlane.xlu0 %14454 }
 0xce6   : > { %v14538_v17 = vadd.f32 %v22370_v1, %v14455_v25 }
 0xce7   : > { %v14460_v31 = vpop.xlane.xlu1 %14459 }
 0xce8   : > { %14571 = vst.msk [vmem:[%s22375_s17 + $0xa0] sm:$0xff] %vm14550_vm0, %v14538_v17  ;;  %v14539_v59 = vadd.f32 %v22370_v1, %v14460_v31 }
 0xcea   : > { %14572 = vst.msk [vmem:[%s22375_s17 + $0xa8] sm:$0xff] %vm14550_vm0, %v14539_v59 }
 0xcec   : > { %v14465_v50 = vpop.xlane.xlu0 %14464 }
 0xced   : > { %v14540_v28 = vadd.f32 %v22370_v1, %v14465_v50 }
 0xcef   : > { %v14470_v58 = vpop.xlane.xlu1 %14469  ;;  %14573 = vst.msk [vmem:[%s22375_s17 + $0xb0] sm:$0xff] %vm14550_vm0, %v14540_v28 }
 0xcf0   : > { %v14541_v40 = vadd.f32 %v22370_v1, %v14470_v58 }
 0xcf2   : > { %14574 = vst.msk [vmem:[%s22375_s17 + $0xb8] sm:$0xff] %vm14550_vm0, %v14541_v40 }
 0xcf5   : > { %v14475_v35 = vpop.xlane.xlu0 %14474 }
 0xcf6   : > { %v14542_v60 = vadd.f32 %v22370_v1, %v14475_v35 }
 0xcf7   : > { %v14480_v43 = vpop.xlane.xlu1 %14479 }
 0xcf8   : > { %14575 = vst.msk [vmem:[%s22375_s17 + $0xc0] sm:$0xff] %vm14550_vm0, %v14542_v60  ;;  %v14543_v8 = vadd.f32 %v22370_v1, %v14480_v43 }
 0xcfa   : > { %14576 = vst.msk [vmem:[%s22375_s17 + $0xc8] sm:$0xff] %vm14550_vm0, %v14543_v8 }
 0xcfc   : > { %v14485_v63 = vpop.xlane.xlu0 %14484 }
 0xcfd   : > { %v14544_v5 = vadd.f32 %v22370_v1, %v14485_v63 }
 0xcff   : > { %v14490_v45 = vpop.xlane.xlu1 %14489  ;;  %14577 = vst.msk [vmem:[%s22375_s17 + $0xd0] sm:$0xff] %vm14550_vm0, %v14544_v5 }
 0xd00   : > { %v14545_v42 = vadd.f32 %v22370_v1, %v14490_v45 }
 0xd02   : > { %14578 = vst.msk [vmem:[%s22375_s17 + $0xd8] sm:$0xff] %vm14550_vm0, %v14545_v42 }
 0xd05   : > { %v14495_v30 = vpop.xlane.xlu0 %14494 }
 0xd06   : > { %v14546_v29 = vadd.f32 %v22370_v1, %v14495_v30 }
 0xd08   : > { %v14500_v0 = vpop.xlane.xlu1 %14499  ;;  %14579 = vst.msk [vmem:[%s22375_s17 + $0xe0] sm:$0xff] %vm14550_vm0, %v14546_v29 }
 0xd09   : > { %v14547_v19 = vadd.f32 %v22370_v1, %v14500_v0 }
 0xd0b   : > { %14580 = vst.msk [vmem:[%s22375_s17 + $0xe8] sm:$0xff] %vm14550_vm0, %v14547_v19 }
 0xd0c   : > { %v14505_v6 = vpop.xlane.xlu0 %14504 }
 0xd0d   : > { %v14548_v62 = vadd.f32 %v22370_v1, %v14505_v6 }
 0xd0e   : > { %v14510_v3 = vpop.xlane.xlu1 %14509 }
 0xd0f   : > { %14581 = vst.msk [vmem:[%s22375_s17 + $0xf0] sm:$0xff] %vm14550_vm0, %v14548_v62  ;;  %v14549_v47 = vadd.f32 %v22370_v1, %v14510_v3 }
 0xd11   : > { %14582 = vst.msk [vmem:[%s22375_s17 + $0xf8] sm:$0xff] %vm14550_vm0, %v14549_v47 }
 0xd12 PF: > { %p37_p5 = scmp.ge.s32.totalorder %s19853_s30, 4   ;;  %s22564_s23 = smov %s19443_s24 }
 0xd13   : > { %s22565_s24 = smov %s19447_s2  ;;  %s22566_s2 = smov %s19865_s13 }
 0xd14   : > { %s22567_s25 = smov %s19853_s30  ;;  %39 = sbr.rel (!%p37_p5) target bundleno = 24 (0x18), region = 180 }
 0xd1b   :  { %14605 = vsyncpa [#allocation4], 1 }
 0xd1c   :  { %14607 = vsyncpa [#allocation4 + $0x1], 1 }
 0xd1d   :  { %14608 = vsyncpa [#allocation6], 1 }
 0xd1e   :  { %14609 = vsyncpa [#allocation9], 1 }
 0xd1f   :  { %14610 = vsyncpa [#allocation12], 1 }
 0xd20   :  { %14611 = vsyncpa [#allocation15], 1 }
 0xd21   :  { %14612 = vsyncpa [#allocation18], 1 }

</bundles_post_ra>
